<compile_context>
chip_gen: v7x
topology: tpu7x:2x2x1
jax: 0.10.0
libtpu: 0.0.40
codegen_flags: <defaults>
</compile_context>

<pallas_src>
import functools
import math

import jax
import jax.numpy as jnp
from jax.experimental import pallas as pl
from jax.experimental.pallas import tpu as pltpu

# True-f32 matmuls everywhere (host-side weight folding, pure-JAX reference and
# the in-kernel f32 debug path) so the tight 2e-3 check below is meaningful.
# bf16-operand matmuls (the production path) are unaffected by this setting.
jax.config.update("jax_default_matmul_precision", "highest")


def _transformer_layer_kernel(num_heads, compute_dtype, approx_recip,
                              x_ref, wqkv_ref, bqkv_ref, wo_ref, bo_ref,
                              wff_ref, o_ref):
    x = x_ref[0]                                   # (L, C) f32, one batch element
    L, C = x.shape
    hd = C // num_heads

    # Fused projection: outer q/k/v Linears + MHA in_proj.  Bias and the
    # 1/sqrt(hd) softmax scale are folded into the weight/bias on the host, so
    # this is ONE lane-dense (L, C) @ (C, 3C) matmul (f32 accumulation).
    qkv = (jnp.dot(x.astype(compute_dtype), wqkv_ref[...],
                   preferred_element_type=jnp.float32)
           + bqkv_ref[...])                        # (L, 3C) f32

    # Single head relayout: (L, 3C) -> (L, 3H, hd) -> (3H, L, hd).
    # Replaces the previous 3H per-head lane gathers (jnp.stack of slices).
    qkvh = pltpu.einshape(
        "mhd->hmd", qkv.reshape(L, 3 * num_heads, hd)).astype(compute_dtype)
    q3 = qkvh[:num_heads]                          # (H, L, hd)
    k3 = qkvh[num_heads:2 * num_heads]             # (H, L, hd)
    v3 = qkvh[2 * num_heads:]                      # (H, L, hd)

    # Head-batched attention (softmax scale already folded into Q weight/bias).
    s = jnp.einsum('hqd,hkd->hqk', q3, k3,
                   preferred_element_type=jnp.float32)              # (H, L, L)
    s = s - jnp.max(s, axis=-1, keepdims=True)
    p = jnp.exp(s)
    p = p * pl.reciprocal(jnp.sum(p, axis=-1, keepdims=True),
                          approx=approx_recip)
    o3 = jnp.einsum('hqk,hkd->hqd', p.astype(compute_dtype), v3,
                    preferred_element_type=jnp.float32)             # (H, L, hd)

    # Out-projection with the head-concat folded into the (H, hd, C) weight:
    #   concat_h(o3[h]) @ Wo == sum_h (o3[h] @ Wo[h])
    # i.e. a head-batched MXU matmul + a cheap VPU sum over the leading head
    # axis; no (L, C) concat / lane scatter is ever materialized.
    attn = jnp.sum(
        jnp.einsum('hqd,hdc->hqc', o3.astype(compute_dtype), wo_ref[...],
                   preferred_element_type=jnp.float32),
        axis=0)                                                      # (L, C)
    x1 = attn + bo_ref[...] + x                    # first residual (f32)

    # Feed-forward with fc1/fc2 AND the second residual folded into one weight:
    #   fc2(fc1(x1)) + x1 == x1 @ (fc1^T fc2^T + I)
    x2 = jnp.dot(x1.astype(compute_dtype), wff_ref[...],
                 preferred_element_type=jnp.float32)

    o_ref[0] = x2.astype(o_ref.dtype)


def init_params(key, c):
    ks = jax.random.split(key, 9)
    scale = 0.05

    def w(k, shape):
        return jax.random.normal(k, shape, dtype=jnp.float32) * scale

    return {
        "wq": w(ks[0], (c, c)),             # nn.Linear weight (out, in)
        "wk": w(ks[1], (c, c)),
        "wv": w(ks[2], (c, c)),
        "in_proj_w": w(ks[3], (3 * c, c)),  # MHA in_proj_weight
        "in_proj_b": w(ks[4], (3 * c,)),    # MHA in_proj_bias
        "out_w": w(ks[5], (c, c)),          # MHA out_proj.weight
        "out_b": w(ks[6], (c,)),            # MHA out_proj.bias
        "fc1": w(ks[7], (c, c)),
        "fc2": w(ks[8], (c, c)),
    }


def _fuse_params(params, num_heads, compute_dtype):
    """One-time host-side algebraic folding (exact in f32; weights then cast to
    `compute_dtype` for the MXU, biases stay f32 since they are added to f32
    accumulations)."""
    c = params["wq"].shape[0]
    hd = c // num_heads
    scale = 1.0 / math.sqrt(hd)

    wqi, wki, wvi = jnp.split(params["in_proj_w"], 3, axis=0)   # each (C, C)
    bqi, bki, bvi = jnp.split(params["in_proj_b"], 3)           # each (C,)

    # scaled_q = ((x @ Wq^T) @ Wqi^T + bqi) * scale == x @ Wq_f + bq_f
    wq_f = (params["wq"].T @ wqi.T) * scale
    wk_f = params["wk"].T @ wki.T
    wv_f = params["wv"].T @ wvi.T
    w_qkv = jnp.concatenate([wq_f, wk_f, wv_f], axis=1)          # (C, 3C)
    b_qkv = jnp.concatenate([bqi * scale, bki, bvi])[None, :]    # (1, 3C)

    # Head-major out-projection weight (folds the head concat into the matmul).
    w_o = params["out_w"].T.reshape(num_heads, hd, c)            # (H, hd, C)
    b_o = params["out_b"][None, :]                               # (1, C)

    # NOTE: valid only because there is NO nonlinearity between fc1 and fc2 and
    # the residual add is linear:  fc2(fc1(x)) + x == x @ (fc1^T fc2^T + I).
    w_ff = params["fc1"].T @ params["fc2"].T + jnp.eye(c, dtype=jnp.float32)

    cd = compute_dtype
    return (w_qkv.astype(cd), b_qkv.astype(jnp.float32),
            w_o.astype(cd), b_o.astype(jnp.float32), w_ff.astype(cd))


def _build_call(N, L, C, num_heads, out_dtype, compute_dtype, approx_recip,
                single_buffer_weights):
    hd = C // num_heads
    x_spec = pl.BlockSpec((1, L, C), lambda n: (n, 0, 0))

    def w_spec(shape):
        # Grid-invariant weight/bias: the index_map never changes, so request a
        # single VMEM buffer (double-buffering it would only waste VMEM).
        index_map = lambda n: (0,) * len(shape)
        if single_buffer_weights:
            return pl.BlockSpec(shape, index_map, pipeline_mode=pl.Buffered(1))
        return pl.BlockSpec(shape, index_map)

    in_specs = [
        x_spec,                       # activations: one batch element per step
        w_spec((C, 3 * C)),           # fused QKV weight (softmax scale folded)
        w_spec((1, 3 * C)),           # fused QKV bias
        w_spec((num_heads, hd, C)),   # head-major out_proj weight
        w_spec((1, C)),               # out_proj bias
        w_spec((C, C)),               # folded fc1 @ fc2 + I (residual folded)
    ]
    return pl.pallas_call(
        functools.partial(_transformer_layer_kernel, num_heads, compute_dtype,
                          approx_recip),
        out_shape=jax.ShapeDtypeStruct((N, L, C), out_dtype),
        grid_spec=pl.GridSpec(grid=(N,), in_specs=in_specs, out_specs=x_spec),
        compiler_params=pltpu.CompilerParams(
            dimension_semantics=("parallel",),
            vmem_limit_bytes=32 * 1024 * 1024),
    )


def transformer_layer(x, params, num_heads, compute_dtype=jnp.bfloat16):
    """x: (L, N, C) in the PyTorch MultiheadAttention layout."""
    L, N, C = x.shape
    assert C % num_heads == 0
    xb = jnp.transpose(x, (1, 0, 2))                              # (N, L, C)

    fused = _fuse_params(params, num_heads, compute_dtype)
    # f32 debug path keeps the exact softmax reciprocal; bf16 production path
    # uses the EUP approx reciprocal (its error is far below bf16 rounding).
    approx_recip = compute_dtype != jnp.float32
    args = (xb,) + fused

    try:
        out = _build_call(N, L, C, num_heads, x.dtype, compute_dtype,
                          approx_recip, single_buffer_weights=True)(*args)
    except Exception:
        # pl.Buffered(1) (single-buffered grid-invariant weights) is not
        # supported by every jax build; fall back to default double-buffering.
        out = _build_call(N, L, C, num_heads, x.dtype, compute_dtype,
                          approx_recip, single_buffer_weights=False)(*args)

    return jnp.transpose(out, (1, 0, 2))                          # (L, N, C)


def transformer_layer_reference(x, params, num_heads):
    """Pure-JAX reference mirroring the PyTorch module with UNFUSED weights."""
    L, N, C = x.shape
    hd = C // num_heads
    scale = 1.0 / math.sqrt(hd)
    wqi, wki, wvi = jnp.split(params["in_proj_w"], 3, axis=0)
    bqi, bki, bvi = jnp.split(params["in_proj_b"], 3)

    q = x @ params["wq"].T
    k = x @ params["wk"].T
    v = x @ params["wv"].T
    qp = q @ wqi.T + bqi
    kp = k @ wki.T + bki
    vp = v @ wvi.T + bvi

    def heads(t):            # (L, N, C) -> (N, H, L, hd)
        return t.reshape(L, N, num_heads, hd).transpose(1, 2, 0, 3)

    qh, kh, vh = heads(qp), heads(kp), heads(vp)
    s = jnp.einsum('nhld,nhmd->nhlm', qh, kh) * scale
    p = jax.nn.softmax(s, axis=-1)
    o = jnp.einsum('nhlm,nhmd->nhld', p, vh)
    o = o.transpose(2, 0, 1, 3).reshape(L, N, C)
    attn = o @ params["out_w"].T + params["out_b"]
    x1 = attn + x
    return (x1 @ params["fc1"].T) @ params["fc2"].T + x1


if __name__ == "__main__":
    # C=128 so the embed dim is exactly one 128-lane vreg (lane-dense IO);
    # small L/N keep the demo fast.
    L, N, C, H = 16, 2, 128, 4       # seq, batch, channels, heads
    key = jax.random.PRNGKey(0)
    kx, kp = jax.random.split(key)
    x = jax.random.normal(kx, (L, N, C), dtype=jnp.float32)
    params = init_params(kp, C)

    y_ref = transformer_layer_reference(x, params, H)

    # Exact path (f32 matmul operands, exact softmax reciprocal): tight check,
    # so the folding / relayout / residual-fold are verified structurally.
    y_f32 = transformer_layer(x, params, num_heads=H, compute_dtype=jnp.float32)
    jax.block_until_ready(y_f32)
    assert y_f32.shape == (L, N, C)
    err_f32 = float(jnp.max(jnp.abs(y_f32 - y_ref)))
    assert err_f32 < 2e-3, f"f32 path max abs error too large: {err_f32}"

    # Production path (bf16 matmul operands, f32 accumulation + f32 softmax,
    # EUP approx reciprocal): tolerance governed by bf16 operand rounding.
    y_bf16 = transformer_layer(x, params, num_heads=H,
                               compute_dtype=jnp.bfloat16)
    jax.block_until_ready(y_bf16)
    assert y_bf16.shape == (L, N, C)
    err_bf16 = float(jnp.max(jnp.abs(y_bf16.astype(jnp.float32) - y_ref)))
    assert err_bf16 < 3e-2, f"bf16 path max abs error too large: {err_bf16}"

    print("KERNEL_OK")
</pallas_src>

<mosaic_0001>
module attributes {stable_mosaic.version = 11 : i64} {
  func.func @_transformer_layer_kernel(%arg0: i32, %arg1: memref<1x16x128xf32, #tpu.memory_space<vmem>>, %arg2: memref<128x384xf32, #tpu.memory_space<vmem>>, %arg3: memref<1x384xf32, #tpu.memory_space<vmem>>, %arg4: memref<4x32x128xf32, #tpu.memory_space<vmem>>, %arg5: memref<1x128xf32, #tpu.memory_space<vmem>>, %arg6: memref<128x128xf32, #tpu.memory_space<vmem>>, %arg7: memref<1x16x128xf32, #tpu.memory_space<vmem>>) attributes {dimension_semantics = [#tpu.dimension_semantics<parallel>], iteration_bounds = array<i64: 2>, scalar_prefetch = 0 : i64, scratch_operands = 0 : i64, tpu.core_type = #tpu.core_type<tc>, window_params = [{transform_indices = @transform_0, window_bounds = array<i64: 1, 16, 128>}, {pipeline_mode = #tpu.pipeline_mode<synchronous>, transform_indices = @transform_1, window_bounds = array<i64: 128, 384>}, {pipeline_mode = #tpu.pipeline_mode<synchronous>, transform_indices = @transform_2, window_bounds = array<i64: 1, 384>}, {pipeline_mode = #tpu.pipeline_mode<synchronous>, transform_indices = @transform_3, window_bounds = array<i64: 4, 32, 128>}, {pipeline_mode = #tpu.pipeline_mode<synchronous>, transform_indices = @transform_4, window_bounds = array<i64: 1, 128>}, {pipeline_mode = #tpu.pipeline_mode<synchronous>, transform_indices = @transform_5, window_bounds = array<i64: 128, 128>}, {transform_indices = @transform_6, window_bounds = array<i64: 1, 16, 128>}]} {
    %c0 = arith.constant 0 : index
    %c0_0 = arith.constant 0 : index
    %c0_1 = arith.constant 0 : index
    %0 = vector.load %arg1[%c0, %c0_0, %c0_1] : memref<1x16x128xf32, #tpu.memory_space<vmem>>, vector<1x16x128xf32>
    %1 = vector.shape_cast %0 : vector<1x16x128xf32> to vector<16x128xf32>
    %c0_2 = arith.constant 0 : index
    %c0_3 = arith.constant 0 : index
    %2 = vector.load %arg2[%c0_2, %c0_3] : memref<128x384xf32, #tpu.memory_space<vmem>>, vector<128x384xf32>
    %cst = arith.constant dense<0.000000e+00> : vector<16x384xf32>
    %3 = tpu.matmul %1, %2, %cst {dimension_numbers = #tpu.dot_dimension_numbers<[1], [0], [0], [1], [0, 0, 1, 1], [], []>, precision = #tpu.contract_precision<fp32>} : vector<16x128xf32>, vector<128x384xf32>, vector<16x384xf32> -> vector<16x384xf32>
    %c0_4 = arith.constant 0 : index
    %c0_5 = arith.constant 0 : index
    %4 = vector.load %arg3[%c0_4, %c0_5] : memref<1x384xf32, #tpu.memory_space<vmem>>, vector<1x384xf32>
    %5 = vector.broadcast %4 : vector<1x384xf32> to vector<16x384xf32>
    %6 = arith.addf %3, %5 : vector<16x384xf32>
    %7 = vector.shape_cast %6 : vector<16x384xf32> to vector<16x12x32xf32>
    %8 = tpu.transpose %7, [1, 0, 2] : vector<16x12x32xf32> -> vector<12x16x32xf32>
    %9 = vector.extract_strided_slice %8 {offsets = [0, 0, 0], sizes = [4, 16, 32], strides = [1, 1, 1]} : vector<12x16x32xf32> to vector<4x16x32xf32>
    %10 = vector.extract_strided_slice %8 {offsets = [4, 0, 0], sizes = [4, 16, 32], strides = [1, 1, 1]} : vector<12x16x32xf32> to vector<4x16x32xf32>
    %11 = vector.extract_strided_slice %8 {offsets = [8, 0, 0], sizes = [4, 16, 32], strides = [1, 1, 1]} : vector<12x16x32xf32> to vector<4x16x32xf32>
    "tpu.trace_start"() <{level = 10 : i32, message = "hqd,hkd->hqk"}> : () -> ()
    %cst_6 = arith.constant dense<0.000000e+00> : vector<4x16x16xf32>
    %12 = tpu.matmul %9, %10, %cst_6 {dimension_numbers = #tpu.dot_dimension_numbers<[2], [2], [1], [1], [0, 0, 0, 1, 1, 1], [0], [0]>, precision = #tpu.contract_precision<fp32>} : vector<4x16x32xf32>, vector<4x16x32xf32>, vector<4x16x16xf32> -> vector<4x16x16xf32>
    "tpu.trace_stop"() : () -> ()
    %cst_7 = arith.constant dense<0xFF800000> : vector<4x16xf32>
    %13 = vector.multi_reduction <maximumf>, %12, %cst_7 [2] : vector<4x16x16xf32> to vector<4x16xf32>
    %14 = vector.shape_cast %13 : vector<4x16xf32> to vector<4x16x1xf32>
    %15 = vector.broadcast %14 : vector<4x16x1xf32> to vector<4x16x16xf32>
    %16 = arith.subf %12, %15 : vector<4x16x16xf32>
    %17 = math.exp %16 : vector<4x16x16xf32>
    %cst_8 = arith.constant dense<0.000000e+00> : vector<4x16xf32>
    %18 = vector.multi_reduction <add>, %17, %cst_8 [2] : vector<4x16x16xf32> to vector<4x16xf32>
    %19 = vector.shape_cast %18 : vector<4x16xf32> to vector<4x16x1xf32>
    %20 = tpu.reciprocal %19 : vector<4x16x1xf32> -> vector<4x16x1xf32>
    %21 = vector.broadcast %20 : vector<4x16x1xf32> to vector<4x16x16xf32>
    %22 = arith.mulf %17, %21 : vector<4x16x16xf32>
    "tpu.trace_start"() <{level = 10 : i32, message = "hqk,hkd->hqd"}> : () -> ()
    %cst_9 = arith.constant dense<0.000000e+00> : vector<4x16x32xf32>
    %23 = tpu.matmul %22, %11, %cst_9 {dimension_numbers = #tpu.dot_dimension_numbers<[2], [1], [1], [2], [0, 0, 0, 1, 1, 2], [0], [0]>, precision = #tpu.contract_precision<fp32>} : vector<4x16x16xf32>, vector<4x16x32xf32>, vector<4x16x32xf32> -> vector<4x16x32xf32>
    "tpu.trace_stop"() : () -> ()
    %c0_10 = arith.constant 0 : index
    %c0_11 = arith.constant 0 : index
    %c0_12 = arith.constant 0 : index
    %24 = vector.load %arg4[%c0_10, %c0_11, %c0_12] : memref<4x32x128xf32, #tpu.memory_space<vmem>>, vector<4x32x128xf32>
    "tpu.trace_start"() <{level = 10 : i32, message = "hqd,hdc->hqc"}> : () -> ()
    %cst_13 = arith.constant dense<0.000000e+00> : vector<4x16x128xf32>
    %25 = tpu.matmul %23, %24, %cst_13 {dimension_numbers = #tpu.dot_dimension_numbers<[2], [1], [1], [2], [0, 0, 0, 1, 1, 2], [0], [0]>, precision = #tpu.contract_precision<fp32>} : vector<4x16x32xf32>, vector<4x32x128xf32>, vector<4x16x128xf32> -> vector<4x16x128xf32>
    "tpu.trace_stop"() : () -> ()
    %cst_14 = arith.constant dense<0.000000e+00> : vector<16x128xf32>
    %26 = vector.multi_reduction <add>, %25, %cst_14 [0] : vector<4x16x128xf32> to vector<16x128xf32>
    %c0_15 = arith.constant 0 : index
    %c0_16 = arith.constant 0 : index
    %27 = vector.load %arg5[%c0_15, %c0_16] : memref<1x128xf32, #tpu.memory_space<vmem>>, vector<1x128xf32>
    %28 = vector.broadcast %27 : vector<1x128xf32> to vector<16x128xf32>
    %29 = arith.addf %26, %28 : vector<16x128xf32>
    %30 = arith.addf %29, %1 : vector<16x128xf32>
    %c0_17 = arith.constant 0 : index
    %c0_18 = arith.constant 0 : index
    %31 = vector.load %arg6[%c0_17, %c0_18] : memref<128x128xf32, #tpu.memory_space<vmem>>, vector<128x128xf32>
    %cst_19 = arith.constant dense<0.000000e+00> : vector<16x128xf32>
    %32 = tpu.matmul %30, %31, %cst_19 {dimension_numbers = #tpu.dot_dimension_numbers<[1], [0], [0], [1], [0, 0, 1, 1], [], []>, precision = #tpu.contract_precision<fp32>} : vector<16x128xf32>, vector<128x128xf32>, vector<16x128xf32> -> vector<16x128xf32>
    %c0_20 = arith.constant 0 : index
    %c0_21 = arith.constant 0 : index
    %c0_22 = arith.constant 0 : index
    %33 = vector.load %arg7[%c0_20, %c0_21, %c0_22] : memref<1x16x128xf32, #tpu.memory_space<vmem>>, vector<1x16x128xf32>
    %34 = vector.shape_cast %33 : vector<1x16x128xf32> to vector<16x128xf32>
    %35 = vector.shape_cast %32 : vector<16x128xf32> to vector<1x16x128xf32>
    tpu.vector_store %arg7[%c0_20, %c0_21, %c0_22], %35 {strides = array<i32>} : memref<1x16x128xf32, #tpu.memory_space<vmem>>, vector<1x16x128xf32>,
    return
  }
  func.func @transform_0(%arg0: i32) -> (i32, i32, i32) {
    %c0_i32 = arith.constant 0 : i32
    %c0_i32_0 = arith.constant 0 : i32
    %c0_i32_1 = arith.constant 0 : i32
    return %arg0, %c0_i32, %c0_i32_0 : i32, i32, i32
  }
  func.func @transform_1(%arg0: i32) -> (i32, i32) {
    %c0_i32 = arith.constant 0 : i32
    %c0_i32_0 = arith.constant 0 : i32
    %c0_i32_1 = arith.constant 0 : i32
    return %c0_i32, %c0_i32_0 : i32, i32
  }
  func.func @transform_2(%arg0: i32) -> (i32, i32) {
    %c0_i32 = arith.constant 0 : i32
    %c0_i32_0 = arith.constant 0 : i32
    %c0_i32_1 = arith.constant 0 : i32
    return %c0_i32, %c0_i32_0 : i32, i32
  }
  func.func @transform_3(%arg0: i32) -> (i32, i32, i32) {
    %c0_i32 = arith.constant 0 : i32
    %c0_i32_0 = arith.constant 0 : i32
    %c0_i32_1 = arith.constant 0 : i32
    %c0_i32_2 = arith.constant 0 : i32
    return %c0_i32, %c0_i32_0, %c0_i32_1 : i32, i32, i32
  }
  func.func @transform_4(%arg0: i32) -> (i32, i32) {
    %c0_i32 = arith.constant 0 : i32
    %c0_i32_0 = arith.constant 0 : i32
    %c0_i32_1 = arith.constant 0 : i32
    return %c0_i32, %c0_i32_0 : i32, i32
  }
  func.func @transform_5(%arg0: i32) -> (i32, i32) {
    %c0_i32 = arith.constant 0 : i32
    %c0_i32_0 = arith.constant 0 : i32
    %c0_i32_1 = arith.constant 0 : i32
    return %c0_i32, %c0_i32_0 : i32, i32
  }
  func.func @transform_6(%arg0: i32) -> (i32, i32, i32) {
    %c0_i32 = arith.constant 0 : i32
    %c0_i32_0 = arith.constant 0 : i32
    %c0_i32_1 = arith.constant 0 : i32
    return %arg0, %c0_i32, %c0_i32_0 : i32, i32, i32
  }
}

module attributes {stable_mosaic.version = 11 : i64} {
  func.func @_transformer_layer_kernel(%arg0: i32, %arg1: memref<1x16x128xf32, #tpu.memory_space<vmem>>, %arg2: memref<128x384xf32, #tpu.memory_space<vmem>>, %arg3: memref<1x384xf32, #tpu.memory_space<vmem>>, %arg4: memref<4x32x128xf32, #tpu.memory_space<vmem>>, %arg5: memref<1x128xf32, #tpu.memory_space<vmem>>, %arg6: memref<128x128xf32, #tpu.memory_space<vmem>>, %arg7: memref<1x16x128xf32, #tpu.memory_space<vmem>>) attributes {dimension_semantics = [#tpu.dimension_semantics<parallel>], iteration_bounds = array<i64: 2>, scalar_prefetch = 0 : i64, scratch_operands = 0 : i64, tpu.core_type = #tpu.core_type<tc>, window_params = [{transform_indices = @transform_0, window_bounds = array<i64: 1, 16, 128>}, {pipeline_mode = #tpu.pipeline_mode<synchronous>, transform_indices = @transform_1, window_bounds = array<i64: 128, 384>}, {pipeline_mode = #tpu.pipeline_mode<synchronous>, transform_indices = @transform_2, window_bounds = array<i64: 1, 384>}, {pipeline_mode = #tpu.pipeline_mode<synchronous>, transform_indices = @transform_3, window_bounds = array<i64: 4, 32, 128>}, {pipeline_mode = #tpu.pipeline_mode<synchronous>, transform_indices = @transform_4, window_bounds = array<i64: 1, 128>}, {pipeline_mode = #tpu.pipeline_mode<synchronous>, transform_indices = @transform_5, window_bounds = array<i64: 128, 128>}, {transform_indices = @transform_6, window_bounds = array<i64: 1, 16, 128>}]} {
    %c0 = arith.constant 0 : index
    %c0_0 = arith.constant 0 : index
    %c0_1 = arith.constant 0 : index
    %0 = vector.load %arg1[%c0, %c0_0, %c0_1] : memref<1x16x128xf32, #tpu.memory_space<vmem>>, vector<1x16x128xf32>
    %1 = vector.shape_cast %0 : vector<1x16x128xf32> to vector<16x128xf32>
    %c0_2 = arith.constant 0 : index
    %c0_3 = arith.constant 0 : index
    %2 = vector.load %arg2[%c0_2, %c0_3] : memref<128x384xf32, #tpu.memory_space<vmem>>, vector<128x384xf32>
    %cst = arith.constant dense<0.000000e+00> : vector<16x384xf32>
    %3 = tpu.matmul %1, %2, %cst {dimension_numbers = #tpu.dot_dimension_numbers<[1], [0], [0], [1], [0, 0, 1, 1], [], []>, precision = #tpu.contract_precision<fp32>} : vector<16x128xf32>, vector<128x384xf32>, vector<16x384xf32> -> vector<16x384xf32>
    %c0_4 = arith.constant 0 : index
    %c0_5 = arith.constant 0 : index
    %4 = vector.load %arg3[%c0_4, %c0_5] : memref<1x384xf32, #tpu.memory_space<vmem>>, vector<1x384xf32>
    %5 = vector.broadcast %4 : vector<1x384xf32> to vector<16x384xf32>
    %6 = arith.addf %3, %5 : vector<16x384xf32>
    %7 = vector.shape_cast %6 : vector<16x384xf32> to vector<16x12x32xf32>
    %8 = tpu.transpose %7, [1, 0, 2] : vector<16x12x32xf32> -> vector<12x16x32xf32>
    %9 = vector.extract_strided_slice %8 {offsets = [0, 0, 0], sizes = [4, 16, 32], strides = [1, 1, 1]} : vector<12x16x32xf32> to vector<4x16x32xf32>
    %10 = vector.extract_strided_slice %8 {offsets = [4, 0, 0], sizes = [4, 16, 32], strides = [1, 1, 1]} : vector<12x16x32xf32> to vector<4x16x32xf32>
    %11 = vector.extract_strided_slice %8 {offsets = [8, 0, 0], sizes = [4, 16, 32], strides = [1, 1, 1]} : vector<12x16x32xf32> to vector<4x16x32xf32>
    "tpu.trace_start"() <{level = 10 : i32, message = "hqd,hkd->hqk"}> : () -> ()
    %cst_6 = arith.constant dense<0.000000e+00> : vector<4x16x16xf32>
    %12 = tpu.matmul %9, %10, %cst_6 {dimension_numbers = #tpu.dot_dimension_numbers<[2], [2], [1], [1], [0, 0, 0, 1, 1, 1], [0], [0]>, precision = #tpu.contract_precision<fp32>} : vector<4x16x32xf32>, vector<4x16x32xf32>, vector<4x16x16xf32> -> vector<4x16x16xf32>
    "tpu.trace_stop"() : () -> ()
    %cst_7 = arith.constant dense<0xFF800000> : vector<4x16xf32>
    %13 = vector.multi_reduction <maximumf>, %12, %cst_7 [2] : vector<4x16x16xf32> to vector<4x16xf32>
    %14 = vector.shape_cast %13 : vector<4x16xf32> to vector<4x16x1xf32>
    %15 = vector.broadcast %14 : vector<4x16x1xf32> to vector<4x16x16xf32>
    %16 = arith.subf %12, %15 : vector<4x16x16xf32>
    %17 = math.exp %16 : vector<4x16x16xf32>
    %cst_8 = arith.constant dense<0.000000e+00> : vector<4x16xf32>
    %18 = vector.multi_reduction <add>, %17, %cst_8 [2] : vector<4x16x16xf32> to vector<4x16xf32>
    %19 = vector.shape_cast %18 : vector<4x16xf32> to vector<4x16x1xf32>
    %20 = tpu.reciprocal %19 : vector<4x16x1xf32> -> vector<4x16x1xf32>
    %21 = vector.broadcast %20 : vector<4x16x1xf32> to vector<4x16x16xf32>
    %22 = arith.mulf %17, %21 : vector<4x16x16xf32>
    "tpu.trace_start"() <{level = 10 : i32, message = "hqk,hkd->hqd"}> : () -> ()
    %cst_9 = arith.constant dense<0.000000e+00> : vector<4x16x32xf32>
    %23 = tpu.matmul %22, %11, %cst_9 {dimension_numbers = #tpu.dot_dimension_numbers<[2], [1], [1], [2], [0, 0, 0, 1, 1, 2], [0], [0]>, precision = #tpu.contract_precision<fp32>} : vector<4x16x16xf32>, vector<4x16x32xf32>, vector<4x16x32xf32> -> vector<4x16x32xf32>
    "tpu.trace_stop"() : () -> ()
    %c0_10 = arith.constant 0 : index
    %c0_11 = arith.constant 0 : index
    %c0_12 = arith.constant 0 : index
    %24 = vector.load %arg4[%c0_10, %c0_11, %c0_12] : memref<4x32x128xf32, #tpu.memory_space<vmem>>, vector<4x32x128xf32>
    "tpu.trace_start"() <{level = 10 : i32, message = "hqd,hdc->hqc"}> : () -> ()
    %cst_13 = arith.constant dense<0.000000e+00> : vector<4x16x128xf32>
    %25 = tpu.matmul %23, %24, %cst_13 {dimension_numbers = #tpu.dot_dimension_numbers<[2], [1], [1], [2], [0, 0, 0, 1, 1, 2], [0], [0]>, precision = #tpu.contract_precision<fp32>} : vector<4x16x32xf32>, vector<4x32x128xf32>, vector<4x16x128xf32> -> vector<4x16x128xf32>
    "tpu.trace_stop"() : () -> ()
    %cst_14 = arith.constant dense<0.000000e+00> : vector<16x128xf32>
    %26 = vector.multi_reduction <add>, %25, %cst_14 [0] : vector<4x16x128xf32> to vector<16x128xf32>
    %c0_15 = arith.constant 0 : index
    %c0_16 = arith.constant 0 : index
    %27 = vector.load %arg5[%c0_15, %c0_16] : memref<1x128xf32, #tpu.memory_space<vmem>>, vector<1x128xf32>
    %28 = vector.broadcast %27 : vector<1x128xf32> to vector<16x128xf32>
    %29 = arith.addf %26, %28 : vector<16x128xf32>
    %30 = arith.addf %29, %1 : vector<16x128xf32>
    %c0_17 = arith.constant 0 : index
    %c0_18 = arith.constant 0 : index
    %31 = vector.load %arg6[%c0_17, %c0_18] : memref<128x128xf32, #tpu.memory_space<vmem>>, vector<128x128xf32>
    %cst_19 = arith.constant dense<0.000000e+00> : vector<16x128xf32>
    %32 = tpu.matmul %30, %31, %cst_19 {dimension_numbers = #tpu.dot_dimension_numbers<[1], [0], [0], [1], [0, 0, 1, 1], [], []>, precision = #tpu.contract_precision<fp32>} : vector<16x128xf32>, vector<128x128xf32>, vector<16x128xf32> -> vector<16x128xf32>
    %c0_20 = arith.constant 0 : index
    %c0_21 = arith.constant 0 : index
    %c0_22 = arith.constant 0 : index
    %33 = vector.load %arg7[%c0_20, %c0_21, %c0_22] : memref<1x16x128xf32, #tpu.memory_space<vmem>>, vector<1x16x128xf32>
    %34 = vector.shape_cast %33 : vector<1x16x128xf32> to vector<16x128xf32>
    %35 = vector.shape_cast %32 : vector<16x128xf32> to vector<1x16x128xf32>
    tpu.vector_store %arg7[%c0_20, %c0_21, %c0_22], %35 {strides = array<i32>} : memref<1x16x128xf32, #tpu.memory_space<vmem>>, vector<1x16x128xf32>,
    return
  }
  func.func @transform_0(%arg0: i32) -> (i32, i32, i32) {
    %c0_i32 = arith.constant 0 : i32
    %c0_i32_0 = arith.constant 0 : i32
    %c0_i32_1 = arith.constant 0 : i32
    return %arg0, %c0_i32, %c0_i32_0 : i32, i32, i32
  }
  func.func @transform_1(%arg0: i32) -> (i32, i32) {
    %c0_i32 = arith.constant 0 : i32
    %c0_i32_0 = arith.constant 0 : i32
    %c0_i32_1 = arith.constant 0 : i32
    return %c0_i32, %c0_i32_0 : i32, i32
  }
  func.func @transform_2(%arg0: i32) -> (i32, i32) {
    %c0_i32 = arith.constant 0 : i32
    %c0_i32_0 = arith.constant 0 : i32
    %c0_i32_1 = arith.constant 0 : i32
    return %c0_i32, %c0_i32_0 : i32, i32
  }
  func.func @transform_3(%arg0: i32) -> (i32, i32, i32) {
    %c0_i32 = arith.constant 0 : i32
    %c0_i32_0 = arith.constant 0 : i32
    %c0_i32_1 = arith.constant 0 : i32
    %c0_i32_2 = arith.constant 0 : i32
    return %c0_i32, %c0_i32_0, %c0_i32_1 : i32, i32, i32
  }
  func.func @transform_4(%arg0: i32) -> (i32, i32) {
    %c0_i32 = arith.constant 0 : i32
    %c0_i32_0 = arith.constant 0 : i32
    %c0_i32_1 = arith.constant 0 : i32
    return %c0_i32, %c0_i32_0 : i32, i32
  }
  func.func @transform_5(%arg0: i32) -> (i32, i32) {
    %c0_i32 = arith.constant 0 : i32
    %c0_i32_0 = arith.constant 0 : i32
    %c0_i32_1 = arith.constant 0 : i32
    return %c0_i32, %c0_i32_0 : i32, i32
  }
  func.func @transform_6(%arg0: i32) -> (i32, i32, i32) {
    %c0_i32 = arith.constant 0 : i32
    %c0_i32_0 = arith.constant 0 : i32
    %c0_i32_1 = arith.constant 0 : i32
    return %arg0, %c0_i32, %c0_i32_0 : i32, i32, i32
  }
}

</mosaic_0001>

<bundles_post_ra>
// kernel: tpu_custom_call.1
= control target key start
LH: loop header
LB: loop body
LE: loop exit
PB: predicated region body
PF: predicated region fallthrough
CT: control target
= control target key end

     0   :  { %s15303_s0 = inlined_call_operand.hbm [shape: f32[2,16,128], index: 0, kind: input, shape index: {}]   ;;  %s15304_s1 = inlined_call_operand.hbm [shape: f32[128,384], index: 1, kind: input, shape index: {}]   ;;  %s15305_s2 = inlined_call_operand.vmem [shape: f32[1,384], index: 2, kind: input, shape index: {}]   ;;  %s15306_s3 = inlined_call_operand.hbm [shape: f32[4,32,128], index: 3, kind: input, shape index: {}]   ;;  %s15307_s4 = inlined_call_operand.vmem [shape: f32[1,128], index: 4, kind: input, shape index: {}]   ;;  %s15308_s5 = inlined_call_operand.hbm [shape: f32[128,128], index: 5, kind: input, shape index: {}]   ;;  %s15309_s6 = inlined_call_operand.hbm [shape: f32[2,16,128], index: 6, kind: output, shape index: {}]  }
   0x1   :  { %15410 = sst [smem:[#allocation48_spill]] %s15304_s1 }
   0x2   :  { %11 = vsyncpa [#allocation3], 0 }
   0x3   :  { %13 = vsyncpa [#allocation3 + $0x1], 0 }
   0x4   :  { %14 = vsyncpa [#allocation6], 0 }
   0x5   :  { %15 = vsyncpa [#allocation9], 0 }
   0x6   :  { %16 = vsyncpa [#allocation4], 0 }
   0x7   :  { %18 = vsyncpa [#allocation4 + $0x1], 0  ;;  %s13122_s21 = smov 0   ;;  %s13124_s22 = smov 0  }
   0x8   :  { %s13126_s23 = smov 0   ;;  %s13128_s24 = smov 0  }
   0x9 LB: > { %s13143_s25 = sadd.s32 4294967295, %s13068_s24   ;;  %s10010_s26 = sadd.s32 4294967294, %s13068_s24   ;;  %s13068_s24 = sphi %s13128_s24, %s15555_s24   ;;  %s13064_s23 = sphi %s13126_s23, %s15554_s23   ;;  %s13060_s22 = sphi %s13124_s22, %s15553_s22   ;;  %s13056_s21 = sphi %s13122_s21, %s15552_s21  }
   0xa   : > { %p44_p0 = scmp.ne.s32.totalorder %s13060_s22, %s13056_s21  ;;  %p15310_p1 = scmp.eq.s32.totalorder %s13143_s25, 0 }
   0xb   : > { %p179_p3 = scmp.eq.s32.totalorder %s10010_s26, 1  ;;  %p10011_p5 = scmp.ge.s32.totalorder %s13068_s24, 1 }
   0xc   : > { %p13152_p4 = por %p15310_p1, %p44_p0  ;;  %p186_p7 = scmp.lt.s32.totalorder %s13068_s24, 3 }
   0xd   : > { %p13157_p6 = por %p179_p3, %p44_p0  ;;  %s13070_s30 = smov [#allocation5]  }
   0xe   : > { %s15411_s27 = scalar_select %p13152_p4, 1, 0 }
   0xf   : > { %s15412_s28 = scalar_select %p13157_p6, 1, 0 }
  0x10   : > { %p13162_p8 = pnand %p10011_p5, %p186_p7  ;;  %s198_s7 = sshll.u32 %s13070_s30, 4  ;;  %s13166_s7 = int_to_ptr.vmem [resolvable:$true] %s198_s7 }
  0x11   : > { %s13071_s9 = smov [#allocation7]   ;;  %s15415_s1 = sld [smem:[#allocation48_spill]] }
  0x12   : > { %s15413_s29 = scalar_select %p13162_p8, 1, 0 }
  0x13   : > { %p12773_p9 = pneg %p13162_p8  ;;  %s214_s10 = sshll.u32 %s13071_s9, 4  ;;  %s13177_s10 = int_to_ptr.vmem [resolvable:$true] %s214_s10 }
  0x15   : > { %p13173_p11 = pnand %p12773_p9, %p15310_p1 }
  0x17   : > { %s12880_s13 = scalar_lea.hbm %s15415_s1, 6144  ;;  %p13187_p13 = pneg %p13173_p11 }
  0x18   : > { %p12881_p12 = scmp.ne.s32.totalorder %s15415_s1, %s12880_s13  ;;  %p12887_p5 = scmp.lt.u32.totalorder %s12880_s13, %s15415_s1 }
  0x1a   : > { %p12883_p0 = pnand %p13187_p13, %p12881_p12 }
  0x1c   : > { %p12884_p3 = pneg %p12883_p0 }
  0x1e   : > { %p12889_p7 = pnand %p12887_p5, %p12884_p3 }
  0x20   : > { %12892 = shalt.err (!%p12889_p7)
}
  0x21   : > { %s12893_s19 = scalar_lea.vmem %s13166_s7, 6144  ;;  %p12901_p2 = scmp.lt.s32.totalorder %s13166_s7, %s13166_s7 }
  0x22   : > { %p12894_p9 = scmp.ne.s32.totalorder %s13166_s7, %s12893_s19  ;;  %p12902_p6 = scmp.lt.s32.totalorder %s12893_s19, %s12893_s19 }
  0x24   : > { %p12896_p10 = pnand %p12894_p9, %p13187_p13  ;;  %p12903_p12 = por %p12902_p6, %p12901_p2 }
  0x26   : > { %p12897_p1 = pneg %p12896_p10 }
  0x28   : > { %p12904_p0 = pnand %p12903_p12, %p12897_p1 }
  0x2a   : > { %12907 = shalt.err (!%p12904_p0)
}
  0x2b   : > { %s13072_s20 = smov 384   ;;  %s13073_s26 = smov 24  }
  0x2c   : > { %12776 = dma.hbm_to_vmem [thread:$0]  (!%p13173_p11), %s15415_s1, 6144, %s13166_s7, [#allocation6], %s13072_s20, %s13072_s20, %s13073_s26  }
  0x2d   : > { %s12908_s13 = scalar_lea.hbm %s15306_s3, 2048 }
  0x2e   : > { %p12909_p2 = scmp.ne.s32.totalorder %s15306_s3, %s12908_s13  ;;  %p12915_p10 = scmp.lt.u32.totalorder %s12908_s13, %s15306_s3 }
  0x30   : > { %p12911_p1 = pnand %p12909_p2, %p13187_p13 }
  0x32   : > { %p12912_p6 = pneg %p12911_p1 }
  0x34   : > { %p12917_p3 = pnand %p12915_p10, %p12912_p6 }
  0x36   : > { %12920 = shalt.err (!%p12917_p3)
}
  0x37   : > { %s12921_s7 = scalar_lea.vmem %s13177_s10, 2048  ;;  %p12929_p12 = scmp.lt.s32.totalorder %s13177_s10, %s13177_s10 }
  0x38   : > { %p12922_p5 = scmp.ne.s32.totalorder %s13177_s10, %s12921_s7  ;;  %p12930_p0 = scmp.lt.s32.totalorder %s12921_s7, %s12921_s7 }
  0x3a   : > { %p12924_p7 = pnand %p12922_p5, %p13187_p13  ;;  %p12931_p2 = por %p12930_p0, %p12929_p12 }
  0x3c   : > { %p12925_p9 = pneg %p12924_p7 }
  0x3e   : > { %p12932_p1 = pnand %p12931_p2, %p12925_p9 }
  0x40   : > { %12935 = shalt.err (!%p12932_p1)
}
  0x41   : > { %s13074_s19 = smov 128   ;;  %s13075_s20 = smov 8  }
  0x42   : > { %12779 = dma.hbm_to_vmem [thread:$0]  (!%p13173_p11), %s15306_s3, 2048, %s13177_s10, [#allocation6], %s13074_s19, %s13074_s19, %s13075_s20  }
  0x43   : > { %s13076_s9 = smov [#allocation8]   ;;  %s13235_s12 = sadd.s32 1, %s13068_s24  }
  0x44   : > { %s230_s11 = sshll.u32 %s13076_s9, 4  ;;  %s12936_s15 = scalar_lea.hbm %s15308_s5, 2048  ;;  %s231_s11 = int_to_ptr.vmem [resolvable:$true] %s230_s11 }
  0x45   : > { %p12937_p6 = scmp.ne.s32.totalorder %s15308_s5, %s12936_s15  ;;  %p12943_p5 = scmp.lt.u32.totalorder %s12936_s15, %s15308_s5 }
  0x47   : > { %p12939_p10 = pnand %p12937_p6, %p13187_p13 }
  0x49   : > { %p12940_p3 = pneg %p12939_p10 }
  0x4b   : > { %p12945_p7 = pnand %p12943_p5, %p12940_p3 }
  0x4d   : > { %12948 = shalt.err (!%p12945_p7)
}
  0x4e   : > { %s12949_s10 = scalar_lea.vmem %s231_s11, 2048  ;;  %p12957_p2 = scmp.lt.s32.totalorder %s231_s11, %s231_s11 }
  0x4f   : > { %p12950_p9 = scmp.ne.s32.totalorder %s231_s11, %s12949_s10  ;;  %p12958_p1 = scmp.lt.s32.totalorder %s12949_s10, %s12949_s10 }
  0x51   : > { %p12952_p12 = pnand %p12950_p9, %p13187_p13  ;;  %p12959_p4 = por %p12958_p1, %p12957_p2 }
  0x53   : > { %p12953_p0 = pneg %p12952_p12 }
  0x55   : > { %p12960_p8 = pnand %p12959_p4, %p12953_p0 }
  0x57   : > { %12963 = shalt.err (!%p12960_p8)
}
  0x58   : > { %12782 = dma.hbm_to_vmem [thread:$0]  (!%p13173_p11), %s15308_s5, 2048, %s231_s11, [#allocation9], %s13074_s19, %s13074_s19, %s13075_s20  }
  0x59   : > { %s28_s16 = ssub.s32 %s13068_s24, %s13235_s12  ;;  %s31_s8 = sadd.s32 1, %s13064_s23 }
  0x5a   : > { %p29_p4 = scmp.eq.s32.totalorder %s28_s16, 0  ;;  %p38_p8 = scmp.ne.s32.totalorder %s13064_s23, %s13060_s22 }
  0x5b   : > { %p39_p13 = scmp.eq.s32.totalorder %s13068_s24, 0  ;;  %p12794_p6 = scmp.lt.s32.totalorder %s13068_s24, 2 }
  0x5c   : > { %s13266_s30 = scalar_select %p29_p4, %s13064_s23, %s31_s8  }
  0x5d   : > { %p40_p10 = por %p39_p13, %p38_p8  ;;  %p15417_p3 = scmp.eq.s32.totalorder %s13143_s25, 1 }
  0x5e   : > { %s244_s13 = sand.u32 1, %s13064_s23   ;;  %s10051_s14 = sshll.u32 %s13068_s24, 8 }
  0x5f   : > { %p13270_p5 = por %p15417_p3, %p38_p8  ;;  %s10016_s15 = sshll.u32 %s244_s13, 4 }
  0x60   : > { %s13279_s11 = scalar_lea.hbm %s15303_s0, %s10051_s14  ;;  %s248_s7 = scalar_lea.vmem [#allocation2], %s10016_s15 }
  0x61   : > { %s255_s10 = sshll.u32 %s248_s7, 4  ;;  %p13281_p11 = pnand %p12794_p6, %p40_p10  ;;  %s13285_s10 = int_to_ptr.vmem [resolvable:$true] %s255_s10 }
  0x62   : > { %s13287_s26 = scalar_lea.sflag [#allocation3], %s244_s13  ;;  %s12964_s16 = scalar_lea.hbm %s13279_s11, 256 }
  0x63   : > { %p12965_p7 = scmp.ne.s32.totalorder %s13279_s11, %s12964_s16  ;;  %p12966_p9 = pneg %p13281_p11 }
  0x64   : > { %s12969_s15 = scalar_lea.hbm %s15303_s0, 512  ;;  %p12970_p2 = scmp.lt.u32.totalorder %s13279_s11, %s15303_s0 }
  0x65   : > { %p12967_p12 = pnand %p12966_p9, %p12965_p7  ;;  %p12971_p1 = scmp.lt.u32.totalorder %s12969_s15, %s12964_s16 }
  0x66   : > { %p12973_p8 = scmp.lt.u32.totalorder %s12964_s16, %s13279_s11 }
  0x67   : > { %p12968_p0 = pneg %p12967_p12  ;;  %p12972_p4 = por %p12971_p1, %p12970_p2 }
  0x69   : > { %p12974_p13 = por %p12973_p8, %p12972_p4 }
  0x6b   : > { %p12975_p6 = pnand %p12974_p13, %p12968_p0 }
  0x6d   : > { %12978 = shalt.err (!%p12975_p6)
}
  0x6e   : > { %s12979_s13 = scalar_lea.vmem %s13285_s10, 256  ;;  %s13077_s7 = smov [#allocation2]  }
  0x6f   : > { %p12980_p10 = scmp.ne.s32.totalorder %s13285_s10, %s12979_s13  ;;  %s12984_s8 = sshll.u32 %s13077_s7, 4  ;;  %s12985_s8 = int_to_ptr.vmem [resolvable:$false] %s12984_s8 }
  0x70   : > { %s12986_s14 = scalar_lea.vmem %s12985_s8, 512  ;;  %p12987_p12 = scmp.lt.s32.totalorder %s13285_s10, %s12985_s8 }
  0x71   : > { %p12982_p3 = pnand %p12980_p10, %p12966_p9  ;;  %p12988_p2 = scmp.lt.s32.totalorder %s12986_s14, %s12979_s13 }
  0x73   : > { %p12983_p7 = pneg %p12982_p3  ;;  %p12989_p1 = por %p12988_p2, %p12987_p12 }
  0x75   : > { %p12990_p4 = pnand %p12989_p1, %p12983_p7 }
  0x77   : > { %12993 = shalt.err (!%p12990_p4)
}
  0x78   : > { %12786 = dma.hbm_to_vmem [thread:$0]  (!%p13281_p11), %s13279_s11, 256, %s13285_s10, %s13287_s26, %s13074_s19, %s13074_s19, %s13075_s20  }
  0x79   : > { %p15420_p9 = scmp.ne.s32.totalorder %s15413_s29, 0 }
  0x7b   : > { %267 = sbr.rel (%p15420_p9) target bundleno = 2442 (0x98a), region = 44 }
  0x82   : > { %s13321_s16 = sand.u32 1, %s13060_s22   ;;  %p15421_p0 = scmp.ne.s32.totalorder %s15411_s27, 0 }
  0x83   : > { %s10020_s15 = sshll.u32 %s13321_s16, 4  ;;  %s270_s17 = scalar_lea.sflag [#allocation3], %s13321_s16 }
  0x84   : > { %s13327_s1 = scalar_lea.vmem [#allocation2], %s10020_s15 }
  0x85   : > { %13039 = dma.done.wait (%p15421_p0), %s270_s17, 256  }
  0x86   : > { %13041 = vsyncadd (%p15421_p0), %s270_s17, 4294967040  ;;  %p15422_p11 = scmp.eq.s32.totalorder %s13143_s25, 0 }
  0x88   : > { %13043 = dma.done.wait (%p15422_p11), [#allocation6], 8192   ;;  %p15423_p8 = pmov %p15422_p11 }
  0x8a   : > { %13045 = vsyncadd (%p15423_p8), [#allocation6], 4294959104  ;;  %p15424_p13 = pmov %p15423_p8 }
  0x8b   : > { %p15425_p6 = pmov %p15423_p8 }
  0x8c   : > { %13047 = dma.done.wait (%p15424_p13), [#allocation9], 2048  }
  0x8d   : > { %13049 = vsyncadd (%p15425_p6), [#allocation9], 4294965248  ;;  %v15315_v0 = vmov 0.0   ;;  %v317_v1 = vld [vmem:[#allocation5 + $0x8] sm:$0xff]  ;;  %v320_v2 = vld [vmem:[#allocation5 + $0x20] sm:$0xff]  ;;  %s13079_s19 = smov 64  }
  0x8e   : > { %477 = vmatprep.mubr.f32.mxu0 %v15315_v0  ;;  %v316_v3 = vld [vmem:[#allocation5] sm:$0xff]  ;;  %v381_v4 = vand.u32 4294901760, %v317_v1  ;;  %v385_v5 = vand.u32 4294901760, %v320_v2  ;;  %v319_v6 = vld [vmem:[#allocation5 + $0x18] sm:$0xff]  ;;  %v326_v9 = vld [vmem:[#allocation5 + $0x50] sm:$0xff]  ;;  %s13080_s20 = smov 96  }
  0x8f   : > { %v383_v7 = vand.u32 4294901760, %v316_v3  ;;  %v323_v8 = vld [vmem:[#allocation5 + $0x38] sm:$0xff]  ;;  %v387_v10 = vand.u32 4294901760, %v319_v6  ;;  %v393_v12 = vand.u32 4294901760, %v326_v9  ;;  %v322_v13 = vld [vmem:[#allocation5 + $0x30] sm:$0xff]  ;;  %v325_v14 = vld [vmem:[#allocation5 + $0x48] sm:$0xff] }
  0x90   : > { %v389_v11 = vand.u32 4294901760, %v323_v8  ;;  %v329_v15 = vld [vmem:[#allocation5 + $0x68] sm:$0xff]  ;;  %v13342_v16 = vpack.c.bf16 %v385_v5, %v381_v4  ;;  %v332_v17 = vld [vmem:[#allocation5 + $0x80] sm:$0xff]  ;;  %v331_v19 = vld [vmem:[#allocation5 + $0x78] sm:$0xff]  ;;  %v391_v23 = vand.u32 4294901760, %v322_v13  ;;  %v395_v24 = vand.u32 4294901760, %v325_v14 }
  0x91   : > { %v328_v18 = vld [vmem:[#allocation5 + $0x60] sm:$0xff]  ;;  %v13344_v20 = vpack.c.bf16 %v387_v10, %v383_v7  ;;  %v335_v22 = vld [vmem:[#allocation5 + $0x98] sm:$0xff]  ;;  %v397_v25 = vand.u32 4294901760, %v329_v15  ;;  %v401_v26 = vand.u32 4294901760, %v332_v17  ;;  %v403_v28 = vand.u32 4294901760, %v331_v19  ;;  %v338_v29 = vld [vmem:[#allocation5 + $0xb0] sm:$0xff] }
  0x92   : > { %15426 = vst [vmem:[#allocation15_spill] sm:$0xff] %v13342_v16  ;;  %v13346_v21 = vpack.c.bf16 %v393_v12, %v389_v11  ;;  %11626 = vmatprep.subr.bf16.mxu0 %v13342_v16  ;;  %v399_v27 = vand.u32 4294901760, %v328_v18  ;;  %v334_v30 = vld [vmem:[#allocation5 + $0x90] sm:$0xff]  ;;  %v13350_v31 = vsub.f32 %v317_v1, %v381_v4  ;;  %v13353_v32 = vpack.c.bf16 %v395_v24, %v391_v23  ;;  %v337_v34 = vld [vmem:[#allocation5 + $0xa8] sm:$0xff]  ;;  %v344_v40 = vld [vmem:[#allocation5 + $0xe0] sm:$0xff]  ;;  %s13081_s11 = smov 32  }
  0x93   : > { %15427 = vst [vmem:[#allocation16_spill] sm:$0xff] %v13344_v20  ;;  %11628 = vmatpush1.bf16.msra.mxu0 %v13344_v20  ;;  %v405_v33 = vand.u32 4294901760, %v335_v22  ;;  %v13355_v35 = vsub.f32 %v320_v2, %v385_v5  ;;  %v13357_v36 = vsub.f32 %v316_v3, %v383_v7  ;;  %v13359_v37 = vsub.f32 %v319_v6, %v387_v10  ;;  %v341_v39 = vld [vmem:[#allocation5 + $0xc8] sm:$0xff]  ;;  %v340_v45 = vld [vmem:[#allocation5 + $0xc0] sm:$0xff]  ;;  %v343_v46 = vld [vmem:[#allocation5 + $0xd8] sm:$0xff]  ;;  %s313_s18 = scalar_lea.vmem [#allocation10], %s10020_s15 }
  0x94   : > { %15428 = vst [vmem:[#allocation17_spill] sm:$0xff] %v13346_v21  ;;  %11630 = vmatprep.subr.bf16.mxu0 %v13346_v21  ;;  %15429 = vst [vmem:[#allocation18_spill] sm:$0xff] %v13353_v32  ;;  %v13361_v38 = vpack.c.bf16 %v401_v26, %v397_v25  ;;  %v13363_v41 = vsub.f32 %v323_v8, %v389_v11  ;;  %v13365_v42 = vsub.f32 %v326_v9, %v393_v12  ;;  %v347_v51 = vld [vmem:[#allocation5 + $0xf8] sm:$0xff]  ;;  %v350_v56 = vld [vmem:[#allocation5 + $0x110] sm:$0xff]  ;;  %vm2845_vm0 = vcmask 261120   ;;  %s9908_s13 = sshll.u32 %s313_s18, 4  ;;  %s15254_s13 = int_to_ptr.vmem [resolvable:$true] %s9908_s13 }
  0x95   : > { %v409_v43 = vand.u32 4294901760, %v338_v29  ;;  %v407_v44 = vand.u32 4294901760, %v334_v30  ;;  %v13368_v47 = vsub.f32 %v322_v13, %v391_v23  ;;  %v13370_v48 = vsub.f32 %v325_v14, %v395_v24  ;;  %v346_v57 = vld [vmem:[#allocation5 + $0xf0] sm:$0xff]  ;;  %v349_v58 = vld [vmem:[#allocation5 + $0x108] sm:$0xff]  ;;  %v356_v1 = vld [vmem:[#allocation5 + $0x140] sm:$0xff]  ;;  %s10052_s7 = sshll.u32 %s13143_s25, 8 }
  0x96   : > { %15430 = vst [vmem:[#allocation19_spill] sm:$0xff] %v13361_v38  ;;  %v13372_v49 = vpack.c.bf16 %v403_v28, %v399_v27  ;;  %v411_v50 = vand.u32 4294901760, %v337_v34  ;;  %v13375_v52 = vsub.f32 %v329_v15, %v397_v25  ;;  %v413_v54 = vand.u32 4294901760, %v341_v39  ;;  %v353_v63 = vld [vmem:[#allocation5 + $0x128] sm:$0xff]  ;;  %v352_v10 = vld [vmem:[#allocation5 + $0x120] sm:$0xff]  ;;  %v355_v11 = vld [vmem:[#allocation5 + $0x138] sm:$0xff]  ;;  %s15259_s17 = scalar_lea.hbm %s15309_s6, %s10052_s7 }
  0x97   : > { %11632 = vmatpush1.bf16.msra.mxu0 %v13353_v32  ;;  %v13377_v53 = vpack.c.bf16 %v409_v43, %v405_v33  ;;  %v417_v55 = vand.u32 4294901760, %v344_v40  ;;  %v13379_v59 = vsub.f32 %v332_v17, %v401_v26  ;;  %v13381_v60 = vsub.f32 %v328_v18, %v399_v27  ;;  %v314_v27 = vld [vmem:[%s13327_s1] sm:$0xff]  ;;  %v315_v20 = vld [vmem:[%s13327_s1 + $0x8] sm:$0xff]  ;;  %s12994_s27 = scalar_lea.vmem %s15254_s13, 256  ;;  %s13084_s25 = smov [#allocation10]  }
  0x98   : > { %15431 = vst [vmem:[#allocation20_spill] sm:$0xff] %v13372_v49  ;;  %11634 = vmatprep.subr.bf16.mxu0 %v13361_v38  ;;  %v415_v61 = vand.u32 4294901760, %v340_v45  ;;  %v419_v62 = vand.u32 4294901760, %v343_v46  ;;  %v13383_v2 = vsub.f32 %v331_v19, %v403_v28  ;;  %v13385_v3 = vsub.f32 %v335_v22, %v405_v33  ;;  %p12995_p10 = scmp.ne.s32.totalorder %s15254_s13, %s12994_s27  ;;  %s12998_s15 = sshll.u32 %s13084_s25, 4  ;;  %s12999_s15 = int_to_ptr.vmem [resolvable:$false] %s12998_s15 }
  0x99   : > { %15432 = vst [vmem:[#allocation21_spill] sm:$0xff] %v13377_v53  ;;  %v13387_v4 = vsub.f32 %v338_v29, %v409_v43  ;;  %v13389_v5 = vpack.c.bf16 %v411_v50, %v407_v44  ;;  %v421_v6 = vand.u32 4294901760, %v347_v51  ;;  %v425_v7 = vand.u32 4294901760, %v350_v56  ;;  %s13000_s29 = scalar_lea.vmem %s12999_s15, 512  ;;  %p13001_p12 = scmp.lt.s32.totalorder %s15254_s13, %s12999_s15 }
  0x9a   : > { %v423_v8 = vand.u32 4294901760, %v346_v57  ;;  %v427_v9 = vand.u32 4294901760, %v349_v58  ;;  %v13393_v12 = vsub.f32 %v334_v30, %v407_v44  ;;  %v13395_v13 = vpack.c.bf16 %v417_v55, %v413_v54  ;;  %v359_v44 = vld [vmem:[#allocation5 + $0x158] sm:$0xff]  ;;  %p12996_p3 = pnand %p12995_p10, %p13270_p5  ;;  %p13002_p2 = scmp.lt.s32.totalorder %s13000_s29, %s12994_s27 }
  0x9b   : > { %15433 = vst [vmem:[#allocation22_spill] sm:$0xff] %v13389_v5  ;;  %11636 = vmatpush1.bf16.msra.mxu0 %v13372_v49  ;;  %v429_v14 = vand.u32 4294901760, %v353_v63  ;;  %v433_v15 = vand.u32 4294901760, %v356_v1  ;;  %v13397_v17 = vsub.f32 %v337_v34, %v411_v50  ;;  %v13399_v18 = vsub.f32 %v341_v39, %v413_v54 }
  0x9c   : > { %11638 = vmatprep.subr.bf16.mxu0 %v13377_v53  ;;  %15434 = vst [vmem:[#allocation23_spill] sm:$0xff] %v13395_v13  ;;  %v13401_v19 = vsub.f32 %v344_v40, %v417_v55  ;;  %v13403_v22 = vpack.c.bf16 %v419_v62, %v415_v61  ;;  %v13405_v23 = vsub.f32 %v340_v45, %v415_v61  ;;  %v431_v25 = vand.u32 4294901760, %v352_v10  ;;  %v362_v45 = vld [vmem:[#allocation5 + $0x170] sm:$0xff]  ;;  %p12997_p7 = pneg %p12996_p3  ;;  %p13003_p1 = por %p13002_p2, %p13001_p12 }
  0x9d   : > { %v13407_v24 = vsub.f32 %v343_v46, %v419_v62  ;;  %v435_v26 = vand.u32 4294901760, %v355_v11  ;;  %v13411_v28 = vpack.c.bf16 %v425_v7, %v421_v6  ;;  %v13413_v29 = vsub.f32 %v347_v51, %v421_v6  ;;  %v13428_v46 = vld [vmem:[#allocation5 + $0x150] sm:$0xff]  ;;  %v13443_v62 = vld [vmem:[#allocation5 + $0x168] sm:$0xff] }
  0x9e   : > { %15435 = vst [vmem:[#allocation24_spill] sm:$0xff] %v13403_v22  ;;  %v13415_v30 = vsub.f32 %v350_v56, %v425_v7  ;;  %v13417_v33 = vpack.c.bf16 %v427_v9, %v423_v8  ;;  %v13420_v34 = vsub.f32 %v346_v57, %v423_v8  ;;  %v13422_v39 = vsub.f32 %v349_v58, %v427_v9  ;;  %p13004_p4 = pnand %p13003_p1, %p12997_p7 }
  0x9f   : > { %11640 = vmatpush1.bf16.msra.mxu0 %v13389_v5  ;;  %15436 = vst [vmem:[#allocation25_spill] sm:$0xff] %v13411_v28  ;;  %v13424_v40 = vpack.c.bf16 %v433_v15, %v429_v14  ;;  %v13426_v43 = vsub.f32 %v353_v63, %v429_v14  ;;  %v15314_v50 = vand.u32 4294901760, %v13350_v31  ;;  %v15313_v51 = vand.u32 4294901760, %v13355_v35 }
  0xa0   : > { %15437 = vst [vmem:[#allocation26_spill] sm:$0xff] %v13417_v33  ;;  %11642 = vmatprep.subr.bf16.mxu0 %v13395_v13  ;;  %v13432_v54 = vand.u32 4294901760, %v314_v27  ;;  %v15317_v55 = vand.u32 4294901760, %v13357_v36  ;;  %v13435_v56 = vsub.f32 %v356_v1, %v433_v15  ;;  %v13437_v57 = vpack.c.bf16 %v435_v26, %v431_v25 }
  0xa1   : > { %15438 = vst [vmem:[#allocation27_spill] sm:$0xff] %v13424_v40  ;;  %v13439_v58 = vsub.f32 %v352_v10, %v431_v25  ;;  %v13441_v61 = vsub.f32 %v355_v11, %v435_v26  ;;  %v437_v63 = vand.u32 4294901760, %v359_v44  ;;  %v441_v6 = vand.u32 4294901760, %v362_v45 }
  0xa2   : > { %15439 = vst [vmem:[#allocation28_spill] sm:$0xff] %v13437_v57  ;;  %v503_v7 = vsub.f32 %v13350_v31, %v15314_v50  ;;  %v515_v1 = vsub.f32 %v13355_v35, %v15313_v51  ;;  %v13455_v9 = vsub.f32 %v314_v27, %v13432_v54  ;;  %v15318_v10 = vand.u32 4294901760, %v13359_v37 }
  0xa3   : > { %15440 = vst [vmem:[#allocation29_spill] sm:$0xff] %v13441_v61  ;;  %11644 = vmatpush1.bf16.msra.mxu0 %v13403_v22  ;;  %v15321_v11 = vand.u32 4294901760, %v13363_v41  ;;  %v509_v15 = vsub.f32 %v13357_v36, %v15317_v55  ;;  %v15324_v25 = vand.u32 4294901760, %v13365_v42  ;;  %v15327_v26 = vand.u32 4294901760, %v13368_v47 }
  0xa4   : > { %11646 = vmatprep.subr.bf16.mxu0 %v13411_v28  ;;  %15441 = vst [vmem:[#allocation30_spill] sm:$0xff] %v13455_v9  ;;  %v504_v51 = vand.u32 4294901760, %v503_v7  ;;  %v516_v50 = vand.u32 4294901760, %v515_v1  ;;  %v13466_v0 = vand.u32 4294901760, %v13455_v9  ;;  %v521_v27 = vsub.f32 %v13359_v37, %v15318_v10 }
  0xa5   : > { %v527_v14 = vsub.f32 %v13363_v41, %v15321_v11  ;;  %v539_v55 = vsub.f32 %v13365_v42, %v15324_v25  ;;  %v533_v7 = vsub.f32 %v13368_v47, %v15327_v26  ;;  %v15341_v1 = vand.u32 4294901760, %v13370_v48 }
  0xa6   : > { %15442 = vst [vmem:[#allocation31_spill] sm:$0xff] %v13466_v0  ;;  %v13483_v8 = vpack.c.bf16 %v441_v6, %v437_v63  ;;  %v13485_v10 = vsub.f32 %v359_v44, %v437_v63  ;;  %v15445_v28 = vand.u32 4294901760, %v13428_v46  ;;  %v15446_v25 = vand.u32 4294901760, %v13443_v62 }
  0xa7   : > { %11648 = vmatpush1.bf16.msra.mxu0 %v13417_v33  ;;  %v481_v33 = vsub.f32 %v13455_v9, %v13466_v0  ;;  %v510_v26 = vand.u32 4294901760, %v509_v15  ;;  %v15340_v13 = vand.u32 4294901760, %v13379_v59  ;;  %v11657_v44 = vpack.c.bf16 %v516_v50, %v504_v51 }
  0xa8   : > { %11650 = vmatprep.subr.bf16.mxu0 %v13424_v40  ;;  %15443 = vst [vmem:[#allocation32_spill] sm:$0xff] %v13483_v8  ;;  %15444 = vst [vmem:[#allocation33_spill] sm:$0xff] %v13485_v10  ;;  %v13494_v22 = vpack.c.bf16 %v15446_v25, %v15445_v28  ;;  %v545_v40 = vsub.f32 %v13370_v48, %v15341_v1  ;;  %v522_v5 = vand.u32 4294901760, %v521_v27  ;;  %v15342_v0 = vand.u32 4294901760, %v13381_v60 }
  0xa9   : > { %v482_v63 = vand.u32 4294901760, %v481_v33  ;;  %v528_v11 = vand.u32 4294901760, %v527_v14  ;;  %v540_v53 = vand.u32 4294901760, %v539_v55  ;;  %v534_v49 = vand.u32 4294901760, %v533_v7 }
  0xaa   : > { %15447 = vst [vmem:[#allocation34_spill] sm:$0xff] %v13494_v22  ;;  %v15345_v28 = vand.u32 4294901760, %v13383_v2  ;;  %v15448_v15 = vand.u32 4294901760, %v13375_v52  ;;  %v563_v33 = vsub.f32 %v13379_v59, %v15340_v13  ;;  %v15348_v50 = vand.u32 4294901760, %v13385_v3 }
  0xab   : > { %11652 = vmatpush1.bf16.msra.mxu0 %v13437_v57  ;;  %v15349_v51 = vand.u32 4294901760, %v13387_v4  ;;  %10637 = vmatprep.mubr.f32.mxu1 %v482_v63  ;;  %v546_v14 = vand.u32 4294901760, %v545_v40  ;;  %v557_v55 = vsub.f32 %v13381_v60, %v15342_v0  ;;  %v15356_v7 = vand.u32 4294901760, %v13393_v12 }
  0xac   : > { %11654 = vmatprep.subr.bf16.mxu0 %v13483_v8  ;;  %v551_v25 = vsub.f32 %v13375_v52, %v15448_v15  ;;  %v569_v27 = vsub.f32 %v13383_v2, %v15345_v28  ;;  %v13519_v15 = vsub.f32 %v362_v45, %v441_v6  ;;  %v575_v13 = vsub.f32 %v13385_v3, %v15348_v50 }
  0xad   : > { %v587_v40 = vsub.f32 %v13387_v4, %v15349_v51  ;;  %v15363_v1 = vand.u32 4294901760, %v13397_v17  ;;  %v11659_v0 = vpack.c.bf16 %v522_v5, %v510_v26  ;;  %v11661_v8 = vpack.c.bf16 %v540_v53, %v528_v11 }
  0xae   : > { %15449 = vst [vmem:[#allocation35_spill] sm:$0xff] %v13519_v15  ;;  %v581_v28 = vsub.f32 %v13393_v12, %v15356_v7  ;;  %v15361_v45 = vand.u32 4294901760, %v13399_v18  ;;  %v552_v6 = vand.u32 4294901760, %v551_v25  ;;  %v564_v57 = vand.u32 4294901760, %v563_v33 }
  0xaf   : > { %11656 = vmatpush1.bf16.msra.mxu0 %v13494_v22  ;;  %v593_v50 = vsub.f32 %v13397_v17, %v15363_v1  ;;  %v15360_v51 = vand.u32 4294901760, %v13401_v19  ;;  %v11663_v38 = vpack.c.bf16 %v546_v14, %v534_v49  ;;  %v558_v32 = vand.u32 4294901760, %v557_v55 }
  0xb0   : > { %11658 = vmatprep.subr.bf16.mxu0 %v11657_v44  ;;  %v570_v22 = vand.u32 4294901760, %v569_v27  ;;  %v15358_v53 = vand.u32 4294901760, %v13405_v23  ;;  %v576_v5 = vand.u32 4294901760, %v575_v13  ;;  %v588_v11 = vand.u32 4294901760, %v587_v40 }
  0xb1   : > { %v582_v26 = vand.u32 4294901760, %v581_v28  ;;  %v15357_v7 = vand.u32 4294901760, %v13407_v24  ;;  %v594_v44 = vand.u32 4294901760, %v593_v50  ;;  %v599_v25 = vsub.f32 %v13399_v18, %v15361_v45 }
  0xb2   : > { %483 = vmatmul.mubr.f32.vlgmr.msra.gmra.mrb[0].mxu0 %v482_v63  ;;  %v15359_v33 = vand.u32 4294901760, %v13413_v29  ;;  %v15362_v49 = vand.u32 4294901760, %v13415_v30  ;;  %v15450_v14 = vmov 0.0   ;;  %v11665_v55 = vpack.c.bf16 %v564_v57, %v552_v6 }
  0xb3   : > { %11660 = vmatpush1.bf16.msra.mxu0 %v11659_v0  ;;  %488 = vmatprep.mubr.f32.mxu0 %v15450_v14  ;;  %v611_v13 = vsub.f32 %v13401_v19, %v15360_v51  ;;  %v605_v0 = vsub.f32 %v13405_v23, %v15358_v53  ;;  %v617_v63 = vsub.f32 %v13407_v24, %v15357_v7  ;;  %v15451_v28 = vand.u32 4294901760, %v13428_v46 }
  0xb4   : > { %11662 = vmatprep.subr.bf16.mxu0 %v11661_v8  ;;  %v623_v57 = vsub.f32 %v13413_v29, %v15359_v33  ;;  %v635_v8 = vsub.f32 %v13415_v30, %v15362_v49  ;;  %v15452_v40 = vand.u32 4294901760, %v13443_v62  ;;  %v11667_v7 = vpack.c.bf16 %v570_v22, %v558_v32 }
  0xb5   : > { %v13557_v50 = vsub.f32 %v13428_v46, %v15451_v28  ;;  %v15370_v46 = vand.u32 4294901760, %v13422_v39  ;;  %v15368_v28 = vand.u32 4294901760, %v13426_v43  ;;  %v11669_v53 = vpack.c.bf16 %v588_v11, %v576_v5 }
  0xb6   : > { %v13569_v6 = vsub.f32 %v13443_v62, %v15452_v40  ;;  %v11671_v33 = vpack.c.bf16 %v594_v44, %v582_v26  ;;  %v600_v51 = vand.u32 4294901760, %v599_v25  ;;  %v15369_v45 = vand.u32 4294901760, %v13435_v56 }
  0xb7   : > { %11664 = vmatpush1.bf16.msra.mxu0 %v11663_v38  ;;  %v612_v49 = vand.u32 4294901760, %v611_v13  ;;  %v606_v1 = vand.u32 4294901760, %v605_v0  ;;  %v618_v27 = vand.u32 4294901760, %v617_v63  ;;  %v15371_v21 = vand.u32 4294901760, %v13439_v58 }
  0xb8   : > { %11666 = vmatprep.subr.bf16.mxu0 %v11665_v55  ;;  %v624_v62 = vand.u32 4294901760, %v623_v57  ;;  %v636_v40 = vand.u32 4294901760, %v635_v8  ;;  %v15453_v32 = vand.u32 4294901760, %v13420_v34  ;;  %v664_v38 = vand.u32 4294901760, %v13441_v61 }
  0xb9   : > { %v641_v5 = vsub.f32 %v13422_v39, %v15370_v46  ;;  %v647_v11 = vsub.f32 %v13426_v43, %v15368_v28  ;;  %v670_v26 = vand.u32 4294901760, %v13485_v10  ;;  %v682_v44 = vand.u32 4294901760, %v13519_v15 }
  0xba   : > { %v629_v22 = vsub.f32 %v13420_v34, %v15453_v32  ;;  %v659_v25 = vsub.f32 %v13435_v56, %v15369_v45  ;;  %v653_v55 = vsub.f32 %v13439_v58, %v15371_v21  ;;  %v665_v13 = vsub.f32 %v13441_v61, %v664_v38 }
  0xbb   : > { %11668 = vmatpush1.bf16.msra.mxu0 %v11667_v7  ;;  %v13595_v0 = vand.u32 4294901760, %v315_v20  ;;  %v11673_v63 = vpack.c.bf16 %v612_v49, %v600_v51  ;;  %v671_v57 = vsub.f32 %v13485_v10, %v670_v26  ;;  %v683_v8 = vsub.f32 %v13519_v15, %v682_v44 }
  0xbc   : > { %11670 = vmatprep.subr.bf16.mxu0 %v11669_v53  ;;  %v676_v7 = vand.u32 4294901760, %v13557_v50  ;;  %v11675_v32 = vpack.c.bf16 %v618_v27, %v606_v1  ;;  %v688_v45 = vand.u32 4294901760, %v13569_v6  ;;  %v11677_v46 = vpack.c.bf16 %v636_v40, %v624_v62 }
  0xbd   : > { %v13601_v28 = vsub.f32 %v315_v20, %v13595_v0  ;;  %v630_v21 = vand.u32 4294901760, %v629_v22  ;;  %v642_v9 = vand.u32 4294901760, %v641_v5  ;;  %v648_v16 = vand.u32 4294901760, %v647_v11 }
  0xbe   : > { %v660_v61 = vand.u32 4294901760, %v659_v25  ;;  %v654_v53 = vand.u32 4294901760, %v653_v55  ;;  %v666_v51 = vand.u32 4294901760, %v665_v13  ;;  %v672_v15 = vand.u32 4294901760, %v671_v57 }
  0xbf   : > { %11672 = vmatpush1.bf16.msra.mxu0 %v11671_v33  ;;  %v13605_v49 = vand.u32 4294901760, %v13601_v28  ;;  %v684_v10 = vand.u32 4294901760, %v683_v8  ;;  %v677_v1 = vsub.f32 %v13557_v50, %v676_v7  ;;  %v689_v20 = vsub.f32 %v13569_v6, %v688_v45 }
  0xc0   : > { %11674 = vmatprep.subr.bf16.mxu0 %v11673_v63  ;;  %v11679_v62 = vpack.c.bf16 %v642_v9, %v630_v21  ;;  %v11681_v40 = vpack.c.bf16 %v660_v61, %v648_v16  ;;  %v11683_v22 = vpack.c.bf16 %v666_v51, %v654_v53  ;;  %v15454_v55 = vand.u32 4294901760, %v13350_v31 }
  0xc1   : > { %v492_v27 = vsub.f32 %v13601_v28, %v13605_v49  ;;  %v11685_v5 = vpack.c.bf16 %v684_v10, %v672_v15  ;;  %v678_v11 = vand.u32 4294901760, %v677_v1  ;;  %v690_v25 = vand.u32 4294901760, %v689_v20 }
  0xc2   : > { %v15455_v13 = vand.u32 4294901760, %v13355_v35  ;;  %v15456_v57 = vand.u32 4294901760, %v13357_v36  ;;  %v15457_v21 = vand.u32 4294901760, %v13359_v37  ;;  %v15458_v61 = vand.u32 4294901760, %v13363_v41 }
  0xc3   : > { %11676 = vmatpush1.bf16.msra.mxu0 %v11675_v32  ;;  %v13611_v33 = vand.u32 4294901760, %v492_v27  ;;  %v15459_v9 = vand.u32 4294901760, %v13365_v42  ;;  %v15460_v15 = vand.u32 4294901760, %v13368_v47  ;;  %v15462_v32 = vand.u32 4294901760, %v13375_v52 }
  0xc4   : > { %11678 = vmatprep.subr.bf16.mxu0 %v11677_v46  ;;  %v13618_v63 = vpack.c.bf16 %v15455_v13, %v15454_v55  ;;  %v13624_v16 = vpack.c.bf16 %v15457_v21, %v15456_v57  ;;  %v15461_v46 = vand.u32 4294901760, %v13370_v48  ;;  %v15463_v53 = vand.u32 4294901760, %v13379_v59 }
  0xc5   : > { %494 = vmatmul.mubr.f32.gmra.mrb[2].mxu0 %v13611_v33  ;;  %v13630_v10 = vpack.c.bf16 %v15459_v9, %v15458_v61  ;;  %v15464_v1 = vand.u32 4294901760, %v13381_v60  ;;  %v15465_v20 = vand.u32 4294901760, %v13383_v2  ;;  %v15466_v55 = vand.u32 4294901760, %v13385_v3 }
  0xc6   : > { %v13636_v8 = vpack.c.bf16 %v15461_v46, %v15460_v15  ;;  %724 = vmatprep.mubr.f32.mxu0 %v15450_v14  ;;  %v13643_v51 = vpack.c.bf16 %v15463_v53, %v15462_v32  ;;  %v15467_v13 = vand.u32 4294901760, %v13387_v4  ;;  %v15469_v21 = vand.u32 4294901760, %v13393_v12 }
  0xc7   : > { %v13649_v27 = vpack.c.bf16 %v15465_v20, %v15464_v1  ;;  %v15470_v61 = vand.u32 4294901760, %v13397_v17  ;;  %11680 = vmatpush1.bf16.msra.mxu0 %v11679_v62  ;;  %v15471_v15 = vand.u32 4294901760, %v13399_v18  ;;  %v15472_v46 = vand.u32 4294901760, %v13401_v19 }
  0xc8   : > { %v13655_v57 = vpack.c.bf16 %v15467_v13, %v15466_v55  ;;  %v15474_v53 = vand.u32 4294901760, %v13405_v23  ;;  %v15475_v1 = vand.u32 4294901760, %v13407_v24  ;;  %v15477_v55 = vand.u32 4294901760, %v13413_v29  ;;  %11682 = vmatprep.subr.bf16.mxu0 %v11681_v40 }
  0xc9   : > { %v13661_v9 = vpack.c.bf16 %v15470_v61, %v15469_v21  ;;  %v13667_v32 = vpack.c.bf16 %v15472_v46, %v15471_v15  ;;  %v15478_v13 = vand.u32 4294901760, %v13415_v30  ;;  %v15479_v62 = vand.u32 4294901760, %v13420_v34 }
  0xca   : > { %15468 = vst [vmem:[#allocation36_spill] sm:$0xff] %v13655_v57  ;;  %v13673_v20 = vpack.c.bf16 %v15475_v1, %v15474_v53  ;;  %v15480_v21 = vand.u32 4294901760, %v13422_v39  ;;  %v15481_v15 = vand.u32 4294901760, %v13426_v43  ;;  %v15482_v46 = vand.u32 4294901760, %v13435_v56 }
  0xcb   : > { %15473 = vst [vmem:[#allocation37_spill] sm:$0xff] %v13667_v32  ;;  %v13679_v57 = vpack.c.bf16 %v15478_v13, %v15477_v55  ;;  %v15483_v53 = vand.u32 4294901760, %v13439_v58  ;;  %v13699_v55 = vpack.c.bf16 %v688_v45, %v676_v7  ;;  %11684 = vmatpush1.bf16.msra.mxu0 %v11683_v22  ;;  %v11687_v13 = vpack.c.bf16 %v690_v25, %v678_v11  ;;  %v339_v11 = vld [vmem:[#allocation5 + $0xb8] sm:$0xff] }
  0xcc   : > { %15476 = vst [vmem:[#allocation38_spill] sm:$0xff] %v13673_v20  ;;  %v13685_v61 = vpack.c.bf16 %v15480_v21, %v15479_v62  ;;  %v13691_v32 = vpack.c.bf16 %v15482_v46, %v15481_v15  ;;  %v13697_v20 = vpack.c.bf16 %v682_v44, %v670_v26  ;;  %11686 = vmatprep.subr.bf16.mxu0 %v11685_v5  ;;  %v13717_v26 = vld [vmem:[#allocation5 + $0x70] sm:$0xff]  ;;  %v13719_v44 = vld [vmem:[#allocation5 + $0x88] sm:$0xff]  ;;  %v336_v5 = vld [vmem:[#allocation5 + $0xa0] sm:$0xff]  ;;  %v1307_v46 = vand.u32 4294901760, %v339_v11 }
  0xcd   : > { %v13695_v1 = vpack.c.bf16 %v664_v38, %v15483_v53  ;;  %v11689_v40 = vpack.c.bf16 %v13355_v35, %v13350_v31  ;;  %v11691_v62 = vpack.c.bf16 %v13359_v37, %v13357_v36  ;;  %v11693_v21 = vpack.c.bf16 %v13365_v42, %v13363_v41  ;;  %v318_v35 = vld [vmem:[#allocation5 + $0x10] sm:$0xff]  ;;  %v321_v36 = vld [vmem:[#allocation5 + $0x28] sm:$0xff]  ;;  %v324_v37 = vld [vmem:[#allocation5 + $0x40] sm:$0xff] }
  0xce   : > { %v11695_v45 = vpack.c.bf16 %v13370_v48, %v13368_v47  ;;  %v11697_v31 = vpack.c.bf16 %v13379_v59, %v13375_v52  ;;  %v11699_v41 = vpack.c.bf16 %v13383_v2, %v13381_v60  ;;  %v1286_v42 = vand.u32 4294901760, %v318_v35  ;;  %v327_v47 = vld [vmem:[#allocation5 + $0x58] sm:$0xff]  ;;  %v342_v53 = vld [vmem:[#allocation5 + $0xd0] sm:$0xff] }
  0xcf   : > { %11688 = vmatpush1.bf16.msra.mxu0 %v11687_v13  ;;  %v1289_v38 = vand.u32 4294901760, %v321_v36  ;;  %v1292_v48 = vand.u32 4294901760, %v324_v37  ;;  %v11701_v52 = vpack.c.bf16 %v13387_v4, %v13385_v3  ;;  %v1295_v59 = vand.u32 4294901760, %v327_v47  ;;  %v345_v13 = vld [vmem:[#allocation5 + $0xe8] sm:$0xff] }
  0xd0   : > { %11690 = vmatprep.subr.bf16.mxu0 %v11689_v40  ;;  %v1298_v22 = vand.u32 4294901760, %v13717_v26  ;;  %v1301_v60 = vand.u32 4294901760, %v13719_v44  ;;  %v11703_v25 = vpack.c.bf16 %v13397_v17, %v13393_v12  ;;  %v11705_v3 = vpack.c.bf16 %v13401_v19, %v13399_v18 }
  0xd1   : > { %v13723_v7 = vpack.c.bf16 %v1289_v38, %v1286_v42  ;;  %v13727_v2 = vpack.c.bf16 %v1295_v59, %v1292_v48  ;;  %v1304_v15 = vand.u32 4294901760, %v336_v5  ;;  %v11707_v12 = vpack.c.bf16 %v13407_v24, %v13405_v23 }
  0xd2   : > { %726 = vmatmul.mubr.f32.vlgmr.msra.gmra.mrb[0].mxu0 %v13432_v54  ;;  %v13736_v4 = vpack.c.bf16 %v1301_v60, %v1298_v22  ;;  %v11709_v17 = vpack.c.bf16 %v13415_v30, %v13413_v29  ;;  %v1310_v19 = vand.u32 4294901760, %v342_v53  ;;  %v1313_v40 = vand.u32 4294901760, %v345_v13 }
  0xd3   : > { %11692 = vmatpush1.bf16.msra.mxu0 %v11691_v62  ;;  %731 = vmatprep.mubr.f32.mxu0 %v15450_v14  ;;  %15484 = vst [vmem:[#allocation39_spill] sm:$0xff] %v13723_v7  ;;  %15485 = vst [vmem:[#allocation40_spill] sm:$0xff] %v13727_v2  ;;  %v13744_v18 = vpack.c.bf16 %v1307_v46, %v1304_v15  ;;  %v348_v62 = vld [vmem:[#allocation5 + $0x100] sm:$0xff]  ;;  %v11713_v23 = vpack.c.bf16 %v13435_v56, %v13426_v43  ;;  %v15489_v43 = vld [vmem:[#allocation29_spill] sm:$0xff]  ;;  %vm4902_vm1 = vcmask 130048  }
  0xd4   : > { %11694 = vmatprep.subr.bf16.mxu0 %v11693_v21  ;;  %11818 = vmatprep.subr.bf16.mxu1 %v13723_v7  ;;  %15486 = vst [vmem:[#allocation41_spill] sm:$0xff] %v13736_v4  ;;  %v351_v21 = vld [vmem:[#allocation5 + $0x118] sm:$0xff]  ;;  %v13754_v24 = vpack.c.bf16 %v1313_v40, %v1310_v19  ;;  %v1316_v29 = vand.u32 4294901760, %v348_v62  ;;  %v11715_v56 = vpack.c.bf16 %v15489_v43, %v13439_v58 }
  0xd5   : > { %11820 = vmatpush3.bf16.msra.mxu1 %v13723_v7  ;;  %15487 = vst [vmem:[#allocation42_spill] sm:$0xff] %v13744_v18  ;;  %v1319_v30 = vand.u32 4294901760, %v351_v21  ;;  %v15506_v7 = vld [vmem:[#allocation17_spill] sm:$0xff] }
  0xd6   : > { %733 = vmatmul.mubr.f32.gmra.mrb[2].mxu0 %v13595_v0  ;;  %11822 = vmatprep.subr.bf16.mxu1 %v13727_v2  ;;  %15488 = vst [vmem:[#allocation43_spill] sm:$0xff] %v13754_v24 }
  0xd7   : > { %11696 = vmatpush1.bf16.msra.mxu0 %v11695_v45  ;;  %867 = vmatprep.mubr.f32.mxu0 %v15450_v14  ;;  %v11711_v45 = vpack.c.bf16 %v13422_v39, %v13420_v34  ;;  %v13762_v34 = vld [vmem:[#allocation5 + $0x160] sm:$0xff]  ;;  %v13764_v39 = vld [vmem:[#allocation5 + $0x178] sm:$0xff]  ;;  %v13781_v58 = vpack.c.bf16 %v1319_v30, %v1316_v29 }
  0xd8   : > { %11698 = vmatprep.subr.bf16.mxu0 %v11697_v31  ;;  %v13748_v31 = vsub.f32 %v318_v35, %v1286_v42  ;;  %v13766_v35 = vsub.f32 %v324_v37, %v1292_v48  ;;  %v13799_v48 = vsub.f32 %v342_v53, %v1310_v19 }
  0xd9   : > { %11824 = vmatpush3.bf16.msra.mxu1 %v13727_v2  ;;  %15492 = vst [vmem:[#allocation29_spill] sm:$0xff] %v13781_v58  ;;  %v15505_v2 = vld [vmem:[#allocation16_spill] sm:$0xff] }
  0xda   : > { %11826 = vmatprep.subr.bf16.mxu1 %v13736_v4  ;;  %v1389_v42 = vand.u32 4294901760, %v13748_v31 }
  0xdb   : > { %11700 = vmatpush1.bf16.msra.mxu0 %v11699_v41  ;;  %v13756_v41 = vld [vmem:[#allocation5 + $0x130] sm:$0xff] }
  0xdc   : > { %11702 = vmatprep.subr.bf16.mxu0 %v11701_v52  ;;  %v13758_v52 = vld [vmem:[#allocation5 + $0x148] sm:$0xff]  ;;  %v15382_v37 = vand.u32 4294901760, %v13756_v41  ;;  %v1390_v43 = vsub.f32 %v13748_v31, %v1389_v42 }
  0xdd   : > { %11828 = vmatpush3.bf16.msra.mxu1 %v13736_v4 }
  0xde   : > { %11830 = vmatprep.subr.bf16.mxu1 %v13744_v18 }
  0xdf   : > { %11704 = vmatpush1.bf16.msra.mxu0 %v11703_v25  ;;  %v13760_v25 = vsub.f32 %v321_v36, %v1289_v38  ;;  %v11719_v36 = vpack.c.bf16 %v13569_v6, %v13557_v50  ;;  %v15381_v38 = vand.u32 4294901760, %v13758_v52  ;;  %v13788_v50 = vsub.f32 %v13717_v26, %v1298_v22 }
  0xe0   : > { %11706 = vmatprep.subr.bf16.mxu0 %v11705_v3  ;;  %v13771_v3 = vsub.f32 %v327_v47, %v1295_v59  ;;  %v13791_v6 = vsub.f32 %v13719_v44, %v1301_v60  ;;  %v13802_v47 = vsub.f32 %v345_v13, %v1313_v40  ;;  %v13804_v26 = vsub.f32 %v348_v62, %v1316_v29 }
  0xe1   : > { %11832 = vmatpush3.bf16.msra.mxu1 %v13744_v18  ;;  %v1396_v59 = vand.u32 4294901760, %v13760_v25  ;;  %v13806_v44 = vsub.f32 %v351_v21, %v1319_v30  ;;  %v13813_v22 = vpack.c.bf16 %v15381_v38, %v15382_v37  ;;  %v1391_v13 = vand.u32 4294901760, %v1390_v43  ;;  %v15497_v21 = vld [vmem:[#allocation15_spill] sm:$0xff]  ;;  %v15501_v37 = vld [vmem:[#allocation30_spill] sm:$0xff] }
  0xe2   : > { %11834 = vmatprep.subr.bf16.mxu1 %v13754_v24  ;;  %v1424_v53 = vand.u32 4294901760, %v13791_v6  ;;  %v1445_v29 = vand.u32 4294901760, %v13799_v48  ;;  %v1452_v30 = vand.u32 4294901760, %v13802_v47 }
  0xe3   : > { %11708 = vmatpush1.bf16.msra.mxu0 %v11707_v12  ;;  %v15490_v12 = vld [vmem:[#allocation33_spill] sm:$0xff]  ;;  %v1397_v60 = vsub.f32 %v13760_v25, %v1396_v59  ;;  %v13835_v43 = vpack.c.bf16 %v1396_v59, %v1389_v42 }
  0xe4   : > { %11710 = vmatprep.subr.bf16.mxu0 %v11709_v17  ;;  %v15491_v17 = vld [vmem:[#allocation35_spill] sm:$0xff]  ;;  %15493 = vst [vmem:[#allocation33_spill] sm:$0xff] %v13813_v22 }
  0xe5   : > { %v11717_v4 = vpack.c.bf16 %v15491_v17, %v15490_v12  ;;  %v1410_v12 = vand.u32 4294901760, %v13771_v3  ;;  %v13797_v17 = vsub.f32 %v339_v11, %v1307_v46  ;;  %11836 = vmatpush3.bf16.msra.mxu1 %v13754_v24  ;;  %v15495_v11 = vand.u32 4294901760, %v13764_v39  ;;  %15498 = vst [vmem:[#allocation15_spill] sm:$0xff] %v13835_v43 }
  0xe6   : > { %11838 = vmatprep.subr.bf16.mxu1 %v13781_v58  ;;  %v1417_v46 = vand.u32 4294901760, %v13788_v50  ;;  %v13844_v24 = vpack.c.bf16 %v1452_v30, %v1445_v29 }
  0xe7   : > { %11712 = vmatpush1.bf16.msra.mxu0 %v11711_v45  ;;  %v1403_v45 = vand.u32 4294901760, %v13766_v35  ;;  %v1411_v19 = vsub.f32 %v13771_v3, %v1410_v12  ;;  %v1438_v62 = vand.u32 4294901760, %v13797_v17 }
  0xe8   : > { %11714 = vmatprep.subr.bf16.mxu0 %v11713_v23  ;;  %v13793_v23 = vsub.f32 %v336_v5, %v1304_v15  ;;  %v15494_v5 = vand.u32 4294901760, %v13762_v34  ;;  %v13839_v38 = vpack.c.bf16 %v1424_v53, %v1417_v46  ;;  %15503 = vst [vmem:[#allocation46_spill] sm:$0xff] %v13844_v24  ;;  %v1418_v42 = vsub.f32 %v13788_v50, %v1417_v46 }
  0xe9   : > { %v1404_v15 = vsub.f32 %v13766_v35, %v1403_v45  ;;  %11840 = vmatpush3.bf16.msra.mxu1 %v13781_v58 }
  0xea   : > { %v1431_v40 = vand.u32 4294901760, %v13793_v23  ;;  %11842 = vmatprep.subr.bf16.mxu1 %v13813_v22  ;;  %15500 = vst [vmem:[#allocation45_spill] sm:$0xff] %v13839_v38  ;;  %v15508_v38 = vld [vmem:[#allocation19_spill] sm:$0xff] }
  0xeb   : > { %11716 = vmatpush1.bf16.msra.mxu0 %v11715_v56  ;;  %v1459_v56 = vand.u32 4294901760, %v13804_v26 }
  0xec   : > { %11718 = vmatprep.subr.bf16.mxu0 %v11717_v4  ;;  %v13820_v4 = vpack.c.bf16 %v15495_v11, %v15494_v5  ;;  %v1466_v5 = vand.u32 4294901760, %v13806_v44  ;;  %v13837_v11 = vpack.c.bf16 %v1410_v12, %v1403_v45  ;;  %v13842_v58 = vpack.c.bf16 %v1438_v62, %v1431_v40 }
  0xed   : > { %11844 = vmatpush3.bf16.msra.mxu1 %v13813_v22  ;;  %v1405_v45 = vand.u32 4294901760, %v1404_v15  ;;  %v1412_v12 = vand.u32 4294901760, %v1411_v19  ;;  %v1432_v24 = vsub.f32 %v13793_v23, %v1431_v40  ;;  %v1419_v15 = vand.u32 4294901760, %v1418_v42  ;;  %v15509_v19 = vld [vmem:[#allocation20_spill] sm:$0xff] }
  0xee   : > { %15496 = vst [vmem:[#allocation35_spill] sm:$0xff] %v13820_v4  ;;  %15499 = vst [vmem:[#allocation44_spill] sm:$0xff] %v13837_v11  ;;  %v13846_v18 = vpack.c.bf16 %v1466_v5, %v1459_v56  ;;  %11846 = vmatprep.subr.bf16.mxu1 %v13820_v4  ;;  %v15510_v11 = vld [vmem:[#allocation21_spill] sm:$0xff]  ;;  %v1446_v40 = vsub.f32 %v13799_v48, %v1445_v29  ;;  %v1453_v42 = vsub.f32 %v13802_v47, %v1452_v30  ;;  %v15514_v29 = vld [vmem:[#allocation23_spill] sm:$0xff] }
  0xef   : > { %11720 = vmatpush1.bf16.msra.mxu0 %v11719_v36  ;;  %v1398_v36 = vand.u32 4294901760, %v1397_v60  ;;  %15502 = vst [vmem:[#allocation30_spill] sm:$0xff] %v13842_v58  ;;  %v1425_v60 = vsub.f32 %v13791_v6, %v1424_v53  ;;  %v1439_v58 = vsub.f32 %v13797_v17, %v1438_v62  ;;  %v11853_v46 = vpack.c.bf16 %v1412_v12, %v1405_v45 }
  0xf0   : > { %11722 = vmatprep.subr.bf16.mxu0 %v15497_v21  ;;  %15504 = vst [vmem:[#allocation47_spill] sm:$0xff] %v13846_v18  ;;  %v15507_v18 = vld [vmem:[#allocation18_spill] sm:$0xff]  ;;  %v1433_v53 = vand.u32 4294901760, %v1432_v24  ;;  %v15511_v62 = vand.u32 4294901760, %v13756_v41  ;;  %v15512_v12 = vand.u32 4294901760, %v13758_v52  ;;  %v15515_v30 = vand.u32 4294901760, %v13762_v34 }
  0xf1   : > { %v11849_v59 = vpack.c.bf16 %v1398_v36, %v1391_v13  ;;  %11848 = vmatpush3.bf16.msra.mxu1 %v13820_v4  ;;  %v1426_v13 = vand.u32 4294901760, %v1425_v60  ;;  %v1440_v36 = vand.u32 4294901760, %v1439_v58  ;;  %v15513_v24 = vld [vmem:[#allocation22_spill] sm:$0xff]  ;;  %v15520_v4 = vld [vmem:[#allocation27_spill] sm:$0xff] }
  0xf2   : > { %870 = vmatmul.mubr.f32.vlgmr.msra.gmra.mrb[0].mxu0 %v15501_v37  ;;  %v13869_v43 = vsub.f32 %v13756_v41, %v15511_v62  ;;  %v1460_v41 = vsub.f32 %v13804_v26, %v1459_v56  ;;  %v15518_v56 = vld [vmem:[#allocation25_spill] sm:$0xff] }
  0xf3   : > { %11724 = vmatpush1.bf16.msra.mxu0 %v15505_v2  ;;  %875 = vmatprep.mubr.f32.mxu0 %v15450_v14  ;;  %v11857_v45 = vpack.c.bf16 %v1426_v13, %v1419_v15  ;;  %v11861_v58 = vpack.c.bf16 %v1440_v36, %v1433_v53  ;;  %v13885_v15 = vsub.f32 %v13762_v34, %v15515_v30  ;;  %v15516_v53 = vand.u32 4294901760, %v13764_v39  ;;  %v15517_v36 = vld [vmem:[#allocation24_spill] sm:$0xff] }
  0xf4   : > { %11726 = vmatprep.subr.bf16.mxu0 %v15506_v7  ;;  %11850 = vmatprep.subr.bf16.mxu1 %v11849_v59  ;;  %v15401_v60 = vand.u32 4294901760, %v13869_v43  ;;  %v1467_v13 = vsub.f32 %v13806_v44, %v1466_v5 }
  0xf5   : > { %10638 = vmatmul.mubr.f32.vlgmr.msra.gmra.mrb[0].mxu1 %v13611_v33  ;;  %v13875_v33 = vsub.f32 %v13758_v52, %v15512_v12  ;;  %v1454_v52 = vand.u32 4294901760, %v1453_v42  ;;  %v1487_v42 = vand.u32 4294901760, %v13885_v15 }
  0xf6   : > { %878 = vmatmul.mubr.f32.gmra.mrb[2].mxu0 %v13601_v28  ;;  %11852 = vmatpush3.bf16.msra.mxu1 %v11849_v59  ;;  %v1447_v59 = vand.u32 4294901760, %v1446_v40  ;;  %v1461_v40 = vand.u32 4294901760, %v1460_v41  ;;  %v1474_v34 = vsub.f32 %v13869_v43, %v15401_v60  ;;  %v1468_v12 = vand.u32 4294901760, %v1467_v13  ;;  %v15521_v13 = vld [vmem:[#allocation28_spill] sm:$0xff] }
  0xf7   : > { %11728 = vmatpush1.bf16.msra.mxu0 %v15507_v18  ;;  %980 = vmatprep.mubr.f32.mxu0 %v15450_v14  ;;  %v15402_v62 = vand.u32 4294901760, %v13875_v33 }
  0xf8   : > { %11730 = vmatprep.subr.bf16.mxu0 %v15508_v38  ;;  %11854 = vmatprep.subr.bf16.mxu1 %v11853_v46  ;;  %v11865_v5 = vpack.c.bf16 %v1454_v52, %v1447_v59  ;;  %v11869_v41 = vpack.c.bf16 %v1468_v12, %v1461_v40  ;;  %v1488_v59 = vsub.f32 %v13885_v15, %v1487_v42  ;;  %v15524_v12 = vld [vmem:[#allocation31_spill] sm:$0xff] }
  0xf9   : > { %10672 = vmatprep.mubr.f32.mxu1 %v13432_v54 }
  0xfa   : > { %11856 = vmatpush3.bf16.msra.mxu1 %v11853_v46  ;;  %v13892_v46 = vsub.f32 %v13764_v39, %v15516_v53  ;;  %v1481_v39 = vsub.f32 %v13875_v33, %v15402_v62  ;;  %v15519_v53 = vld [vmem:[#allocation26_spill] sm:$0xff]  ;;  %v15522_v62 = vld [vmem:[#allocation32_spill] sm:$0xff] }
  0xfb   : > { %11732 = vmatpush1.bf16.msra.mxu0 %v15509_v19  ;;  %11858 = vmatprep.subr.bf16.mxu1 %v11857_v45 }
  0xfc   : > { %11734 = vmatprep.subr.bf16.mxu0 %v15510_v11  ;;  %v1494_v30 = vand.u32 4294901760, %v13892_v46  ;;  %v1482_v60 = vand.u32 4294901760, %v1481_v39 }
  0xfe   : > { %11860 = vmatpush3.bf16.msra.mxu1 %v11857_v45  ;;  %v1475_v45 = vand.u32 4294901760, %v1474_v34  ;;  %v1495_v52 = vsub.f32 %v13892_v46, %v1494_v30 }
  0xff   : > { %11736 = vmatpush1.bf16.msra.mxu0 %v15513_v24  ;;  %11862 = vmatprep.subr.bf16.mxu1 %v11861_v58 }
 0x100   : > { %11738 = vmatprep.subr.bf16.mxu0 %v15514_v29  ;;  %v11873_v22 = vpack.c.bf16 %v1482_v60, %v1475_v45  ;;  %v1496_v34 = vand.u32 4294901760, %v1495_v52  ;;  %v11881_v60 = vpack.c.bf16 %v13760_v25, %v13748_v31  ;;  %v11897_v31 = vpack.c.bf16 %v13802_v47, %v13799_v48  ;;  %v15536_v25 = vld [vmem:[#allocation35_spill] sm:$0xff] }
 0x101   : > { %v15543_v47 = vand.u32 4294901760, %v13869_v43  ;;  %v15544_v48 = vand.u32 4294901760, %v13875_v33 }
 0x102   : > { %11864 = vmatpush3.bf16.msra.mxu1 %v11861_v58  ;;  %v1489_v58 = vand.u32 4294901760, %v1488_v59 }
 0x103   : > { %11740 = vmatpush1.bf16.msra.mxu0 %v15517_v36  ;;  %11866 = vmatprep.subr.bf16.mxu1 %v11865_v5 }
 0x104   : > { %11742 = vmatprep.subr.bf16.mxu0 %v15518_v56  ;;  %v11877_v40 = vpack.c.bf16 %v1496_v34, %v1489_v58 }
 0x106   : > { %11868 = vmatpush3.bf16.msra.mxu1 %v11865_v5 }
 0x107   : > { %11744 = vmatpush1.bf16.msra.mxu0 %v15519_v53  ;;  %11870 = vmatprep.subr.bf16.mxu1 %v11869_v41 }
 0x108   : > { %11746 = vmatprep.subr.bf16.mxu0 %v15520_v4  ;;  %v15523_v4 = vld [vmem:[#allocation34_spill] sm:$0xff] }
 0x10a   : > { %11872 = vmatpush3.bf16.msra.mxu1 %v11869_v41 }
 0x10b   : > { %11748 = vmatpush1.bf16.msra.mxu0 %v15521_v13  ;;  %11874 = vmatprep.subr.bf16.mxu1 %v11873_v22 }
 0x10c   : > { %11750 = vmatprep.subr.bf16.mxu0 %v15522_v62 }
 0x10e   : > { %11876 = vmatpush3.bf16.msra.mxu1 %v11873_v22 }
 0x10f   : > { %11752 = vmatpush1.bf16.msra.mxu0 %v15523_v4  ;;  %11878 = vmatprep.subr.bf16.mxu1 %v11877_v40 }
 0x110   : > { %11754 = vmatprep.subr.bf16.mxu0 %v13618_v63  ;;  %v11885_v63 = vpack.c.bf16 %v13771_v3, %v13766_v35  ;;  %v15537_v35 = vld [vmem:[#allocation15_spill] sm:$0xff]  ;;  %v15538_v3 = vld [vmem:[#allocation44_spill] sm:$0xff] }
 0x112   : > { %984 = vmatmul.mubr.f32.vlgmr.msra.gmra.mrb[0].mxu0 %v15524_v12  ;;  %11880 = vmatpush3.bf16.msra.mxu1 %v11877_v40 }
 0x113   : > { %11756 = vmatpush1.bf16.msra.mxu0 %v13624_v16  ;;  %989 = vmatprep.mubr.f32.mxu0 %v15450_v14  ;;  %v15525_v16 = vld [vmem:[#allocation36_spill] sm:$0xff] }
 0x114   : > { %11758 = vmatprep.subr.bf16.mxu0 %v13630_v10  ;;  %11882 = vmatprep.subr.bf16.mxu1 %v11881_v60  ;;  %v11889_v10 = vpack.c.bf16 %v13791_v6, %v13788_v50  ;;  %v11969_v50 = vpack.c.bf16 %v15544_v48, %v15543_v47  ;;  %v11973_v6 = vpack.c.bf16 %v1494_v30, %v1487_v42 }
 0x115   : > { %10673 = vmatmul.mubr.f32.vlgmr.msra.gmra.mrb[0].mxu1 %v13595_v0 }
 0x116   : > { %993 = vmatmul.mubr.f32.gmra.mrb[2].mxu0 %v13605_v49  ;;  %11884 = vmatpush3.bf16.msra.mxu1 %v11881_v60 }
 0x117   : > { %11760 = vmatpush1.bf16.msra.mxu0 %v13636_v8  ;;  %1159 = vmatprep.mubr.f32.mxu0 %v15450_v14  ;;  %v15526_v8 = vld [vmem:[#allocation37_spill] sm:$0xff] }
 0x118   : > { %11762 = vmatprep.subr.bf16.mxu0 %v13643_v51  ;;  %11886 = vmatprep.subr.bf16.mxu1 %v11885_v63  ;;  %v11893_v51 = vpack.c.bf16 %v13797_v17, %v13793_v23 }
 0x119   : > { %10707 = vmatprep.mubr.f32.mxu1 %v15501_v37  ;;  %v15540_v37 = vld [vmem:[#allocation30_spill] sm:$0xff] }
 0x11a   : > { %11888 = vmatpush3.bf16.msra.mxu1 %v11885_v63 }
 0x11b   : > { %11764 = vmatpush1.bf16.msra.mxu0 %v13649_v27  ;;  %11890 = vmatprep.subr.bf16.mxu1 %v11889_v10  ;;  %v15527_v27 = vld [vmem:[#allocation38_spill] sm:$0xff] }
 0x11c   : > { %11766 = vmatprep.subr.bf16.mxu0 %v15525_v16 }
 0x11e   : > { %11892 = vmatpush3.bf16.msra.mxu1 %v11889_v10 }
 0x11f   : > { %11768 = vmatpush1.bf16.msra.mxu0 %v13661_v9  ;;  %11894 = vmatprep.subr.bf16.mxu1 %v11893_v51  ;;  %v11901_v9 = vpack.c.bf16 %v13806_v44, %v13804_v26  ;;  %v14041_v26 = vld [vmem:[%s15305_s2] sm:$0x7] }
 0x120   : > { %11770 = vmatprep.subr.bf16.mxu0 %v15526_v8 }
 0x122   : > { %11896 = vmatpush3.bf16.msra.mxu1 %v11893_v51 }
 0x123   : > { %11772 = vmatpush1.bf16.msra.mxu0 %v15527_v27  ;;  %11898 = vmatprep.subr.bf16.mxu1 %v11897_v31 }
 0x124   : > { %11774 = vmatprep.subr.bf16.mxu0 %v13679_v57  ;;  %v11905_v57 = vpack.c.bf16 %v13875_v33, %v13869_v43 }
 0x126   : > { %11900 = vmatpush3.bf16.msra.mxu1 %v11897_v31 }
 0x127   : > { %11776 = vmatpush1.bf16.msra.mxu0 %v13685_v61  ;;  %11902 = vmatprep.subr.bf16.mxu1 %v11901_v9  ;;  %v15529_v61 = vld [vmem:[#allocation40_spill] sm:$0xff] }
 0x128   : > { %11778 = vmatprep.subr.bf16.mxu0 %v13691_v32  ;;  %v11909_v32 = vpack.c.bf16 %v13892_v46, %v13885_v15  ;;  %v13082_v15 = vmov 1983009808   ;;  %v13083_v46 = vmov 1934713408  }
 0x12a   : > { %11904 = vmatpush3.bf16.msra.mxu1 %v11901_v9 }
 0x12b   : > { %11780 = vmatpush1.bf16.msra.mxu0 %v13695_v1  ;;  %11906 = vmatprep.subr.bf16.mxu1 %v11905_v57  ;;  %v15530_v1 = vld [vmem:[#allocation41_spill] sm:$0xff] }
 0x12c   : > { %11782 = vmatprep.subr.bf16.mxu0 %v13697_v20  ;;  %v15528_v20 = vld [vmem:[#allocation39_spill] sm:$0xff] }
 0x12e   : > { %11908 = vmatpush3.bf16.msra.mxu1 %v11905_v57 }
 0x12f   : > { %11784 = vmatpush1.bf16.msra.mxu0 %v13699_v55  ;;  %11910 = vmatprep.subr.bf16.mxu1 %v11909_v32  ;;  %v15532_v55 = vld [vmem:[#allocation27_spill] sm:$0xff] }
 0x130   : > { %11786 = vmatprep.subr.bf16.mxu0 %v15497_v21 }
 0x132   : > { %1161 = vmatmul.mubr.f32.vlgmr.msra.gmra.mrb[0].mxu0 %v13432_v54  ;;  %11912 = vmatpush3.bf16.msra.mxu1 %v11909_v32 }
 0x133   : > { %11788 = vmatpush1.bf16.msra.mxu0 %v15505_v2  ;;  %1166 = vmatprep.mubr.f32.mxu0 %v15450_v14  ;;  %v15534_v2 = vld [vmem:[#allocation29_spill] sm:$0xff] }
 0x134   : > { %11790 = vmatprep.subr.bf16.mxu0 %v15506_v7  ;;  %11914 = vmatprep.subr.bf16.mxu1 %v15528_v20  ;;  %v15533_v7 = vld [vmem:[#allocation43_spill] sm:$0xff] }
 0x135   : > { %10708 = vmatmul.mubr.f32.vlgmr.msra.gmra.mrb[0].mxu1 %v13601_v28  ;;  %v15531_v28 = vld [vmem:[#allocation42_spill] sm:$0xff] }
 0x136   : > { %1168 = vmatmul.mubr.f32.gmra.mrb[2].mxu0 %v13595_v0  ;;  %11916 = vmatpush3.bf16.msra.mxu1 %v15528_v20 }
 0x137   : > { %11792 = vmatpush1.bf16.msra.mxu0 %v15507_v18  ;;  %1270 = vmatprep.mubr.f32.mxu0 %v15450_v14  ;;  %v15535_v18 = vld [vmem:[#allocation33_spill] sm:$0xff] }
 0x138   : > { %11794 = vmatprep.subr.bf16.mxu0 %v15508_v38  ;;  %11918 = vmatprep.subr.bf16.mxu1 %v15529_v61  ;;  %v15541_v38 = vld [vmem:[#allocation46_spill] sm:$0xff] }
 0x139   : > { %10742 = vmatprep.mubr.f32.mxu1 %v15524_v12 }
 0x13a   : > { %11920 = vmatpush3.bf16.msra.mxu1 %v15529_v61 }
 0x13b   : > { %11796 = vmatpush1.bf16.msra.mxu0 %v15509_v19  ;;  %11922 = vmatprep.subr.bf16.mxu1 %v15530_v1 }
 0x13c   : > { %11798 = vmatprep.subr.bf16.mxu0 %v15510_v11 }
 0x13e   : > { %11924 = vmatpush3.bf16.msra.mxu1 %v15530_v1 }
 0x13f   : > { %11800 = vmatpush1.bf16.msra.mxu0 %v15513_v24  ;;  %11926 = vmatprep.subr.bf16.mxu1 %v15531_v28 }
 0x140   : > { %11802 = vmatprep.subr.bf16.mxu0 %v15514_v29 }
 0x142   : > { %11928 = vmatpush3.bf16.msra.mxu1 %v15531_v28 }
 0x143   : > { %11804 = vmatpush1.bf16.msra.mxu0 %v15517_v36  ;;  %11930 = vmatprep.subr.bf16.mxu1 %v15533_v7  ;;  %v2096_v36 = vunpack.c.l.s4 %v13083_v46 }
 0x144   : > { %11806 = vmatprep.subr.bf16.mxu0 %v15518_v56 }
 0x145   : > { %v2097_v39 = vunpack.c.0.s8 %v2096_v36 }
 0x146   : > { %11932 = vmatpush3.bf16.msra.mxu1 %v15533_v7 }
 0x147   : > { %11808 = vmatpush1.bf16.msra.mxu0 %v15519_v53  ;;  %11934 = vmatprep.subr.bf16.mxu1 %v15534_v2 }
 0x148   : > { %11810 = vmatprep.subr.bf16.mxu0 %v15532_v55 }
 0x14a   : > { %11936 = vmatpush3.bf16.msra.mxu1 %v15534_v2 }
 0x14b   : > { %11812 = vmatpush1.bf16.msra.mxu0 %v15521_v13  ;;  %11938 = vmatprep.subr.bf16.mxu1 %v15535_v18 }
 0x14c   : > { %11814 = vmatprep.subr.bf16.mxu0 %v15522_v62  ;;  %v2032_v62 = vunpack.c.l.s4 %v13082_v15 }
 0x14e   : > { %11940 = vmatpush3.bf16.msra.mxu1 %v15535_v18  ;;  %v2033_v56 = vunpack.c.0.s8 %v2032_v62 }
 0x14f   : > { %11816 = vmatpush1.bf16.msra.mxu0 %v15523_v4  ;;  %11942 = vmatprep.subr.bf16.mxu1 %v15536_v25 }
 0x152   : > { %1272 = vmatmul.mubr.f32.vlgmr.msra.gmra.mrb[0].mxu0 %v13432_v54  ;;  %11944 = vmatpush3.bf16.msra.mxu1 %v15536_v25 }
 0x153   : > { %1277 = vmatprep.mubr.f32.mxu0 %v15450_v14  ;;  %11946 = vmatprep.subr.bf16.mxu1 %v15537_v35  ;;  %v15539_v14 = vld [vmem:[#allocation45_spill] sm:$0xff] }
 0x155   : > { %10743 = vmatmul.mubr.f32.vlgmr.msra.gmra.mrb[0].mxu1 %v13605_v49  ;;  %v15542_v49 = vld [vmem:[#allocation47_spill] sm:$0xff] }
 0x156   : > { %1279 = vmatmul.mubr.f32.gmra.mrb[2].mxu0 %v13595_v0  ;;  %11948 = vmatpush3.bf16.msra.mxu1 %v15537_v35 }
 0x157   : > { %10777 = vmatprep.mubr.f32.mxu1 %v13432_v54  ;;  %11950 = vmatprep.subr.bf16.mxu1 %v15538_v3 }
 0x15a   : > { %11952 = vmatpush3.bf16.msra.mxu1 %v15538_v3 }
 0x15b   : > { %11954 = vmatprep.subr.bf16.mxu1 %v15539_v14 }
 0x15e   : > { %11956 = vmatpush3.bf16.msra.mxu1 %v15539_v14 }
 0x15f   : > { %11958 = vmatprep.subr.bf16.mxu1 %v15540_v37 }
 0x162   : > { %11960 = vmatpush3.bf16.msra.mxu1 %v15540_v37 }
 0x163   : > { %11962 = vmatprep.subr.bf16.mxu1 %v15541_v38 }
 0x166   : > { %11964 = vmatpush3.bf16.msra.mxu1 %v15541_v38 }
 0x167   : > { %11966 = vmatprep.subr.bf16.mxu1 %v15542_v49 }
 0x16a   : > { %11968 = vmatpush3.bf16.msra.mxu1 %v15542_v49 }
 0x16b   : > { %11970 = vmatprep.subr.bf16.mxu1 %v11969_v50 }
 0x16e   : > { %11972 = vmatpush3.bf16.msra.mxu1 %v11969_v50 }
 0x16f   : > { %11974 = vmatprep.subr.bf16.mxu1 %v11973_v6 }
 0x172   : > { %11976 = vmatpush3.bf16.msra.mxu1 %v11973_v6 }
 0x173   : > { %11978 = vmatprep.subr.bf16.mxu1 %v15528_v20 }
 0x175   : > { %10778 = vmatmul.mubr.f32.vlgmr.msra.gmra.mrb[0].mxu1 %v13595_v0 }
 0x176   : > { %11980 = vmatpush3.bf16.msra.mxu1 %v15528_v20  ;;  %10812 = vmatprep.mubr.f32.mxu1 %v13432_v54  ;;  %v366_v54 = vlaneseq }
 0x177   : > { %11982 = vmatprep.subr.bf16.mxu1 %v15529_v61 }
 0x178   : > { %v14035_v23 = vshrl.u32 %v366_v54, 7 }
 0x17a   : > { %11984 = vmatpush3.bf16.msra.mxu1 %v15529_v61  ;;  %v368_v17 = vsub.s32 0, %v14035_v23  ;;  %v372_v22 = vsub.s32 1, %v14035_v23  ;;  %v14069_v30 = vsub.s32 %v2033_v56, %v14035_v23  ;;  %v14072_v58 = vsub.s32 %v2097_v39, %v14035_v23 }
 0x17b   : > { %11986 = vmatprep.subr.bf16.mxu1 %v15530_v1 }
 0x17c   : > { %v369_v44 = vrot.slane %v14041_v26, %v368_v17  ;;  %v373_v43 = vrot.slane %v14041_v26, %v372_v22 }
 0x17e   : > { %11988 = vmatpush3.bf16.msra.mxu1 %v15530_v1 }
 0x17f   : > { %11990 = vmatprep.subr.bf16.mxu1 %v15531_v28 }
 0x182   : > { %11992 = vmatpush3.bf16.msra.mxu1 %v15531_v28 }
 0x183   : > { %11994 = vmatprep.subr.bf16.mxu1 %v15533_v7 }
 0x186   : > { %11996 = vmatpush3.bf16.msra.mxu1 %v15533_v7 }
 0x187   : > { %11998 = vmatprep.subr.bf16.mxu1 %v15534_v2 }
 0x18a   : > { %12000 = vmatpush3.bf16.msra.mxu1 %v15534_v2 }
 0x18b   : > { %12002 = vmatprep.subr.bf16.mxu1 %v15535_v18 }
 0x18e   : > { %12004 = vmatpush3.bf16.msra.mxu1 %v15535_v18 }
 0x18f   : > { %12006 = vmatprep.subr.bf16.mxu1 %v15536_v25 }
 0x192   : > { %12008 = vmatpush3.bf16.msra.mxu1 %v15536_v25 }
 0x195   : > { %10813 = vmatmul.mubr.f32.vlgmr.msra.gmra.mrb[0].mxu1 %v13595_v0 }
 0x225   : > { %v1273_v4 = vpop.f32.mrb[0].mxu0 }
 0x226   : > { %v12585_v21 = vadd.f32 %v1273_v4, %v369_v44  ;;  %v1275_v11 = vpop.f32.mrb[1].mxu0 }
 0x227   : > { %v12586_v19 = vadd.f32 %v1275_v11, %v373_v43 }
 0x228   : > { %1977 = vrot.lane.b32.xlu1 %v12585_v21, %s13079_s19  ;;  %1971 = vrot.lane.b32.xlu0 %v12585_v21, %s13080_s20 }
 0x229   : > { %v1280_v0 = vpop.f32.mrb[2].mxu0 }
 0x22a   : > { %v1282_v33 = vpop.f32.mrb[3].mxu0  ;;  %v14050_v24 = vadd.f32 %v1280_v0, %v369_v44 }
 0x22b   : > { %v14055_v29 = vadd.f32 %v1282_v33, %v373_v43 }
 0x22c   : > { %1997 = vrot.lane.b32.xlu1 %v12586_v19, %s13079_s19  ;;  %1983 = vrot.lane.b32.xlu0 %v12585_v21, %s13081_s11 }
 0x230   : > { %1973 = vrot.lane.b32.xlu1 %v14050_v24, %s13080_s20  ;;  %1991 = vrot.lane.b32.xlu0 %v12586_v19, %s13080_s20 }
 0x234   : > { %1999 = vrot.lane.b32.xlu1 %v14055_v29, %s13079_s19  ;;  %2003 = vrot.lane.b32.xlu0 %v12586_v19, %s13081_s11 }
 0x238   : > { %2005 = vrot.lane.b32.xlu1 %v14055_v29, %s13081_s11  ;;  %1993 = vrot.lane.b32.xlu0 %v14055_v29, %s13080_s20 }
 0x23c   : > { %1985 = vrot.lane.b32.xlu1 %v14050_v24, %s13081_s11  ;;  %1979 = vrot.lane.b32.xlu0 %v14050_v24, %s13079_s19 }
 0x29a   : > { %v1978_v42 = vpop.permute.xlu1 %1977  ;;  %v1972_v5 = vpop.permute.xlu0 %1971 }
 0x29b   : > { %v2029_v53 = vcombine.low %v12585_v21, %v1978_v42  ;;  %v2030_v45 = vcombine.high %v12585_v21, %v1978_v42  ;;  %v14096_v21 = vpop.f32.mrb[0].mxu1 }
 0x29c   : > { %v14104_v33 = vpop.f32.mrb[1].mxu1 }
 0x29d   : > { %v2037_v34 = vrot.slane %v2029_v53, %v14069_v30  ;;  %v2044_v40 = vrot.slane %v2030_v45, %v14069_v30 }
 0x29e   : > { %v1998_v41 = vpop.permute.xlu1 %1997  ;;  %v1984_v59 = vpop.permute.xlu0 %1983 }
 0x29f   : > { %v2045_v52 = vcombine.low %v1972_v5, %v1984_v59  ;;  %v2046_v13 = vcombine.high %v1972_v5, %v1984_v59  ;;  %v2061_v20 = vcombine.low %v12586_v19, %v1998_v41  ;;  %v2062_v61 = vcombine.high %v12586_v19, %v1998_v41 }
 0x2a1   : > { %v2053_v12 = vrot.slane %v2045_v52, %v14069_v30  ;;  %v2060_v60 = vrot.slane %v2046_v13, %v14069_v30  ;;  %v2069_v3 = vrot.slane %v2061_v20, %v14069_v30  ;;  %v2076_v14 = vrot.slane %v2062_v61, %v14069_v30 }
 0x2a2   : > { %v14078_v63 = vpop.permute.xlu1 %1973  ;;  %v1992_v16 = vpop.permute.xlu0 %1991 }
 0x2a3   : > { %v2093_v10 = vcombine.low %v2037_v34, %v2053_v12  ;;  %v2094_v8 = vcombine.high %v2037_v34, %v2053_v12  ;;  %v2109_v51 = vcombine.low %v2044_v40, %v2060_v60  ;;  %v2110_v27 = vcombine.high %v2044_v40, %v2060_v60 }
 0x2a5   : > { %v2101_v31 = vrot.slane %v2093_v10, %v14072_v58  ;;  %v2108_v9 = vrot.slane %v2094_v8, %v14072_v58  ;;  %v2117_v57 = vrot.slane %v2109_v51, %v14072_v58  ;;  %v2124_v32 = vrot.slane %v2110_v27, %v14072_v58 }
 0x2a6   : > { %v2000_v1 = vpop.permute.xlu1 %1999  ;;  %v2004_v28 = vpop.permute.xlu0 %2003 }
 0x2a7   : > { %v10025_v55 = vcombine.low %v2101_v31, %v2108_v9  ;;  %v10027_v7 = vcombine.high %v2101_v31, %v2108_v9  ;;  %v2077_v2 = vcombine.low %v1992_v16, %v2004_v28  ;;  %v2078_v18 = vcombine.high %v1992_v16, %v2004_v28 }
 0x2a8   : > { %v10029_v25 = vcombine.low %v2117_v57, %v2124_v32  ;;  %v10031_v35 = vcombine.high %v2117_v57, %v2124_v32  ;;  %v2265_v6 = vcombine.low %v14055_v29, %v2000_v1  ;;  %v2266_v54 = vcombine.high %v14055_v29, %v2000_v1 }
 0x2a9   : > { %v2085_v37 = vrot.slane %v2077_v2, %v14069_v30  ;;  %v2092_v38 = vrot.slane %v2078_v18, %v14069_v30  ;;  %v14089_v48 = vrot.slane %v10025_v55, %v14069_v30  ;;  %v14092_v50 = vrot.slane %v10027_v7, %v14069_v30 }
 0x2aa   : > { %v2006_v49 = vpop.permute.xlu1 %2005  ;;  %v1994_v47 = vpop.permute.xlu0 %1993  ;;  %v14099_v43 = vrot.slane %v10029_v25, %v14069_v30  ;;  %v14102_v11 = vrot.slane %v10031_v35, %v14069_v30  ;;  %v2273_v36 = vrot.slane %v2265_v6, %v14069_v30  ;;  %v2280_v56 = vrot.slane %v2266_v54, %v14069_v30 }
 0x2ab   : > { %v2125_v17 = vcombine.low %v2069_v3, %v2085_v37  ;;  %v2126_v44 = vcombine.high %v2069_v3, %v2085_v37  ;;  %v2141_v22 = vcombine.low %v2076_v14, %v2092_v38  ;;  %v2142_v4 = vcombine.high %v2076_v14, %v2092_v38 }
 0x2ac   : > { %v2281_v0 = vcombine.low %v1994_v47, %v2006_v49  ;;  %v2282_v19 = vcombine.high %v1994_v47, %v2006_v49  ;;  %v2501_v28 = vcombine.low %v14089_v48, %v14092_v50  ;;  %v2533_v55 = vcombine.low %v14099_v43, %v14102_v11 }
 0x2ad   : > { %v2133_v15 = vrot.slane %v2125_v17, %v14072_v58  ;;  %v2140_v29 = vrot.slane %v2126_v44, %v14072_v58  ;;  %v2149_v62 = vrot.slane %v2141_v22, %v14072_v58  ;;  %v2156_v46 = vrot.slane %v2142_v4, %v14072_v58 }
 0x2ae   : > { %v2289_v42 = vrot.slane %v2281_v0, %v14069_v30  ;;  %v2296_v5 = vrot.slane %v2282_v19, %v14069_v30  ;;  %v1986_v1 = vpop.permute.xlu1 %1985  ;;  %v1980_v6 = vpop.permute.xlu0 %1979  ;;  %v2509_v54 = vrot.slane %v2501_v28, %v14072_v58  ;;  %v2541_v17 = vrot.slane %v2533_v55, %v14072_v58 }
 0x2af   : > { %v10026_v39 = vcombine.low %v2133_v15, %v2140_v29  ;;  %v10028_v53 = vcombine.high %v2133_v15, %v2140_v29  ;;  %v10030_v45 = vcombine.low %v2149_v62, %v2156_v46  ;;  %v10032_v41 = vcombine.high %v2149_v62, %v2156_v46 }
 0x2b0   : > { %v2329_v59 = vcombine.low %v2273_v36, %v2289_v42  ;;  %v2330_v52 = vcombine.high %v2273_v36, %v2289_v42  ;;  %v2345_v13 = vcombine.low %v2280_v56, %v2296_v5  ;;  %v2346_v34 = vcombine.high %v2280_v56, %v2296_v5 }
 0x2b1   : > { %v14115_v40 = vrot.slane %v10026_v39, %v14069_v30  ;;  %v14118_v12 = vrot.slane %v10028_v53, %v14069_v30  ;;  %v14121_v60 = vrot.slane %v10030_v45, %v14069_v30  ;;  %v14124_v16 = vrot.slane %v10032_v41, %v14069_v30 }
 0x2b2   : > { %v2337_v10 = vrot.slane %v2329_v59, %v14072_v58  ;;  %v2344_v8 = vrot.slane %v2330_v52, %v14072_v58  ;;  %v2353_v51 = vrot.slane %v2345_v13, %v14072_v58  ;;  %v2360_v27 = vrot.slane %v2346_v34, %v14072_v58 }
 0x2b3   : > { %v2517_v31 = vcombine.low %v14115_v40, %v14118_v12  ;;  %v2549_v9 = vcombine.low %v14121_v60, %v14124_v16  ;;  %v2249_v14 = vcombine.low %v14078_v63, %v1986_v1  ;;  %v2250_v37 = vcombine.high %v14078_v63, %v1986_v1 }
 0x2b4   : > { %v10034_v57 = vcombine.low %v2337_v10, %v2344_v8  ;;  %v10036_v32 = vcombine.high %v2337_v10, %v2344_v8  ;;  %v10038_v20 = vcombine.low %v2353_v51, %v2360_v27  ;;  %v10040_v61 = vcombine.high %v2353_v51, %v2360_v27 }
 0x2b5   : > { %v2525_v7 = vrot.slane %v2517_v31, %v14072_v58  ;;  %v2557_v2 = vrot.slane %v2549_v9, %v14072_v58  ;;  %v2257_v63 = vrot.slane %v2249_v14, %v14069_v30  ;;  %v2264_v0 = vrot.slane %v2250_v37, %v14069_v30 }
 0x2b6   : > { %v14141_v18 = vrot.slane %v10034_v57, %v14069_v30  ;;  %v14144_v25 = vrot.slane %v10036_v32, %v14069_v30  ;;  %v14147_v35 = vrot.slane %v10038_v20, %v14069_v30  ;;  %v14150_v3 = vrot.slane %v10040_v61, %v14069_v30 }
 0x2b7   : > { %v2569_v38 = vcombine.low %v2525_v7, %v2557_v2  ;;  %v2570_v44 = vcombine.high %v2525_v7, %v2557_v2  ;;  %v2233_v19 = vcombine.low %v14050_v24, %v1980_v6  ;;  %v2234_v15 = vcombine.high %v14050_v24, %v1980_v6 }
 0x2b8   : > { %v2653_v49 = vcombine.low %v14141_v18, %v14144_v25  ;;  %v2685_v47 = vcombine.low %v14147_v35, %v14150_v3  ;;  %v2565_v42 = vcombine.low %v2509_v54, %v2541_v17  ;;  %v2566_v5 = vcombine.high %v2509_v54, %v2541_v17 }
 0x2b9   : > { %v2853_v29 = vsel %vm2845_vm0, %v2569_v38, 0  ;;  %v2241_v36 = vrot.slane %v2233_v19, %v14069_v30  ;;  %v2248_v56 = vrot.slane %v2234_v15, %v14069_v30  ;;  %v3367_v39 = vsel %vm2845_vm0, %v2570_v44, 0 }
 0x2ba   : > { %v2661_v22 = vrot.slane %v2653_v49, %v14072_v58  ;;  %v2693_v4 = vrot.slane %v2685_v47, %v14072_v58  ;;  %v2847_v13 = vsel %vm2845_vm0, %v2565_v42, 0  ;;  %v3361_v34 = vsel %vm2845_vm0, %v2566_v5, 0 }
 0x2bb   : > { %v2297_v41 = vcombine.low %v2241_v36, %v2257_v63  ;;  %v2298_v59 = vcombine.high %v2241_v36, %v2257_v63  ;;  %v2313_v52 = vcombine.low %v2248_v56, %v2264_v0  ;;  %v2314_v24 = vcombine.high %v2248_v56, %v2264_v0 }
 0x2bc   : > { %v2705_v62 = vcombine.low %v2661_v22, %v2693_v4  ;;  %v2706_v46 = vcombine.high %v2661_v22, %v2693_v4  ;;  %v2859_v10 = vand.u32 4294901760, %v2853_v29  ;;  %v14178_v57 = vand.u32 4294901760, %v2847_v13 }
 0x2bd   : > { %v2305_v51 = vrot.slane %v2297_v41, %v14072_v58  ;;  %v2312_v27 = vrot.slane %v2298_v59, %v14072_v58  ;;  %v2321_v31 = vrot.slane %v2313_v52, %v14072_v58  ;;  %v2328_v9 = vrot.slane %v2314_v24, %v14072_v58 }
 0x2be   : > { %v2856_v53 = vsel %vm2845_vm0, %v2705_v62, 0  ;;  %v3370_v45 = vsel %vm2845_vm0, %v2706_v46, 0  ;;  %v14180_v32 = vand.u32 4294901760, %v3361_v34  ;;  %v3373_v61 = vand.u32 4294901760, %v3367_v39 }
 0x2bf   : > { %v2862_v8 = vand.u32 4294901760, %v2856_v53  ;;  %v10033_v1 = vcombine.low %v2305_v51, %v2312_v27  ;;  %v10035_v28 = vcombine.high %v2305_v51, %v2312_v27  ;;  %v10037_v55 = vcombine.low %v2321_v31, %v2328_v9 }
 0x2c0   : > { %v10039_v7 = vcombine.high %v2321_v31, %v2328_v9  ;;  %v14185_v2 = vsub.f32 %v2847_v13, %v14178_v57  ;;  %v14188_v14 = vsub.f32 %v3361_v34, %v14180_v32  ;;  %v3376_v37 = vand.u32 4294901760, %v3370_v45 }
 0x2c1   : > { %v14182_v20 = vpack.c.bf16 %v2862_v8, %v2859_v10  ;;  %v14191_v38 = vsub.f32 %v2853_v29, %v2859_v10  ;;  %v14194_v49 = vrot.slane %v10033_v1, %v14069_v30  ;;  %v14197_v47 = vrot.slane %v10035_v28, %v14069_v30 }
 0x2c2   : > { %v14200_v6 = vrot.slane %v10037_v55, %v14069_v30  ;;  %v14203_v54 = vrot.slane %v10039_v7, %v14069_v30  ;;  %v2927_v17 = vand.u32 4294901760, %v14185_v2  ;;  %v3441_v44 = vand.u32 4294901760, %v14188_v14 }
 0x2c3   : > { %12010 = vmatprep.subr.bf16.mxu0 %v14182_v20  ;;  %v14208_v22 = vpack.c.bf16 %v3376_v37, %v3373_v61  ;;  %v2948_v4 = vand.u32 4294901760, %v14191_v38  ;;  %v2637_v63 = vcombine.low %v14194_v49, %v14197_v47  ;;  %v14222_v29 = vsub.f32 %v2856_v53, %v2862_v8 }
 0x2c4   : > { %12012 = vmatpush3.bf16.xpose.msra.mxu0 %v14182_v20  ;;  %v2669_v0 = vcombine.low %v14200_v6, %v14203_v54  ;;  %v2928_v19 = vsub.f32 %v14185_v2, %v2927_v17  ;;  %v3442_v15 = vsub.f32 %v14188_v14, %v3441_v44  ;;  %v14231_v59 = vsub.f32 %v3367_v39, %v3373_v61 }
 0x2c5   : > { %12034 = vmatprep.subr.bf16.mxu1 %v14208_v22  ;;  %v2645_v62 = vrot.slane %v2637_v63, %v14072_v58  ;;  %v2949_v42 = vsub.f32 %v14191_v38, %v2948_v4  ;;  %v2955_v5 = vand.u32 4294901760, %v14222_v29  ;;  %v14233_v52 = vsub.f32 %v3370_v45, %v3376_v37 }
 0x2c6   : > { %v2677_v46 = vrot.slane %v2669_v0, %v14072_v58  ;;  %12036 = vmatpush3.bf16.xpose.msra.mxu1 %v14208_v22  ;;  %v2929_v36 = vand.u32 4294901760, %v2928_v19  ;;  %v3443_v56 = vand.u32 4294901760, %v3442_v15  ;;  %v3462_v13 = vand.u32 4294901760, %v14231_v59 }
 0x2c7   : > { %v2956_v24 = vsub.f32 %v14222_v29, %v2955_v5  ;;  %v3469_v34 = vand.u32 4294901760, %v14233_v52  ;;  %v2950_v51 = vand.u32 4294901760, %v2949_v42  ;;  %v2654_v42 = vcombine.high %v14141_v18, %v14144_v25 }
 0x2c8   : > { %v2701_v41 = vcombine.low %v2645_v62, %v2677_v46  ;;  %v2702_v53 = vcombine.high %v2645_v62, %v2677_v46  ;;  %10819 = vmatprep.mubr.f32.mxu0 %v2929_v36  ;;  %10861 = vmatprep.mubr.f32.mxu1 %v3443_v56  ;;  %v3463_v31 = vsub.f32 %v14231_v59, %v3462_v13 }
 0x2c9   : > { %v2957_v39 = vand.u32 4294901760, %v2956_v24  ;;  %v3470_v9 = vsub.f32 %v14233_v52, %v3469_v34  ;;  %v12017_v36 = vpack.c.bf16 %v14222_v29, %v14191_v38  ;;  %v12041_v56 = vpack.c.bf16 %v14233_v52, %v14231_v59 }
 0x2ca   : > { %v2850_v10 = vsel %vm2845_vm0, %v2701_v41, 0  ;;  %v3364_v8 = vsel %vm2845_vm0, %v2702_v53, 0  ;;  %v3464_v55 = vand.u32 4294901760, %v3463_v31  ;;  %v2686_v41 = vcombine.high %v14147_v35, %v14150_v3 }
 0x2cb   : > { %v14242_v27 = vand.u32 4294901760, %v2850_v10  ;;  %v14244_v45 = vand.u32 4294901760, %v3364_v8  ;;  %v12013_v61 = vpack.c.bf16 %v2957_v39, %v2950_v51  ;;  %v3471_v7 = vand.u32 4294901760, %v3470_v9 }
 0x2cc   : > { %v2518_v53 = vcombine.high %v14115_v40, %v14118_v12  ;;  %v2550_v24 = vcombine.high %v14121_v60, %v14124_v16  ;;  %v2668_v18 = vrot.slane %v2654_v42, %v14072_v58  ;;  %v2700_v25 = vrot.slane %v2686_v41, %v14072_v58 }
 0x2cd   : > { %v14253_v1 = vsub.f32 %v2850_v10, %v14242_v27  ;;  %v14256_v28 = vsub.f32 %v3364_v8, %v14244_v45  ;;  %12014 = vmatprep.subr.bf16.mxu0 %v12013_v61  ;;  %v12037_v0 = vpack.c.bf16 %v3471_v7, %v3464_v55  ;;  %v2502_v10 = vcombine.high %v14089_v48, %v14092_v50 }
 0x2ce   : > { %v2534_v8 = vcombine.high %v14099_v43, %v14102_v11  ;;  %v2532_v40 = vrot.slane %v2518_v53, %v14072_v58  ;;  %v2564_v48 = vrot.slane %v2550_v24, %v14072_v58  ;;  %v2707_v50 = vcombine.low %v2668_v18, %v2700_v25 }
 0x2cf   : > { %v2937_v37 = vand.u32 4294901760, %v14253_v1  ;;  %v3451_v63 = vand.u32 4294901760, %v14256_v28  ;;  %12038 = vmatprep.subr.bf16.mxu1 %v12037_v0  ;;  %v2516_v43 = vrot.slane %v2502_v10, %v14072_v58  ;;  %v2708_v12 = vcombine.high %v2668_v18, %v2700_v25 }
 0x2d0   : > { %v2548_v11 = vrot.slane %v2534_v8, %v14072_v58  ;;  %v2571_v60 = vcombine.low %v2532_v40, %v2564_v48  ;;  %v2638_v16 = vcombine.high %v14194_v49, %v14197_v47  ;;  %v2670_v35 = vcombine.high %v14200_v6, %v14203_v54 }
 0x2d1   : > { %v2938_v19 = vsub.f32 %v14253_v1, %v2937_v37  ;;  %v3452_v15 = vsub.f32 %v14256_v28, %v3451_v63  ;;  %v2572_v3 = vcombine.high %v2532_v40, %v2564_v48  ;;  %v12025_v51 = vpack.c.bf16 %v2955_v5, %v2948_v4 }
 0x2d2   : > { %v3884_v39 = vsel %vm2845_vm0, %v2707_v50, 0  ;;  %v12049_v49 = vpack.c.bf16 %v3469_v34, %v3462_v13  ;;  %v2567_v47 = vcombine.low %v2516_v43, %v2548_v11  ;;  %v4398_v6 = vsel %vm2845_vm0, %v2708_v12, 0 }
 0x2d3   : > { %v2939_v62 = vand.u32 4294901760, %v2938_v19  ;;  %v3453_v46 = vand.u32 4294901760, %v3452_v15  ;;  %v2568_v38 = vcombine.high %v2516_v43, %v2548_v11  ;;  %v3881_v54 = vsel %vm2845_vm0, %v2571_v60, 0 }
 0x2d4   : > { %v2652_v4 = vrot.slane %v2638_v16, %v14072_v58  ;;  %v2684_v29 = vrot.slane %v2670_v35, %v14072_v58  ;;  %v4395_v5 = vsel %vm2845_vm0, %v2572_v3, 0  ;;  %v3890_v59 = vand.u32 4294901760, %v3884_v39 }
 0x2d5   : > { %10820 = vmatmul.mubr.f32.vlgmr.msra.gmra.mrb[4].mxu0 %v2939_v62  ;;  %10862 = vmatmul.mubr.f32.vlgmr.msra.gmra.mrb[2].mxu1 %v3453_v46  ;;  %v4404_v52 = vand.u32 4294901760, %v4398_v6  ;;  %v3875_v13 = vsel %vm2845_vm0, %v2567_v47, 0  ;;  %v4401_v34 = vand.u32 4294901760, %v4395_v5 }
 0x2d6   : > { %12016 = vmatpush3.bf16.xpose.msra.mxu0 %v12013_v61  ;;  %12040 = vmatpush3.bf16.xpose.msra.mxu1 %v12037_v0  ;;  %v2703_v31 = vcombine.low %v2652_v4, %v2684_v29  ;;  %v2704_v9 = vcombine.high %v2652_v4, %v2684_v29 }
 0x2d7   : > { %10826 = vmatprep.mubr.f32.mxu0 %v14178_v57  ;;  %12018 = vmatprep.subr.bf16.mxu0 %v12017_v36  ;;  %v14334_v55 = vsub.f32 %v4398_v6, %v4404_v52  ;;  %v14370_v24 = vpack.c.bf16 %v4404_v52, %v4401_v34 }
 0x2d8   : > { %10868 = vmatprep.mubr.f32.mxu1 %v14180_v32  ;;  %12042 = vmatprep.subr.bf16.mxu1 %v12041_v56 }
 0x2d9   : > { %v4497_v15 = vand.u32 4294901760, %v14334_v55 }
 0x2db   : > { %v4498_v8 = vsub.f32 %v14334_v55, %v4497_v15 }
 0x2dd   : > { %10827 = vmatmul.mubr.f32.vlgmr.msra.gmra.mrb[4].mxu0 %v14242_v27  ;;  %10869 = vmatmul.mubr.f32.vlgmr.msra.gmra.mrb[2].mxu1 %v14244_v45  ;;  %v4499_v48 = vand.u32 4294901760, %v4498_v8 }
 0x2de   : > { %12020 = vmatpush3.bf16.xpose.msra.mxu0 %v12017_v36  ;;  %12044 = vmatpush3.bf16.xpose.msra.mxu1 %v12041_v56 }
 0x2df   : > { %10833 = vmatprep.mubr.f32.mxu0 %v14185_v2  ;;  %12022 = vmatprep.subr.bf16.mxu0 %v14182_v20  ;;  %v3887_v2 = vand.u32 4294901760, %v3881_v54 }
 0x2e0   : > { %10875 = vmatprep.mubr.f32.mxu1 %v14188_v14  ;;  %12046 = vmatprep.subr.bf16.mxu1 %v14208_v22  ;;  %v14328_v14 = vand.u32 4294901760, %v3875_v13 }
 0x2e1   : > { %v14338_v7 = vsub.f32 %v3881_v54, %v3887_v2  ;;  %v14368_v53 = vpack.c.bf16 %v3890_v59, %v3887_v2  ;;  %v376_v2 = vsub.s32 2, %v14035_v23 }
 0x2e3   : > { %v3976_v62 = vand.u32 4294901760, %v14338_v7 }
 0x2e5   : > { %10834 = vmatmul.mubr.f32.vlgmr.msra.gmra.mrb[4].mxu0 %v14253_v1  ;;  %10876 = vmatmul.mubr.f32.vlgmr.msra.gmra.mrb[2].mxu1 %v14256_v28  ;;  %v14342_v1 = vsub.f32 %v4395_v5, %v4401_v34  ;;  %v3878_v28 = vsel %vm2845_vm0, %v2703_v31, 0  ;;  %v377_v34 = vrot.slane %v14041_v26, %v376_v2 }
 0x2e6   : > { %12024 = vmatpush3.bf16.xpose.msra.mxu0 %v14182_v20  ;;  %12048 = vmatpush3.bf16.xpose.msra.mxu1 %v14208_v22  ;;  %v14355_v46 = vand.u32 4294901760, %v3878_v28 }
 0x2e7   : > { %10840 = vmatprep.mubr.f32.mxu0 %v2927_v17  ;;  %12026 = vmatprep.subr.bf16.mxu0 %v12025_v51  ;;  %v4389_v17 = vsel %vm2845_vm0, %v2568_v38, 0  ;;  %v4490_v56 = vand.u32 4294901760, %v14342_v1  ;;  %v14435_v31 = vadd.f32 %v14104_v33, %v377_v34 }
 0x2e8   : > { %10882 = vmatprep.mubr.f32.mxu1 %v3441_v44  ;;  %12050 = vmatprep.subr.bf16.mxu1 %v12049_v49  ;;  %v14330_v44 = vsub.f32 %v3884_v39, %v3890_v59  ;;  %v14332_v61 = vand.u32 4294901760, %v4389_v17 }
 0x2e9   : > { %v4491_v25 = vsub.f32 %v14342_v1, %v4490_v56  ;;  %v12097_v38 = vpack.c.bf16 %v4497_v15, %v4490_v56 }
 0x2ea   : > { %v3983_v0 = vand.u32 4294901760, %v14330_v44  ;;  %v14351_v19 = vsub.f32 %v4389_v17, %v14332_v61 }
 0x2eb   : > { %v4492_v12 = vand.u32 4294901760, %v4491_v25 }
 0x2ec   : > { %v3984_v41 = vsub.f32 %v14330_v44, %v3983_v0  ;;  %v4469_v10 = vand.u32 4294901760, %v14351_v19  ;;  %v12073_v6 = vpack.c.bf16 %v3983_v0, %v3976_v62 }
 0x2ed   : > { %10841 = vmatmul.mubr.f32.vlgmr.msra.gmra.mrb[4].mxu0 %v2937_v37  ;;  %10883 = vmatmul.mubr.f32.vlgmr.msra.gmra.mrb[2].mxu1 %v3451_v63  ;;  %v4392_v37 = vsel %vm2845_vm0, %v2704_v9, 0  ;;  %v14347_v63 = vsub.f32 %v3875_v13, %v14328_v14  ;;  %v12085_v3 = vpack.c.bf16 %v4499_v48, %v4492_v12  ;;  %v14442_v9 = vadd.f32 %v14096_v21, %v377_v34 }
 0x2ee   : > { %12028 = vmatpush3.bf16.xpose.msra.mxu0 %v12025_v51  ;;  %12052 = vmatpush3.bf16.xpose.msra.mxu1 %v12049_v49  ;;  %v14357_v36 = vand.u32 4294901760, %v4392_v37  ;;  %v3985_v40 = vand.u32 4294901760, %v3984_v41 }
 0x2ef   : > { %10847 = vmatprep.mubr.f32.mxu0 %v14178_v57  ;;  %12030 = vmatprep.subr.bf16.mxu0 %v14182_v20  ;;  %v3955_v42 = vand.u32 4294901760, %v14347_v63 }
 0x2f0   : > { %10889 = vmatprep.mubr.f32.mxu1 %v14180_v32  ;;  %12054 = vmatprep.subr.bf16.mxu1 %v14208_v22  ;;  %v4478_v18 = vsub.f32 %v4392_v37, %v14357_v36 }
 0x2f2   : > { %v4479_v11 = vand.u32 4294901760, %v4478_v18 }
 0x2f4   : > { %v4480_v39 = vsub.f32 %v4478_v18, %v4479_v11 }
 0x2f5   : > { %10848 = vmatmul.mubr.f32.vlgmr.msra.gmra.mrb[4].mxu0 %v14242_v27  ;;  %10890 = vmatmul.mubr.f32.vlgmr.msra.gmra.mrb[2].mxu1 %v14244_v45 }
 0x2f6   : > { %12032 = vmatpush3.bf16.xpose.msra.mxu0 %v14182_v20  ;;  %12056 = vmatpush3.bf16.xpose.msra.mxu1 %v14208_v22  ;;  %v3977_v20 = vsub.f32 %v14338_v7, %v3976_v62  ;;  %v3964_v22 = vsub.f32 %v3878_v28, %v14355_v46  ;;  %v4481_v47 = vand.u32 4294901760, %v4480_v39 }
 0x2f7   : > { %10854 = vmatprep.mubr.f32.mxu0 %v14178_v57  ;;  %10896 = vmatprep.mubr.f32.mxu1 %v14180_v32  ;;  %v3956_v57 = vsub.f32 %v14347_v63, %v3955_v42  ;;  %v4470_v32 = vsub.f32 %v14351_v19, %v4469_v10 }
 0x2f8   : > { %12058 = vmatprep.subr.bf16.mxu0 %v14368_v53  ;;  %12082 = vmatprep.subr.bf16.mxu1 %v14370_v24  ;;  %v3978_v50 = vand.u32 4294901760, %v3977_v20  ;;  %v3965_v43 = vand.u32 4294901760, %v3964_v22 }
 0x2f9   : > { %v3957_v60 = vand.u32 4294901760, %v3956_v57  ;;  %v4471_v35 = vand.u32 4294901760, %v4470_v32 }
 0x2fa   : > { %v12061_v16 = vpack.c.bf16 %v3985_v40, %v3978_v50  ;;  %v3966_v51 = vsub.f32 %v3964_v22, %v3965_v43 }
 0x2fc   : > { %v3967_v49 = vand.u32 4294901760, %v3966_v51 }
 0x2fd   : > { %10855 = vmatmul.mubr.f32.vlgmr.msra.gmra.mrb[4].mxu0 %v14242_v27  ;;  %10897 = vmatmul.mubr.f32.vlgmr.msra.gmra.mrb[2].mxu1 %v14244_v45  ;;  %v12065_v27 = vpack.c.bf16 %v14330_v44, %v14338_v7  ;;  %v12089_v45 = vpack.c.bf16 %v14334_v55, %v14342_v1 }
 0x2fe   : > { %12060 = vmatpush3.bf16.xpose.msra.mxu0 %v14368_v53  ;;  %12084 = vmatpush3.bf16.xpose.msra.mxu1 %v14370_v24 }
 0x2ff   : > { %10903 = vmatprep.mubr.f32.mxu0 %v3957_v60  ;;  %12062 = vmatprep.subr.bf16.mxu0 %v12061_v16 }
 0x300   : > { %10945 = vmatprep.mubr.f32.mxu1 %v4471_v35  ;;  %12086 = vmatprep.subr.bf16.mxu1 %v12085_v3 }
 0x305   : > { %10904 = vmatmul.mubr.f32.vlgmr.msra.gmra.mrb[6].mxu0 %v3967_v49  ;;  %10946 = vmatmul.mubr.f32.vlgmr.msra.gmra.mrb[4].mxu1 %v4481_v47 }
 0x306   : > { %12064 = vmatpush3.bf16.xpose.msra.mxu0 %v12061_v16  ;;  %10910 = vmatprep.mubr.f32.mxu0 %v14328_v14 }
 0x307   : > { %12088 = vmatpush3.bf16.xpose.msra.mxu1 %v12085_v3  ;;  %10952 = vmatprep.mubr.f32.mxu1 %v14332_v61 }
 0x308   : > { %12066 = vmatprep.subr.bf16.mxu0 %v12065_v27  ;;  %12090 = vmatprep.subr.bf16.mxu1 %v12089_v45 }
 0x30d   : > { %10911 = vmatmul.mubr.f32.vlgmr.msra.gmra.mrb[6].mxu0 %v14355_v46 }
 0x30e   : > { %10953 = vmatmul.mubr.f32.vlgmr.msra.gmra.mrb[4].mxu1 %v14357_v36  ;;  %12068 = vmatpush3.bf16.xpose.msra.mxu0 %v12065_v27 }
 0x30f   : > { %10917 = vmatprep.mubr.f32.mxu0 %v14347_v63  ;;  %12092 = vmatpush3.bf16.xpose.msra.mxu1 %v12089_v45 }
 0x310   : > { %10959 = vmatprep.mubr.f32.mxu1 %v14351_v19  ;;  %12070 = vmatprep.subr.bf16.mxu0 %v14368_v53 }
 0x311   : > { %12094 = vmatprep.subr.bf16.mxu1 %v14370_v24 }
 0x315   : > { %10918 = vmatmul.mubr.f32.vlgmr.msra.gmra.mrb[6].mxu0 %v3964_v22 }
 0x316   : > { %10960 = vmatmul.mubr.f32.vlgmr.msra.gmra.mrb[4].mxu1 %v4478_v18  ;;  %12072 = vmatpush3.bf16.xpose.msra.mxu0 %v14368_v53 }
 0x317   : > { %10924 = vmatprep.mubr.f32.mxu0 %v3955_v42  ;;  %12096 = vmatpush3.bf16.xpose.msra.mxu1 %v14370_v24 }
 0x318   : > { %10966 = vmatprep.mubr.f32.mxu1 %v4469_v10  ;;  %12074 = vmatprep.subr.bf16.mxu0 %v12073_v6 }
 0x319   : > { %12098 = vmatprep.subr.bf16.mxu1 %v12097_v38 }
 0x31d   : > { %10925 = vmatmul.mubr.f32.vlgmr.msra.gmra.mrb[6].mxu0 %v3965_v43 }
 0x31e   : > { %10967 = vmatmul.mubr.f32.vlgmr.msra.gmra.mrb[4].mxu1 %v4479_v11  ;;  %12076 = vmatpush3.bf16.xpose.msra.mxu0 %v12073_v6 }
 0x31f   : > { %10931 = vmatprep.mubr.f32.mxu0 %v14328_v14  ;;  %12100 = vmatpush3.bf16.xpose.msra.mxu1 %v12097_v38 }
 0x320   : > { %10973 = vmatprep.mubr.f32.mxu1 %v14332_v61  ;;  %12078 = vmatprep.subr.bf16.mxu0 %v14368_v53 }
 0x321   : > { %12102 = vmatprep.subr.bf16.mxu1 %v14370_v24 }
 0x325   : > { %10932 = vmatmul.mubr.f32.vlgmr.msra.gmra.mrb[6].mxu0 %v14355_v46 }
 0x326   : > { %10974 = vmatmul.mubr.f32.vlgmr.msra.gmra.mrb[4].mxu1 %v14357_v36  ;;  %12080 = vmatpush3.bf16.xpose.msra.mxu0 %v14368_v53 }
 0x327   : > { %10938 = vmatprep.mubr.f32.mxu0 %v14328_v14  ;;  %12104 = vmatpush3.bf16.xpose.msra.mxu1 %v14370_v24 }
 0x328   : > { %10980 = vmatprep.mubr.f32.mxu1 %v14332_v61 }
 0x32d   : > { %10939 = vmatmul.mubr.f32.vlgmr.msra.gmra.mrb[6].mxu0 %v14355_v46 }
 0x32e   : > { %10981 = vmatmul.mubr.f32.vlgmr.msra.gmra.mrb[4].mxu1 %v14357_v36 }
 0x3d0   : > { %v10856_v54 = vpop.f32.mrb[4].mxu0  ;;  %v10898_v4 = vpop.f32.mrb[2].mxu1 }
 0x3d1   : > { %v3350_v29 = vpop.f32.mrb[5].mxu0  ;;  %v3864_v5 = vpop.f32.mrb[3].mxu1  ;;  %v4906_v59 = vsel %vm4902_vm1, %v10856_v54, -inf  ;;  %v4912_v13 = vsel %vm4902_vm1, %v10898_v4, -inf }
 0x3d2   : > { %4907 = vmax.xlane.f32.xlu1 %v4906_v59  ;;  %v4903_v52 = vsel %vm4902_vm1, %v3350_v29, -inf  ;;  %v4909_v17 = vsel %vm4902_vm1, %v3864_v5, -inf }
 0x3d3   : > { %4904 = vmax.xlane.f32.xlu0 %v4903_v52 }
 0x3d7   : > { %4913 = vmax.xlane.f32.xlu0 %v4912_v13 }
 0x3db   : > { %4910 = vmax.xlane.f32.xlu0 %v4909_v17 }
 0x3e3   : > { %2011 = vrot.lane.b32.xlu1 %v14435_v31, %s13080_s20 }
 0x3e7   : > { %2017 = vrot.lane.b32.xlu1 %v14435_v31, %s13079_s19 }
 0x3eb   : > { %2019 = vrot.lane.b32.xlu1 %v14442_v9, %s13079_s19 }
 0x3f1   : > { %2013 = vrot.lane.b32.xlu0 %v14442_v9, %s13080_s20 }
 0x400   : > { %v10940_v23 = vpop.f32.mrb[6].mxu0 }
 0x401   : > { %v14448_v26 = vpop.f32.mrb[4].mxu1  ;;  %v4378_v33 = vpop.f32.mrb[7].mxu0  ;;  %v4918_v61 = vsel %vm4902_vm1, %v10940_v23, -inf }
 0x402   : > { %v14450_v14 = vpop.f32.mrb[5].mxu1  ;;  %v4915_v44 = vsel %vm4902_vm1, %v4378_v33, -inf  ;;  %v4924_v60 = vsel %vm4902_vm1, %v14448_v26, -inf }
 0x403   : > { %v4921_v11 = vsel %vm4902_vm1, %v14450_v14, -inf }
 0x40f   : > { %4916 = vmax.xlane.f32.xlu1 %v4915_v44 }
 0x410   : > { %4919 = vmax.xlane.f32.xlu0 %v4918_v61 }
 0x45f   : > { %v4908_v21 = vpop.xlane.xlu1 %4907 }
 0x460   : > { %v4928_v55 = vsub.f32 %v10856_v54, %v4908_v21  ;;  %v4905_v7 = vpop.xlane.xlu0 %4904 }
 0x461   : > { %v4927_v1 = vsub.f32 %v3350_v29, %v4905_v7 }
 0x462   : > { %v4937_v28 = vmul.f32 1.442695, %v4928_v55 }
 0x463   : > { %v4935_v37 = vmul.f32 1.442695, %v4927_v1  ;;  %v2012_v46 = vpop.permute.xlu1 %2011 }
 0x464   : > { %12846 = vpow2.f32 %v4937_v28  ;;  %v4914_v62 = vpop.xlane.xlu0 %4913 }
 0x465   : > { %12848 = vpow2.f32 %v4935_v37  ;;  %v4930_v42 = vsub.f32 %v10898_v4, %v4914_v62 }
 0x467   : > { %v2018_v41 = vpop.permute.xlu1 %2017  ;;  %v4941_v24 = vmul.f32 1.442695, %v4930_v42 }
 0x468   : > { %v4911_v36 = vpop.xlane.xlu0 %4910  ;;  %v2165_v49 = vcombine.low %v14435_v31, %v2018_v41  ;;  %v2166_v47 = vcombine.high %v14435_v31, %v2018_v41 }
 0x469   : > { %v4929_v56 = vsub.f32 %v3864_v5, %v4911_v36 }
 0x46a   : > { %v2173_v59 = vrot.slane %v2165_v49, %v14069_v30  ;;  %v2180_v52 = vrot.slane %v2166_v47, %v14069_v30 }
 0x46b   : > { %v4939_v53 = vmul.f32 1.442695, %v4929_v56  ;;  %v2020_v10 = vpop.permute.xlu1 %2019 }
 0x46c   : > { %v2014_v8 = vpop.permute.xlu0 %2013  ;;  %v2369_v27 = vcombine.low %v14442_v9, %v2020_v10  ;;  %v2370_v45 = vcombine.high %v14442_v9, %v2020_v10 }
 0x46d   : > { %12850 = vpow2.f32 %v4939_v53 }
 0x46e   : > { %v14454_v63 = vpop.eup %12846  ;;  %12852 = vpow2.f32 %v4941_v24  ;;  %v2377_v17 = vrot.slane %v2369_v27, %v14069_v30  ;;  %v2384_v34 = vrot.slane %v2370_v45, %v14069_v30 }
 0x46f   : > { %v14456_v0 = vpop.eup %12848  ;;  %v4954_v19 = vsel %vm4902_vm1, %v14454_v63, 0.0 }
 0x470   : > { %4955 = vadd.xlane.f32.xlu0 %v4954_v19  ;;  %v4951_v15 = vsel %vm4902_vm1, %v14456_v0, 0.0 }
 0x471   : > { %4952 = vadd.xlane.f32.xlu1 %v4951_v15 }
 0x477   : > { %v14466_v32 = vpop.eup %12850 }
 0x478   : > { %v14468_v48 = vpop.eup %12852  ;;  %v4957_v50 = vsel %vm4902_vm1, %v14466_v32, 0.0 }
 0x479   : > { %v4960_v43 = vsel %vm4902_vm1, %v14468_v48, 0.0 }
 0x482   : > { %2025 = vrot.lane.b32.xlu1 %v14442_v9, %s13081_s11 }
 0x486   : > { %2023 = vrot.lane.b32.xlu0 %v14435_v31, %s13081_s11 }
 0x49c   : > { %v4917_v20 = vpop.xlane.xlu1 %4916 }
 0x49d   : > { %v4931_v22 = vsub.f32 %v4378_v33, %v4917_v20  ;;  %v4920_v18 = vpop.xlane.xlu0 %4919 }
 0x49e   : > { %v4932_v25 = vsub.f32 %v10940_v23, %v4920_v18 }
 0x49f   : > { %v4943_v57 = vmul.f32 1.442695, %v4931_v22 }
 0x4a0   : > { %v4945_v40 = vmul.f32 1.442695, %v4932_v25 }
 0x4a1   : > { %12854 = vpow2.f32 %v4943_v57 }
 0x4a2   : > { %12856 = vpow2.f32 %v4945_v40 }
 0x4a5   : > { %4958 = vadd.xlane.f32.xlu0 %v4957_v50 }
 0x4a6   : > { %4961 = vadd.xlane.f32.xlu1 %v4960_v43 }
 0x4a9   : > { %4922 = vmax.xlane.f32.xlu0 %v4921_v11 }
 0x4ab   : > { %v14476_v12 = vpop.eup %12854 }
 0x4ac   : > { %v4963_v16 = vsel %vm4902_vm1, %v14476_v12, 0.0  ;;  %v14482_v35 = vpop.eup %12856 }
 0x4ad   : > { %4925 = vmax.xlane.f32.xlu0 %v4924_v60  ;;  %4964 = vadd.xlane.f32.xlu1 %v4963_v16  ;;  %v4966_v3 = vsel %vm4902_vm1, %v14482_v35, 0.0 }
 0x4b1   : > { %4967 = vadd.xlane.f32.xlu0 %v4966_v3 }
 0x4fd   : > { %v4956_v51 = vpop.xlane.xlu0 %4955 }
 0x4fe   : > { %12858 = vrcp.f32 %v4956_v51  ;;  %v4953_v39 = vpop.xlane.xlu1 %4952 }
 0x4ff   : > { %12860 = vrcp.f32 %v4953_v39 }
 0x501   : > { %v2024_v6 = vpop.permute.xlu0 %2023 }
 0x502   : > { %v2181_v38 = vcombine.low %v2012_v46, %v2024_v6  ;;  %v2182_v54 = vcombine.high %v2012_v46, %v2024_v6  ;;  %v2026_v4 = vpop.permute.xlu1 %2025 }
 0x503   : > { %v2385_v29 = vcombine.low %v2014_v8, %v2026_v4  ;;  %v2386_v5 = vcombine.high %v2014_v8, %v2026_v4 }
 0x504   : > { %v2189_v13 = vrot.slane %v2181_v38, %v14069_v30  ;;  %v2196_v2 = vrot.slane %v2182_v54, %v14069_v30 }
 0x505   : > { %v2393_v31 = vrot.slane %v2385_v29, %v14069_v30  ;;  %v2400_v9 = vrot.slane %v2386_v5, %v14069_v30 }
 0x506   : > { %v2197_v23 = vcombine.low %v2173_v59, %v2189_v13  ;;  %v2198_v33 = vcombine.high %v2173_v59, %v2189_v13  ;;  %v2213_v44 = vcombine.low %v2180_v52, %v2196_v2  ;;  %v2214_v61 = vcombine.high %v2180_v52, %v2196_v2 }
 0x507   : > { %v2401_v21 = vcombine.low %v2377_v17, %v2393_v31  ;;  %v2402_v55 = vcombine.high %v2377_v17, %v2393_v31  ;;  %v2417_v7 = vcombine.low %v2384_v34, %v2400_v9  ;;  %v2418_v1 = vcombine.high %v2384_v34, %v2400_v9 }
 0x508   : > { %v12859_v28 = vpop.eup %12858  ;;  %v2205_v37 = vrot.slane %v2197_v23, %v14072_v58  ;;  %v2212_v19 = vrot.slane %v2198_v33, %v14072_v58  ;;  %v2221_v15 = vrot.slane %v2213_v44, %v14072_v58  ;;  %v2228_v62 = vrot.slane %v2214_v61, %v14072_v58 }
 0x509   : > { %v12861_v46 = vpop.eup %12860  ;;  %v4984_v36 = vmul.f32 %v12859_v28, %v14454_v63  ;;  %v2409_v56 = vrot.slane %v2401_v21, %v14072_v58  ;;  %v2416_v42 = vrot.slane %v2402_v55, %v14072_v58  ;;  %v2425_v41 = vrot.slane %v2417_v7, %v14072_v58 }
 0x50a   : > { %v4983_v53 = vmul.f32 %v12861_v46, %v14456_v0  ;;  %v2709_v24 = vcombine.low %v2205_v37, %v2212_v19  ;;  %v10041_v10 = vcombine.high %v2205_v37, %v2212_v19  ;;  %v2725_v8 = vcombine.low %v2221_v15, %v2228_v62 }
 0x50b   : > { %v10042_v20 = vcombine.high %v2221_v15, %v2228_v62  ;;  %v2432_v22 = vrot.slane %v2418_v1, %v14072_v58  ;;  %v2777_v18 = vcombine.low %v2409_v56, %v2416_v42  ;;  %v10043_v25 = vcombine.high %v2409_v56, %v2416_v42 }
 0x50c   : > { %v2716_v57 = vrot.slane %v2709_v24, %v14069_v30  ;;  %v2724_v63 = vrot.slane %v10041_v10, %v14069_v30  ;;  %v2732_v40 = vrot.slane %v2725_v8, %v14069_v30  ;;  %v4992_v50 = vsel %vm4902_vm1, %v4983_v53, 0 }
 0x50d   : > { %v2740_v43 = vrot.slane %v10042_v20, %v14069_v30  ;;  %v2784_v0 = vrot.slane %v2777_v18, %v14069_v30  ;;  %v2792_v11 = vrot.slane %v10043_v25, %v14069_v30  ;;  %v2793_v60 = vcombine.low %v2425_v41, %v2432_v22 }
 0x50e   : > { %v2741_v16 = vcombine.low %v2716_v57, %v2724_v63  ;;  %v2742_v3 = vcombine.high %v2716_v57, %v2724_v63  ;;  %v10044_v51 = vcombine.high %v2425_v41, %v2432_v22  ;;  %v14515_v39 = vand.u32 4294901760, %v4992_v50 }
 0x50f   : > { %v2757_v49 = vcombine.low %v2732_v40, %v2740_v43  ;;  %v2758_v47 = vcombine.high %v2732_v40, %v2740_v43  ;;  %v2800_v27 = vrot.slane %v2793_v60, %v14069_v30  ;;  %v2809_v45 = vcombine.low %v2784_v0, %v2792_v11 }
 0x510   : > { %v2749_v6 = vrot.slane %v2741_v16, %v14072_v58  ;;  %v2756_v38 = vrot.slane %v2742_v3, %v14072_v58  ;;  %v2808_v54 = vrot.slane %v10044_v51, %v14069_v30  ;;  %v2810_v4 = vcombine.high %v2784_v0, %v2792_v11 }
 0x511   : > { %v2765_v29 = vrot.slane %v2757_v49, %v14072_v58  ;;  %v2772_v5 = vrot.slane %v2758_v47, %v14072_v58  ;;  %v2817_v59 = vrot.slane %v2809_v45, %v14072_v58  ;;  %v14525_v52 = vsub.f32 %v4992_v50, %v14515_v39 }
 0x512   : > { %v2824_v13 = vrot.slane %v2810_v4, %v14072_v58  ;;  %v2825_v2 = vcombine.low %v2800_v27, %v2808_v54  ;;  %v2826_v17 = vcombine.high %v2800_v27, %v2808_v54  ;;  %v4995_v34 = vsel %vm4902_vm1, %v4984_v36, 0 }
 0x513   : > { %v2773_v31 = vcombine.low %v2749_v6, %v2765_v29  ;;  %v2774_v9 = vcombine.high %v2749_v6, %v2765_v29  ;;  %v2775_v23 = vcombine.low %v2756_v38, %v2772_v5  ;;  %v14529_v30 = vcombine.high %v2756_v38, %v2772_v5 }
 0x514   : > { %v2833_v33 = vrot.slane %v2825_v2, %v14072_v58  ;;  %v2840_v44 = vrot.slane %v2826_v17, %v14072_v58  ;;  %v5066_v61 = vand.u32 4294901760, %v14525_v52  ;;  %v14534_v21 = vand.u32 4294901760, %v4995_v34 }
 0x515   : > { %v4998_v55 = vand.u32 4294901760, %v2773_v31  ;;  %v5506_v7 = vand.u32 4294901760, %v2774_v9  ;;  %v6014_v1 = vand.u32 4294901760, %v2775_v23  ;;  %v6522_v28 = vand.u32 4294901760, %v14529_v30 }
 0x516   : > { %v2841_v37 = vcombine.low %v2817_v59, %v2833_v33  ;;  %v2842_v19 = vcombine.high %v2817_v59, %v2833_v33  ;;  %v2843_v15 = vcombine.low %v2824_v13, %v2840_v44  ;;  %v2844_v62 = vcombine.high %v2824_v13, %v2840_v44 }
 0x517   : > { %v5067_v46 = vsub.f32 %v14525_v52, %v5066_v61  ;;  %v14541_v36 = vsub.f32 %v4995_v34, %v14534_v21  ;;  %v5086_v58 = vsub.f32 %v2773_v31, %v4998_v55  ;;  %v5594_v56 = vsub.f32 %v2774_v9, %v5506_v7 }
 0x518   : > { %v5001_v42 = vand.u32 4294901760, %v2841_v37  ;;  %v5509_v41 = vand.u32 4294901760, %v2842_v19  ;;  %v6017_v53 = vand.u32 4294901760, %v2843_v15  ;;  %v6102_v24 = vsub.f32 %v2775_v23, %v6014_v1 }
 0x519   : > { %v5068_v10 = vand.u32 4294901760, %v5067_v46  ;;  %v5076_v8 = vand.u32 4294901760, %v14541_v36  ;;  %v5087_v20 = vand.u32 4294901760, %v5086_v58  ;;  %v5595_v22 = vand.u32 4294901760, %v5594_v56 }
 0x51a   : > { %v14544_v18 = vpack.c.bf16 %v5001_v42, %v4998_v55  ;;  %v14546_v25 = vpack.c.bf16 %v5509_v41, %v5506_v7  ;;  %v5093_v57 = vsub.f32 %v2841_v37, %v5001_v42  ;;  %v5601_v63 = vsub.f32 %v2842_v19, %v5509_v41 }
 0x51b   : > { %10987 = vmatprep.mubr.f32.mxu0 %v5068_v10  ;;  %v5077_v40 = vsub.f32 %v14541_v36, %v5076_v8  ;;  %v5088_v50 = vsub.f32 %v5086_v58, %v5087_v20  ;;  %v5596_v43 = vsub.f32 %v5594_v56, %v5595_v22  ;;  %v14551_v0 = vpack.c.bf16 %v6017_v53, %v6014_v1 }
 0x51c   : > { %12106 = vmatprep.subr.bf16.mxu0 %v14544_v18  ;;  %12130 = vmatprep.subr.bf16.mxu1 %v14546_v25  ;;  %v5094_v11 = vand.u32 4294901760, %v5093_v57  ;;  %v5602_v60 = vand.u32 4294901760, %v5601_v63  ;;  %v12113_v16 = vpack.c.bf16 %v5093_v57, %v5086_v58  ;;  %v6103_v3 = vand.u32 4294901760, %v6102_v24 }
 0x51d   : > { %12108 = vmatpush3.bf16.msra.mxu0 %v14544_v18  ;;  %12132 = vmatpush3.bf16.msra.mxu1 %v14546_v25  ;;  %v5078_v51 = vand.u32 4294901760, %v5077_v40  ;;  %v5089_v49 = vand.u32 4294901760, %v5088_v50  ;;  %v5597_v47 = vand.u32 4294901760, %v5596_v43  ;;  %v6109_v27 = vsub.f32 %v2843_v15, %v6017_v53 }
 0x51e   : > { %v5095_v45 = vsub.f32 %v5093_v57, %v5094_v11  ;;  %v5603_v6 = vsub.f32 %v5601_v63, %v5602_v60  ;;  %v12121_v38 = vpack.c.bf16 %v5094_v11, %v5087_v20  ;;  %v6104_v54 = vsub.f32 %v6102_v24, %v6103_v3 }
 0x51f   : > { %v6110_v4 = vand.u32 4294901760, %v6109_v27  ;;  %v14557_v29 = vpack.c.bf16 %v5601_v63, %v5594_v56  ;;  %v14559_v5 = vpack.c.bf16 %v6109_v27, %v6102_v24  ;;  %v14561_v59 = vpack.c.bf16 %v5602_v60, %v5595_v22 }
 0x520   : > { %10988 = vmatmul.mubr.f32.vlgmr.msra.gmra.mrb[8].mxu0 %v5078_v51  ;;  %v5096_v13 = vand.u32 4294901760, %v5095_v45  ;;  %v5604_v2 = vand.u32 4294901760, %v5603_v6  ;;  %v6525_v17 = vand.u32 4294901760, %v2844_v62  ;;  %v6105_v34 = vand.u32 4294901760, %v6104_v54 }
 0x521   : > { %10994 = vmatprep.mubr.f32.mxu0 %v14515_v39  ;;  %v6111_v31 = vsub.f32 %v6109_v27, %v6110_v4  ;;  %v14564_v9 = vpack.c.bf16 %v6110_v4, %v6103_v3  ;;  %v6610_v23 = vsub.f32 %v14529_v30, %v6522_v28 }
 0x522   : > { %v12109_v33 = vpack.c.bf16 %v5096_v13, %v5089_v49  ;;  %v14567_v44 = vpack.c.bf16 %v5604_v2, %v5597_v47  ;;  %v14569_v55 = vpack.c.bf16 %v6525_v17, %v6522_v28  ;;  %v6617_v7 = vsub.f32 %v2844_v62, %v6525_v17 }
 0x523   : > { %v6112_v1 = vand.u32 4294901760, %v6111_v31  ;;  %v6611_v37 = vand.u32 4294901760, %v6610_v23 }
 0x524   : > { %12110 = vmatprep.subr.bf16.mxu0 %v12109_v33  ;;  %12134 = vmatprep.subr.bf16.mxu1 %v14567_v44  ;;  %v6618_v19 = vand.u32 4294901760, %v6617_v7  ;;  %v14572_v15 = vpack.c.bf16 %v6617_v7, %v6610_v23 }
 0x525   : > { %12112 = vmatpush3.bf16.msra.mxu0 %v12109_v33  ;;  %v14574_v46 = vpack.c.bf16 %v6112_v1, %v6105_v34  ;;  %v6612_v58 = vsub.f32 %v6610_v23, %v6611_v37 }
 0x526   : > { %12114 = vmatprep.subr.bf16.mxu0 %v12113_v16  ;;  %v6619_v30 = vsub.f32 %v6617_v7, %v6618_v19  ;;  %v14576_v56 = vpack.c.bf16 %v6618_v19, %v6611_v37 }
 0x527   : > { %v6613_v42 = vand.u32 4294901760, %v6612_v58 }
 0x528   : > { %10995 = vmatmul.mubr.f32.vlgmr.msra.gmra.mrb[8].mxu0 %v14534_v21  ;;  %v6620_v28 = vand.u32 4294901760, %v6619_v30 }
 0x529   : > { %12116 = vmatpush3.bf16.msra.mxu0 %v12113_v16  ;;  %11001 = vmatprep.mubr.f32.mxu0 %v14525_v52 }
 0x52a   : > { %12118 = vmatprep.subr.bf16.mxu0 %v14544_v18  ;;  %v14581_v62 = vpack.c.bf16 %v6620_v28, %v6613_v42 }
 0x530   : > { %11002 = vmatmul.mubr.f32.vlgmr.msra.gmra.mrb[8].mxu0 %v14541_v36 }
 0x531   : > { %12120 = vmatpush3.bf16.msra.mxu0 %v14544_v18  ;;  %11008 = vmatprep.mubr.f32.mxu0 %v5066_v61 }
 0x532   : > { %12122 = vmatprep.subr.bf16.mxu0 %v12121_v38  ;;  %v4959_v41 = vpop.xlane.xlu0 %4958 }
 0x533   : > { %12862 = vrcp.f32 %v4959_v41  ;;  %v4962_v53 = vpop.xlane.xlu1 %4961 }
 0x534   : > { %12864 = vrcp.f32 %v4962_v53 }
 0x536   : > { %v4923_v24 = vpop.xlane.xlu0 %4922 }
 0x537   : > { %v4933_v10 = vsub.f32 %v14450_v14, %v4923_v24 }
 0x538   : > { %11009 = vmatmul.mubr.f32.vlgmr.msra.gmra.mrb[8].mxu0 %v5076_v8 }
 0x539   : > { %12124 = vmatpush3.bf16.msra.mxu0 %v12121_v38  ;;  %v4947_v20 = vmul.f32 1.442695, %v4933_v10  ;;  %11015 = vmatprep.mubr.f32.mxu0 %v14515_v39 }
 0x53a   : > { %12126 = vmatprep.subr.bf16.mxu0 %v14544_v18  ;;  %v4926_v22 = vpop.xlane.xlu0 %4925  ;;  %v4965_v52 = vpop.xlane.xlu1 %4964 }
 0x53b   : > { %12866 = vpow2.f32 %v4947_v20  ;;  %v4934_v61 = vsub.f32 %v14448_v26, %v4926_v22 }
 0x53c   : > { %12868 = vrcp.f32 %v4965_v52 }
 0x53d   : > { %v12863_v57 = vpop.eup %12862  ;;  %v4949_v63 = vmul.f32 1.442695, %v4934_v61 }
 0x53e   : > { %v12865_v40 = vpop.eup %12864  ;;  %v4985_v14 = vmul.f32 %v12863_v57, %v14466_v32  ;;  %v4968_v50 = vpop.xlane.xlu0 %4967 }
 0x53f   : > { %v4986_v36 = vmul.f32 %v12865_v40, %v14468_v48  ;;  %12870 = vpow2.f32 %v4949_v63 }
 0x540   : > { %11016 = vmatmul.mubr.f32.vlgmr.msra.gmra.mrb[8].mxu0 %v14534_v21  ;;  %12872 = vrcp.f32 %v4968_v50  ;;  %v5500_v8 = vsel %vm4902_vm1, %v4985_v14, 0 }
 0x541   : > { %12128 = vmatpush3.bf16.msra.mxu0 %v14544_v18  ;;  %11022 = vmatprep.mubr.f32.mxu0 %v14515_v39  ;;  %v14599_v26 = vand.u32 4294901760, %v5500_v8  ;;  %v5503_v43 = vsel %vm4902_vm1, %v4986_v36, 0 }
 0x542   : > { %12154 = vmatprep.subr.bf16.mxu0 %v14551_v0  ;;  %v14603_v32 = vand.u32 4294901760, %v5503_v43 }
 0x543   : > { %v5573_v48 = vsub.f32 %v5500_v8, %v14599_v26 }
 0x544   : > { %v5583_v11 = vsub.f32 %v5503_v43, %v14603_v32 }
 0x545   : > { %v14607_v60 = vpop.eup %12866  ;;  %v5574_v16 = vand.u32 4294901760, %v5573_v48 }
 0x546   : > { %v12869_v3 = vpop.eup %12868  ;;  %v4969_v18 = vsel %vm4902_vm1, %v14607_v60, 0.0  ;;  %v5584_v39 = vand.u32 4294901760, %v5583_v11 }
 0x547   : > { %v4987_v51 = vmul.f32 %v12869_v3, %v14476_v12  ;;  %4970 = vadd.xlane.f32.xlu1 %v4969_v18  ;;  %v5575_v49 = vsub.f32 %v5573_v48, %v5574_v16 }
 0x548   : > { %11023 = vmatmul.mubr.f32.vlgmr.msra.gmra.mrb[8].mxu0 %v14534_v21  ;;  %v5585_v47 = vsub.f32 %v5583_v11, %v5584_v39 }
 0x549   : > { %v14613_v27 = vpop.eup %12870  ;;  %12156 = vmatpush3.bf16.msra.mxu0 %v14551_v0  ;;  %v5576_v45 = vand.u32 4294901760, %v5575_v49  ;;  %v6008_v6 = vsel %vm4902_vm1, %v4987_v51, 0 }
 0x54a   : > { %v12873_v38 = vpop.eup %12872  ;;  %12158 = vmatprep.subr.bf16.mxu0 %v14574_v46  ;;  %v4972_v54 = vsel %vm4902_vm1, %v14613_v27, 0.0  ;;  %v5586_v4 = vand.u32 4294901760, %v5585_v47  ;;  %v6080_v12 = vand.u32 4294901760, %v6008_v6 }
 0x54b   : > { %v4988_v13 = vmul.f32 %v12873_v38, %v14482_v35  ;;  %11029 = vmatprep.mubr.f32.mxu1 %v5576_v45  ;;  %4973 = vadd.xlane.f32.xlu0 %v4972_v54 }
 0x54c   : > { %11030 = vmatmul.mubr.f32.vlgmr.msra.gmra.mrb[6].mxu1 %v5586_v4  ;;  %v6081_v21 = vsub.f32 %v6008_v6, %v6080_v12 }
 0x54d   : > { %12136 = vmatpush3.bf16.msra.mxu1 %v14567_v44  ;;  %11036 = vmatprep.mubr.f32.mxu1 %v14599_v26  ;;  %v6011_v2 = vsel %vm4902_vm1, %v4988_v13, 0 }
 0x54e   : > { %12138 = vmatprep.subr.bf16.mxu1 %v14557_v29  ;;  %v6082_v17 = vand.u32 4294901760, %v6081_v21  ;;  %v6090_v34 = vand.u32 4294901760, %v6011_v2 }
 0x550   : > { %v6083_v31 = vsub.f32 %v6081_v21, %v6082_v17  ;;  %v6091_v23 = vsub.f32 %v6011_v2, %v6090_v34 }
 0x552   : > { %v6084_v33 = vand.u32 4294901760, %v6083_v31  ;;  %v6092_v7 = vand.u32 4294901760, %v6091_v23 }
 0x554   : > { %11071 = vmatprep.mubr.f32.mxu0 %v6084_v33  ;;  %11037 = vmatmul.mubr.f32.vlgmr.msra.gmra.mrb[6].mxu1 %v14603_v32  ;;  %v6093_v35 = vsub.f32 %v6091_v23, %v6092_v7 }
 0x555   : > { %12140 = vmatpush3.bf16.msra.mxu1 %v14557_v29  ;;  %11043 = vmatprep.mubr.f32.mxu1 %v5573_v48  ;;  %v7024_v29 = vld [vmem:[#allocation7 + $0x8] sm:$0xff] }
 0x556   : > { %12142 = vmatprep.subr.bf16.mxu1 %v14546_v25  ;;  %v6094_v44 = vand.u32 4294901760, %v6093_v35  ;;  %v7049_v1 = vand.u32 4294901760, %v7024_v29 }
 0x558   : > { %11072 = vmatmul.mubr.f32.vlgmr.msra.gmra.mrb[10].mxu0 %v6094_v44  ;;  %v7143_v42 = vsub.f32 %v7024_v29, %v7049_v1  ;;  %v7028_v29 = vld [vmem:[#allocation7 + $0x28] sm:$0xff] }
 0x559   : > { %12160 = vmatpush3.bf16.msra.mxu0 %v14574_v46  ;;  %11078 = vmatprep.mubr.f32.mxu0 %v6080_v12 }
 0x55a   : > { %12162 = vmatprep.subr.bf16.mxu0 %v14559_v5  ;;  %v7144_v53 = vand.u32 4294901760, %v7143_v42 }
 0x55c   : > { %11044 = vmatmul.mubr.f32.vlgmr.msra.gmra.mrb[6].mxu1 %v5583_v11  ;;  %v7145_v22 = vsub.f32 %v7143_v42, %v7144_v53 }
 0x55d   : > { %12144 = vmatpush3.bf16.msra.mxu1 %v14546_v25  ;;  %11050 = vmatprep.mubr.f32.mxu1 %v5574_v16 }
 0x55e   : > { %12146 = vmatprep.subr.bf16.mxu1 %v14561_v59  ;;  %v7146_v63 = vand.u32 4294901760, %v7145_v22 }
 0x560   : > { %11079 = vmatmul.mubr.f32.vlgmr.msra.gmra.mrb[10].mxu0 %v6090_v34 }
 0x561   : > { %12164 = vmatpush3.bf16.msra.mxu0 %v14559_v5  ;;  %11085 = vmatprep.mubr.f32.mxu0 %v6081_v21  ;;  %v7025_v5 = vld [vmem:[#allocation7 + $0x10] sm:$0xff] }
 0x562   : > { %12166 = vmatprep.subr.bf16.mxu0 %v14551_v0  ;;  %v7052_v37 = vand.u32 4294901760, %v7025_v5 }
 0x564   : > { %11051 = vmatmul.mubr.f32.vlgmr.msra.gmra.mrb[6].mxu1 %v5584_v39  ;;  %v7150_v28 = vsub.f32 %v7025_v5, %v7052_v37 }
 0x565   : > { %12148 = vmatpush3.bf16.msra.mxu1 %v14561_v59  ;;  %11057 = vmatprep.mubr.f32.mxu1 %v14599_v26 }
 0x566   : > { %12150 = vmatprep.subr.bf16.mxu1 %v14546_v25  ;;  %v7151_v24 = vand.u32 4294901760, %v7150_v28 }
 0x568   : > { %11086 = vmatmul.mubr.f32.vlgmr.msra.gmra.mrb[10].mxu0 %v6091_v23  ;;  %v7152_v52 = vsub.f32 %v7150_v28, %v7151_v24 }
 0x569   : > { %12168 = vmatpush3.bf16.msra.mxu0 %v14551_v0  ;;  %11092 = vmatprep.mubr.f32.mxu0 %v6082_v17 }
 0x56a   : > { %12170 = vmatprep.subr.bf16.mxu0 %v14564_v9  ;;  %v7153_v40 = vand.u32 4294901760, %v7152_v52 }
 0x56c   : > { %11058 = vmatmul.mubr.f32.vlgmr.msra.gmra.mrb[6].mxu1 %v14603_v32 }
 0x56d   : > { %12152 = vmatpush3.bf16.msra.mxu1 %v14546_v25  ;;  %11064 = vmatprep.mubr.f32.mxu1 %v14599_v26  ;;  %v7023_v25 = vld [vmem:[#allocation7] sm:$0xff] }
 0x56e   : > { %12178 = vmatprep.subr.bf16.mxu1 %v14569_v55  ;;  %v7046_v59 = vand.u32 4294901760, %v7023_v25 }
 0x570   : > { %11093 = vmatmul.mubr.f32.vlgmr.msra.gmra.mrb[10].mxu0 %v6092_v7  ;;  %v14649_v46 = vpack.c.bf16 %v7049_v1, %v7046_v59  ;;  %v7136_v30 = vsub.f32 %v7023_v25, %v7046_v59  ;;  %v7027_v25 = vld [vmem:[#allocation7 + $0x20] sm:$0xff]  ;;  %v7583_v59 = vand.u32 4294901760, %v7028_v29  ;;  %v7029_v1 = vld [vmem:[#allocation7 + $0x30] sm:$0xff] }
 0x571   : > { %12172 = vmatpush3.bf16.msra.mxu0 %v14564_v9  ;;  %11099 = vmatprep.mubr.f32.mxu0 %v6080_v12  ;;  %v7026_v9 = vld [vmem:[#allocation7 + $0x18] sm:$0xff]  ;;  %v7580_v5 = vand.u32 4294901760, %v7027_v25 }
 0x572   : > { %12174 = vmatprep.subr.bf16.mxu0 %v14551_v0  ;;  %v7055_v19 = vand.u32 4294901760, %v7026_v9  ;;  %v7137_v41 = vand.u32 4294901760, %v7136_v30  ;;  %v14659_v36 = vpack.c.bf16 %v7143_v42, %v7136_v30  ;;  %v14705_v42 = vsub.f32 %v7028_v29, %v7583_v59  ;;  %v14773_v29 = vld [vmem:[#allocation7 + $0x70] sm:$0xff] }
 0x574   : > { %11065 = vmatmul.mubr.f32.vlgmr.msra.gmra.mrb[6].mxu1 %v14603_v32  ;;  %v14651_v58 = vpack.c.bf16 %v7055_v19, %v7052_v37  ;;  %v7138_v20 = vsub.f32 %v7136_v30, %v7137_v41  ;;  %v14666_v43 = vpack.c.bf16 %v7144_v53, %v7137_v41  ;;  %v14702_v37 = vsub.f32 %v7027_v25, %v7580_v5 }
 0x575   : > { %12180 = vmatpush3.bf16.msra.mxu1 %v14569_v55  ;;  %v7678_v41 = vand.u32 4294901760, %v14705_v42 }
 0x576   : > { %12182 = vmatprep.subr.bf16.mxu1 %v14581_v62  ;;  %v7139_v57 = vand.u32 4294901760, %v7138_v20 }
 0x578   : > { %11100 = vmatmul.mubr.f32.vlgmr.msra.gmra.mrb[10].mxu0 %v6090_v34  ;;  %v14657_v50 = vpack.c.bf16 %v7146_v63, %v7139_v57  ;;  %v14723_v57 = vpack.c.bf16 %v7583_v59, %v7580_v5 }
 0x579   : > { %12176 = vmatpush3.bf16.msra.mxu0 %v14551_v0  ;;  %11106 = vmatprep.mubr.f32.mxu0 %v6080_v12  ;;  %v7157_v0 = vsub.f32 %v7026_v9, %v7055_v19  ;;  %v7030_v9 = vld [vmem:[#allocation7 + $0x38] sm:$0xff]  ;;  %v7586_v19 = vand.u32 4294901760, %v7029_v1 }
 0x57a   : > { %12202 = vmatprep.subr.bf16.mxu0 %v14649_v46  ;;  %v7589_v30 = vand.u32 4294901760, %v7030_v9 }
 0x57b   : > { %v7158_v10 = vand.u32 4294901760, %v7157_v0  ;;  %v14663_v26 = vpack.c.bf16 %v7157_v0, %v7150_v28  ;;  %v7671_v28 = vand.u32 4294901760, %v14702_v37  ;;  %v14711_v53 = vsub.f32 %v7029_v1, %v7586_v19  ;;  %v14779_v1 = vld [vmem:[#allocation7 + $0x60] sm:$0xff] }
 0x57d   : > { %v7159_v61 = vsub.f32 %v7157_v0, %v7158_v10  ;;  %v14668_v32 = vpack.c.bf16 %v7158_v10, %v7151_v24  ;;  %v14713_v24 = vsub.f32 %v7030_v9, %v7589_v30  ;;  %v7672_v63 = vsub.f32 %v14702_v37, %v7671_v28  ;;  %v14781_v9 = vld [vmem:[#allocation7 + $0x68] sm:$0xff] }
 0x57f   : > { %v7160_v14 = vand.u32 4294901760, %v7159_v61 }
 0x580   : > { %11107 = vmatmul.mubr.f32.vlgmr.msra.gmra.mrb[10].mxu0 %v6090_v34 }
 0x581   : > { %12204 = vmatpush3.bf16.msra.mxu0 %v14649_v46  ;;  %v14661_v8 = vpack.c.bf16 %v7160_v14, %v7153_v40  ;;  %v7679_v14 = vsub.f32 %v14705_v42, %v7678_v41 }
 0x582   : > { %12206 = vmatprep.subr.bf16.mxu0 %v14651_v58 }
 0x585   : > { %12208 = vmatpush3.bf16.msra.mxu0 %v14651_v58 }
 0x586   : > { %12210 = vmatprep.subr.bf16.mxu0 %v14657_v50 }
 0x5d4   : > { %v4971_v48 = vpop.xlane.xlu1 %4970 }
 0x5d5   : > { %12874 = vrcp.f32 %v4971_v48  ;;  %v7680_v48 = vand.u32 4294901760, %v7679_v14 }
 0x5d8   : > { %v4974_v11 = vpop.xlane.xlu0 %4973 }
 0x5d9   : > { %12876 = vrcp.f32 %v4974_v11 }
 0x5df   : > { %v12875_v16 = vpop.eup %12874 }
 0x5e0   : > { %v4989_v3 = vmul.f32 %v12875_v16, %v14607_v60 }
 0x5e2   : > { %v6516_v18 = vsel %vm4902_vm1, %v4989_v3, 0 }
 0x5e3   : > { %v12877_v39 = vpop.eup %12876  ;;  %v6588_v51 = vand.u32 4294901760, %v6516_v18 }
 0x5e4   : > { %v4990_v49 = vmul.f32 %v12877_v39, %v14613_v27 }
 0x5e5   : > { %v6589_v47 = vsub.f32 %v6516_v18, %v6588_v51 }
 0x5e6   : > { %v6519_v45 = vsel %vm4902_vm1, %v4990_v49, 0 }
 0x5e7   : > { %v6598_v6 = vand.u32 4294901760, %v6519_v45  ;;  %v6590_v38 = vand.u32 4294901760, %v6589_v47 }
 0x5e9   : > { %v6591_v54 = vsub.f32 %v6589_v47, %v6590_v38  ;;  %v6599_v4 = vsub.f32 %v6519_v45, %v6598_v6 }
 0x5eb   : > { %v6592_v12 = vand.u32 4294901760, %v6591_v54  ;;  %v6600_v13 = vand.u32 4294901760, %v6599_v4  ;;  %v12265_v54 = vpack.c.bf16 %v14705_v42, %v14702_v37  ;;  %v14783_v37 = vld [vmem:[#allocation7 + $0x78] sm:$0xff] }
 0x5ec   : > { %v8657_v42 = vand.u32 4294901760, %v14783_v37 }
 0x5ed   : > { %11113 = vmatprep.mubr.f32.mxu1 %v6592_v12  ;;  %v6601_v21 = vsub.f32 %v6599_v4, %v6600_v13  ;;  %v12281_v12 = vpack.c.bf16 %v7678_v41, %v7671_v28 }
 0x5ef   : > { %v6602_v2 = vand.u32 4294901760, %v6601_v21  ;;  %v7032_v21 = vld [vmem:[#allocation7 + $0x48] sm:$0xff] }
 0x5f1   : > { %11114 = vmatmul.mubr.f32.vlgmr.msra.gmra.mrb[8].mxu1 %v6602_v2 }
 0x5f2   : > { %12184 = vmatpush3.bf16.msra.mxu1 %v14581_v62  ;;  %11120 = vmatprep.mubr.f32.mxu1 %v6588_v51 }
 0x5f3   : > { %12186 = vmatprep.subr.bf16.mxu1 %v14572_v15 }
 0x5f9   : > { %11121 = vmatmul.mubr.f32.vlgmr.msra.gmra.mrb[8].mxu1 %v6598_v6 }
 0x5fa   : > { %12188 = vmatpush3.bf16.msra.mxu1 %v14572_v15  ;;  %11127 = vmatprep.mubr.f32.mxu1 %v6589_v47 }
 0x5fb   : > { %12190 = vmatprep.subr.bf16.mxu1 %v14569_v55 }
 0x601   : > { %11128 = vmatmul.mubr.f32.vlgmr.msra.gmra.mrb[8].mxu1 %v6599_v4  ;;  %v12269_v4 = vpack.c.bf16 %v14713_v24, %v14711_v53 }
 0x602   : > { %12192 = vmatpush3.bf16.msra.mxu1 %v14569_v55  ;;  %11134 = vmatprep.mubr.f32.mxu1 %v6590_v38 }
 0x603   : > { %12194 = vmatprep.subr.bf16.mxu1 %v14576_v56 }
 0x609   : > { %11135 = vmatmul.mubr.f32.vlgmr.msra.gmra.mrb[8].mxu1 %v6600_v13  ;;  %v7031_v13 = vld [vmem:[#allocation7 + $0x40] sm:$0xff] }
 0x60a   : > { %12196 = vmatpush3.bf16.msra.mxu1 %v14576_v56  ;;  %11141 = vmatprep.mubr.f32.mxu1 %v6588_v51 }
 0x60b   : > { %12198 = vmatprep.subr.bf16.mxu1 %v14569_v55 }
 0x611   : > { %11142 = vmatmul.mubr.f32.vlgmr.msra.gmra.mrb[8].mxu1 %v6598_v6 }
 0x612   : > { %12200 = vmatpush3.bf16.msra.mxu1 %v14569_v55  ;;  %11148 = vmatprep.mubr.f32.mxu1 %v6588_v51 }
 0x619   : > { %11149 = vmatmul.mubr.f32.vlgmr.msra.gmra.mrb[8].mxu1 %v6598_v6 }
 0x61b   : > { %v11024_v15 = vpop.f32.mrb[8].mxu0 }
 0x61c   : > { %v7043_v62 = vsel %vm2845_vm0, %v11024_v15, 0  ;;  %v5489_v60 = vpop.f32.mrb[9].mxu0  ;;  %v8114_v15 = vand.u32 4294901760, %v7031_v13 }
 0x61d   : > { %v14684_v27 = vand.u32 4294901760, %v7043_v62  ;;  %v7040_v17 = vsel %vm2845_vm0, %v5489_v60, 0 }
 0x61e   : > { %v7114_v34 = vand.u32 4294901760, %v7040_v17 }
 0x61f   : > { %v7125_v31 = vsub.f32 %v7043_v62, %v14684_v27  ;;  %v7033_v62 = vld [vmem:[#allocation7 + $0x50] sm:$0xff] }
 0x620   : > { %v7115_v56 = vsub.f32 %v7040_v17, %v7114_v34  ;;  %v7034_v17 = vld [vmem:[#allocation7 + $0x58] sm:$0xff] }
 0x621   : > { %v7126_v23 = vand.u32 4294901760, %v7125_v31 }
 0x622   : > { %v7116_v33 = vand.u32 4294901760, %v7115_v56 }
 0x623   : > { %v7127_v7 = vsub.f32 %v7125_v31, %v7126_v23 }
 0x624   : > { %v7117_v35 = vsub.f32 %v7115_v56, %v7116_v33 }
 0x625   : > { %v7128_v55 = vand.u32 4294901760, %v7127_v7 }
 0x626   : > { %v7118_v44 = vand.u32 4294901760, %v7117_v35 }
 0x628   : > { %11159 = vmatprep.mubr.f32.mxu0 %v7118_v44 }
 0x629   : > { %11160 = vmatmul.mubr.f32.vlgmr.msra.gmra.mrb[12].mxu0 %v7128_v55 }
 0x62a   : > { %12212 = vmatpush3.bf16.msra.mxu0 %v14657_v50  ;;  %11170 = vmatprep.mubr.f32.mxu0 %v7114_v34  ;;  %v7685_v50 = vand.u32 4294901760, %v14711_v53 }
 0x62b   : > { %12214 = vmatprep.subr.bf16.mxu0 %v14661_v8 }
 0x62c   : > { %v7686_v11 = vsub.f32 %v14711_v53, %v7685_v50 }
 0x62e   : > { %12216 = vmatpush3.bf16.msra.mxu0 %v14661_v8  ;;  %v7687_v49 = vand.u32 4294901760, %v7686_v11 }
 0x62f   : > { %12218 = vmatprep.subr.bf16.mxu0 %v14659_v36 }
 0x631   : > { %11171 = vmatmul.mubr.f32.vlgmr.msra.gmra.mrb[12].mxu0 %v14684_v27 }
 0x632   : > { %12220 = vmatpush3.bf16.msra.mxu0 %v14659_v36  ;;  %11181 = vmatprep.mubr.f32.mxu0 %v7115_v56  ;;  %v7692_v36 = vand.u32 4294901760, %v14713_v24  ;;  %v8123_v56 = vand.u32 4294901760, %v7034_v17 }
 0x633   : > { %12222 = vmatprep.subr.bf16.mxu0 %v14663_v26 }
 0x634   : > { %v7693_v16 = vsub.f32 %v14713_v24, %v7692_v36  ;;  %v12285_v60 = vpack.c.bf16 %v7692_v36, %v7685_v50  ;;  %v14771_v25 = vsub.f32 %v7034_v17, %v8123_v56  ;;  %v8648_v24 = vand.u32 4294901760, %v14779_v1  ;;  %v14881_v17 = vld [vmem:[#allocation8 + $0x8] sm:$0xff] }
 0x636   : > { %12224 = vmatpush3.bf16.msra.mxu0 %v14663_v26  ;;  %v14735_v26 = vpack.c.bf16 %v7589_v30, %v7586_v19  ;;  %v7694_v47 = vand.u32 4294901760, %v7693_v16  ;;  %v8654_v19 = vand.u32 4294901760, %v14773_v29  ;;  %v8226_v53 = vand.u32 4294901760, %v14771_v25 }
 0x637   : > { %12226 = vmatprep.subr.bf16.mxu0 %v14649_v46 }
 0x638   : > { %v12261_v38 = vpack.c.bf16 %v7694_v47, %v7687_v49 }
 0x639   : > { %11182 = vmatmul.mubr.f32.vlgmr.msra.gmra.mrb[12].mxu0 %v7125_v31  ;;  %v8120_v31 = vand.u32 4294901760, %v7033_v62 }
 0x63a   : > { %12228 = vmatpush3.bf16.msra.mxu0 %v14649_v46  ;;  %11192 = vmatprep.mubr.f32.mxu0 %v7116_v33 }
 0x63b   : > { %12230 = vmatprep.subr.bf16.mxu0 %v14651_v58  ;;  %v14768_v44 = vsub.f32 %v7033_v62, %v8120_v31 }
 0x63e   : > { %12232 = vmatpush3.bf16.msra.mxu0 %v14651_v58 }
 0x63f   : > { %12234 = vmatprep.subr.bf16.mxu0 %v14666_v43 }
 0x641   : > { %11193 = vmatmul.mubr.f32.vlgmr.msra.gmra.mrb[12].mxu0 %v7126_v23  ;;  %v14760_v23 = vsub.f32 %v7031_v13, %v8114_v15 }
 0x642   : > { %12236 = vmatpush3.bf16.msra.mxu0 %v14666_v43  ;;  %11203 = vmatprep.mubr.f32.mxu0 %v7114_v34  ;;  %v7673_v43 = vand.u32 4294901760, %v7672_v63 }
 0x643   : > { %12238 = vmatprep.subr.bf16.mxu0 %v14668_v32  ;;  %v8205_v55 = vand.u32 4294901760, %v14760_v23 }
 0x645   : > { %v8206_v41 = vsub.f32 %v14760_v23, %v8205_v55 }
 0x646   : > { %12240 = vmatpush3.bf16.msra.mxu0 %v14668_v32 }
 0x647   : > { %12242 = vmatprep.subr.bf16.mxu0 %v14649_v46  ;;  %v11066_v0 = vpop.f32.mrb[6].mxu1 }
 0x648   : > { %v7577_v10 = vsel %vm2845_vm0, %v11066_v0, 0  ;;  %v5997_v20 = vpop.f32.mrb[7].mxu1  ;;  %v8219_v0 = vand.u32 4294901760, %v14768_v44 }
 0x649   : > { %11204 = vmatmul.mubr.f32.vlgmr.msra.gmra.mrb[12].mxu0 %v14684_v27  ;;  %v14717_v22 = vand.u32 4294901760, %v7577_v10  ;;  %v7574_v52 = vsel %vm2845_vm0, %v5997_v20, 0 }
 0x64a   : > { %12244 = vmatpush3.bf16.msra.mxu0 %v14649_v46  ;;  %11214 = vmatprep.mubr.f32.mxu0 %v7114_v34  ;;  %v14721_v61 = vand.u32 4294901760, %v7574_v52  ;;  %v8220_v14 = vsub.f32 %v14768_v44, %v8219_v0 }
 0x64b   : > { %v7659_v40 = vsub.f32 %v7577_v10, %v14717_v22  ;;  %12246 = vmatprep.subr.bf16.mxu0 %v14651_v58  ;;  %v8651_v10 = vand.u32 4294901760, %v14781_v9 }
 0x64c   : > { %v7649_v46 = vsub.f32 %v7574_v52, %v14721_v61 }
 0x64d   : > { %v7660_v32 = vand.u32 4294901760, %v7659_v40 }
 0x64e   : > { %v7650_v8 = vand.u32 4294901760, %v7649_v46  ;;  %12248 = vmatpush3.bf16.msra.mxu0 %v14651_v58  ;;  %v12257_v58 = vpack.c.bf16 %v7680_v48, %v7673_v43  ;;  %v14828_v43 = vsub.f32 %v14779_v1, %v8648_v24  ;;  %v12349_v1 = vpack.c.bf16 %v8657_v42, %v8654_v19 }
 0x64f   : > { %12250 = vmatprep.subr.bf16.mxu0 %v14723_v57  ;;  %v7661_v39 = vsub.f32 %v7659_v40, %v7660_v32 }
 0x650   : > { %v7651_v3 = vsub.f32 %v7649_v46, %v7650_v8 }
 0x651   : > { %11215 = vmatmul.mubr.f32.vlgmr.msra.gmra.mrb[12].mxu0 %v14684_v27  ;;  %v7662_v6 = vand.u32 4294901760, %v7661_v39  ;;  %v8117_v27 = vand.u32 4294901760, %v7032_v21 }
 0x652   : > { %12252 = vmatpush3.bf16.msra.mxu0 %v14723_v57  ;;  %v7652_v18 = vand.u32 4294901760, %v7651_v3 }
 0x653   : > { %v11108_v51 = vpop.f32.mrb[10].mxu0  ;;  %12254 = vmatprep.subr.bf16.mxu0 %v14735_v26  ;;  %v14762_v33 = vsub.f32 %v7032_v21, %v8117_v27  ;;  %v14789_v28 = vpack.c.bf16 %v8117_v27, %v8114_v15  ;;  %v12317_v21 = vpack.c.bf16 %v14771_v25, %v14768_v44  ;;  %v14879_v27 = vld [vmem:[#allocation8] sm:$0xff]  ;;  %v14892_v44 = vld [vmem:[#allocation8 + $0x28] sm:$0xff] }
 0x654   : > { %v6505_v45 = vpop.f32.mrb[11].mxu0  ;;  %11225 = vmatprep.mubr.f32.mxu0 %v7652_v18  ;;  %v8111_v7 = vsel %vm2845_vm0, %v11108_v51, 0 }
 0x655   : > { %v8108_v2 = vsel %vm2845_vm0, %v6505_v45, 0  ;;  %v14775_v5 = vand.u32 4294901760, %v8111_v7  ;;  %v8212_v59 = vand.u32 4294901760, %v14762_v33 }
 0x656   : > { %12256 = vmatpush3.bf16.msra.mxu0 %v14735_v26  ;;  %v14757_v34 = vand.u32 4294901760, %v8108_v2 }
 0x657   : > { %12258 = vmatprep.subr.bf16.mxu0 %v12257_v58  ;;  %v14801_v20 = vsub.f32 %v8111_v7, %v14775_v5  ;;  %v8213_v52 = vsub.f32 %v14762_v33, %v8212_v59  ;;  %v12329_v62 = vpack.c.bf16 %v8212_v59, %v8205_v55 }
 0x658   : > { %v14766_v35 = vsub.f32 %v8108_v2, %v14757_v34 }
 0x659   : > { %11226 = vmatmul.mubr.f32.vlgmr.msra.gmra.mrb[12].mxu0 %v7662_v6  ;;  %v8194_v48 = vand.u32 4294901760, %v14801_v20 }
 0x65a   : > { %12260 = vmatpush3.bf16.msra.mxu0 %v12257_v58  ;;  %11236 = vmatprep.mubr.f32.mxu0 %v14721_v61  ;;  %v8184_v30 = vand.u32 4294901760, %v14766_v35  ;;  %v8221_v58 = vand.u32 4294901760, %v8220_v14 }
 0x65b   : > { %12262 = vmatprep.subr.bf16.mxu0 %v12261_v38  ;;  %v8195_v47 = vsub.f32 %v14801_v20, %v8194_v48 }
 0x65c   : > { %v8185_v63 = vsub.f32 %v14766_v35, %v8184_v30 }
 0x65e   : > { %12264 = vmatpush3.bf16.msra.mxu0 %v12261_v38  ;;  %v8186_v3 = vand.u32 4294901760, %v8185_v63 }
 0x65f   : > { %12266 = vmatprep.subr.bf16.mxu0 %v12265_v54 }
 0x661   : > { %11237 = vmatmul.mubr.f32.vlgmr.msra.gmra.mrb[12].mxu0 %v14717_v22 }
 0x662   : > { %12268 = vmatpush3.bf16.msra.mxu0 %v12265_v54  ;;  %11247 = vmatprep.mubr.f32.mxu0 %v7649_v46  ;;  %v8207_v46 = vand.u32 4294901760, %v8206_v41  ;;  %v8196_v54 = vand.u32 4294901760, %v8195_v47  ;;  %v14909_v41 = vld [vmem:[#allocation8 + $0x30] sm:$0xff] }
 0x663   : > { %12270 = vmatprep.subr.bf16.mxu0 %v12269_v4 }
 0x666   : > { %12272 = vmatpush3.bf16.msra.mxu0 %v12269_v4  ;;  %v12313_v4 = vpack.c.bf16 %v14762_v33, %v14760_v23  ;;  %v9212_v23 = vand.u32 4294901760, %v14881_v17  ;;  %v14887_v33 = vld [vmem:[#allocation8 + $0x18] sm:$0xff] }
 0x667   : > { %12274 = vmatprep.subr.bf16.mxu0 %v14723_v57  ;;  %v9218_v55 = vand.u32 4294901760, %v14887_v33 }
 0x669   : > { %11248 = vmatmul.mubr.f32.vlgmr.msra.gmra.mrb[12].mxu0 %v7659_v40  ;;  %v14816_v40 = vpack.c.bf16 %v8123_v56, %v8120_v31  ;;  %v14883_v31 = vld [vmem:[#allocation8 + $0x10] sm:$0xff]  ;;  %v9209_v56 = vand.u32 4294901760, %v14879_v27 }
 0x66a   : > { %12276 = vmatpush3.bf16.msra.mxu0 %v14723_v57  ;;  %11258 = vmatprep.mubr.f32.mxu0 %v7650_v8  ;;  %v8227_v8 = vsub.f32 %v14771_v25, %v8226_v53  ;;  %v9215_v7 = vand.u32 4294901760, %v14883_v31 }
 0x66b   : > { %12278 = vmatprep.subr.bf16.mxu0 %v14735_v26  ;;  %v14899_v25 = vpack.c.bf16 %v9212_v23, %v9209_v56 }
 0x66c   : > { %v8228_v49 = vand.u32 4294901760, %v8227_v8 }
 0x66d   : > { %12394 = vmatprep.subr.bf16.mxu1 %v14899_v25 }
 0x66e   : > { %12280 = vmatpush3.bf16.msra.mxu0 %v14735_v26  ;;  %12396 = vmatpush3.bf16.msra.mxu1 %v14899_v25 }
 0x66f   : > { %12282 = vmatprep.subr.bf16.mxu0 %v12281_v12 }
 0x671   : > { %11259 = vmatmul.mubr.f32.vlgmr.msra.gmra.mrb[12].mxu0 %v7660_v32  ;;  %v14833_v32 = vsub.f32 %v14781_v9, %v8651_v10 }
 0x672   : > { %12284 = vmatpush3.bf16.msra.mxu0 %v12281_v12  ;;  %11269 = vmatprep.mubr.f32.mxu0 %v14721_v61  ;;  %v8739_v12 = vand.u32 4294901760, %v14828_v43 }
 0x673   : > { %12286 = vmatprep.subr.bf16.mxu0 %v12285_v60  ;;  %v14839_v18 = vpack.c.bf16 %v14833_v32, %v14828_v43  ;;  %v8746_v13 = vand.u32 4294901760, %v14833_v32 }
 0x674   : > { %v8740_v63 = vsub.f32 %v14828_v43, %v8739_v12 }
 0x675   : > { %v14857_v2 = vpack.c.bf16 %v8746_v13, %v8739_v12  ;;  %v8747_v14 = vsub.f32 %v14833_v32, %v8746_v13 }
 0x676   : > { %12288 = vmatpush3.bf16.msra.mxu0 %v12285_v60  ;;  %v12333_v60 = vpack.c.bf16 %v8226_v53, %v8219_v0  ;;  %v14907_v0 = vpack.c.bf16 %v9218_v55, %v9215_v7  ;;  %v14911_v53 = vld [vmem:[#allocation8 + $0x38] sm:$0xff]  ;;  %v8741_v9 = vand.u32 4294901760, %v8740_v63 }
 0x677   : > { %12290 = vmatprep.subr.bf16.mxu0 %v14723_v57 }
 0x678   : > { %12398 = vmatprep.subr.bf16.mxu1 %v14907_v0 }
 0x679   : > { %11270 = vmatmul.mubr.f32.vlgmr.msra.gmra.mrb[12].mxu0 %v14717_v22  ;;  %12400 = vmatpush3.bf16.msra.mxu1 %v14907_v0 }
 0x67a   : > { %12292 = vmatpush3.bf16.msra.mxu0 %v14723_v57  ;;  %11280 = vmatprep.mubr.f32.mxu0 %v14721_v61  ;;  %v8752_v61 = vsub.f32 %v14773_v29, %v8654_v19  ;;  %v8759_v57 = vsub.f32 %v14783_v37, %v8657_v42 }
 0x67b   : > { %12294 = vmatprep.subr.bf16.mxu0 %v14735_v26 }
 0x67c   : > { %v8753_v50 = vand.u32 4294901760, %v8752_v61  ;;  %v8760_v36 = vand.u32 4294901760, %v8759_v57  ;;  %v14847_v38 = vpack.c.bf16 %v8759_v57, %v8752_v61 }
 0x67e   : > { %12296 = vmatpush3.bf16.msra.mxu0 %v14735_v26  ;;  %v8214_v26 = vand.u32 4294901760, %v8213_v52  ;;  %v8754_v11 = vsub.f32 %v8752_v61, %v8753_v50  ;;  %v8761_v16 = vsub.f32 %v8759_v57, %v8760_v36  ;;  %v14861_v15 = vpack.c.bf16 %v8760_v36, %v8753_v50 }
 0x67f   : > { %12298 = vmatprep.subr.bf16.mxu0 %v14789_v28  ;;  %v9227_v52 = vand.u32 4294901760, %v14909_v41  ;;  %v9230_v61 = vand.u32 4294901760, %v14911_v53  ;;  %v12345_v57 = vpack.c.bf16 %v8651_v10, %v8648_v24 }
 0x680   : > { %v8755_v39 = vand.u32 4294901760, %v8754_v11  ;;  %v8762_v51 = vand.u32 4294901760, %v8761_v16  ;;  %v12305_v45 = vpack.c.bf16 %v8214_v26, %v8207_v46  ;;  %v9200_v26 = vld [vmem:[#allocation8 + $0x40] sm:$0xff]  ;;  %v9201_v11 = vld [vmem:[#allocation8 + $0x48] sm:$0xff]  ;;  %v9202_v16 = vld [vmem:[#allocation8 + $0x50] sm:$0xff] }
 0x681   : > { %11281 = vmatmul.mubr.f32.vlgmr.msra.gmra.mrb[12].mxu0 %v14717_v22  ;;  %v12309_v22 = vpack.c.bf16 %v8228_v49, %v8221_v58  ;;  %v9204_v58 = vld [vmem:[#allocation8 + $0x60] sm:$0xff]  ;;  %v9205_v49 = vld [vmem:[#allocation8 + $0x68] sm:$0xff] }
 0x682   : > { %12300 = vmatpush3.bf16.msra.mxu0 %v14789_v28  ;;  %11291 = vmatprep.mubr.f32.mxu0 %v8186_v3  ;;  %v14845_v6 = vpack.c.bf16 %v8762_v51, %v8755_v39  ;;  %v9233_v3 = vand.u32 4294901760, %v9200_v26  ;;  %v9203_v39 = vld [vmem:[#allocation8 + $0x58] sm:$0xff]  ;;  %v9239_v51 = vand.u32 4294901760, %v9202_v16 }
 0x683   : > { %12302 = vmatprep.subr.bf16.mxu0 %v14816_v40  ;;  %v9242_v47 = vand.u32 4294901760, %v9203_v39 }
 0x686   : > { %12304 = vmatpush3.bf16.msra.mxu0 %v14816_v40 }
 0x687   : > { %12306 = vmatprep.subr.bf16.mxu0 %v12305_v45 }
 0x689   : > { %11292 = vmatmul.mubr.f32.vlgmr.msra.gmra.mrb[12].mxu0 %v8196_v54  ;;  %v9206_v54 = vld [vmem:[#allocation8 + $0x70] sm:$0xff] }
 0x68a   : > { %12308 = vmatpush3.bf16.msra.mxu0 %v12305_v45  ;;  %11302 = vmatprep.mubr.f32.mxu0 %v14757_v34  ;;  %v9251_v12 = vand.u32 4294901760, %v9206_v54 }
 0x68b   : > { %12310 = vmatprep.subr.bf16.mxu0 %v12309_v22 }
 0x68e   : > { %12312 = vmatpush3.bf16.msra.mxu0 %v12309_v22  ;;  %v14966_v22 = vpack.c.bf16 %v9242_v47, %v9239_v51 }
 0x68f   : > { %12314 = vmatprep.subr.bf16.mxu0 %v12313_v4 }
 0x691   : > { %11303 = vmatmul.mubr.f32.vlgmr.msra.gmra.mrb[12].mxu0 %v14775_v5 }
 0x692   : > { %12316 = vmatpush3.bf16.msra.mxu0 %v12313_v4  ;;  %11313 = vmatprep.mubr.f32.mxu0 %v14766_v35  ;;  %v14890_v35 = vld [vmem:[#allocation8 + $0x20] sm:$0xff]  ;;  %v9207_v4 = vld [vmem:[#allocation8 + $0x78] sm:$0xff] }
 0x693   : > { %12318 = vmatprep.subr.bf16.mxu0 %v12317_v21  ;;  %v9221_v59 = vand.u32 4294901760, %v14890_v35 }
 0x696   : > { %12320 = vmatpush3.bf16.msra.mxu0 %v12317_v21  ;;  %v9254_v21 = vand.u32 4294901760, %v9207_v4 }
 0x697   : > { %12322 = vmatprep.subr.bf16.mxu0 %v14789_v28 }
 0x699   : > { %11314 = vmatmul.mubr.f32.vlgmr.msra.gmra.mrb[12].mxu0 %v14801_v20 }
 0x69a   : > { %12324 = vmatpush3.bf16.msra.mxu0 %v14789_v28  ;;  %11324 = vmatprep.mubr.f32.mxu0 %v8184_v30  ;;  %v9224_v30 = vand.u32 4294901760, %v14892_v44 }
 0x69b   : > { %12326 = vmatprep.subr.bf16.mxu0 %v14816_v40 }
 0x69c   : > { %v14922_v20 = vpack.c.bf16 %v9224_v30, %v9221_v59 }
 0x69e   : > { %12328 = vmatpush3.bf16.msra.mxu0 %v14816_v40  ;;  %12402 = vmatprep.subr.bf16.mxu1 %v14922_v20 }
 0x69f   : > { %12330 = vmatprep.subr.bf16.mxu0 %v12329_v62  ;;  %12404 = vmatpush3.bf16.msra.mxu1 %v14922_v20 }
 0x6a1   : > { %11325 = vmatmul.mubr.f32.vlgmr.msra.gmra.mrb[12].mxu0 %v8194_v48 }
 0x6a2   : > { %12332 = vmatpush3.bf16.msra.mxu0 %v12329_v62  ;;  %11335 = vmatprep.mubr.f32.mxu0 %v14757_v34 }
 0x6a3   : > { %12334 = vmatprep.subr.bf16.mxu0 %v12333_v60 }
 0x6a6   : > { %12336 = vmatpush3.bf16.msra.mxu0 %v12333_v60 }
 0x6a7   : > { %12338 = vmatprep.subr.bf16.mxu0 %v14789_v28 }
 0x6a9   : > { %11336 = vmatmul.mubr.f32.vlgmr.msra.gmra.mrb[12].mxu0 %v14775_v5 }
 0x6aa   : > { %12340 = vmatpush3.bf16.msra.mxu0 %v14789_v28  ;;  %11346 = vmatprep.mubr.f32.mxu0 %v14757_v34  ;;  %v14941_v34 = vpack.c.bf16 %v9230_v61, %v9227_v52  ;;  %v8748_v28 = vand.u32 4294901760, %v8747_v14  ;;  %v15001_v14 = vsub.f32 %v9200_v26, %v9233_v3 }
 0x6ab   : > { %12342 = vmatprep.subr.bf16.mxu0 %v14816_v40 }
 0x6ac   : > { %12406 = vmatprep.subr.bf16.mxu1 %v14941_v34  ;;  %v12353_v24 = vpack.c.bf16 %v8748_v28, %v8741_v9  ;;  %v9368_v9 = vand.u32 4294901760, %v15001_v14 }
 0x6ad   : > { %12408 = vmatpush3.bf16.msra.mxu1 %v14941_v34 }
 0x6ae   : > { %12344 = vmatpush3.bf16.msra.mxu0 %v14816_v40 }
 0x6af   : > { %12346 = vmatprep.subr.bf16.mxu0 %v12345_v57 }
 0x6b1   : > { %11347 = vmatmul.mubr.f32.vlgmr.msra.gmra.mrb[12].mxu0 %v14775_v5 }
 0x6b2   : > { %12348 = vmatpush3.bf16.msra.mxu0 %v12345_v57 }
 0x6b3   : > { %12350 = vmatprep.subr.bf16.mxu0 %v12349_v1 }
 0x6b6   : > { %12352 = vmatpush3.bf16.msra.mxu0 %v12349_v1 }
 0x6b7   : > { %12354 = vmatprep.subr.bf16.mxu0 %v12353_v24 }
 0x6ec   : > { %v11150_v10 = vpop.f32.mrb[8].mxu1 }
 0x6ed   : > { %v8645_v29 = vsel %vm2845_vm0, %v11150_v10, 0  ;;  %v7013_v37 = vpop.f32.mrb[9].mxu1 }
 0x6ee   : > { %v8726_v19 = vand.u32 4294901760, %v8645_v29  ;;  %v8642_v42 = vsel %vm2845_vm0, %v7013_v37, 0  ;;  %v15015_v37 = vsub.f32 %v9203_v39, %v9242_v47  ;;  %v15041_v39 = vsub.f32 %v9207_v4, %v9254_v21 }
 0x6ef   : > { %v8716_v40 = vand.u32 4294901760, %v8642_v42 }
 0x6f0   : > { %v8727_v50 = vsub.f32 %v8645_v29, %v8726_v19  ;;  %v15013_v29 = vsub.f32 %v9202_v16, %v9239_v51 }
 0x6f1   : > { %v8717_v36 = vsub.f32 %v8642_v42, %v8716_v40 }
 0x6f2   : > { %v8728_v5 = vand.u32 4294901760, %v8727_v50 }
 0x6f3   : > { %v8718_v46 = vand.u32 4294901760, %v8717_v36 }
 0x6f4   : > { %v8729_v8 = vsub.f32 %v8727_v50, %v8728_v5 }
 0x6f5   : > { %v8719_v43 = vsub.f32 %v8717_v36, %v8718_v46 }
 0x6f6   : > { %v8730_v48 = vand.u32 4294901760, %v8729_v8 }
 0x6f7   : > { %v8720_v32 = vand.u32 4294901760, %v8719_v43 }
 0x6f9   : > { %11357 = vmatprep.mubr.f32.mxu0 %v8720_v32 }
 0x6fa   : > { %11358 = vmatmul.mubr.f32.vlgmr.msra.gmra.mrb[12].mxu0 %v8730_v48 }
 0x6fb   : > { %12356 = vmatpush3.bf16.msra.mxu0 %v12353_v24  ;;  %11368 = vmatprep.mubr.f32.mxu0 %v8716_v40  ;;  %v9369_v24 = vsub.f32 %v15001_v14, %v9368_v9 }
 0x6fc   : > { %12358 = vmatprep.subr.bf16.mxu0 %v14845_v6 }
 0x6ff   : > { %12360 = vmatpush3.bf16.msra.mxu0 %v14845_v6  ;;  %v9245_v6 = vand.u32 4294901760, %v9204_v58 }
 0x700   : > { %12362 = vmatprep.subr.bf16.mxu0 %v14839_v18 }
 0x702   : > { %11369 = vmatmul.mubr.f32.vlgmr.msra.gmra.mrb[12].mxu0 %v8726_v19 }
 0x703   : > { %12364 = vmatpush3.bf16.msra.mxu0 %v14839_v18  ;;  %11379 = vmatprep.mubr.f32.mxu0 %v8717_v36  ;;  %v9236_v18 = vand.u32 4294901760, %v9201_v11 }
 0x704   : > { %12366 = vmatprep.subr.bf16.mxu0 %v14847_v38 }
 0x705   : > { %v14964_v45 = vpack.c.bf16 %v9236_v18, %v9233_v3 }
 0x707   : > { %12368 = vmatpush3.bf16.msra.mxu0 %v14847_v38  ;;  %v9248_v38 = vand.u32 4294901760, %v9205_v49  ;;  %12410 = vmatprep.subr.bf16.mxu1 %v14964_v45 }
 0x708   : > { %12370 = vmatprep.subr.bf16.mxu0 %v12345_v57  ;;  %12412 = vmatpush3.bf16.msra.mxu1 %v14964_v45 }
 0x709   : > { %12414 = vmatprep.subr.bf16.mxu1 %v14966_v22  ;;  %v14971_v13 = vpack.c.bf16 %v9248_v38, %v9245_v6  ;;  %v15026_v8 = vsub.f32 %v9205_v49, %v9248_v38 }
 0x70a   : > { %11380 = vmatmul.mubr.f32.vlgmr.msra.gmra.mrb[12].mxu0 %v8727_v50  ;;  %v15409_v50 = vand.u32 4294901760, %v15015_v37 }
 0x70b   : > { %12372 = vmatpush3.bf16.msra.mxu0 %v12345_v57  ;;  %11390 = vmatprep.mubr.f32.mxu0 %v8718_v46  ;;  %v15024_v46 = vsub.f32 %v9204_v58, %v9245_v6  ;;  %v15407_v26 = vand.u32 4294901760, %v15026_v8  ;;  %v15405_v6 = vand.u32 4294901760, %v15041_v39 }
 0x70c   : > { %12374 = vmatprep.subr.bf16.mxu0 %v12349_v1  ;;  %12416 = vmatpush3.bf16.msra.mxu1 %v14966_v22  ;;  %v9390_v43 = vsub.f32 %v15015_v37, %v15409_v50 }
 0x70d   : > { %12418 = vmatprep.subr.bf16.mxu1 %v14971_v13  ;;  %v15408_v48 = vand.u32 4294901760, %v15024_v46  ;;  %v9404_v3 = vsub.f32 %v15026_v8, %v15407_v26 }
 0x70f   : > { %12376 = vmatpush3.bf16.msra.mxu0 %v12349_v1  ;;  %v9397_v16 = vsub.f32 %v15024_v46, %v15408_v48  ;;  %v9405_v49 = vand.u32 4294901760, %v9404_v3 }
 0x710   : > { %12378 = vmatprep.subr.bf16.mxu0 %v14857_v2  ;;  %12420 = vmatpush3.bf16.msra.mxu1 %v14971_v13 }
 0x711   : > { %v9398_v58 = vand.u32 4294901760, %v9397_v16 }
 0x712   : > { %11391 = vmatmul.mubr.f32.vlgmr.msra.gmra.mrb[12].mxu0 %v8728_v5 }
 0x713   : > { %12380 = vmatpush3.bf16.msra.mxu0 %v14857_v2  ;;  %11401 = vmatprep.mubr.f32.mxu0 %v8716_v40  ;;  %v14976_v2 = vsub.f32 %v14879_v27, %v9209_v56  ;;  %v15047_v38 = vpack.c.bf16 %v9405_v49, %v9398_v58  ;;  %v15095_v49 = vsub.f32 %v14890_v35, %v9221_v59 }
 0x714   : > { %12382 = vmatprep.subr.bf16.mxu0 %v14861_v15 }
 0x715   : > { %v9312_v62 = vand.u32 4294901760, %v14976_v2  ;;  %v9340_v59 = vand.u32 4294901760, %v15095_v49 }
 0x717   : > { %12384 = vmatpush3.bf16.msra.mxu0 %v14861_v15  ;;  %v14981_v15 = vsub.f32 %v14881_v17, %v9212_v23  ;;  %v9313_v27 = vsub.f32 %v14976_v2, %v9312_v62 }
 0x718   : > { %12386 = vmatprep.subr.bf16.mxu0 %v12345_v57 }
 0x719   : > { %v9319_v60 = vand.u32 4294901760, %v14981_v15  ;;  %v9314_v17 = vand.u32 4294901760, %v9313_v27 }
 0x71a   : > { %11402 = vmatmul.mubr.f32.vlgmr.msra.gmra.mrb[12].mxu0 %v8726_v19 }
 0x71b   : > { %12388 = vmatpush3.bf16.msra.mxu0 %v12345_v57  ;;  %11412 = vmatprep.mubr.f32.mxu0 %v8716_v40  ;;  %v14987_v57 = vpack.c.bf16 %v9254_v21, %v9251_v12  ;;  %v9320_v56 = vsub.f32 %v14981_v15, %v9319_v60  ;;  %v9382_v40 = vand.u32 4294901760, %v15013_v29  ;;  %v15057_v21 = vpack.c.bf16 %v14981_v15, %v14976_v2 }
 0x71c   : > { %12390 = vmatprep.subr.bf16.mxu0 %v12349_v1 }
 0x71d   : > { %v9321_v23 = vand.u32 4294901760, %v9320_v56  ;;  %12422 = vmatprep.subr.bf16.mxu1 %v14987_v57  ;;  %v9383_v5 = vsub.f32 %v15013_v29, %v9382_v40 }
 0x71e   : > { %12424 = vmatpush3.bf16.msra.mxu1 %v14987_v57 }
 0x71f   : > { %12392 = vmatpush3.bf16.msra.mxu0 %v12349_v1  ;;  %v14997_v63 = vpack.c.bf16 %v9321_v23, %v9314_v17  ;;  %v15003_v1 = vsub.f32 %v9201_v11, %v9236_v18  ;;  %v9384_v32 = vand.u32 4294901760, %v9383_v5  ;;  %v9391_v11 = vand.u32 4294901760, %v9390_v43 }
 0x720   : > { %v15039_v18 = vsub.f32 %v9206_v54, %v9251_v12  ;;  %v9418_v54 = vsub.f32 %v15041_v39, %v15405_v6  ;;  %v15067_v23 = vpack.c.bf16 %v15015_v37, %v15013_v29  ;;  %v15088_v5 = vsub.f32 %v14887_v33, %v9218_v55  ;;  %v12879_v55 = vld [vmem:[%s13327_s1] sm:$0xff] }
 0x721   : > { %12426 = vmatprep.subr.bf16.mxu1 %v14997_v63  ;;  %v9375_v28 = vand.u32 4294901760, %v15003_v1  ;;  %v15043_v51 = vpack.c.bf16 %v9391_v11, %v9384_v32  ;;  %v15063_v17 = vpack.c.bf16 %v15003_v1, %v15001_v14  ;;  %v15101_v33 = vsub.f32 %v14892_v44, %v9224_v30 }
 0x722   : > { %11413 = vmatmul.mubr.f32.vlgmr.msra.gmra.mrb[12].mxu0 %v8726_v19  ;;  %v9370_v19 = vand.u32 4294901760, %v9369_v24  ;;  %v15406_v47 = vand.u32 4294901760, %v15039_v18  ;;  %v9419_v12 = vand.u32 4294901760, %v9418_v54  ;;  %v15071_v24 = vpack.c.bf16 %v15026_v8, %v15024_v46 }
 0x723   : > { %v9376_v10 = vsub.f32 %v15003_v1, %v9375_v28  ;;  %v9333_v58 = vand.u32 4294901760, %v15088_v5  ;;  %v9347_v44 = vand.u32 4294901760, %v15101_v33  ;;  %v15122_v30 = vsub.f32 %v14909_v41, %v9227_v52 }
 0x724   : > { %v9411_v27 = vsub.f32 %v15039_v18, %v15406_v47  ;;  %v15548_v14 = vand.u32 4294901760, %v15039_v18  ;;  %v15549_v1 = vand.u32 4294901760, %v15041_v39 }
 0x725   : > { %v9377_v42 = vand.u32 4294901760, %v9376_v10  ;;  %v15075_v10 = vpack.c.bf16 %v15041_v39, %v15039_v18  ;;  %v9334_v35 = vsub.f32 %v15088_v5, %v9333_v58  ;;  %v9354_v52 = vand.u32 4294901760, %v15122_v30 }
 0x726   : > { %v9412_v4 = vand.u32 4294901760, %v9411_v27  ;;  %v12529_v2 = vpack.c.bf16 %v9347_v44, %v9340_v59 }
 0x727   : > { %v15019_v36 = vpack.c.bf16 %v9377_v42, %v9370_v19  ;;  %v10045_v19 = vld [vmem:[%s15307_s4] ss:$0 sm:$0xff]  ;;  %v15083_v42 = vsub.f32 %v14883_v31, %v9215_v7  ;;  %v12878_v31 = vld [vmem:[%s13327_s1 + $0x8] sm:$0xff]  ;;  %v9355_v48 = vsub.f32 %v15122_v30, %v9354_v52  ;;  %s9895_s1 = scalar_lea.sflag [#allocation4], %s13321_s16 }
 0x728   : > { %v15059_v56 = vpack.c.bf16 %v9419_v12, %v9412_v4 }
 0x729   : > { %v9326_v3 = vand.u32 4294901760, %v15083_v42 }
 0x72b   : > { %v9327_v12 = vsub.f32 %v15083_v42, %v9326_v3 }
 0x7f5   : > { %v11414_v43 = vpop.f32.mrb[12].mxu0 }
 0x7f6   : > { %v9189_v32 = vadd.f32 %v11414_v43, %v10045_v19  ;;  %v9165_v11 = vpop.f32.mrb[13].mxu0  ;;  %v15127_v43 = vsub.f32 %v14911_v53, %v9230_v61  ;;  %v9348_v53 = vsub.f32 %v15101_v33, %v9347_v44 }
 0x7f7   : > { %v9188_v16 = vadd.f32 %v10045_v19, %v9165_v11 }
 0x7f8   : > { %v9191_v7 = vadd.f32 %v12878_v31, %v9189_v32  ;;  %v9328_v31 = vand.u32 4294901760, %v9327_v12  ;;  %v9361_v61 = vand.u32 4294901760, %v15127_v43  ;;  %v9349_v26 = vand.u32 4294901760, %v9348_v53 }
 0x7f9   : > { %v9190_v27 = vadd.f32 %v12879_v55, %v9188_v16  ;;  %v9341_v55 = vsub.f32 %v15095_v49, %v9340_v59 }
 0x7fa   : > { %v15104_v54 = vand.u32 4294901760, %v9191_v7  ;;  %v9362_v50 = vsub.f32 %v15127_v43, %v9361_v61  ;;  %v12533_v15 = vpack.c.bf16 %v9361_v61, %v9354_v52 }
 0x7fb   : > { %v15106_v4 = vand.u32 4294901760, %v9190_v27  ;;  %v9342_v6 = vand.u32 4294901760, %v9341_v55 }
 0x7fc   : > { %v15116_v19 = vsub.f32 %v9191_v7, %v15104_v54  ;;  %v9335_v7 = vand.u32 4294901760, %v9334_v35 }
 0x7fd   : > { %v15130_v32 = vsub.f32 %v9190_v27, %v15106_v4 }
 0x7fe   : > { %v9301_v11 = vand.u32 4294901760, %v15116_v19  ;;  %v12429_v35 = vpack.c.bf16 %v9335_v7, %v9328_v31  ;;  %v9356_v31 = vand.u32 4294901760, %v9355_v48  ;;  %v9363_v7 = vand.u32 4294901760, %v9362_v50 }
 0x7ff   : > { %v9291_v16 = vand.u32 4294901760, %v15130_v32  ;;  %v12465_v50 = vpack.c.bf16 %v15101_v33, %v15095_v49  ;;  %v12521_v48 = vpack.c.bf16 %v9319_v60, %v9312_v62  ;;  %v12537_v62 = vpack.c.bf16 %v9375_v28, %v9368_v9 }
 0x800   : > { %v9302_v41 = vsub.f32 %v15116_v19, %v9301_v11  ;;  %v12437_v55 = vpack.c.bf16 %v9363_v7, %v9356_v31  ;;  %v15545_v60 = vand.u32 4294901760, %v15015_v37  ;;  %v12549_v9 = vpack.c.bf16 %v15549_v1, %v15548_v14 }
 0x801   : > { %v9292_v27 = vsub.f32 %v15130_v32, %v9291_v16 }
 0x802   : > { %v9303_v47 = vand.u32 4294901760, %v9302_v41 }
 0x803   : > { %v9293_v12 = vand.u32 4294901760, %v9292_v27  ;;  %v12433_v27 = vpack.c.bf16 %v9349_v26, %v9342_v6  ;;  %v12525_v26 = vpack.c.bf16 %v9333_v58, %v9326_v3  ;;  %v15547_v6 = vand.u32 4294901760, %v15026_v8 }
 0x805   : > { %11447 = vmatprep.mubr.f32.mxu1 %v9293_v12 }
 0x806   : > { %11448 = vmatmul.mubr.f32.vlgmr.msra.gmra.mrb[10].mxu1 %v9303_v47  ;;  %v15546_v47 = vand.u32 4294901760, %v15024_v46 }
 0x807   : > { %12428 = vmatpush3.bf16.msra.mxu1 %v14997_v63  ;;  %11482 = vmatprep.mubr.f32.mxu1 %v15106_v4  ;;  %v12461_v63 = vpack.c.bf16 %v15088_v5, %v15083_v42 }
 0x808   : > { %12430 = vmatprep.subr.bf16.mxu1 %v12429_v35 }
 0x80b   : > { %12432 = vmatpush3.bf16.msra.mxu1 %v12429_v35 }
 0x80c   : > { %12434 = vmatprep.subr.bf16.mxu1 %v12433_v27 }
 0x80f   : > { %12436 = vmatpush3.bf16.msra.mxu1 %v12433_v27 }
 0x810   : > { %12438 = vmatprep.subr.bf16.mxu1 %v12437_v55 }
 0x813   : > { %12440 = vmatpush3.bf16.msra.mxu1 %v12437_v55 }
 0x814   : > { %12442 = vmatprep.subr.bf16.mxu1 %v15019_v36 }
 0x817   : > { %12444 = vmatpush3.bf16.msra.mxu1 %v15019_v36  ;;  %v12469_v36 = vpack.c.bf16 %v15127_v43, %v15122_v30 }
 0x818   : > { %12446 = vmatprep.subr.bf16.mxu1 %v15043_v51 }
 0x81b   : > { %12448 = vmatpush3.bf16.msra.mxu1 %v15043_v51  ;;  %v12541_v51 = vpack.c.bf16 %v15545_v60, %v9382_v40 }
 0x81c   : > { %12450 = vmatprep.subr.bf16.mxu1 %v15047_v38 }
 0x81f   : > { %12452 = vmatpush3.bf16.msra.mxu1 %v15047_v38  ;;  %v12545_v38 = vpack.c.bf16 %v15547_v6, %v15546_v47 }
 0x820   : > { %12454 = vmatprep.subr.bf16.mxu1 %v15059_v56 }
 0x823   : > { %12456 = vmatpush3.bf16.msra.mxu1 %v15059_v56 }
 0x824   : > { %12458 = vmatprep.subr.bf16.mxu1 %v15057_v21 }
 0x826   : > { %11483 = vmatmul.mubr.f32.vlgmr.msra.gmra.mrb[10].mxu1 %v15104_v54 }
 0x827   : > { %12460 = vmatpush3.bf16.msra.mxu1 %v15057_v21  ;;  %11517 = vmatprep.mubr.f32.mxu1 %v15130_v32 }
 0x828   : > { %12462 = vmatprep.subr.bf16.mxu1 %v12461_v63 }
 0x82b   : > { %12464 = vmatpush3.bf16.msra.mxu1 %v12461_v63 }
 0x82c   : > { %12466 = vmatprep.subr.bf16.mxu1 %v12465_v50 }
 0x82f   : > { %12468 = vmatpush3.bf16.msra.mxu1 %v12465_v50 }
 0x830   : > { %12470 = vmatprep.subr.bf16.mxu1 %v12469_v36 }
 0x833   : > { %12472 = vmatpush3.bf16.msra.mxu1 %v12469_v36 }
 0x834   : > { %12474 = vmatprep.subr.bf16.mxu1 %v15063_v17 }
 0x837   : > { %12476 = vmatpush3.bf16.msra.mxu1 %v15063_v17 }
 0x838   : > { %12478 = vmatprep.subr.bf16.mxu1 %v15067_v23 }
 0x83b   : > { %12480 = vmatpush3.bf16.msra.mxu1 %v15067_v23 }
 0x83c   : > { %12482 = vmatprep.subr.bf16.mxu1 %v15071_v24 }
 0x83f   : > { %12484 = vmatpush3.bf16.msra.mxu1 %v15071_v24 }
 0x840   : > { %12486 = vmatprep.subr.bf16.mxu1 %v15075_v10 }
 0x843   : > { %12488 = vmatpush3.bf16.msra.mxu1 %v15075_v10 }
 0x844   : > { %12490 = vmatprep.subr.bf16.mxu1 %v14899_v25 }
 0x846   : > { %11518 = vmatmul.mubr.f32.vlgmr.msra.gmra.mrb[10].mxu1 %v15116_v19 }
 0x847   : > { %12492 = vmatpush3.bf16.msra.mxu1 %v14899_v25  ;;  %11552 = vmatprep.mubr.f32.mxu1 %v9291_v16 }
 0x848   : > { %12494 = vmatprep.subr.bf16.mxu1 %v14907_v0 }
 0x84b   : > { %12496 = vmatpush3.bf16.msra.mxu1 %v14907_v0 }
 0x84c   : > { %12498 = vmatprep.subr.bf16.mxu1 %v14922_v20 }
 0x84f   : > { %12500 = vmatpush3.bf16.msra.mxu1 %v14922_v20 }
 0x850   : > { %12502 = vmatprep.subr.bf16.mxu1 %v14941_v34 }
 0x853   : > { %12504 = vmatpush3.bf16.msra.mxu1 %v14941_v34 }
 0x854   : > { %12506 = vmatprep.subr.bf16.mxu1 %v14964_v45 }
 0x857   : > { %12508 = vmatpush3.bf16.msra.mxu1 %v14964_v45 }
 0x858   : > { %12510 = vmatprep.subr.bf16.mxu1 %v14966_v22 }
 0x85b   : > { %12512 = vmatpush3.bf16.msra.mxu1 %v14966_v22 }
 0x85c   : > { %12514 = vmatprep.subr.bf16.mxu1 %v14971_v13 }
 0x85f   : > { %12516 = vmatpush3.bf16.msra.mxu1 %v14971_v13 }
 0x860   : > { %12518 = vmatprep.subr.bf16.mxu1 %v14987_v57 }
 0x863   : > { %12520 = vmatpush3.bf16.msra.mxu1 %v14987_v57 }
 0x864   : > { %12522 = vmatprep.subr.bf16.mxu1 %v12521_v48 }
 0x866   : > { %11553 = vmatmul.mubr.f32.vlgmr.msra.gmra.mrb[10].mxu1 %v9301_v11 }
 0x867   : > { %12524 = vmatpush3.bf16.msra.mxu1 %v12521_v48  ;;  %11587 = vmatprep.mubr.f32.mxu1 %v15106_v4 }
 0x868   : > { %12526 = vmatprep.subr.bf16.mxu1 %v12525_v26 }
 0x86b   : > { %12528 = vmatpush3.bf16.msra.mxu1 %v12525_v26 }
 0x86c   : > { %12530 = vmatprep.subr.bf16.mxu1 %v12529_v2 }
 0x86f   : > { %12532 = vmatpush3.bf16.msra.mxu1 %v12529_v2 }
 0x870   : > { %12534 = vmatprep.subr.bf16.mxu1 %v12533_v15 }
 0x873   : > { %12536 = vmatpush3.bf16.msra.mxu1 %v12533_v15 }
 0x874   : > { %12538 = vmatprep.subr.bf16.mxu1 %v12537_v62 }
 0x877   : > { %12540 = vmatpush3.bf16.msra.mxu1 %v12537_v62 }
 0x878   : > { %12542 = vmatprep.subr.bf16.mxu1 %v12541_v51 }
 0x87b   : > { %12544 = vmatpush3.bf16.msra.mxu1 %v12541_v51 }
 0x87c   : > { %12546 = vmatprep.subr.bf16.mxu1 %v12545_v38 }
 0x87f   : > { %12548 = vmatpush3.bf16.msra.mxu1 %v12545_v38 }
 0x880   : > { %12550 = vmatprep.subr.bf16.mxu1 %v12549_v9 }
 0x883   : > { %12552 = vmatpush3.bf16.msra.mxu1 %v12549_v9 }
 0x884   : > { %12554 = vmatprep.subr.bf16.mxu1 %v14899_v25 }
 0x886   : > { %11588 = vmatmul.mubr.f32.vlgmr.msra.gmra.mrb[10].mxu1 %v15104_v54 }
 0x887   : > { %12556 = vmatpush3.bf16.msra.mxu1 %v14899_v25  ;;  %11622 = vmatprep.mubr.f32.mxu1 %v15106_v4 }
 0x888   : > { %12558 = vmatprep.subr.bf16.mxu1 %v14907_v0 }
 0x88b   : > { %12560 = vmatpush3.bf16.msra.mxu1 %v14907_v0 }
 0x88c   : > { %12562 = vmatprep.subr.bf16.mxu1 %v14922_v20 }
 0x88f   : > { %12564 = vmatpush3.bf16.msra.mxu1 %v14922_v20 }
 0x890   : > { %12566 = vmatprep.subr.bf16.mxu1 %v14941_v34 }
 0x893   : > { %12568 = vmatpush3.bf16.msra.mxu1 %v14941_v34 }
 0x894   : > { %12570 = vmatprep.subr.bf16.mxu1 %v14964_v45 }
 0x897   : > { %12572 = vmatpush3.bf16.msra.mxu1 %v14964_v45 }
 0x898   : > { %12574 = vmatprep.subr.bf16.mxu1 %v14966_v22 }
 0x89b   : > { %12576 = vmatpush3.bf16.msra.mxu1 %v14966_v22 }
 0x89c   : > { %12578 = vmatprep.subr.bf16.mxu1 %v14971_v13 }
 0x89f   : > { %12580 = vmatpush3.bf16.msra.mxu1 %v14971_v13 }
 0x8a0   : > { %12582 = vmatprep.subr.bf16.mxu1 %v14987_v57 }
 0x8a3   : > { %12584 = vmatpush3.bf16.msra.mxu1 %v14987_v57 }
 0x8a6   : > { %11623 = vmatmul.mubr.f32.vlgmr.msra.gmra.mrb[10].mxu1 %v15104_v54 }
 0x979   : > { %v11624_v25 = vpop.f32.mrb[10].mxu1 }
 0x97a   : > { %9893 = vst [vmem:[%s313_s18 + $0x8] sm:$0xff] %v11624_v25  ;;  %v9882_v0 = vpop.f32.mrb[11].mxu1 }
 0x97b   : > { %9892 = vst [vmem:[%s313_s18] sm:$0xff] %v9882_v0 }
 0x97c   : > { %13007 = shalt.err (!%p13004_p4)
}
 0x97d   : > { %s13008_s19 = scalar_lea.hbm %s15259_s17, 256  ;;  %s13012_s10 = scalar_lea.hbm %s15309_s6, 512 }
 0x97e   : > { %p13009_p9 = scmp.ne.s32.totalorder %s15259_s17, %s13008_s19  ;;  %p13013_p8 = scmp.lt.u32.totalorder %s15259_s17, %s15309_s6 }
 0x97f   : > { %p13014_p13 = scmp.lt.u32.totalorder %s13012_s10, %s13008_s19  ;;  %p13016_p10 = scmp.lt.u32.totalorder %s13008_s19, %s15259_s17 }
 0x980   : > { %p13010_p0 = pnand %p13009_p9, %p13270_p5 }
 0x981   : > { %p13015_p6 = por %p13014_p13, %p13013_p8 }
 0x982   : > { %p13011_p11 = pneg %p13010_p0 }
 0x983   : > { %p13017_p3 = por %p13016_p10, %p13015_p6 }
 0x985   : > { %p13018_p7 = pnand %p13017_p3, %p13011_p11 }
 0x987   : > { %13021 = shalt.err (!%p13018_p7)
}
 0x988   : > { %s13085_s7 = smov 128   ;;  %s13086_s8 = smov 8  }
 0x989   : > { %12771 = dma.vmem_to_hbm [thread:$0]  (%p13270_p5), %s15254_s13, 256, %s15259_s17, %s9895_s1, %s13085_s7, %s13085_s7, %s13086_s8  }
 0x98a PF: > { %s9923_s14 = sand.u32 1, %s13056_s21   ;;  %p15550_p12 = scmp.ne.s32.totalorder %s15412_s28, 0 }
 0x98b   : > { %p15551_p2 = scmp.ge.s32.totalorder %s13068_s24, 2  ;;  %s9924_s27 = scalar_lea.sflag [#allocation4], %s9923_s14 }
 0x98d   : > { %p12788_p1 = pnand %p15551_p2, %p15550_p12 }
 0x98f   : > { %13051 = dma.done.wait (!%p12788_p1), %s9924_s27, 256  }
 0x990   : > { %13053 = vsyncadd (!%p12788_p1), %s9924_s27, 4294967040  ;;  %p21_p4 = scmp.ge.s32.totalorder %s13235_s12, 4   ;;  %s15552_s21 = smov %s13060_s22 }
 0x991   : > { %s15553_s22 = smov %s13064_s23  ;;  %s15554_s23 = smov %s13266_s30 }
 0x992   : > { %s15555_s24 = smov %s13235_s12  ;;  %23 = sbr.rel (!%p21_p4) target bundleno = 9 (0x9), region = 101 }
 0x999   :  { %9929 = vsyncpa [#allocation3], 1 }
 0x99a   :  { %9931 = vsyncpa [#allocation3 + $0x1], 1 }
 0x99b   :  { %9932 = vsyncpa [#allocation6], 1 }
 0x99c   :  { %9933 = vsyncpa [#allocation9], 1 }
 0x99d   :  { %9934 = vsyncpa [#allocation4], 1 }
 0x99e   :  { %9936 = vsyncpa [#allocation4 + $0x1], 1 }

// kernel: tpu_custom_call.1
= control target key start
LH: loop header
LB: loop body
LE: loop exit
PB: predicated region body
PF: predicated region fallthrough
CT: control target
= control target key end

     0   :  { %s15303_s0 = inlined_call_operand.hbm [shape: f32[2,16,128], index: 0, kind: input, shape index: {}]   ;;  %s15304_s1 = inlined_call_operand.hbm [shape: f32[128,384], index: 1, kind: input, shape index: {}]   ;;  %s15305_s2 = inlined_call_operand.vmem [shape: f32[1,384], index: 2, kind: input, shape index: {}]   ;;  %s15306_s3 = inlined_call_operand.hbm [shape: f32[4,32,128], index: 3, kind: input, shape index: {}]   ;;  %s15307_s4 = inlined_call_operand.vmem [shape: f32[1,128], index: 4, kind: input, shape index: {}]   ;;  %s15308_s5 = inlined_call_operand.hbm [shape: f32[128,128], index: 5, kind: input, shape index: {}]   ;;  %s15309_s6 = inlined_call_operand.hbm [shape: f32[2,16,128], index: 6, kind: output, shape index: {}]  }
   0x1   :  { %15410 = sst [smem:[#allocation48_spill]] %s15304_s1 }
   0x2   :  { %11 = vsyncpa [#allocation3], 0 }
   0x3   :  { %13 = vsyncpa [#allocation3 + $0x1], 0 }
   0x4   :  { %14 = vsyncpa [#allocation6], 0 }
   0x5   :  { %15 = vsyncpa [#allocation9], 0 }
   0x6   :  { %16 = vsyncpa [#allocation4], 0 }
   0x7   :  { %18 = vsyncpa [#allocation4 + $0x1], 0  ;;  %s13122_s21 = smov 0   ;;  %s13124_s22 = smov 0  }
   0x8   :  { %s13126_s23 = smov 0   ;;  %s13128_s24 = smov 0  }
   0x9 LB: > { %s13143_s25 = sadd.s32 4294967295, %s13068_s24   ;;  %s10010_s26 = sadd.s32 4294967294, %s13068_s24   ;;  %s13068_s24 = sphi %s13128_s24, %s15555_s24   ;;  %s13064_s23 = sphi %s13126_s23, %s15554_s23   ;;  %s13060_s22 = sphi %s13124_s22, %s15553_s22   ;;  %s13056_s21 = sphi %s13122_s21, %s15552_s21  }
   0xa   : > { %p44_p0 = scmp.ne.s32.totalorder %s13060_s22, %s13056_s21  ;;  %p15310_p1 = scmp.eq.s32.totalorder %s13143_s25, 0 }
   0xb   : > { %p179_p3 = scmp.eq.s32.totalorder %s10010_s26, 1  ;;  %p10011_p5 = scmp.ge.s32.totalorder %s13068_s24, 1 }
   0xc   : > { %p13152_p4 = por %p15310_p1, %p44_p0  ;;  %p186_p7 = scmp.lt.s32.totalorder %s13068_s24, 3 }
   0xd   : > { %p13157_p6 = por %p179_p3, %p44_p0  ;;  %s13070_s30 = smov [#allocation5]  }
   0xe   : > { %s15411_s27 = scalar_select %p13152_p4, 1, 0 }
   0xf   : > { %s15412_s28 = scalar_select %p13157_p6, 1, 0 }
  0x10   : > { %p13162_p8 = pnand %p10011_p5, %p186_p7  ;;  %s198_s7 = sshll.u32 %s13070_s30, 4  ;;  %s13166_s7 = int_to_ptr.vmem [resolvable:$true] %s198_s7 }
  0x11   : > { %s13071_s9 = smov [#allocation7]   ;;  %s15415_s1 = sld [smem:[#allocation48_spill]] }
  0x12   : > { %s15413_s29 = scalar_select %p13162_p8, 1, 0 }
  0x13   : > { %p12773_p9 = pneg %p13162_p8  ;;  %s214_s10 = sshll.u32 %s13071_s9, 4  ;;  %s13177_s10 = int_to_ptr.vmem [resolvable:$true] %s214_s10 }
  0x15   : > { %p13173_p11 = pnand %p12773_p9, %p15310_p1 }
  0x17   : > { %s12880_s13 = scalar_lea.hbm %s15415_s1, 6144  ;;  %p13187_p13 = pneg %p13173_p11 }
  0x18   : > { %p12881_p12 = scmp.ne.s32.totalorder %s15415_s1, %s12880_s13  ;;  %p12887_p5 = scmp.lt.u32.totalorder %s12880_s13, %s15415_s1 }
  0x1a   : > { %p12883_p0 = pnand %p13187_p13, %p12881_p12 }
  0x1c   : > { %p12884_p3 = pneg %p12883_p0 }
  0x1e   : > { %p12889_p7 = pnand %p12887_p5, %p12884_p3 }
  0x20   : > { %12892 = shalt.err (!%p12889_p7)
}
  0x21   : > { %s12893_s19 = scalar_lea.vmem %s13166_s7, 6144  ;;  %p12901_p2 = scmp.lt.s32.totalorder %s13166_s7, %s13166_s7 }
  0x22   : > { %p12894_p9 = scmp.ne.s32.totalorder %s13166_s7, %s12893_s19  ;;  %p12902_p6 = scmp.lt.s32.totalorder %s12893_s19, %s12893_s19 }
  0x24   : > { %p12896_p10 = pnand %p12894_p9, %p13187_p13  ;;  %p12903_p12 = por %p12902_p6, %p12901_p2 }
  0x26   : > { %p12897_p1 = pneg %p12896_p10 }
  0x28   : > { %p12904_p0 = pnand %p12903_p12, %p12897_p1 }
  0x2a   : > { %12907 = shalt.err (!%p12904_p0)
}
  0x2b   : > { %s13072_s20 = smov 384   ;;  %s13073_s26 = smov 24  }
  0x2c   : > { %12776 = dma.hbm_to_vmem [thread:$0]  (!%p13173_p11), %s15415_s1, 6144, %s13166_s7, [#allocation6], %s13072_s20, %s13072_s20, %s13073_s26  }
  0x2d   : > { %s12908_s13 = scalar_lea.hbm %s15306_s3, 2048 }
  0x2e   : > { %p12909_p2 = scmp.ne.s32.totalorder %s15306_s3, %s12908_s13  ;;  %p12915_p10 = scmp.lt.u32.totalorder %s12908_s13, %s15306_s3 }
  0x30   : > { %p12911_p1 = pnand %p12909_p2, %p13187_p13 }
  0x32   : > { %p12912_p6 = pneg %p12911_p1 }
  0x34   : > { %p12917_p3 = pnand %p12915_p10, %p12912_p6 }
  0x36   : > { %12920 = shalt.err (!%p12917_p3)
}
  0x37   : > { %s12921_s7 = scalar_lea.vmem %s13177_s10, 2048  ;;  %p12929_p12 = scmp.lt.s32.totalorder %s13177_s10, %s13177_s10 }
  0x38   : > { %p12922_p5 = scmp.ne.s32.totalorder %s13177_s10, %s12921_s7  ;;  %p12930_p0 = scmp.lt.s32.totalorder %s12921_s7, %s12921_s7 }
  0x3a   : > { %p12924_p7 = pnand %p12922_p5, %p13187_p13  ;;  %p12931_p2 = por %p12930_p0, %p12929_p12 }
  0x3c   : > { %p12925_p9 = pneg %p12924_p7 }
  0x3e   : > { %p12932_p1 = pnand %p12931_p2, %p12925_p9 }
  0x40   : > { %12935 = shalt.err (!%p12932_p1)
}
  0x41   : > { %s13074_s19 = smov 128   ;;  %s13075_s20 = smov 8  }
  0x42   : > { %12779 = dma.hbm_to_vmem [thread:$0]  (!%p13173_p11), %s15306_s3, 2048, %s13177_s10, [#allocation6], %s13074_s19, %s13074_s19, %s13075_s20  }
  0x43   : > { %s13076_s9 = smov [#allocation8]   ;;  %s13235_s12 = sadd.s32 1, %s13068_s24  }
  0x44   : > { %s230_s11 = sshll.u32 %s13076_s9, 4  ;;  %s12936_s15 = scalar_lea.hbm %s15308_s5, 2048  ;;  %s231_s11 = int_to_ptr.vmem [resolvable:$true] %s230_s11 }
  0x45   : > { %p12937_p6 = scmp.ne.s32.totalorder %s15308_s5, %s12936_s15  ;;  %p12943_p5 = scmp.lt.u32.totalorder %s12936_s15, %s15308_s5 }
  0x47   : > { %p12939_p10 = pnand %p12937_p6, %p13187_p13 }
  0x49   : > { %p12940_p3 = pneg %p12939_p10 }
  0x4b   : > { %p12945_p7 = pnand %p12943_p5, %p12940_p3 }
  0x4d   : > { %12948 = shalt.err (!%p12945_p7)
}
  0x4e   : > { %s12949_s10 = scalar_lea.vmem %s231_s11, 2048  ;;  %p12957_p2 = scmp.lt.s32.totalorder %s231_s11, %s231_s11 }
  0x4f   : > { %p12950_p9 = scmp.ne.s32.totalorder %s231_s11, %s12949_s10  ;;  %p12958_p1 = scmp.lt.s32.totalorder %s12949_s10, %s12949_s10 }
  0x51   : > { %p12952_p12 = pnand %p12950_p9, %p13187_p13  ;;  %p12959_p4 = por %p12958_p1, %p12957_p2 }
  0x53   : > { %p12953_p0 = pneg %p12952_p12 }
  0x55   : > { %p12960_p8 = pnand %p12959_p4, %p12953_p0 }
  0x57   : > { %12963 = shalt.err (!%p12960_p8)
}
  0x58   : > { %12782 = dma.hbm_to_vmem [thread:$0]  (!%p13173_p11), %s15308_s5, 2048, %s231_s11, [#allocation9], %s13074_s19, %s13074_s19, %s13075_s20  }
  0x59   : > { %s28_s16 = ssub.s32 %s13068_s24, %s13235_s12  ;;  %s31_s8 = sadd.s32 1, %s13064_s23 }
  0x5a   : > { %p29_p4 = scmp.eq.s32.totalorder %s28_s16, 0  ;;  %p38_p8 = scmp.ne.s32.totalorder %s13064_s23, %s13060_s22 }
  0x5b   : > { %p39_p13 = scmp.eq.s32.totalorder %s13068_s24, 0  ;;  %p12794_p6 = scmp.lt.s32.totalorder %s13068_s24, 2 }
  0x5c   : > { %s13266_s30 = scalar_select %p29_p4, %s13064_s23, %s31_s8  }
  0x5d   : > { %p40_p10 = por %p39_p13, %p38_p8  ;;  %p15417_p3 = scmp.eq.s32.totalorder %s13143_s25, 1 }
  0x5e   : > { %s244_s13 = sand.u32 1, %s13064_s23   ;;  %s10051_s14 = sshll.u32 %s13068_s24, 8 }
  0x5f   : > { %p13270_p5 = por %p15417_p3, %p38_p8  ;;  %s10016_s15 = sshll.u32 %s244_s13, 4 }
  0x60   : > { %s13279_s11 = scalar_lea.hbm %s15303_s0, %s10051_s14  ;;  %s248_s7 = scalar_lea.vmem [#allocation2], %s10016_s15 }
  0x61   : > { %s255_s10 = sshll.u32 %s248_s7, 4  ;;  %p13281_p11 = pnand %p12794_p6, %p40_p10  ;;  %s13285_s10 = int_to_ptr.vmem [resolvable:$true] %s255_s10 }
  0x62   : > { %s13287_s26 = scalar_lea.sflag [#allocation3], %s244_s13  ;;  %s12964_s16 = scalar_lea.hbm %s13279_s11, 256 }
  0x63   : > { %p12965_p7 = scmp.ne.s32.totalorder %s13279_s11, %s12964_s16  ;;  %p12966_p9 = pneg %p13281_p11 }
  0x64   : > { %s12969_s15 = scalar_lea.hbm %s15303_s0, 512  ;;  %p12970_p2 = scmp.lt.u32.totalorder %s13279_s11, %s15303_s0 }
  0x65   : > { %p12967_p12 = pnand %p12966_p9, %p12965_p7  ;;  %p12971_p1 = scmp.lt.u32.totalorder %s12969_s15, %s12964_s16 }
  0x66   : > { %p12973_p8 = scmp.lt.u32.totalorder %s12964_s16, %s13279_s11 }
  0x67   : > { %p12968_p0 = pneg %p12967_p12  ;;  %p12972_p4 = por %p12971_p1, %p12970_p2 }
  0x69   : > { %p12974_p13 = por %p12973_p8, %p12972_p4 }
  0x6b   : > { %p12975_p6 = pnand %p12974_p13, %p12968_p0 }
  0x6d   : > { %12978 = shalt.err (!%p12975_p6)
}
  0x6e   : > { %s12979_s13 = scalar_lea.vmem %s13285_s10, 256  ;;  %s13077_s7 = smov [#allocation2]  }
  0x6f   : > { %p12980_p10 = scmp.ne.s32.totalorder %s13285_s10, %s12979_s13  ;;  %s12984_s8 = sshll.u32 %s13077_s7, 4  ;;  %s12985_s8 = int_to_ptr.vmem [resolvable:$false] %s12984_s8 }
  0x70   : > { %s12986_s14 = scalar_lea.vmem %s12985_s8, 512  ;;  %p12987_p12 = scmp.lt.s32.totalorder %s13285_s10, %s12985_s8 }
  0x71   : > { %p12982_p3 = pnand %p12980_p10, %p12966_p9  ;;  %p12988_p2 = scmp.lt.s32.totalorder %s12986_s14, %s12979_s13 }
  0x73   : > { %p12983_p7 = pneg %p12982_p3  ;;  %p12989_p1 = por %p12988_p2, %p12987_p12 }
  0x75   : > { %p12990_p4 = pnand %p12989_p1, %p12983_p7 }
  0x77   : > { %12993 = shalt.err (!%p12990_p4)
}
  0x78   : > { %12786 = dma.hbm_to_vmem [thread:$0]  (!%p13281_p11), %s13279_s11, 256, %s13285_s10, %s13287_s26, %s13074_s19, %s13074_s19, %s13075_s20  }
  0x79   : > { %p15420_p9 = scmp.ne.s32.totalorder %s15413_s29, 0 }
  0x7b   : > { %267 = sbr.rel (%p15420_p9) target bundleno = 2442 (0x98a), region = 44 }
  0x82   : > { %s13321_s16 = sand.u32 1, %s13060_s22   ;;  %p15421_p0 = scmp.ne.s32.totalorder %s15411_s27, 0 }
  0x83   : > { %s10020_s15 = sshll.u32 %s13321_s16, 4  ;;  %s270_s17 = scalar_lea.sflag [#allocation3], %s13321_s16 }
  0x84   : > { %s13327_s1 = scalar_lea.vmem [#allocation2], %s10020_s15 }
  0x85   : > { %13039 = dma.done.wait (%p15421_p0), %s270_s17, 256  }
  0x86   : > { %13041 = vsyncadd (%p15421_p0), %s270_s17, 4294967040  ;;  %p15422_p11 = scmp.eq.s32.totalorder %s13143_s25, 0 }
  0x88   : > { %13043 = dma.done.wait (%p15422_p11), [#allocation6], 8192   ;;  %p15423_p8 = pmov %p15422_p11 }
  0x8a   : > { %13045 = vsyncadd (%p15423_p8), [#allocation6], 4294959104  ;;  %p15424_p13 = pmov %p15423_p8 }
  0x8b   : > { %p15425_p6 = pmov %p15423_p8 }
  0x8c   : > { %13047 = dma.done.wait (%p15424_p13), [#allocation9], 2048  }
  0x8d   : > { %13049 = vsyncadd (%p15425_p6), [#allocation9], 4294965248  ;;  %v15315_v0 = vmov 0.0   ;;  %v317_v1 = vld [vmem:[#allocation5 + $0x8] sm:$0xff]  ;;  %v320_v2 = vld [vmem:[#allocation5 + $0x20] sm:$0xff]  ;;  %s13079_s19 = smov 64  }
  0x8e   : > { %477 = vmatprep.mubr.f32.mxu0 %v15315_v0  ;;  %v316_v3 = vld [vmem:[#allocation5] sm:$0xff]  ;;  %v381_v4 = vand.u32 4294901760, %v317_v1  ;;  %v385_v5 = vand.u32 4294901760, %v320_v2  ;;  %v319_v6 = vld [vmem:[#allocation5 + $0x18] sm:$0xff]  ;;  %v326_v9 = vld [vmem:[#allocation5 + $0x50] sm:$0xff]  ;;  %s13080_s20 = smov 96  }
  0x8f   : > { %v383_v7 = vand.u32 4294901760, %v316_v3  ;;  %v323_v8 = vld [vmem:[#allocation5 + $0x38] sm:$0xff]  ;;  %v387_v10 = vand.u32 4294901760, %v319_v6  ;;  %v393_v12 = vand.u32 4294901760, %v326_v9  ;;  %v322_v13 = vld [vmem:[#allocation5 + $0x30] sm:$0xff]  ;;  %v325_v14 = vld [vmem:[#allocation5 + $0x48] sm:$0xff] }
  0x90   : > { %v389_v11 = vand.u32 4294901760, %v323_v8  ;;  %v329_v15 = vld [vmem:[#allocation5 + $0x68] sm:$0xff]  ;;  %v13342_v16 = vpack.c.bf16 %v385_v5, %v381_v4  ;;  %v332_v17 = vld [vmem:[#allocation5 + $0x80] sm:$0xff]  ;;  %v331_v19 = vld [vmem:[#allocation5 + $0x78] sm:$0xff]  ;;  %v391_v23 = vand.u32 4294901760, %v322_v13  ;;  %v395_v24 = vand.u32 4294901760, %v325_v14 }
  0x91   : > { %v328_v18 = vld [vmem:[#allocation5 + $0x60] sm:$0xff]  ;;  %v13344_v20 = vpack.c.bf16 %v387_v10, %v383_v7  ;;  %v335_v22 = vld [vmem:[#allocation5 + $0x98] sm:$0xff]  ;;  %v397_v25 = vand.u32 4294901760, %v329_v15  ;;  %v401_v26 = vand.u32 4294901760, %v332_v17  ;;  %v403_v28 = vand.u32 4294901760, %v331_v19  ;;  %v338_v29 = vld [vmem:[#allocation5 + $0xb0] sm:$0xff] }
  0x92   : > { %15426 = vst [vmem:[#allocation15_spill] sm:$0xff] %v13342_v16  ;;  %v13346_v21 = vpack.c.bf16 %v393_v12, %v389_v11  ;;  %11626 = vmatprep.subr.bf16.mxu0 %v13342_v16  ;;  %v399_v27 = vand.u32 4294901760, %v328_v18  ;;  %v334_v30 = vld [vmem:[#allocation5 + $0x90] sm:$0xff]  ;;  %v13350_v31 = vsub.f32 %v317_v1, %v381_v4  ;;  %v13353_v32 = vpack.c.bf16 %v395_v24, %v391_v23  ;;  %v337_v34 = vld [vmem:[#allocation5 + $0xa8] sm:$0xff]  ;;  %v344_v40 = vld [vmem:[#allocation5 + $0xe0] sm:$0xff]  ;;  %s13081_s11 = smov 32  }
  0x93   : > { %15427 = vst [vmem:[#allocation16_spill] sm:$0xff] %v13344_v20  ;;  %11628 = vmatpush1.bf16.msra.mxu0 %v13344_v20  ;;  %v405_v33 = vand.u32 4294901760, %v335_v22  ;;  %v13355_v35 = vsub.f32 %v320_v2, %v385_v5  ;;  %v13357_v36 = vsub.f32 %v316_v3, %v383_v7  ;;  %v13359_v37 = vsub.f32 %v319_v6, %v387_v10  ;;  %v341_v39 = vld [vmem:[#allocation5 + $0xc8] sm:$0xff]  ;;  %v340_v45 = vld [vmem:[#allocation5 + $0xc0] sm:$0xff]  ;;  %v343_v46 = vld [vmem:[#allocation5 + $0xd8] sm:$0xff]  ;;  %s313_s18 = scalar_lea.vmem [#allocation10], %s10020_s15 }
  0x94   : > { %15428 = vst [vmem:[#allocation17_spill] sm:$0xff] %v13346_v21  ;;  %11630 = vmatprep.subr.bf16.mxu0 %v13346_v21  ;;  %15429 = vst [vmem:[#allocation18_spill] sm:$0xff] %v13353_v32  ;;  %v13361_v38 = vpack.c.bf16 %v401_v26, %v397_v25  ;;  %v13363_v41 = vsub.f32 %v323_v8, %v389_v11  ;;  %v13365_v42 = vsub.f32 %v326_v9, %v393_v12  ;;  %v347_v51 = vld [vmem:[#allocation5 + $0xf8] sm:$0xff]  ;;  %v350_v56 = vld [vmem:[#allocation5 + $0x110] sm:$0xff]  ;;  %vm2845_vm0 = vcmask 261120   ;;  %s9908_s13 = sshll.u32 %s313_s18, 4  ;;  %s15254_s13 = int_to_ptr.vmem [resolvable:$true] %s9908_s13 }
  0x95   : > { %v409_v43 = vand.u32 4294901760, %v338_v29  ;;  %v407_v44 = vand.u32 4294901760, %v334_v30  ;;  %v13368_v47 = vsub.f32 %v322_v13, %v391_v23  ;;  %v13370_v48 = vsub.f32 %v325_v14, %v395_v24  ;;  %v346_v57 = vld [vmem:[#allocation5 + $0xf0] sm:$0xff]  ;;  %v349_v58 = vld [vmem:[#allocation5 + $0x108] sm:$0xff]  ;;  %v356_v1 = vld [vmem:[#allocation5 + $0x140] sm:$0xff]  ;;  %s10052_s7 = sshll.u32 %s13143_s25, 8 }
  0x96   : > { %15430 = vst [vmem:[#allocation19_spill] sm:$0xff] %v13361_v38  ;;  %v13372_v49 = vpack.c.bf16 %v403_v28, %v399_v27  ;;  %v411_v50 = vand.u32 4294901760, %v337_v34  ;;  %v13375_v52 = vsub.f32 %v329_v15, %v397_v25  ;;  %v413_v54 = vand.u32 4294901760, %v341_v39  ;;  %v353_v63 = vld [vmem:[#allocation5 + $0x128] sm:$0xff]  ;;  %v352_v10 = vld [vmem:[#allocation5 + $0x120] sm:$0xff]  ;;  %v355_v11 = vld [vmem:[#allocation5 + $0x138] sm:$0xff]  ;;  %s15259_s17 = scalar_lea.hbm %s15309_s6, %s10052_s7 }
  0x97   : > { %11632 = vmatpush1.bf16.msra.mxu0 %v13353_v32  ;;  %v13377_v53 = vpack.c.bf16 %v409_v43, %v405_v33  ;;  %v417_v55 = vand.u32 4294901760, %v344_v40  ;;  %v13379_v59 = vsub.f32 %v332_v17, %v401_v26  ;;  %v13381_v60 = vsub.f32 %v328_v18, %v399_v27  ;;  %v314_v27 = vld [vmem:[%s13327_s1] sm:$0xff]  ;;  %v315_v20 = vld [vmem:[%s13327_s1 + $0x8] sm:$0xff]  ;;  %s12994_s27 = scalar_lea.vmem %s15254_s13, 256  ;;  %s13084_s25 = smov [#allocation10]  }
  0x98   : > { %15431 = vst [vmem:[#allocation20_spill] sm:$0xff] %v13372_v49  ;;  %11634 = vmatprep.subr.bf16.mxu0 %v13361_v38  ;;  %v415_v61 = vand.u32 4294901760, %v340_v45  ;;  %v419_v62 = vand.u32 4294901760, %v343_v46  ;;  %v13383_v2 = vsub.f32 %v331_v19, %v403_v28  ;;  %v13385_v3 = vsub.f32 %v335_v22, %v405_v33  ;;  %p12995_p10 = scmp.ne.s32.totalorder %s15254_s13, %s12994_s27  ;;  %s12998_s15 = sshll.u32 %s13084_s25, 4  ;;  %s12999_s15 = int_to_ptr.vmem [resolvable:$false] %s12998_s15 }
  0x99   : > { %15432 = vst [vmem:[#allocation21_spill] sm:$0xff] %v13377_v53  ;;  %v13387_v4 = vsub.f32 %v338_v29, %v409_v43  ;;  %v13389_v5 = vpack.c.bf16 %v411_v50, %v407_v44  ;;  %v421_v6 = vand.u32 4294901760, %v347_v51  ;;  %v425_v7 = vand.u32 4294901760, %v350_v56  ;;  %s13000_s29 = scalar_lea.vmem %s12999_s15, 512  ;;  %p13001_p12 = scmp.lt.s32.totalorder %s15254_s13, %s12999_s15 }
  0x9a   : > { %v423_v8 = vand.u32 4294901760, %v346_v57  ;;  %v427_v9 = vand.u32 4294901760, %v349_v58  ;;  %v13393_v12 = vsub.f32 %v334_v30, %v407_v44  ;;  %v13395_v13 = vpack.c.bf16 %v417_v55, %v413_v54  ;;  %v359_v44 = vld [vmem:[#allocation5 + $0x158] sm:$0xff]  ;;  %p12996_p3 = pnand %p12995_p10, %p13270_p5  ;;  %p13002_p2 = scmp.lt.s32.totalorder %s13000_s29, %s12994_s27 }
  0x9b   : > { %15433 = vst [vmem:[#allocation22_spill] sm:$0xff] %v13389_v5  ;;  %11636 = vmatpush1.bf16.msra.mxu0 %v13372_v49  ;;  %v429_v14 = vand.u32 4294901760, %v353_v63  ;;  %v433_v15 = vand.u32 4294901760, %v356_v1  ;;  %v13397_v17 = vsub.f32 %v337_v34, %v411_v50  ;;  %v13399_v18 = vsub.f32 %v341_v39, %v413_v54 }
  0x9c   : > { %11638 = vmatprep.subr.bf16.mxu0 %v13377_v53  ;;  %15434 = vst [vmem:[#allocation23_spill] sm:$0xff] %v13395_v13  ;;  %v13401_v19 = vsub.f32 %v344_v40, %v417_v55  ;;  %v13403_v22 = vpack.c.bf16 %v419_v62, %v415_v61  ;;  %v13405_v23 = vsub.f32 %v340_v45, %v415_v61  ;;  %v431_v25 = vand.u32 4294901760, %v352_v10  ;;  %v362_v45 = vld [vmem:[#allocation5 + $0x170] sm:$0xff]  ;;  %p12997_p7 = pneg %p12996_p3  ;;  %p13003_p1 = por %p13002_p2, %p13001_p12 }
  0x9d   : > { %v13407_v24 = vsub.f32 %v343_v46, %v419_v62  ;;  %v435_v26 = vand.u32 4294901760, %v355_v11  ;;  %v13411_v28 = vpack.c.bf16 %v425_v7, %v421_v6  ;;  %v13413_v29 = vsub.f32 %v347_v51, %v421_v6  ;;  %v13428_v46 = vld [vmem:[#allocation5 + $0x150] sm:$0xff]  ;;  %v13443_v62 = vld [vmem:[#allocation5 + $0x168] sm:$0xff] }
  0x9e   : > { %15435 = vst [vmem:[#allocation24_spill] sm:$0xff] %v13403_v22  ;;  %v13415_v30 = vsub.f32 %v350_v56, %v425_v7  ;;  %v13417_v33 = vpack.c.bf16 %v427_v9, %v423_v8  ;;  %v13420_v34 = vsub.f32 %v346_v57, %v423_v8  ;;  %v13422_v39 = vsub.f32 %v349_v58, %v427_v9  ;;  %p13004_p4 = pnand %p13003_p1, %p12997_p7 }
  0x9f   : > { %11640 = vmatpush1.bf16.msra.mxu0 %v13389_v5  ;;  %15436 = vst [vmem:[#allocation25_spill] sm:$0xff] %v13411_v28  ;;  %v13424_v40 = vpack.c.bf16 %v433_v15, %v429_v14  ;;  %v13426_v43 = vsub.f32 %v353_v63, %v429_v14  ;;  %v15314_v50 = vand.u32 4294901760, %v13350_v31  ;;  %v15313_v51 = vand.u32 4294901760, %v13355_v35 }
  0xa0   : > { %15437 = vst [vmem:[#allocation26_spill] sm:$0xff] %v13417_v33  ;;  %11642 = vmatprep.subr.bf16.mxu0 %v13395_v13  ;;  %v13432_v54 = vand.u32 4294901760, %v314_v27  ;;  %v15317_v55 = vand.u32 4294901760, %v13357_v36  ;;  %v13435_v56 = vsub.f32 %v356_v1, %v433_v15  ;;  %v13437_v57 = vpack.c.bf16 %v435_v26, %v431_v25 }
  0xa1   : > { %15438 = vst [vmem:[#allocation27_spill] sm:$0xff] %v13424_v40  ;;  %v13439_v58 = vsub.f32 %v352_v10, %v431_v25  ;;  %v13441_v61 = vsub.f32 %v355_v11, %v435_v26  ;;  %v437_v63 = vand.u32 4294901760, %v359_v44  ;;  %v441_v6 = vand.u32 4294901760, %v362_v45 }
  0xa2   : > { %15439 = vst [vmem:[#allocation28_spill] sm:$0xff] %v13437_v57  ;;  %v503_v7 = vsub.f32 %v13350_v31, %v15314_v50  ;;  %v515_v1 = vsub.f32 %v13355_v35, %v15313_v51  ;;  %v13455_v9 = vsub.f32 %v314_v27, %v13432_v54  ;;  %v15318_v10 = vand.u32 4294901760, %v13359_v37 }
  0xa3   : > { %15440 = vst [vmem:[#allocation29_spill] sm:$0xff] %v13441_v61  ;;  %11644 = vmatpush1.bf16.msra.mxu0 %v13403_v22  ;;  %v15321_v11 = vand.u32 4294901760, %v13363_v41  ;;  %v509_v15 = vsub.f32 %v13357_v36, %v15317_v55  ;;  %v15324_v25 = vand.u32 4294901760, %v13365_v42  ;;  %v15327_v26 = vand.u32 4294901760, %v13368_v47 }
  0xa4   : > { %11646 = vmatprep.subr.bf16.mxu0 %v13411_v28  ;;  %15441 = vst [vmem:[#allocation30_spill] sm:$0xff] %v13455_v9  ;;  %v504_v51 = vand.u32 4294901760, %v503_v7  ;;  %v516_v50 = vand.u32 4294901760, %v515_v1  ;;  %v13466_v0 = vand.u32 4294901760, %v13455_v9  ;;  %v521_v27 = vsub.f32 %v13359_v37, %v15318_v10 }
  0xa5   : > { %v527_v14 = vsub.f32 %v13363_v41, %v15321_v11  ;;  %v539_v55 = vsub.f32 %v13365_v42, %v15324_v25  ;;  %v533_v7 = vsub.f32 %v13368_v47, %v15327_v26  ;;  %v15341_v1 = vand.u32 4294901760, %v13370_v48 }
  0xa6   : > { %15442 = vst [vmem:[#allocation31_spill] sm:$0xff] %v13466_v0  ;;  %v13483_v8 = vpack.c.bf16 %v441_v6, %v437_v63  ;;  %v13485_v10 = vsub.f32 %v359_v44, %v437_v63  ;;  %v15445_v28 = vand.u32 4294901760, %v13428_v46  ;;  %v15446_v25 = vand.u32 4294901760, %v13443_v62 }
  0xa7   : > { %11648 = vmatpush1.bf16.msra.mxu0 %v13417_v33  ;;  %v481_v33 = vsub.f32 %v13455_v9, %v13466_v0  ;;  %v510_v26 = vand.u32 4294901760, %v509_v15  ;;  %v15340_v13 = vand.u32 4294901760, %v13379_v59  ;;  %v11657_v44 = vpack.c.bf16 %v516_v50, %v504_v51 }
  0xa8   : > { %11650 = vmatprep.subr.bf16.mxu0 %v13424_v40  ;;  %15443 = vst [vmem:[#allocation32_spill] sm:$0xff] %v13483_v8  ;;  %15444 = vst [vmem:[#allocation33_spill] sm:$0xff] %v13485_v10  ;;  %v13494_v22 = vpack.c.bf16 %v15446_v25, %v15445_v28  ;;  %v545_v40 = vsub.f32 %v13370_v48, %v15341_v1  ;;  %v522_v5 = vand.u32 4294901760, %v521_v27  ;;  %v15342_v0 = vand.u32 4294901760, %v13381_v60 }
  0xa9   : > { %v482_v63 = vand.u32 4294901760, %v481_v33  ;;  %v528_v11 = vand.u32 4294901760, %v527_v14  ;;  %v540_v53 = vand.u32 4294901760, %v539_v55  ;;  %v534_v49 = vand.u32 4294901760, %v533_v7 }
  0xaa   : > { %15447 = vst [vmem:[#allocation34_spill] sm:$0xff] %v13494_v22  ;;  %v15345_v28 = vand.u32 4294901760, %v13383_v2  ;;  %v15448_v15 = vand.u32 4294901760, %v13375_v52  ;;  %v563_v33 = vsub.f32 %v13379_v59, %v15340_v13  ;;  %v15348_v50 = vand.u32 4294901760, %v13385_v3 }
  0xab   : > { %11652 = vmatpush1.bf16.msra.mxu0 %v13437_v57  ;;  %v15349_v51 = vand.u32 4294901760, %v13387_v4  ;;  %10637 = vmatprep.mubr.f32.mxu1 %v482_v63  ;;  %v546_v14 = vand.u32 4294901760, %v545_v40  ;;  %v557_v55 = vsub.f32 %v13381_v60, %v15342_v0  ;;  %v15356_v7 = vand.u32 4294901760, %v13393_v12 }
  0xac   : > { %11654 = vmatprep.subr.bf16.mxu0 %v13483_v8  ;;  %v551_v25 = vsub.f32 %v13375_v52, %v15448_v15  ;;  %v569_v27 = vsub.f32 %v13383_v2, %v15345_v28  ;;  %v13519_v15 = vsub.f32 %v362_v45, %v441_v6  ;;  %v575_v13 = vsub.f32 %v13385_v3, %v15348_v50 }
  0xad   : > { %v587_v40 = vsub.f32 %v13387_v4, %v15349_v51  ;;  %v15363_v1 = vand.u32 4294901760, %v13397_v17  ;;  %v11659_v0 = vpack.c.bf16 %v522_v5, %v510_v26  ;;  %v11661_v8 = vpack.c.bf16 %v540_v53, %v528_v11 }
  0xae   : > { %15449 = vst [vmem:[#allocation35_spill] sm:$0xff] %v13519_v15  ;;  %v581_v28 = vsub.f32 %v13393_v12, %v15356_v7  ;;  %v15361_v45 = vand.u32 4294901760, %v13399_v18  ;;  %v552_v6 = vand.u32 4294901760, %v551_v25  ;;  %v564_v57 = vand.u32 4294901760, %v563_v33 }
  0xaf   : > { %11656 = vmatpush1.bf16.msra.mxu0 %v13494_v22  ;;  %v593_v50 = vsub.f32 %v13397_v17, %v15363_v1  ;;  %v15360_v51 = vand.u32 4294901760, %v13401_v19  ;;  %v11663_v38 = vpack.c.bf16 %v546_v14, %v534_v49  ;;  %v558_v32 = vand.u32 4294901760, %v557_v55 }
  0xb0   : > { %11658 = vmatprep.subr.bf16.mxu0 %v11657_v44  ;;  %v570_v22 = vand.u32 4294901760, %v569_v27  ;;  %v15358_v53 = vand.u32 4294901760, %v13405_v23  ;;  %v576_v5 = vand.u32 4294901760, %v575_v13  ;;  %v588_v11 = vand.u32 4294901760, %v587_v40 }
  0xb1   : > { %v582_v26 = vand.u32 4294901760, %v581_v28  ;;  %v15357_v7 = vand.u32 4294901760, %v13407_v24  ;;  %v594_v44 = vand.u32 4294901760, %v593_v50  ;;  %v599_v25 = vsub.f32 %v13399_v18, %v15361_v45 }
  0xb2   : > { %483 = vmatmul.mubr.f32.vlgmr.msra.gmra.mrb[0].mxu0 %v482_v63  ;;  %v15359_v33 = vand.u32 4294901760, %v13413_v29  ;;  %v15362_v49 = vand.u32 4294901760, %v13415_v30  ;;  %v15450_v14 = vmov 0.0   ;;  %v11665_v55 = vpack.c.bf16 %v564_v57, %v552_v6 }
  0xb3   : > { %11660 = vmatpush1.bf16.msra.mxu0 %v11659_v0  ;;  %488 = vmatprep.mubr.f32.mxu0 %v15450_v14  ;;  %v611_v13 = vsub.f32 %v13401_v19, %v15360_v51  ;;  %v605_v0 = vsub.f32 %v13405_v23, %v15358_v53  ;;  %v617_v63 = vsub.f32 %v13407_v24, %v15357_v7  ;;  %v15451_v28 = vand.u32 4294901760, %v13428_v46 }
  0xb4   : > { %11662 = vmatprep.subr.bf16.mxu0 %v11661_v8  ;;  %v623_v57 = vsub.f32 %v13413_v29, %v15359_v33  ;;  %v635_v8 = vsub.f32 %v13415_v30, %v15362_v49  ;;  %v15452_v40 = vand.u32 4294901760, %v13443_v62  ;;  %v11667_v7 = vpack.c.bf16 %v570_v22, %v558_v32 }
  0xb5   : > { %v13557_v50 = vsub.f32 %v13428_v46, %v15451_v28  ;;  %v15370_v46 = vand.u32 4294901760, %v13422_v39  ;;  %v15368_v28 = vand.u32 4294901760, %v13426_v43  ;;  %v11669_v53 = vpack.c.bf16 %v588_v11, %v576_v5 }
  0xb6   : > { %v13569_v6 = vsub.f32 %v13443_v62, %v15452_v40  ;;  %v11671_v33 = vpack.c.bf16 %v594_v44, %v582_v26  ;;  %v600_v51 = vand.u32 4294901760, %v599_v25  ;;  %v15369_v45 = vand.u32 4294901760, %v13435_v56 }
  0xb7   : > { %11664 = vmatpush1.bf16.msra.mxu0 %v11663_v38  ;;  %v612_v49 = vand.u32 4294901760, %v611_v13  ;;  %v606_v1 = vand.u32 4294901760, %v605_v0  ;;  %v618_v27 = vand.u32 4294901760, %v617_v63  ;;  %v15371_v21 = vand.u32 4294901760, %v13439_v58 }
  0xb8   : > { %11666 = vmatprep.subr.bf16.mxu0 %v11665_v55  ;;  %v624_v62 = vand.u32 4294901760, %v623_v57  ;;  %v636_v40 = vand.u32 4294901760, %v635_v8  ;;  %v15453_v32 = vand.u32 4294901760, %v13420_v34  ;;  %v664_v38 = vand.u32 4294901760, %v13441_v61 }
  0xb9   : > { %v641_v5 = vsub.f32 %v13422_v39, %v15370_v46  ;;  %v647_v11 = vsub.f32 %v13426_v43, %v15368_v28  ;;  %v670_v26 = vand.u32 4294901760, %v13485_v10  ;;  %v682_v44 = vand.u32 4294901760, %v13519_v15 }
  0xba   : > { %v629_v22 = vsub.f32 %v13420_v34, %v15453_v32  ;;  %v659_v25 = vsub.f32 %v13435_v56, %v15369_v45  ;;  %v653_v55 = vsub.f32 %v13439_v58, %v15371_v21  ;;  %v665_v13 = vsub.f32 %v13441_v61, %v664_v38 }
  0xbb   : > { %11668 = vmatpush1.bf16.msra.mxu0 %v11667_v7  ;;  %v13595_v0 = vand.u32 4294901760, %v315_v20  ;;  %v11673_v63 = vpack.c.bf16 %v612_v49, %v600_v51  ;;  %v671_v57 = vsub.f32 %v13485_v10, %v670_v26  ;;  %v683_v8 = vsub.f32 %v13519_v15, %v682_v44 }
  0xbc   : > { %11670 = vmatprep.subr.bf16.mxu0 %v11669_v53  ;;  %v676_v7 = vand.u32 4294901760, %v13557_v50  ;;  %v11675_v32 = vpack.c.bf16 %v618_v27, %v606_v1  ;;  %v688_v45 = vand.u32 4294901760, %v13569_v6  ;;  %v11677_v46 = vpack.c.bf16 %v636_v40, %v624_v62 }
  0xbd   : > { %v13601_v28 = vsub.f32 %v315_v20, %v13595_v0  ;;  %v630_v21 = vand.u32 4294901760, %v629_v22  ;;  %v642_v9 = vand.u32 4294901760, %v641_v5  ;;  %v648_v16 = vand.u32 4294901760, %v647_v11 }
  0xbe   : > { %v660_v61 = vand.u32 4294901760, %v659_v25  ;;  %v654_v53 = vand.u32 4294901760, %v653_v55  ;;  %v666_v51 = vand.u32 4294901760, %v665_v13  ;;  %v672_v15 = vand.u32 4294901760, %v671_v57 }
  0xbf   : > { %11672 = vmatpush1.bf16.msra.mxu0 %v11671_v33  ;;  %v13605_v49 = vand.u32 4294901760, %v13601_v28  ;;  %v684_v10 = vand.u32 4294901760, %v683_v8  ;;  %v677_v1 = vsub.f32 %v13557_v50, %v676_v7  ;;  %v689_v20 = vsub.f32 %v13569_v6, %v688_v45 }
  0xc0   : > { %11674 = vmatprep.subr.bf16.mxu0 %v11673_v63  ;;  %v11679_v62 = vpack.c.bf16 %v642_v9, %v630_v21  ;;  %v11681_v40 = vpack.c.bf16 %v660_v61, %v648_v16  ;;  %v11683_v22 = vpack.c.bf16 %v666_v51, %v654_v53  ;;  %v15454_v55 = vand.u32 4294901760, %v13350_v31 }
  0xc1   : > { %v492_v27 = vsub.f32 %v13601_v28, %v13605_v49  ;;  %v11685_v5 = vpack.c.bf16 %v684_v10, %v672_v15  ;;  %v678_v11 = vand.u32 4294901760, %v677_v1  ;;  %v690_v25 = vand.u32 4294901760, %v689_v20 }
  0xc2   : > { %v15455_v13 = vand.u32 4294901760, %v13355_v35  ;;  %v15456_v57 = vand.u32 4294901760, %v13357_v36  ;;  %v15457_v21 = vand.u32 4294901760, %v13359_v37  ;;  %v15458_v61 = vand.u32 4294901760, %v13363_v41 }
  0xc3   : > { %11676 = vmatpush1.bf16.msra.mxu0 %v11675_v32  ;;  %v13611_v33 = vand.u32 4294901760, %v492_v27  ;;  %v15459_v9 = vand.u32 4294901760, %v13365_v42  ;;  %v15460_v15 = vand.u32 4294901760, %v13368_v47  ;;  %v15462_v32 = vand.u32 4294901760, %v13375_v52 }
  0xc4   : > { %11678 = vmatprep.subr.bf16.mxu0 %v11677_v46  ;;  %v13618_v63 = vpack.c.bf16 %v15455_v13, %v15454_v55  ;;  %v13624_v16 = vpack.c.bf16 %v15457_v21, %v15456_v57  ;;  %v15461_v46 = vand.u32 4294901760, %v13370_v48  ;;  %v15463_v53 = vand.u32 4294901760, %v13379_v59 }
  0xc5   : > { %494 = vmatmul.mubr.f32.gmra.mrb[2].mxu0 %v13611_v33  ;;  %v13630_v10 = vpack.c.bf16 %v15459_v9, %v15458_v61  ;;  %v15464_v1 = vand.u32 4294901760, %v13381_v60  ;;  %v15465_v20 = vand.u32 4294901760, %v13383_v2  ;;  %v15466_v55 = vand.u32 4294901760, %v13385_v3 }
  0xc6   : > { %v13636_v8 = vpack.c.bf16 %v15461_v46, %v15460_v15  ;;  %724 = vmatprep.mubr.f32.mxu0 %v15450_v14  ;;  %v13643_v51 = vpack.c.bf16 %v15463_v53, %v15462_v32  ;;  %v15467_v13 = vand.u32 4294901760, %v13387_v4  ;;  %v15469_v21 = vand.u32 4294901760, %v13393_v12 }
  0xc7   : > { %v13649_v27 = vpack.c.bf16 %v15465_v20, %v15464_v1  ;;  %v15470_v61 = vand.u32 4294901760, %v13397_v17  ;;  %11680 = vmatpush1.bf16.msra.mxu0 %v11679_v62  ;;  %v15471_v15 = vand.u32 4294901760, %v13399_v18  ;;  %v15472_v46 = vand.u32 4294901760, %v13401_v19 }
  0xc8   : > { %v13655_v57 = vpack.c.bf16 %v15467_v13, %v15466_v55  ;;  %v15474_v53 = vand.u32 4294901760, %v13405_v23  ;;  %v15475_v1 = vand.u32 4294901760, %v13407_v24  ;;  %v15477_v55 = vand.u32 4294901760, %v13413_v29  ;;  %11682 = vmatprep.subr.bf16.mxu0 %v11681_v40 }
  0xc9   : > { %v13661_v9 = vpack.c.bf16 %v15470_v61, %v15469_v21  ;;  %v13667_v32 = vpack.c.bf16 %v15472_v46, %v15471_v15  ;;  %v15478_v13 = vand.u32 4294901760, %v13415_v30  ;;  %v15479_v62 = vand.u32 4294901760, %v13420_v34 }
  0xca   : > { %15468 = vst [vmem:[#allocation36_spill] sm:$0xff] %v13655_v57  ;;  %v13673_v20 = vpack.c.bf16 %v15475_v1, %v15474_v53  ;;  %v15480_v21 = vand.u32 4294901760, %v13422_v39  ;;  %v15481_v15 = vand.u32 4294901760, %v13426_v43  ;;  %v15482_v46 = vand.u32 4294901760, %v13435_v56 }
  0xcb   : > { %15473 = vst [vmem:[#allocation37_spill] sm:$0xff] %v13667_v32  ;;  %v13679_v57 = vpack.c.bf16 %v15478_v13, %v15477_v55  ;;  %v15483_v53 = vand.u32 4294901760, %v13439_v58  ;;  %v13699_v55 = vpack.c.bf16 %v688_v45, %v676_v7  ;;  %11684 = vmatpush1.bf16.msra.mxu0 %v11683_v22  ;;  %v11687_v13 = vpack.c.bf16 %v690_v25, %v678_v11  ;;  %v339_v11 = vld [vmem:[#allocation5 + $0xb8] sm:$0xff] }
  0xcc   : > { %15476 = vst [vmem:[#allocation38_spill] sm:$0xff] %v13673_v20  ;;  %v13685_v61 = vpack.c.bf16 %v15480_v21, %v15479_v62  ;;  %v13691_v32 = vpack.c.bf16 %v15482_v46, %v15481_v15  ;;  %v13697_v20 = vpack.c.bf16 %v682_v44, %v670_v26  ;;  %11686 = vmatprep.subr.bf16.mxu0 %v11685_v5  ;;  %v13717_v26 = vld [vmem:[#allocation5 + $0x70] sm:$0xff]  ;;  %v13719_v44 = vld [vmem:[#allocation5 + $0x88] sm:$0xff]  ;;  %v336_v5 = vld [vmem:[#allocation5 + $0xa0] sm:$0xff]  ;;  %v1307_v46 = vand.u32 4294901760, %v339_v11 }
  0xcd   : > { %v13695_v1 = vpack.c.bf16 %v664_v38, %v15483_v53  ;;  %v11689_v40 = vpack.c.bf16 %v13355_v35, %v13350_v31  ;;  %v11691_v62 = vpack.c.bf16 %v13359_v37, %v13357_v36  ;;  %v11693_v21 = vpack.c.bf16 %v13365_v42, %v13363_v41  ;;  %v318_v35 = vld [vmem:[#allocation5 + $0x10] sm:$0xff]  ;;  %v321_v36 = vld [vmem:[#allocation5 + $0x28] sm:$0xff]  ;;  %v324_v37 = vld [vmem:[#allocation5 + $0x40] sm:$0xff] }
  0xce   : > { %v11695_v45 = vpack.c.bf16 %v13370_v48, %v13368_v47  ;;  %v11697_v31 = vpack.c.bf16 %v13379_v59, %v13375_v52  ;;  %v11699_v41 = vpack.c.bf16 %v13383_v2, %v13381_v60  ;;  %v1286_v42 = vand.u32 4294901760, %v318_v35  ;;  %v327_v47 = vld [vmem:[#allocation5 + $0x58] sm:$0xff]  ;;  %v342_v53 = vld [vmem:[#allocation5 + $0xd0] sm:$0xff] }
  0xcf   : > { %11688 = vmatpush1.bf16.msra.mxu0 %v11687_v13  ;;  %v1289_v38 = vand.u32 4294901760, %v321_v36  ;;  %v1292_v48 = vand.u32 4294901760, %v324_v37  ;;  %v11701_v52 = vpack.c.bf16 %v13387_v4, %v13385_v3  ;;  %v1295_v59 = vand.u32 4294901760, %v327_v47  ;;  %v345_v13 = vld [vmem:[#allocation5 + $0xe8] sm:$0xff] }
  0xd0   : > { %11690 = vmatprep.subr.bf16.mxu0 %v11689_v40  ;;  %v1298_v22 = vand.u32 4294901760, %v13717_v26  ;;  %v1301_v60 = vand.u32 4294901760, %v13719_v44  ;;  %v11703_v25 = vpack.c.bf16 %v13397_v17, %v13393_v12  ;;  %v11705_v3 = vpack.c.bf16 %v13401_v19, %v13399_v18 }
  0xd1   : > { %v13723_v7 = vpack.c.bf16 %v1289_v38, %v1286_v42  ;;  %v13727_v2 = vpack.c.bf16 %v1295_v59, %v1292_v48  ;;  %v1304_v15 = vand.u32 4294901760, %v336_v5  ;;  %v11707_v12 = vpack.c.bf16 %v13407_v24, %v13405_v23 }
  0xd2   : > { %726 = vmatmul.mubr.f32.vlgmr.msra.gmra.mrb[0].mxu0 %v13432_v54  ;;  %v13736_v4 = vpack.c.bf16 %v1301_v60, %v1298_v22  ;;  %v11709_v17 = vpack.c.bf16 %v13415_v30, %v13413_v29  ;;  %v1310_v19 = vand.u32 4294901760, %v342_v53  ;;  %v1313_v40 = vand.u32 4294901760, %v345_v13 }
  0xd3   : > { %11692 = vmatpush1.bf16.msra.mxu0 %v11691_v62  ;;  %731 = vmatprep.mubr.f32.mxu0 %v15450_v14  ;;  %15484 = vst [vmem:[#allocation39_spill] sm:$0xff] %v13723_v7  ;;  %15485 = vst [vmem:[#allocation40_spill] sm:$0xff] %v13727_v2  ;;  %v13744_v18 = vpack.c.bf16 %v1307_v46, %v1304_v15  ;;  %v348_v62 = vld [vmem:[#allocation5 + $0x100] sm:$0xff]  ;;  %v11713_v23 = vpack.c.bf16 %v13435_v56, %v13426_v43  ;;  %v15489_v43 = vld [vmem:[#allocation29_spill] sm:$0xff]  ;;  %vm4902_vm1 = vcmask 130048  }
  0xd4   : > { %11694 = vmatprep.subr.bf16.mxu0 %v11693_v21  ;;  %11818 = vmatprep.subr.bf16.mxu1 %v13723_v7  ;;  %15486 = vst [vmem:[#allocation41_spill] sm:$0xff] %v13736_v4  ;;  %v351_v21 = vld [vmem:[#allocation5 + $0x118] sm:$0xff]  ;;  %v13754_v24 = vpack.c.bf16 %v1313_v40, %v1310_v19  ;;  %v1316_v29 = vand.u32 4294901760, %v348_v62  ;;  %v11715_v56 = vpack.c.bf16 %v15489_v43, %v13439_v58 }
  0xd5   : > { %11820 = vmatpush3.bf16.msra.mxu1 %v13723_v7  ;;  %15487 = vst [vmem:[#allocation42_spill] sm:$0xff] %v13744_v18  ;;  %v1319_v30 = vand.u32 4294901760, %v351_v21  ;;  %v15506_v7 = vld [vmem:[#allocation17_spill] sm:$0xff] }
  0xd6   : > { %733 = vmatmul.mubr.f32.gmra.mrb[2].mxu0 %v13595_v0  ;;  %11822 = vmatprep.subr.bf16.mxu1 %v13727_v2  ;;  %15488 = vst [vmem:[#allocation43_spill] sm:$0xff] %v13754_v24 }
  0xd7   : > { %11696 = vmatpush1.bf16.msra.mxu0 %v11695_v45  ;;  %867 = vmatprep.mubr.f32.mxu0 %v15450_v14  ;;  %v11711_v45 = vpack.c.bf16 %v13422_v39, %v13420_v34  ;;  %v13762_v34 = vld [vmem:[#allocation5 + $0x160] sm:$0xff]  ;;  %v13764_v39 = vld [vmem:[#allocation5 + $0x178] sm:$0xff]  ;;  %v13781_v58 = vpack.c.bf16 %v1319_v30, %v1316_v29 }
  0xd8   : > { %11698 = vmatprep.subr.bf16.mxu0 %v11697_v31  ;;  %v13748_v31 = vsub.f32 %v318_v35, %v1286_v42  ;;  %v13766_v35 = vsub.f32 %v324_v37, %v1292_v48  ;;  %v13799_v48 = vsub.f32 %v342_v53, %v1310_v19 }
  0xd9   : > { %11824 = vmatpush3.bf16.msra.mxu1 %v13727_v2  ;;  %15492 = vst [vmem:[#allocation29_spill] sm:$0xff] %v13781_v58  ;;  %v15505_v2 = vld [vmem:[#allocation16_spill] sm:$0xff] }
  0xda   : > { %11826 = vmatprep.subr.bf16.mxu1 %v13736_v4  ;;  %v1389_v42 = vand.u32 4294901760, %v13748_v31 }
  0xdb   : > { %11700 = vmatpush1.bf16.msra.mxu0 %v11699_v41  ;;  %v13756_v41 = vld [vmem:[#allocation5 + $0x130] sm:$0xff] }
  0xdc   : > { %11702 = vmatprep.subr.bf16.mxu0 %v11701_v52  ;;  %v13758_v52 = vld [vmem:[#allocation5 + $0x148] sm:$0xff]  ;;  %v15382_v37 = vand.u32 4294901760, %v13756_v41  ;;  %v1390_v43 = vsub.f32 %v13748_v31, %v1389_v42 }
  0xdd   : > { %11828 = vmatpush3.bf16.msra.mxu1 %v13736_v4 }
  0xde   : > { %11830 = vmatprep.subr.bf16.mxu1 %v13744_v18 }
  0xdf   : > { %11704 = vmatpush1.bf16.msra.mxu0 %v11703_v25  ;;  %v13760_v25 = vsub.f32 %v321_v36, %v1289_v38  ;;  %v11719_v36 = vpack.c.bf16 %v13569_v6, %v13557_v50  ;;  %v15381_v38 = vand.u32 4294901760, %v13758_v52  ;;  %v13788_v50 = vsub.f32 %v13717_v26, %v1298_v22 }
  0xe0   : > { %11706 = vmatprep.subr.bf16.mxu0 %v11705_v3  ;;  %v13771_v3 = vsub.f32 %v327_v47, %v1295_v59  ;;  %v13791_v6 = vsub.f32 %v13719_v44, %v1301_v60  ;;  %v13802_v47 = vsub.f32 %v345_v13, %v1313_v40  ;;  %v13804_v26 = vsub.f32 %v348_v62, %v1316_v29 }
  0xe1   : > { %11832 = vmatpush3.bf16.msra.mxu1 %v13744_v18  ;;  %v1396_v59 = vand.u32 4294901760, %v13760_v25  ;;  %v13806_v44 = vsub.f32 %v351_v21, %v1319_v30  ;;  %v13813_v22 = vpack.c.bf16 %v15381_v38, %v15382_v37  ;;  %v1391_v13 = vand.u32 4294901760, %v1390_v43  ;;  %v15497_v21 = vld [vmem:[#allocation15_spill] sm:$0xff]  ;;  %v15501_v37 = vld [vmem:[#allocation30_spill] sm:$0xff] }
  0xe2   : > { %11834 = vmatprep.subr.bf16.mxu1 %v13754_v24  ;;  %v1424_v53 = vand.u32 4294901760, %v13791_v6  ;;  %v1445_v29 = vand.u32 4294901760, %v13799_v48  ;;  %v1452_v30 = vand.u32 4294901760, %v13802_v47 }
  0xe3   : > { %11708 = vmatpush1.bf16.msra.mxu0 %v11707_v12  ;;  %v15490_v12 = vld [vmem:[#allocation33_spill] sm:$0xff]  ;;  %v1397_v60 = vsub.f32 %v13760_v25, %v1396_v59  ;;  %v13835_v43 = vpack.c.bf16 %v1396_v59, %v1389_v42 }
  0xe4   : > { %11710 = vmatprep.subr.bf16.mxu0 %v11709_v17  ;;  %v15491_v17 = vld [vmem:[#allocation35_spill] sm:$0xff]  ;;  %15493 = vst [vmem:[#allocation33_spill] sm:$0xff] %v13813_v22 }
  0xe5   : > { %v11717_v4 = vpack.c.bf16 %v15491_v17, %v15490_v12  ;;  %v1410_v12 = vand.u32 4294901760, %v13771_v3  ;;  %v13797_v17 = vsub.f32 %v339_v11, %v1307_v46  ;;  %11836 = vmatpush3.bf16.msra.mxu1 %v13754_v24  ;;  %v15495_v11 = vand.u32 4294901760, %v13764_v39  ;;  %15498 = vst [vmem:[#allocation15_spill] sm:$0xff] %v13835_v43 }
  0xe6   : > { %11838 = vmatprep.subr.bf16.mxu1 %v13781_v58  ;;  %v1417_v46 = vand.u32 4294901760, %v13788_v50  ;;  %v13844_v24 = vpack.c.bf16 %v1452_v30, %v1445_v29 }
  0xe7   : > { %11712 = vmatpush1.bf16.msra.mxu0 %v11711_v45  ;;  %v1403_v45 = vand.u32 4294901760, %v13766_v35  ;;  %v1411_v19 = vsub.f32 %v13771_v3, %v1410_v12  ;;  %v1438_v62 = vand.u32 4294901760, %v13797_v17 }
  0xe8   : > { %11714 = vmatprep.subr.bf16.mxu0 %v11713_v23  ;;  %v13793_v23 = vsub.f32 %v336_v5, %v1304_v15  ;;  %v15494_v5 = vand.u32 4294901760, %v13762_v34  ;;  %v13839_v38 = vpack.c.bf16 %v1424_v53, %v1417_v46  ;;  %15503 = vst [vmem:[#allocation46_spill] sm:$0xff] %v13844_v24  ;;  %v1418_v42 = vsub.f32 %v13788_v50, %v1417_v46 }
  0xe9   : > { %v1404_v15 = vsub.f32 %v13766_v35, %v1403_v45  ;;  %11840 = vmatpush3.bf16.msra.mxu1 %v13781_v58 }
  0xea   : > { %v1431_v40 = vand.u32 4294901760, %v13793_v23  ;;  %11842 = vmatprep.subr.bf16.mxu1 %v13813_v22  ;;  %15500 = vst [vmem:[#allocation45_spill] sm:$0xff] %v13839_v38  ;;  %v15508_v38 = vld [vmem:[#allocation19_spill] sm:$0xff] }
  0xeb   : > { %11716 = vmatpush1.bf16.msra.mxu0 %v11715_v56  ;;  %v1459_v56 = vand.u32 4294901760, %v13804_v26 }
  0xec   : > { %11718 = vmatprep.subr.bf16.mxu0 %v11717_v4  ;;  %v13820_v4 = vpack.c.bf16 %v15495_v11, %v15494_v5  ;;  %v1466_v5 = vand.u32 4294901760, %v13806_v44  ;;  %v13837_v11 = vpack.c.bf16 %v1410_v12, %v1403_v45  ;;  %v13842_v58 = vpack.c.bf16 %v1438_v62, %v1431_v40 }
  0xed   : > { %11844 = vmatpush3.bf16.msra.mxu1 %v13813_v22  ;;  %v1405_v45 = vand.u32 4294901760, %v1404_v15  ;;  %v1412_v12 = vand.u32 4294901760, %v1411_v19  ;;  %v1432_v24 = vsub.f32 %v13793_v23, %v1431_v40  ;;  %v1419_v15 = vand.u32 4294901760, %v1418_v42  ;;  %v15509_v19 = vld [vmem:[#allocation20_spill] sm:$0xff] }
  0xee   : > { %15496 = vst [vmem:[#allocation35_spill] sm:$0xff] %v13820_v4  ;;  %15499 = vst [vmem:[#allocation44_spill] sm:$0xff] %v13837_v11  ;;  %v13846_v18 = vpack.c.bf16 %v1466_v5, %v1459_v56  ;;  %11846 = vmatprep.subr.bf16.mxu1 %v13820_v4  ;;  %v15510_v11 = vld [vmem:[#allocation21_spill] sm:$0xff]  ;;  %v1446_v40 = vsub.f32 %v13799_v48, %v1445_v29  ;;  %v1453_v42 = vsub.f32 %v13802_v47, %v1452_v30  ;;  %v15514_v29 = vld [vmem:[#allocation23_spill] sm:$0xff] }
  0xef   : > { %11720 = vmatpush1.bf16.msra.mxu0 %v11719_v36  ;;  %v1398_v36 = vand.u32 4294901760, %v1397_v60  ;;  %15502 = vst [vmem:[#allocation30_spill] sm:$0xff] %v13842_v58  ;;  %v1425_v60 = vsub.f32 %v13791_v6, %v1424_v53  ;;  %v1439_v58 = vsub.f32 %v13797_v17, %v1438_v62  ;;  %v11853_v46 = vpack.c.bf16 %v1412_v12, %v1405_v45 }
  0xf0   : > { %11722 = vmatprep.subr.bf16.mxu0 %v15497_v21  ;;  %15504 = vst [vmem:[#allocation47_spill] sm:$0xff] %v13846_v18  ;;  %v15507_v18 = vld [vmem:[#allocation18_spill] sm:$0xff]  ;;  %v1433_v53 = vand.u32 4294901760, %v1432_v24  ;;  %v15511_v62 = vand.u32 4294901760, %v13756_v41  ;;  %v15512_v12 = vand.u32 4294901760, %v13758_v52  ;;  %v15515_v30 = vand.u32 4294901760, %v13762_v34 }
  0xf1   : > { %v11849_v59 = vpack.c.bf16 %v1398_v36, %v1391_v13  ;;  %11848 = vmatpush3.bf16.msra.mxu1 %v13820_v4  ;;  %v1426_v13 = vand.u32 4294901760, %v1425_v60  ;;  %v1440_v36 = vand.u32 4294901760, %v1439_v58  ;;  %v15513_v24 = vld [vmem:[#allocation22_spill] sm:$0xff]  ;;  %v15520_v4 = vld [vmem:[#allocation27_spill] sm:$0xff] }
  0xf2   : > { %870 = vmatmul.mubr.f32.vlgmr.msra.gmra.mrb[0].mxu0 %v15501_v37  ;;  %v13869_v43 = vsub.f32 %v13756_v41, %v15511_v62  ;;  %v1460_v41 = vsub.f32 %v13804_v26, %v1459_v56  ;;  %v15518_v56 = vld [vmem:[#allocation25_spill] sm:$0xff] }
  0xf3   : > { %11724 = vmatpush1.bf16.msra.mxu0 %v15505_v2  ;;  %875 = vmatprep.mubr.f32.mxu0 %v15450_v14  ;;  %v11857_v45 = vpack.c.bf16 %v1426_v13, %v1419_v15  ;;  %v11861_v58 = vpack.c.bf16 %v1440_v36, %v1433_v53  ;;  %v13885_v15 = vsub.f32 %v13762_v34, %v15515_v30  ;;  %v15516_v53 = vand.u32 4294901760, %v13764_v39  ;;  %v15517_v36 = vld [vmem:[#allocation24_spill] sm:$0xff] }
  0xf4   : > { %11726 = vmatprep.subr.bf16.mxu0 %v15506_v7  ;;  %11850 = vmatprep.subr.bf16.mxu1 %v11849_v59  ;;  %v15401_v60 = vand.u32 4294901760, %v13869_v43  ;;  %v1467_v13 = vsub.f32 %v13806_v44, %v1466_v5 }
  0xf5   : > { %10638 = vmatmul.mubr.f32.vlgmr.msra.gmra.mrb[0].mxu1 %v13611_v33  ;;  %v13875_v33 = vsub.f32 %v13758_v52, %v15512_v12  ;;  %v1454_v52 = vand.u32 4294901760, %v1453_v42  ;;  %v1487_v42 = vand.u32 4294901760, %v13885_v15 }
  0xf6   : > { %878 = vmatmul.mubr.f32.gmra.mrb[2].mxu0 %v13601_v28  ;;  %11852 = vmatpush3.bf16.msra.mxu1 %v11849_v59  ;;  %v1447_v59 = vand.u32 4294901760, %v1446_v40  ;;  %v1461_v40 = vand.u32 4294901760, %v1460_v41  ;;  %v1474_v34 = vsub.f32 %v13869_v43, %v15401_v60  ;;  %v1468_v12 = vand.u32 4294901760, %v1467_v13  ;;  %v15521_v13 = vld [vmem:[#allocation28_spill] sm:$0xff] }
  0xf7   : > { %11728 = vmatpush1.bf16.msra.mxu0 %v15507_v18  ;;  %980 = vmatprep.mubr.f32.mxu0 %v15450_v14  ;;  %v15402_v62 = vand.u32 4294901760, %v13875_v33 }
  0xf8   : > { %11730 = vmatprep.subr.bf16.mxu0 %v15508_v38  ;;  %11854 = vmatprep.subr.bf16.mxu1 %v11853_v46  ;;  %v11865_v5 = vpack.c.bf16 %v1454_v52, %v1447_v59  ;;  %v11869_v41 = vpack.c.bf16 %v1468_v12, %v1461_v40  ;;  %v1488_v59 = vsub.f32 %v13885_v15, %v1487_v42  ;;  %v15524_v12 = vld [vmem:[#allocation31_spill] sm:$0xff] }
  0xf9   : > { %10672 = vmatprep.mubr.f32.mxu1 %v13432_v54 }
  0xfa   : > { %11856 = vmatpush3.bf16.msra.mxu1 %v11853_v46  ;;  %v13892_v46 = vsub.f32 %v13764_v39, %v15516_v53  ;;  %v1481_v39 = vsub.f32 %v13875_v33, %v15402_v62  ;;  %v15519_v53 = vld [vmem:[#allocation26_spill] sm:$0xff]  ;;  %v15522_v62 = vld [vmem:[#allocation32_spill] sm:$0xff] }
  0xfb   : > { %11732 = vmatpush1.bf16.msra.mxu0 %v15509_v19  ;;  %11858 = vmatprep.subr.bf16.mxu1 %v11857_v45 }
  0xfc   : > { %11734 = vmatprep.subr.bf16.mxu0 %v15510_v11  ;;  %v1494_v30 = vand.u32 4294901760, %v13892_v46  ;;  %v1482_v60 = vand.u32 4294901760, %v1481_v39 }
  0xfe   : > { %11860 = vmatpush3.bf16.msra.mxu1 %v11857_v45  ;;  %v1475_v45 = vand.u32 4294901760, %v1474_v34  ;;  %v1495_v52 = vsub.f32 %v13892_v46, %v1494_v30 }
  0xff   : > { %11736 = vmatpush1.bf16.msra.mxu0 %v15513_v24  ;;  %11862 = vmatprep.subr.bf16.mxu1 %v11861_v58 }
 0x100   : > { %11738 = vmatprep.subr.bf16.mxu0 %v15514_v29  ;;  %v11873_v22 = vpack.c.bf16 %v1482_v60, %v1475_v45  ;;  %v1496_v34 = vand.u32 4294901760, %v1495_v52  ;;  %v11881_v60 = vpack.c.bf16 %v13760_v25, %v13748_v31  ;;  %v11897_v31 = vpack.c.bf16 %v13802_v47, %v13799_v48  ;;  %v15536_v25 = vld [vmem:[#allocation35_spill] sm:$0xff] }
 0x101   : > { %v15543_v47 = vand.u32 4294901760, %v13869_v43  ;;  %v15544_v48 = vand.u32 4294901760, %v13875_v33 }
 0x102   : > { %11864 = vmatpush3.bf16.msra.mxu1 %v11861_v58  ;;  %v1489_v58 = vand.u32 4294901760, %v1488_v59 }
 0x103   : > { %11740 = vmatpush1.bf16.msra.mxu0 %v15517_v36  ;;  %11866 = vmatprep.subr.bf16.mxu1 %v11865_v5 }
 0x104   : > { %11742 = vmatprep.subr.bf16.mxu0 %v15518_v56  ;;  %v11877_v40 = vpack.c.bf16 %v1496_v34, %v1489_v58 }
 0x106   : > { %11868 = vmatpush3.bf16.msra.mxu1 %v11865_v5 }
 0x107   : > { %11744 = vmatpush1.bf16.msra.mxu0 %v15519_v53  ;;  %11870 = vmatprep.subr.bf16.mxu1 %v11869_v41 }
 0x108   : > { %11746 = vmatprep.subr.bf16.mxu0 %v15520_v4  ;;  %v15523_v4 = vld [vmem:[#allocation34_spill] sm:$0xff] }
 0x10a   : > { %11872 = vmatpush3.bf16.msra.mxu1 %v11869_v41 }
 0x10b   : > { %11748 = vmatpush1.bf16.msra.mxu0 %v15521_v13  ;;  %11874 = vmatprep.subr.bf16.mxu1 %v11873_v22 }
 0x10c   : > { %11750 = vmatprep.subr.bf16.mxu0 %v15522_v62 }
 0x10e   : > { %11876 = vmatpush3.bf16.msra.mxu1 %v11873_v22 }
 0x10f   : > { %11752 = vmatpush1.bf16.msra.mxu0 %v15523_v4  ;;  %11878 = vmatprep.subr.bf16.mxu1 %v11877_v40 }
 0x110   : > { %11754 = vmatprep.subr.bf16.mxu0 %v13618_v63  ;;  %v11885_v63 = vpack.c.bf16 %v13771_v3, %v13766_v35  ;;  %v15537_v35 = vld [vmem:[#allocation15_spill] sm:$0xff]  ;;  %v15538_v3 = vld [vmem:[#allocation44_spill] sm:$0xff] }
 0x112   : > { %984 = vmatmul.mubr.f32.vlgmr.msra.gmra.mrb[0].mxu0 %v15524_v12  ;;  %11880 = vmatpush3.bf16.msra.mxu1 %v11877_v40 }
 0x113   : > { %11756 = vmatpush1.bf16.msra.mxu0 %v13624_v16  ;;  %989 = vmatprep.mubr.f32.mxu0 %v15450_v14  ;;  %v15525_v16 = vld [vmem:[#allocation36_spill] sm:$0xff] }
 0x114   : > { %11758 = vmatprep.subr.bf16.mxu0 %v13630_v10  ;;  %11882 = vmatprep.subr.bf16.mxu1 %v11881_v60  ;;  %v11889_v10 = vpack.c.bf16 %v13791_v6, %v13788_v50  ;;  %v11969_v50 = vpack.c.bf16 %v15544_v48, %v15543_v47  ;;  %v11973_v6 = vpack.c.bf16 %v1494_v30, %v1487_v42 }
 0x115   : > { %10673 = vmatmul.mubr.f32.vlgmr.msra.gmra.mrb[0].mxu1 %v13595_v0 }
 0x116   : > { %993 = vmatmul.mubr.f32.gmra.mrb[2].mxu0 %v13605_v49  ;;  %11884 = vmatpush3.bf16.msra.mxu1 %v11881_v60 }
 0x117   : > { %11760 = vmatpush1.bf16.msra.mxu0 %v13636_v8  ;;  %1159 = vmatprep.mubr.f32.mxu0 %v15450_v14  ;;  %v15526_v8 = vld [vmem:[#allocation37_spill] sm:$0xff] }
 0x118   : > { %11762 = vmatprep.subr.bf16.mxu0 %v13643_v51  ;;  %11886 = vmatprep.subr.bf16.mxu1 %v11885_v63  ;;  %v11893_v51 = vpack.c.bf16 %v13797_v17, %v13793_v23 }
 0x119   : > { %10707 = vmatprep.mubr.f32.mxu1 %v15501_v37  ;;  %v15540_v37 = vld [vmem:[#allocation30_spill] sm:$0xff] }
 0x11a   : > { %11888 = vmatpush3.bf16.msra.mxu1 %v11885_v63 }
 0x11b   : > { %11764 = vmatpush1.bf16.msra.mxu0 %v13649_v27  ;;  %11890 = vmatprep.subr.bf16.mxu1 %v11889_v10  ;;  %v15527_v27 = vld [vmem:[#allocation38_spill] sm:$0xff] }
 0x11c   : > { %11766 = vmatprep.subr.bf16.mxu0 %v15525_v16 }
 0x11e   : > { %11892 = vmatpush3.bf16.msra.mxu1 %v11889_v10 }
 0x11f   : > { %11768 = vmatpush1.bf16.msra.mxu0 %v13661_v9  ;;  %11894 = vmatprep.subr.bf16.mxu1 %v11893_v51  ;;  %v11901_v9 = vpack.c.bf16 %v13806_v44, %v13804_v26  ;;  %v14041_v26 = vld [vmem:[%s15305_s2] sm:$0x7] }
 0x120   : > { %11770 = vmatprep.subr.bf16.mxu0 %v15526_v8 }
 0x122   : > { %11896 = vmatpush3.bf16.msra.mxu1 %v11893_v51 }
 0x123   : > { %11772 = vmatpush1.bf16.msra.mxu0 %v15527_v27  ;;  %11898 = vmatprep.subr.bf16.mxu1 %v11897_v31 }
 0x124   : > { %11774 = vmatprep.subr.bf16.mxu0 %v13679_v57  ;;  %v11905_v57 = vpack.c.bf16 %v13875_v33, %v13869_v43 }
 0x126   : > { %11900 = vmatpush3.bf16.msra.mxu1 %v11897_v31 }
 0x127   : > { %11776 = vmatpush1.bf16.msra.mxu0 %v13685_v61  ;;  %11902 = vmatprep.subr.bf16.mxu1 %v11901_v9  ;;  %v15529_v61 = vld [vmem:[#allocation40_spill] sm:$0xff] }
 0x128   : > { %11778 = vmatprep.subr.bf16.mxu0 %v13691_v32  ;;  %v11909_v32 = vpack.c.bf16 %v13892_v46, %v13885_v15  ;;  %v13082_v15 = vmov 1983009808   ;;  %v13083_v46 = vmov 1934713408  }
 0x12a   : > { %11904 = vmatpush3.bf16.msra.mxu1 %v11901_v9 }
 0x12b   : > { %11780 = vmatpush1.bf16.msra.mxu0 %v13695_v1  ;;  %11906 = vmatprep.subr.bf16.mxu1 %v11905_v57  ;;  %v15530_v1 = vld [vmem:[#allocation41_spill] sm:$0xff] }
 0x12c   : > { %11782 = vmatprep.subr.bf16.mxu0 %v13697_v20  ;;  %v15528_v20 = vld [vmem:[#allocation39_spill] sm:$0xff] }
 0x12e   : > { %11908 = vmatpush3.bf16.msra.mxu1 %v11905_v57 }
 0x12f   : > { %11784 = vmatpush1.bf16.msra.mxu0 %v13699_v55  ;;  %11910 = vmatprep.subr.bf16.mxu1 %v11909_v32  ;;  %v15532_v55 = vld [vmem:[#allocation27_spill] sm:$0xff] }
 0x130   : > { %11786 = vmatprep.subr.bf16.mxu0 %v15497_v21 }
 0x132   : > { %1161 = vmatmul.mubr.f32.vlgmr.msra.gmra.mrb[0].mxu0 %v13432_v54  ;;  %11912 = vmatpush3.bf16.msra.mxu1 %v11909_v32 }
 0x133   : > { %11788 = vmatpush1.bf16.msra.mxu0 %v15505_v2  ;;  %1166 = vmatprep.mubr.f32.mxu0 %v15450_v14  ;;  %v15534_v2 = vld [vmem:[#allocation29_spill] sm:$0xff] }
 0x134   : > { %11790 = vmatprep.subr.bf16.mxu0 %v15506_v7  ;;  %11914 = vmatprep.subr.bf16.mxu1 %v15528_v20  ;;  %v15533_v7 = vld [vmem:[#allocation43_spill] sm:$0xff] }
 0x135   : > { %10708 = vmatmul.mubr.f32.vlgmr.msra.gmra.mrb[0].mxu1 %v13601_v28  ;;  %v15531_v28 = vld [vmem:[#allocation42_spill] sm:$0xff] }
 0x136   : > { %1168 = vmatmul.mubr.f32.gmra.mrb[2].mxu0 %v13595_v0  ;;  %11916 = vmatpush3.bf16.msra.mxu1 %v15528_v20 }
 0x137   : > { %11792 = vmatpush1.bf16.msra.mxu0 %v15507_v18  ;;  %1270 = vmatprep.mubr.f32.mxu0 %v15450_v14  ;;  %v15535_v18 = vld [vmem:[#allocation33_spill] sm:$0xff] }
 0x138   : > { %11794 = vmatprep.subr.bf16.mxu0 %v15508_v38  ;;  %11918 = vmatprep.subr.bf16.mxu1 %v15529_v61  ;;  %v15541_v38 = vld [vmem:[#allocation46_spill] sm:$0xff] }
 0x139   : > { %10742 = vmatprep.mubr.f32.mxu1 %v15524_v12 }
 0x13a   : > { %11920 = vmatpush3.bf16.msra.mxu1 %v15529_v61 }
 0x13b   : > { %11796 = vmatpush1.bf16.msra.mxu0 %v15509_v19  ;;  %11922 = vmatprep.subr.bf16.mxu1 %v15530_v1 }
 0x13c   : > { %11798 = vmatprep.subr.bf16.mxu0 %v15510_v11 }
 0x13e   : > { %11924 = vmatpush3.bf16.msra.mxu1 %v15530_v1 }
 0x13f   : > { %11800 = vmatpush1.bf16.msra.mxu0 %v15513_v24  ;;  %11926 = vmatprep.subr.bf16.mxu1 %v15531_v28 }
 0x140   : > { %11802 = vmatprep.subr.bf16.mxu0 %v15514_v29 }
 0x142   : > { %11928 = vmatpush3.bf16.msra.mxu1 %v15531_v28 }
 0x143   : > { %11804 = vmatpush1.bf16.msra.mxu0 %v15517_v36  ;;  %11930 = vmatprep.subr.bf16.mxu1 %v15533_v7  ;;  %v2096_v36 = vunpack.c.l.s4 %v13083_v46 }
 0x144   : > { %11806 = vmatprep.subr.bf16.mxu0 %v15518_v56 }
 0x145   : > { %v2097_v39 = vunpack.c.0.s8 %v2096_v36 }
 0x146   : > { %11932 = vmatpush3.bf16.msra.mxu1 %v15533_v7 }
 0x147   : > { %11808 = vmatpush1.bf16.msra.mxu0 %v15519_v53  ;;  %11934 = vmatprep.subr.bf16.mxu1 %v15534_v2 }
 0x148   : > { %11810 = vmatprep.subr.bf16.mxu0 %v15532_v55 }
 0x14a   : > { %11936 = vmatpush3.bf16.msra.mxu1 %v15534_v2 }
 0x14b   : > { %11812 = vmatpush1.bf16.msra.mxu0 %v15521_v13  ;;  %11938 = vmatprep.subr.bf16.mxu1 %v15535_v18 }
 0x14c   : > { %11814 = vmatprep.subr.bf16.mxu0 %v15522_v62  ;;  %v2032_v62 = vunpack.c.l.s4 %v13082_v15 }
 0x14e   : > { %11940 = vmatpush3.bf16.msra.mxu1 %v15535_v18  ;;  %v2033_v56 = vunpack.c.0.s8 %v2032_v62 }
 0x14f   : > { %11816 = vmatpush1.bf16.msra.mxu0 %v15523_v4  ;;  %11942 = vmatprep.subr.bf16.mxu1 %v15536_v25 }
 0x152   : > { %1272 = vmatmul.mubr.f32.vlgmr.msra.gmra.mrb[0].mxu0 %v13432_v54  ;;  %11944 = vmatpush3.bf16.msra.mxu1 %v15536_v25 }
 0x153   : > { %1277 = vmatprep.mubr.f32.mxu0 %v15450_v14  ;;  %11946 = vmatprep.subr.bf16.mxu1 %v15537_v35  ;;  %v15539_v14 = vld [vmem:[#allocation45_spill] sm:$0xff] }
 0x155   : > { %10743 = vmatmul.mubr.f32.vlgmr.msra.gmra.mrb[0].mxu1 %v13605_v49  ;;  %v15542_v49 = vld [vmem:[#allocation47_spill] sm:$0xff] }
 0x156   : > { %1279 = vmatmul.mubr.f32.gmra.mrb[2].mxu0 %v13595_v0  ;;  %11948 = vmatpush3.bf16.msra.mxu1 %v15537_v35 }
 0x157   : > { %10777 = vmatprep.mubr.f32.mxu1 %v13432_v54  ;;  %11950 = vmatprep.subr.bf16.mxu1 %v15538_v3 }
 0x15a   : > { %11952 = vmatpush3.bf16.msra.mxu1 %v15538_v3 }
 0x15b   : > { %11954 = vmatprep.subr.bf16.mxu1 %v15539_v14 }
 0x15e   : > { %11956 = vmatpush3.bf16.msra.mxu1 %v15539_v14 }
 0x15f   : > { %11958 = vmatprep.subr.bf16.mxu1 %v15540_v37 }
 0x162   : > { %11960 = vmatpush3.bf16.msra.mxu1 %v15540_v37 }
 0x163   : > { %11962 = vmatprep.subr.bf16.mxu1 %v15541_v38 }
 0x166   : > { %11964 = vmatpush3.bf16.msra.mxu1 %v15541_v38 }
 0x167   : > { %11966 = vmatprep.subr.bf16.mxu1 %v15542_v49 }
 0x16a   : > { %11968 = vmatpush3.bf16.msra.mxu1 %v15542_v49 }
 0x16b   : > { %11970 = vmatprep.subr.bf16.mxu1 %v11969_v50 }
 0x16e   : > { %11972 = vmatpush3.bf16.msra.mxu1 %v11969_v50 }
 0x16f   : > { %11974 = vmatprep.subr.bf16.mxu1 %v11973_v6 }
 0x172   : > { %11976 = vmatpush3.bf16.msra.mxu1 %v11973_v6 }
 0x173   : > { %11978 = vmatprep.subr.bf16.mxu1 %v15528_v20 }
 0x175   : > { %10778 = vmatmul.mubr.f32.vlgmr.msra.gmra.mrb[0].mxu1 %v13595_v0 }
 0x176   : > { %11980 = vmatpush3.bf16.msra.mxu1 %v15528_v20  ;;  %10812 = vmatprep.mubr.f32.mxu1 %v13432_v54  ;;  %v366_v54 = vlaneseq }
 0x177   : > { %11982 = vmatprep.subr.bf16.mxu1 %v15529_v61 }
 0x178   : > { %v14035_v23 = vshrl.u32 %v366_v54, 7 }
 0x17a   : > { %11984 = vmatpush3.bf16.msra.mxu1 %v15529_v61  ;;  %v368_v17 = vsub.s32 0, %v14035_v23  ;;  %v372_v22 = vsub.s32 1, %v14035_v23  ;;  %v14069_v30 = vsub.s32 %v2033_v56, %v14035_v23  ;;  %v14072_v58 = vsub.s32 %v2097_v39, %v14035_v23 }
 0x17b   : > { %11986 = vmatprep.subr.bf16.mxu1 %v15530_v1 }
 0x17c   : > { %v369_v44 = vrot.slane %v14041_v26, %v368_v17  ;;  %v373_v43 = vrot.slane %v14041_v26, %v372_v22 }
 0x17e   : > { %11988 = vmatpush3.bf16.msra.mxu1 %v15530_v1 }
 0x17f   : > { %11990 = vmatprep.subr.bf16.mxu1 %v15531_v28 }
 0x182   : > { %11992 = vmatpush3.bf16.msra.mxu1 %v15531_v28 }
 0x183   : > { %11994 = vmatprep.subr.bf16.mxu1 %v15533_v7 }
 0x186   : > { %11996 = vmatpush3.bf16.msra.mxu1 %v15533_v7 }
 0x187   : > { %11998 = vmatprep.subr.bf16.mxu1 %v15534_v2 }
 0x18a   : > { %12000 = vmatpush3.bf16.msra.mxu1 %v15534_v2 }
 0x18b   : > { %12002 = vmatprep.subr.bf16.mxu1 %v15535_v18 }
 0x18e   : > { %12004 = vmatpush3.bf16.msra.mxu1 %v15535_v18 }
 0x18f   : > { %12006 = vmatprep.subr.bf16.mxu1 %v15536_v25 }
 0x192   : > { %12008 = vmatpush3.bf16.msra.mxu1 %v15536_v25 }
 0x195   : > { %10813 = vmatmul.mubr.f32.vlgmr.msra.gmra.mrb[0].mxu1 %v13595_v0 }
 0x225   : > { %v1273_v4 = vpop.f32.mrb[0].mxu0 }
 0x226   : > { %v12585_v21 = vadd.f32 %v1273_v4, %v369_v44  ;;  %v1275_v11 = vpop.f32.mrb[1].mxu0 }
 0x227   : > { %v12586_v19 = vadd.f32 %v1275_v11, %v373_v43 }
 0x228   : > { %1977 = vrot.lane.b32.xlu1 %v12585_v21, %s13079_s19  ;;  %1971 = vrot.lane.b32.xlu0 %v12585_v21, %s13080_s20 }
 0x229   : > { %v1280_v0 = vpop.f32.mrb[2].mxu0 }
 0x22a   : > { %v1282_v33 = vpop.f32.mrb[3].mxu0  ;;  %v14050_v24 = vadd.f32 %v1280_v0, %v369_v44 }
 0x22b   : > { %v14055_v29 = vadd.f32 %v1282_v33, %v373_v43 }
 0x22c   : > { %1997 = vrot.lane.b32.xlu1 %v12586_v19, %s13079_s19  ;;  %1983 = vrot.lane.b32.xlu0 %v12585_v21, %s13081_s11 }
 0x230   : > { %1973 = vrot.lane.b32.xlu1 %v14050_v24, %s13080_s20  ;;  %1991 = vrot.lane.b32.xlu0 %v12586_v19, %s13080_s20 }
 0x234   : > { %1999 = vrot.lane.b32.xlu1 %v14055_v29, %s13079_s19  ;;  %2003 = vrot.lane.b32.xlu0 %v12586_v19, %s13081_s11 }
 0x238   : > { %2005 = vrot.lane.b32.xlu1 %v14055_v29, %s13081_s11  ;;  %1993 = vrot.lane.b32.xlu0 %v14055_v29, %s13080_s20 }
 0x23c   : > { %1985 = vrot.lane.b32.xlu1 %v14050_v24, %s13081_s11  ;;  %1979 = vrot.lane.b32.xlu0 %v14050_v24, %s13079_s19 }
 0x29a   : > { %v1978_v42 = vpop.permute.xlu1 %1977  ;;  %v1972_v5 = vpop.permute.xlu0 %1971 }
 0x29b   : > { %v2029_v53 = vcombine.low %v12585_v21, %v1978_v42  ;;  %v2030_v45 = vcombine.high %v12585_v21, %v1978_v42  ;;  %v14096_v21 = vpop.f32.mrb[0].mxu1 }
 0x29c   : > { %v14104_v33 = vpop.f32.mrb[1].mxu1 }
 0x29d   : > { %v2037_v34 = vrot.slane %v2029_v53, %v14069_v30  ;;  %v2044_v40 = vrot.slane %v2030_v45, %v14069_v30 }
 0x29e   : > { %v1998_v41 = vpop.permute.xlu1 %1997  ;;  %v1984_v59 = vpop.permute.xlu0 %1983 }
 0x29f   : > { %v2045_v52 = vcombine.low %v1972_v5, %v1984_v59  ;;  %v2046_v13 = vcombine.high %v1972_v5, %v1984_v59  ;;  %v2061_v20 = vcombine.low %v12586_v19, %v1998_v41  ;;  %v2062_v61 = vcombine.high %v12586_v19, %v1998_v41 }
 0x2a1   : > { %v2053_v12 = vrot.slane %v2045_v52, %v14069_v30  ;;  %v2060_v60 = vrot.slane %v2046_v13, %v14069_v30  ;;  %v2069_v3 = vrot.slane %v2061_v20, %v14069_v30  ;;  %v2076_v14 = vrot.slane %v2062_v61, %v14069_v30 }
 0x2a2   : > { %v14078_v63 = vpop.permute.xlu1 %1973  ;;  %v1992_v16 = vpop.permute.xlu0 %1991 }
 0x2a3   : > { %v2093_v10 = vcombine.low %v2037_v34, %v2053_v12  ;;  %v2094_v8 = vcombine.high %v2037_v34, %v2053_v12  ;;  %v2109_v51 = vcombine.low %v2044_v40, %v2060_v60  ;;  %v2110_v27 = vcombine.high %v2044_v40, %v2060_v60 }
 0x2a5   : > { %v2101_v31 = vrot.slane %v2093_v10, %v14072_v58  ;;  %v2108_v9 = vrot.slane %v2094_v8, %v14072_v58  ;;  %v2117_v57 = vrot.slane %v2109_v51, %v14072_v58  ;;  %v2124_v32 = vrot.slane %v2110_v27, %v14072_v58 }
 0x2a6   : > { %v2000_v1 = vpop.permute.xlu1 %1999  ;;  %v2004_v28 = vpop.permute.xlu0 %2003 }
 0x2a7   : > { %v10025_v55 = vcombine.low %v2101_v31, %v2108_v9  ;;  %v10027_v7 = vcombine.high %v2101_v31, %v2108_v9  ;;  %v2077_v2 = vcombine.low %v1992_v16, %v2004_v28  ;;  %v2078_v18 = vcombine.high %v1992_v16, %v2004_v28 }
 0x2a8   : > { %v10029_v25 = vcombine.low %v2117_v57, %v2124_v32  ;;  %v10031_v35 = vcombine.high %v2117_v57, %v2124_v32  ;;  %v2265_v6 = vcombine.low %v14055_v29, %v2000_v1  ;;  %v2266_v54 = vcombine.high %v14055_v29, %v2000_v1 }
 0x2a9   : > { %v2085_v37 = vrot.slane %v2077_v2, %v14069_v30  ;;  %v2092_v38 = vrot.slane %v2078_v18, %v14069_v30  ;;  %v14089_v48 = vrot.slane %v10025_v55, %v14069_v30  ;;  %v14092_v50 = vrot.slane %v10027_v7, %v14069_v30 }
 0x2aa   : > { %v2006_v49 = vpop.permute.xlu1 %2005  ;;  %v1994_v47 = vpop.permute.xlu0 %1993  ;;  %v14099_v43 = vrot.slane %v10029_v25, %v14069_v30  ;;  %v14102_v11 = vrot.slane %v10031_v35, %v14069_v30  ;;  %v2273_v36 = vrot.slane %v2265_v6, %v14069_v30  ;;  %v2280_v56 = vrot.slane %v2266_v54, %v14069_v30 }
 0x2ab   : > { %v2125_v17 = vcombine.low %v2069_v3, %v2085_v37  ;;  %v2126_v44 = vcombine.high %v2069_v3, %v2085_v37  ;;  %v2141_v22 = vcombine.low %v2076_v14, %v2092_v38  ;;  %v2142_v4 = vcombine.high %v2076_v14, %v2092_v38 }
 0x2ac   : > { %v2281_v0 = vcombine.low %v1994_v47, %v2006_v49  ;;  %v2282_v19 = vcombine.high %v1994_v47, %v2006_v49  ;;  %v2501_v28 = vcombine.low %v14089_v48, %v14092_v50  ;;  %v2533_v55 = vcombine.low %v14099_v43, %v14102_v11 }
 0x2ad   : > { %v2133_v15 = vrot.slane %v2125_v17, %v14072_v58  ;;  %v2140_v29 = vrot.slane %v2126_v44, %v14072_v58  ;;  %v2149_v62 = vrot.slane %v2141_v22, %v14072_v58  ;;  %v2156_v46 = vrot.slane %v2142_v4, %v14072_v58 }
 0x2ae   : > { %v2289_v42 = vrot.slane %v2281_v0, %v14069_v30  ;;  %v2296_v5 = vrot.slane %v2282_v19, %v14069_v30  ;;  %v1986_v1 = vpop.permute.xlu1 %1985  ;;  %v1980_v6 = vpop.permute.xlu0 %1979  ;;  %v2509_v54 = vrot.slane %v2501_v28, %v14072_v58  ;;  %v2541_v17 = vrot.slane %v2533_v55, %v14072_v58 }
 0x2af   : > { %v10026_v39 = vcombine.low %v2133_v15, %v2140_v29  ;;  %v10028_v53 = vcombine.high %v2133_v15, %v2140_v29  ;;  %v10030_v45 = vcombine.low %v2149_v62, %v2156_v46  ;;  %v10032_v41 = vcombine.high %v2149_v62, %v2156_v46 }
 0x2b0   : > { %v2329_v59 = vcombine.low %v2273_v36, %v2289_v42  ;;  %v2330_v52 = vcombine.high %v2273_v36, %v2289_v42  ;;  %v2345_v13 = vcombine.low %v2280_v56, %v2296_v5  ;;  %v2346_v34 = vcombine.high %v2280_v56, %v2296_v5 }
 0x2b1   : > { %v14115_v40 = vrot.slane %v10026_v39, %v14069_v30  ;;  %v14118_v12 = vrot.slane %v10028_v53, %v14069_v30  ;;  %v14121_v60 = vrot.slane %v10030_v45, %v14069_v30  ;;  %v14124_v16 = vrot.slane %v10032_v41, %v14069_v30 }
 0x2b2   : > { %v2337_v10 = vrot.slane %v2329_v59, %v14072_v58  ;;  %v2344_v8 = vrot.slane %v2330_v52, %v14072_v58  ;;  %v2353_v51 = vrot.slane %v2345_v13, %v14072_v58  ;;  %v2360_v27 = vrot.slane %v2346_v34, %v14072_v58 }
 0x2b3   : > { %v2517_v31 = vcombine.low %v14115_v40, %v14118_v12  ;;  %v2549_v9 = vcombine.low %v14121_v60, %v14124_v16  ;;  %v2249_v14 = vcombine.low %v14078_v63, %v1986_v1  ;;  %v2250_v37 = vcombine.high %v14078_v63, %v1986_v1 }
 0x2b4   : > { %v10034_v57 = vcombine.low %v2337_v10, %v2344_v8  ;;  %v10036_v32 = vcombine.high %v2337_v10, %v2344_v8  ;;  %v10038_v20 = vcombine.low %v2353_v51, %v2360_v27  ;;  %v10040_v61 = vcombine.high %v2353_v51, %v2360_v27 }
 0x2b5   : > { %v2525_v7 = vrot.slane %v2517_v31, %v14072_v58  ;;  %v2557_v2 = vrot.slane %v2549_v9, %v14072_v58  ;;  %v2257_v63 = vrot.slane %v2249_v14, %v14069_v30  ;;  %v2264_v0 = vrot.slane %v2250_v37, %v14069_v30 }
 0x2b6   : > { %v14141_v18 = vrot.slane %v10034_v57, %v14069_v30  ;;  %v14144_v25 = vrot.slane %v10036_v32, %v14069_v30  ;;  %v14147_v35 = vrot.slane %v10038_v20, %v14069_v30  ;;  %v14150_v3 = vrot.slane %v10040_v61, %v14069_v30 }
 0x2b7   : > { %v2569_v38 = vcombine.low %v2525_v7, %v2557_v2  ;;  %v2570_v44 = vcombine.high %v2525_v7, %v2557_v2  ;;  %v2233_v19 = vcombine.low %v14050_v24, %v1980_v6  ;;  %v2234_v15 = vcombine.high %v14050_v24, %v1980_v6 }
 0x2b8   : > { %v2653_v49 = vcombine.low %v14141_v18, %v14144_v25  ;;  %v2685_v47 = vcombine.low %v14147_v35, %v14150_v3  ;;  %v2565_v42 = vcombine.low %v2509_v54, %v2541_v17  ;;  %v2566_v5 = vcombine.high %v2509_v54, %v2541_v17 }
 0x2b9   : > { %v2853_v29 = vsel %vm2845_vm0, %v2569_v38, 0  ;;  %v2241_v36 = vrot.slane %v2233_v19, %v14069_v30  ;;  %v2248_v56 = vrot.slane %v2234_v15, %v14069_v30  ;;  %v3367_v39 = vsel %vm2845_vm0, %v2570_v44, 0 }
 0x2ba   : > { %v2661_v22 = vrot.slane %v2653_v49, %v14072_v58  ;;  %v2693_v4 = vrot.slane %v2685_v47, %v14072_v58  ;;  %v2847_v13 = vsel %vm2845_vm0, %v2565_v42, 0  ;;  %v3361_v34 = vsel %vm2845_vm0, %v2566_v5, 0 }
 0x2bb   : > { %v2297_v41 = vcombine.low %v2241_v36, %v2257_v63  ;;  %v2298_v59 = vcombine.high %v2241_v36, %v2257_v63  ;;  %v2313_v52 = vcombine.low %v2248_v56, %v2264_v0  ;;  %v2314_v24 = vcombine.high %v2248_v56, %v2264_v0 }
 0x2bc   : > { %v2705_v62 = vcombine.low %v2661_v22, %v2693_v4  ;;  %v2706_v46 = vcombine.high %v2661_v22, %v2693_v4  ;;  %v2859_v10 = vand.u32 4294901760, %v2853_v29  ;;  %v14178_v57 = vand.u32 4294901760, %v2847_v13 }
 0x2bd   : > { %v2305_v51 = vrot.slane %v2297_v41, %v14072_v58  ;;  %v2312_v27 = vrot.slane %v2298_v59, %v14072_v58  ;;  %v2321_v31 = vrot.slane %v2313_v52, %v14072_v58  ;;  %v2328_v9 = vrot.slane %v2314_v24, %v14072_v58 }
 0x2be   : > { %v2856_v53 = vsel %vm2845_vm0, %v2705_v62, 0  ;;  %v3370_v45 = vsel %vm2845_vm0, %v2706_v46, 0  ;;  %v14180_v32 = vand.u32 4294901760, %v3361_v34  ;;  %v3373_v61 = vand.u32 4294901760, %v3367_v39 }
 0x2bf   : > { %v2862_v8 = vand.u32 4294901760, %v2856_v53  ;;  %v10033_v1 = vcombine.low %v2305_v51, %v2312_v27  ;;  %v10035_v28 = vcombine.high %v2305_v51, %v2312_v27  ;;  %v10037_v55 = vcombine.low %v2321_v31, %v2328_v9 }
 0x2c0   : > { %v10039_v7 = vcombine.high %v2321_v31, %v2328_v9  ;;  %v14185_v2 = vsub.f32 %v2847_v13, %v14178_v57  ;;  %v14188_v14 = vsub.f32 %v3361_v34, %v14180_v32  ;;  %v3376_v37 = vand.u32 4294901760, %v3370_v45 }
 0x2c1   : > { %v14182_v20 = vpack.c.bf16 %v2862_v8, %v2859_v10  ;;  %v14191_v38 = vsub.f32 %v2853_v29, %v2859_v10  ;;  %v14194_v49 = vrot.slane %v10033_v1, %v14069_v30  ;;  %v14197_v47 = vrot.slane %v10035_v28, %v14069_v30 }
 0x2c2   : > { %v14200_v6 = vrot.slane %v10037_v55, %v14069_v30  ;;  %v14203_v54 = vrot.slane %v10039_v7, %v14069_v30  ;;  %v2927_v17 = vand.u32 4294901760, %v14185_v2  ;;  %v3441_v44 = vand.u32 4294901760, %v14188_v14 }
 0x2c3   : > { %12010 = vmatprep.subr.bf16.mxu0 %v14182_v20  ;;  %v14208_v22 = vpack.c.bf16 %v3376_v37, %v3373_v61  ;;  %v2948_v4 = vand.u32 4294901760, %v14191_v38  ;;  %v2637_v63 = vcombine.low %v14194_v49, %v14197_v47  ;;  %v14222_v29 = vsub.f32 %v2856_v53, %v2862_v8 }
 0x2c4   : > { %12012 = vmatpush3.bf16.xpose.msra.mxu0 %v14182_v20  ;;  %v2669_v0 = vcombine.low %v14200_v6, %v14203_v54  ;;  %v2928_v19 = vsub.f32 %v14185_v2, %v2927_v17  ;;  %v3442_v15 = vsub.f32 %v14188_v14, %v3441_v44  ;;  %v14231_v59 = vsub.f32 %v3367_v39, %v3373_v61 }
 0x2c5   : > { %12034 = vmatprep.subr.bf16.mxu1 %v14208_v22  ;;  %v2645_v62 = vrot.slane %v2637_v63, %v14072_v58  ;;  %v2949_v42 = vsub.f32 %v14191_v38, %v2948_v4  ;;  %v2955_v5 = vand.u32 4294901760, %v14222_v29  ;;  %v14233_v52 = vsub.f32 %v3370_v45, %v3376_v37 }
 0x2c6   : > { %v2677_v46 = vrot.slane %v2669_v0, %v14072_v58  ;;  %12036 = vmatpush3.bf16.xpose.msra.mxu1 %v14208_v22  ;;  %v2929_v36 = vand.u32 4294901760, %v2928_v19  ;;  %v3443_v56 = vand.u32 4294901760, %v3442_v15  ;;  %v3462_v13 = vand.u32 4294901760, %v14231_v59 }
 0x2c7   : > { %v2956_v24 = vsub.f32 %v14222_v29, %v2955_v5  ;;  %v3469_v34 = vand.u32 4294901760, %v14233_v52  ;;  %v2950_v51 = vand.u32 4294901760, %v2949_v42  ;;  %v2654_v42 = vcombine.high %v14141_v18, %v14144_v25 }
 0x2c8   : > { %v2701_v41 = vcombine.low %v2645_v62, %v2677_v46  ;;  %v2702_v53 = vcombine.high %v2645_v62, %v2677_v46  ;;  %10819 = vmatprep.mubr.f32.mxu0 %v2929_v36  ;;  %10861 = vmatprep.mubr.f32.mxu1 %v3443_v56  ;;  %v3463_v31 = vsub.f32 %v14231_v59, %v3462_v13 }
 0x2c9   : > { %v2957_v39 = vand.u32 4294901760, %v2956_v24  ;;  %v3470_v9 = vsub.f32 %v14233_v52, %v3469_v34  ;;  %v12017_v36 = vpack.c.bf16 %v14222_v29, %v14191_v38  ;;  %v12041_v56 = vpack.c.bf16 %v14233_v52, %v14231_v59 }
 0x2ca   : > { %v2850_v10 = vsel %vm2845_vm0, %v2701_v41, 0  ;;  %v3364_v8 = vsel %vm2845_vm0, %v2702_v53, 0  ;;  %v3464_v55 = vand.u32 4294901760, %v3463_v31  ;;  %v2686_v41 = vcombine.high %v14147_v35, %v14150_v3 }
 0x2cb   : > { %v14242_v27 = vand.u32 4294901760, %v2850_v10  ;;  %v14244_v45 = vand.u32 4294901760, %v3364_v8  ;;  %v12013_v61 = vpack.c.bf16 %v2957_v39, %v2950_v51  ;;  %v3471_v7 = vand.u32 4294901760, %v3470_v9 }
 0x2cc   : > { %v2518_v53 = vcombine.high %v14115_v40, %v14118_v12  ;;  %v2550_v24 = vcombine.high %v14121_v60, %v14124_v16  ;;  %v2668_v18 = vrot.slane %v2654_v42, %v14072_v58  ;;  %v2700_v25 = vrot.slane %v2686_v41, %v14072_v58 }
 0x2cd   : > { %v14253_v1 = vsub.f32 %v2850_v10, %v14242_v27  ;;  %v14256_v28 = vsub.f32 %v3364_v8, %v14244_v45  ;;  %12014 = vmatprep.subr.bf16.mxu0 %v12013_v61  ;;  %v12037_v0 = vpack.c.bf16 %v3471_v7, %v3464_v55  ;;  %v2502_v10 = vcombine.high %v14089_v48, %v14092_v50 }
 0x2ce   : > { %v2534_v8 = vcombine.high %v14099_v43, %v14102_v11  ;;  %v2532_v40 = vrot.slane %v2518_v53, %v14072_v58  ;;  %v2564_v48 = vrot.slane %v2550_v24, %v14072_v58  ;;  %v2707_v50 = vcombine.low %v2668_v18, %v2700_v25 }
 0x2cf   : > { %v2937_v37 = vand.u32 4294901760, %v14253_v1  ;;  %v3451_v63 = vand.u32 4294901760, %v14256_v28  ;;  %12038 = vmatprep.subr.bf16.mxu1 %v12037_v0  ;;  %v2516_v43 = vrot.slane %v2502_v10, %v14072_v58  ;;  %v2708_v12 = vcombine.high %v2668_v18, %v2700_v25 }
 0x2d0   : > { %v2548_v11 = vrot.slane %v2534_v8, %v14072_v58  ;;  %v2571_v60 = vcombine.low %v2532_v40, %v2564_v48  ;;  %v2638_v16 = vcombine.high %v14194_v49, %v14197_v47  ;;  %v2670_v35 = vcombine.high %v14200_v6, %v14203_v54 }
 0x2d1   : > { %v2938_v19 = vsub.f32 %v14253_v1, %v2937_v37  ;;  %v3452_v15 = vsub.f32 %v14256_v28, %v3451_v63  ;;  %v2572_v3 = vcombine.high %v2532_v40, %v2564_v48  ;;  %v12025_v51 = vpack.c.bf16 %v2955_v5, %v2948_v4 }
 0x2d2   : > { %v3884_v39 = vsel %vm2845_vm0, %v2707_v50, 0  ;;  %v12049_v49 = vpack.c.bf16 %v3469_v34, %v3462_v13  ;;  %v2567_v47 = vcombine.low %v2516_v43, %v2548_v11  ;;  %v4398_v6 = vsel %vm2845_vm0, %v2708_v12, 0 }
 0x2d3   : > { %v2939_v62 = vand.u32 4294901760, %v2938_v19  ;;  %v3453_v46 = vand.u32 4294901760, %v3452_v15  ;;  %v2568_v38 = vcombine.high %v2516_v43, %v2548_v11  ;;  %v3881_v54 = vsel %vm2845_vm0, %v2571_v60, 0 }
 0x2d4   : > { %v2652_v4 = vrot.slane %v2638_v16, %v14072_v58  ;;  %v2684_v29 = vrot.slane %v2670_v35, %v14072_v58  ;;  %v4395_v5 = vsel %vm2845_vm0, %v2572_v3, 0  ;;  %v3890_v59 = vand.u32 4294901760, %v3884_v39 }
 0x2d5   : > { %10820 = vmatmul.mubr.f32.vlgmr.msra.gmra.mrb[4].mxu0 %v2939_v62  ;;  %10862 = vmatmul.mubr.f32.vlgmr.msra.gmra.mrb[2].mxu1 %v3453_v46  ;;  %v4404_v52 = vand.u32 4294901760, %v4398_v6  ;;  %v3875_v13 = vsel %vm2845_vm0, %v2567_v47, 0  ;;  %v4401_v34 = vand.u32 4294901760, %v4395_v5 }
 0x2d6   : > { %12016 = vmatpush3.bf16.xpose.msra.mxu0 %v12013_v61  ;;  %12040 = vmatpush3.bf16.xpose.msra.mxu1 %v12037_v0  ;;  %v2703_v31 = vcombine.low %v2652_v4, %v2684_v29  ;;  %v2704_v9 = vcombine.high %v2652_v4, %v2684_v29 }
 0x2d7   : > { %10826 = vmatprep.mubr.f32.mxu0 %v14178_v57  ;;  %12018 = vmatprep.subr.bf16.mxu0 %v12017_v36  ;;  %v14334_v55 = vsub.f32 %v4398_v6, %v4404_v52  ;;  %v14370_v24 = vpack.c.bf16 %v4404_v52, %v4401_v34 }
 0x2d8   : > { %10868 = vmatprep.mubr.f32.mxu1 %v14180_v32  ;;  %12042 = vmatprep.subr.bf16.mxu1 %v12041_v56 }
 0x2d9   : > { %v4497_v15 = vand.u32 4294901760, %v14334_v55 }
 0x2db   : > { %v4498_v8 = vsub.f32 %v14334_v55, %v4497_v15 }
 0x2dd   : > { %10827 = vmatmul.mubr.f32.vlgmr.msra.gmra.mrb[4].mxu0 %v14242_v27  ;;  %10869 = vmatmul.mubr.f32.vlgmr.msra.gmra.mrb[2].mxu1 %v14244_v45  ;;  %v4499_v48 = vand.u32 4294901760, %v4498_v8 }
 0x2de   : > { %12020 = vmatpush3.bf16.xpose.msra.mxu0 %v12017_v36  ;;  %12044 = vmatpush3.bf16.xpose.msra.mxu1 %v12041_v56 }
 0x2df   : > { %10833 = vmatprep.mubr.f32.mxu0 %v14185_v2  ;;  %12022 = vmatprep.subr.bf16.mxu0 %v14182_v20  ;;  %v3887_v2 = vand.u32 4294901760, %v3881_v54 }
 0x2e0   : > { %10875 = vmatprep.mubr.f32.mxu1 %v14188_v14  ;;  %12046 = vmatprep.subr.bf16.mxu1 %v14208_v22  ;;  %v14328_v14 = vand.u32 4294901760, %v3875_v13 }
 0x2e1   : > { %v14338_v7 = vsub.f32 %v3881_v54, %v3887_v2  ;;  %v14368_v53 = vpack.c.bf16 %v3890_v59, %v3887_v2  ;;  %v376_v2 = vsub.s32 2, %v14035_v23 }
 0x2e3   : > { %v3976_v62 = vand.u32 4294901760, %v14338_v7 }
 0x2e5   : > { %10834 = vmatmul.mubr.f32.vlgmr.msra.gmra.mrb[4].mxu0 %v14253_v1  ;;  %10876 = vmatmul.mubr.f32.vlgmr.msra.gmra.mrb[2].mxu1 %v14256_v28  ;;  %v14342_v1 = vsub.f32 %v4395_v5, %v4401_v34  ;;  %v3878_v28 = vsel %vm2845_vm0, %v2703_v31, 0  ;;  %v377_v34 = vrot.slane %v14041_v26, %v376_v2 }
 0x2e6   : > { %12024 = vmatpush3.bf16.xpose.msra.mxu0 %v14182_v20  ;;  %12048 = vmatpush3.bf16.xpose.msra.mxu1 %v14208_v22  ;;  %v14355_v46 = vand.u32 4294901760, %v3878_v28 }
 0x2e7   : > { %10840 = vmatprep.mubr.f32.mxu0 %v2927_v17  ;;  %12026 = vmatprep.subr.bf16.mxu0 %v12025_v51  ;;  %v4389_v17 = vsel %vm2845_vm0, %v2568_v38, 0  ;;  %v4490_v56 = vand.u32 4294901760, %v14342_v1  ;;  %v14435_v31 = vadd.f32 %v14104_v33, %v377_v34 }
 0x2e8   : > { %10882 = vmatprep.mubr.f32.mxu1 %v3441_v44  ;;  %12050 = vmatprep.subr.bf16.mxu1 %v12049_v49  ;;  %v14330_v44 = vsub.f32 %v3884_v39, %v3890_v59  ;;  %v14332_v61 = vand.u32 4294901760, %v4389_v17 }
 0x2e9   : > { %v4491_v25 = vsub.f32 %v14342_v1, %v4490_v56  ;;  %v12097_v38 = vpack.c.bf16 %v4497_v15, %v4490_v56 }
 0x2ea   : > { %v3983_v0 = vand.u32 4294901760, %v14330_v44  ;;  %v14351_v19 = vsub.f32 %v4389_v17, %v14332_v61 }
 0x2eb   : > { %v4492_v12 = vand.u32 4294901760, %v4491_v25 }
 0x2ec   : > { %v3984_v41 = vsub.f32 %v14330_v44, %v3983_v0  ;;  %v4469_v10 = vand.u32 4294901760, %v14351_v19  ;;  %v12073_v6 = vpack.c.bf16 %v3983_v0, %v3976_v62 }
 0x2ed   : > { %10841 = vmatmul.mubr.f32.vlgmr.msra.gmra.mrb[4].mxu0 %v2937_v37  ;;  %10883 = vmatmul.mubr.f32.vlgmr.msra.gmra.mrb[2].mxu1 %v3451_v63  ;;  %v4392_v37 = vsel %vm2845_vm0, %v2704_v9, 0  ;;  %v14347_v63 = vsub.f32 %v3875_v13, %v14328_v14  ;;  %v12085_v3 = vpack.c.bf16 %v4499_v48, %v4492_v12  ;;  %v14442_v9 = vadd.f32 %v14096_v21, %v377_v34 }
 0x2ee   : > { %12028 = vmatpush3.bf16.xpose.msra.mxu0 %v12025_v51  ;;  %12052 = vmatpush3.bf16.xpose.msra.mxu1 %v12049_v49  ;;  %v14357_v36 = vand.u32 4294901760, %v4392_v37  ;;  %v3985_v40 = vand.u32 4294901760, %v3984_v41 }
 0x2ef   : > { %10847 = vmatprep.mubr.f32.mxu0 %v14178_v57  ;;  %12030 = vmatprep.subr.bf16.mxu0 %v14182_v20  ;;  %v3955_v42 = vand.u32 4294901760, %v14347_v63 }
 0x2f0   : > { %10889 = vmatprep.mubr.f32.mxu1 %v14180_v32  ;;  %12054 = vmatprep.subr.bf16.mxu1 %v14208_v22  ;;  %v4478_v18 = vsub.f32 %v4392_v37, %v14357_v36 }
 0x2f2   : > { %v4479_v11 = vand.u32 4294901760, %v4478_v18 }
 0x2f4   : > { %v4480_v39 = vsub.f32 %v4478_v18, %v4479_v11 }
 0x2f5   : > { %10848 = vmatmul.mubr.f32.vlgmr.msra.gmra.mrb[4].mxu0 %v14242_v27  ;;  %10890 = vmatmul.mubr.f32.vlgmr.msra.gmra.mrb[2].mxu1 %v14244_v45 }
 0x2f6   : > { %12032 = vmatpush3.bf16.xpose.msra.mxu0 %v14182_v20  ;;  %12056 = vmatpush3.bf16.xpose.msra.mxu1 %v14208_v22  ;;  %v3977_v20 = vsub.f32 %v14338_v7, %v3976_v62  ;;  %v3964_v22 = vsub.f32 %v3878_v28, %v14355_v46  ;;  %v4481_v47 = vand.u32 4294901760, %v4480_v39 }
 0x2f7   : > { %10854 = vmatprep.mubr.f32.mxu0 %v14178_v57  ;;  %10896 = vmatprep.mubr.f32.mxu1 %v14180_v32  ;;  %v3956_v57 = vsub.f32 %v14347_v63, %v3955_v42  ;;  %v4470_v32 = vsub.f32 %v14351_v19, %v4469_v10 }
 0x2f8   : > { %12058 = vmatprep.subr.bf16.mxu0 %v14368_v53  ;;  %12082 = vmatprep.subr.bf16.mxu1 %v14370_v24  ;;  %v3978_v50 = vand.u32 4294901760, %v3977_v20  ;;  %v3965_v43 = vand.u32 4294901760, %v3964_v22 }
 0x2f9   : > { %v3957_v60 = vand.u32 4294901760, %v3956_v57  ;;  %v4471_v35 = vand.u32 4294901760, %v4470_v32 }
 0x2fa   : > { %v12061_v16 = vpack.c.bf16 %v3985_v40, %v3978_v50  ;;  %v3966_v51 = vsub.f32 %v3964_v22, %v3965_v43 }
 0x2fc   : > { %v3967_v49 = vand.u32 4294901760, %v3966_v51 }
 0x2fd   : > { %10855 = vmatmul.mubr.f32.vlgmr.msra.gmra.mrb[4].mxu0 %v14242_v27  ;;  %10897 = vmatmul.mubr.f32.vlgmr.msra.gmra.mrb[2].mxu1 %v14244_v45  ;;  %v12065_v27 = vpack.c.bf16 %v14330_v44, %v14338_v7  ;;  %v12089_v45 = vpack.c.bf16 %v14334_v55, %v14342_v1 }
 0x2fe   : > { %12060 = vmatpush3.bf16.xpose.msra.mxu0 %v14368_v53  ;;  %12084 = vmatpush3.bf16.xpose.msra.mxu1 %v14370_v24 }
 0x2ff   : > { %10903 = vmatprep.mubr.f32.mxu0 %v3957_v60  ;;  %12062 = vmatprep.subr.bf16.mxu0 %v12061_v16 }
 0x300   : > { %10945 = vmatprep.mubr.f32.mxu1 %v4471_v35  ;;  %12086 = vmatprep.subr.bf16.mxu1 %v12085_v3 }
 0x305   : > { %10904 = vmatmul.mubr.f32.vlgmr.msra.gmra.mrb[6].mxu0 %v3967_v49  ;;  %10946 = vmatmul.mubr.f32.vlgmr.msra.gmra.mrb[4].mxu1 %v4481_v47 }
 0x306   : > { %12064 = vmatpush3.bf16.xpose.msra.mxu0 %v12061_v16  ;;  %10910 = vmatprep.mubr.f32.mxu0 %v14328_v14 }
 0x307   : > { %12088 = vmatpush3.bf16.xpose.msra.mxu1 %v12085_v3  ;;  %10952 = vmatprep.mubr.f32.mxu1 %v14332_v61 }
 0x308   : > { %12066 = vmatprep.subr.bf16.mxu0 %v12065_v27  ;;  %12090 = vmatprep.subr.bf16.mxu1 %v12089_v45 }
 0x30d   : > { %10911 = vmatmul.mubr.f32.vlgmr.msra.gmra.mrb[6].mxu0 %v14355_v46 }
 0x30e   : > { %10953 = vmatmul.mubr.f32.vlgmr.msra.gmra.mrb[4].mxu1 %v14357_v36  ;;  %12068 = vmatpush3.bf16.xpose.msra.mxu0 %v12065_v27 }
 0x30f   : > { %10917 = vmatprep.mubr.f32.mxu0 %v14347_v63  ;;  %12092 = vmatpush3.bf16.xpose.msra.mxu1 %v12089_v45 }
 0x310   : > { %10959 = vmatprep.mubr.f32.mxu1 %v14351_v19  ;;  %12070 = vmatprep.subr.bf16.mxu0 %v14368_v53 }
 0x311   : > { %12094 = vmatprep.subr.bf16.mxu1 %v14370_v24 }
 0x315   : > { %10918 = vmatmul.mubr.f32.vlgmr.msra.gmra.mrb[6].mxu0 %v3964_v22 }
 0x316   : > { %10960 = vmatmul.mubr.f32.vlgmr.msra.gmra.mrb[4].mxu1 %v4478_v18  ;;  %12072 = vmatpush3.bf16.xpose.msra.mxu0 %v14368_v53 }
 0x317   : > { %10924 = vmatprep.mubr.f32.mxu0 %v3955_v42  ;;  %12096 = vmatpush3.bf16.xpose.msra.mxu1 %v14370_v24 }
 0x318   : > { %10966 = vmatprep.mubr.f32.mxu1 %v4469_v10  ;;  %12074 = vmatprep.subr.bf16.mxu0 %v12073_v6 }
 0x319   : > { %12098 = vmatprep.subr.bf16.mxu1 %v12097_v38 }
 0x31d   : > { %10925 = vmatmul.mubr.f32.vlgmr.msra.gmra.mrb[6].mxu0 %v3965_v43 }
 0x31e   : > { %10967 = vmatmul.mubr.f32.vlgmr.msra.gmra.mrb[4].mxu1 %v4479_v11  ;;  %12076 = vmatpush3.bf16.xpose.msra.mxu0 %v12073_v6 }
 0x31f   : > { %10931 = vmatprep.mubr.f32.mxu0 %v14328_v14  ;;  %12100 = vmatpush3.bf16.xpose.msra.mxu1 %v12097_v38 }
 0x320   : > { %10973 = vmatprep.mubr.f32.mxu1 %v14332_v61  ;;  %12078 = vmatprep.subr.bf16.mxu0 %v14368_v53 }
 0x321   : > { %12102 = vmatprep.subr.bf16.mxu1 %v14370_v24 }
 0x325   : > { %10932 = vmatmul.mubr.f32.vlgmr.msra.gmra.mrb[6].mxu0 %v14355_v46 }
 0x326   : > { %10974 = vmatmul.mubr.f32.vlgmr.msra.gmra.mrb[4].mxu1 %v14357_v36  ;;  %12080 = vmatpush3.bf16.xpose.msra.mxu0 %v14368_v53 }
 0x327   : > { %10938 = vmatprep.mubr.f32.mxu0 %v14328_v14  ;;  %12104 = vmatpush3.bf16.xpose.msra.mxu1 %v14370_v24 }
 0x328   : > { %10980 = vmatprep.mubr.f32.mxu1 %v14332_v61 }
 0x32d   : > { %10939 = vmatmul.mubr.f32.vlgmr.msra.gmra.mrb[6].mxu0 %v14355_v46 }
 0x32e   : > { %10981 = vmatmul.mubr.f32.vlgmr.msra.gmra.mrb[4].mxu1 %v14357_v36 }
 0x3d0   : > { %v10856_v54 = vpop.f32.mrb[4].mxu0  ;;  %v10898_v4 = vpop.f32.mrb[2].mxu1 }
 0x3d1   : > { %v3350_v29 = vpop.f32.mrb[5].mxu0  ;;  %v3864_v5 = vpop.f32.mrb[3].mxu1  ;;  %v4906_v59 = vsel %vm4902_vm1, %v10856_v54, -inf  ;;  %v4912_v13 = vsel %vm4902_vm1, %v10898_v4, -inf }
 0x3d2   : > { %4907 = vmax.xlane.f32.xlu1 %v4906_v59  ;;  %v4903_v52 = vsel %vm4902_vm1, %v3350_v29, -inf  ;;  %v4909_v17 = vsel %vm4902_vm1, %v3864_v5, -inf }
 0x3d3   : > { %4904 = vmax.xlane.f32.xlu0 %v4903_v52 }
 0x3d7   : > { %4913 = vmax.xlane.f32.xlu0 %v4912_v13 }
 0x3db   : > { %4910 = vmax.xlane.f32.xlu0 %v4909_v17 }
 0x3e3   : > { %2011 = vrot.lane.b32.xlu1 %v14435_v31, %s13080_s20 }
 0x3e7   : > { %2017 = vrot.lane.b32.xlu1 %v14435_v31, %s13079_s19 }
 0x3eb   : > { %2019 = vrot.lane.b32.xlu1 %v14442_v9, %s13079_s19 }
 0x3f1   : > { %2013 = vrot.lane.b32.xlu0 %v14442_v9, %s13080_s20 }
 0x400   : > { %v10940_v23 = vpop.f32.mrb[6].mxu0 }
 0x401   : > { %v14448_v26 = vpop.f32.mrb[4].mxu1  ;;  %v4378_v33 = vpop.f32.mrb[7].mxu0  ;;  %v4918_v61 = vsel %vm4902_vm1, %v10940_v23, -inf }
 0x402   : > { %v14450_v14 = vpop.f32.mrb[5].mxu1  ;;  %v4915_v44 = vsel %vm4902_vm1, %v4378_v33, -inf  ;;  %v4924_v60 = vsel %vm4902_vm1, %v14448_v26, -inf }
 0x403   : > { %v4921_v11 = vsel %vm4902_vm1, %v14450_v14, -inf }
 0x40f   : > { %4916 = vmax.xlane.f32.xlu1 %v4915_v44 }
 0x410   : > { %4919 = vmax.xlane.f32.xlu0 %v4918_v61 }
 0x45f   : > { %v4908_v21 = vpop.xlane.xlu1 %4907 }
 0x460   : > { %v4928_v55 = vsub.f32 %v10856_v54, %v4908_v21  ;;  %v4905_v7 = vpop.xlane.xlu0 %4904 }
 0x461   : > { %v4927_v1 = vsub.f32 %v3350_v29, %v4905_v7 }
 0x462   : > { %v4937_v28 = vmul.f32 1.442695, %v4928_v55 }
 0x463   : > { %v4935_v37 = vmul.f32 1.442695, %v4927_v1  ;;  %v2012_v46 = vpop.permute.xlu1 %2011 }
 0x464   : > { %12846 = vpow2.f32 %v4937_v28  ;;  %v4914_v62 = vpop.xlane.xlu0 %4913 }
 0x465   : > { %12848 = vpow2.f32 %v4935_v37  ;;  %v4930_v42 = vsub.f32 %v10898_v4, %v4914_v62 }
 0x467   : > { %v2018_v41 = vpop.permute.xlu1 %2017  ;;  %v4941_v24 = vmul.f32 1.442695, %v4930_v42 }
 0x468   : > { %v4911_v36 = vpop.xlane.xlu0 %4910  ;;  %v2165_v49 = vcombine.low %v14435_v31, %v2018_v41  ;;  %v2166_v47 = vcombine.high %v14435_v31, %v2018_v41 }
 0x469   : > { %v4929_v56 = vsub.f32 %v3864_v5, %v4911_v36 }
 0x46a   : > { %v2173_v59 = vrot.slane %v2165_v49, %v14069_v30  ;;  %v2180_v52 = vrot.slane %v2166_v47, %v14069_v30 }
 0x46b   : > { %v4939_v53 = vmul.f32 1.442695, %v4929_v56  ;;  %v2020_v10 = vpop.permute.xlu1 %2019 }
 0x46c   : > { %v2014_v8 = vpop.permute.xlu0 %2013  ;;  %v2369_v27 = vcombine.low %v14442_v9, %v2020_v10  ;;  %v2370_v45 = vcombine.high %v14442_v9, %v2020_v10 }
 0x46d   : > { %12850 = vpow2.f32 %v4939_v53 }
 0x46e   : > { %v14454_v63 = vpop.eup %12846  ;;  %12852 = vpow2.f32 %v4941_v24  ;;  %v2377_v17 = vrot.slane %v2369_v27, %v14069_v30  ;;  %v2384_v34 = vrot.slane %v2370_v45, %v14069_v30 }
 0x46f   : > { %v14456_v0 = vpop.eup %12848  ;;  %v4954_v19 = vsel %vm4902_vm1, %v14454_v63, 0.0 }
 0x470   : > { %4955 = vadd.xlane.f32.xlu0 %v4954_v19  ;;  %v4951_v15 = vsel %vm4902_vm1, %v14456_v0, 0.0 }
 0x471   : > { %4952 = vadd.xlane.f32.xlu1 %v4951_v15 }
 0x477   : > { %v14466_v32 = vpop.eup %12850 }
 0x478   : > { %v14468_v48 = vpop.eup %12852  ;;  %v4957_v50 = vsel %vm4902_vm1, %v14466_v32, 0.0 }
 0x479   : > { %v4960_v43 = vsel %vm4902_vm1, %v14468_v48, 0.0 }
 0x482   : > { %2025 = vrot.lane.b32.xlu1 %v14442_v9, %s13081_s11 }
 0x486   : > { %2023 = vrot.lane.b32.xlu0 %v14435_v31, %s13081_s11 }
 0x49c   : > { %v4917_v20 = vpop.xlane.xlu1 %4916 }
 0x49d   : > { %v4931_v22 = vsub.f32 %v4378_v33, %v4917_v20  ;;  %v4920_v18 = vpop.xlane.xlu0 %4919 }
 0x49e   : > { %v4932_v25 = vsub.f32 %v10940_v23, %v4920_v18 }
 0x49f   : > { %v4943_v57 = vmul.f32 1.442695, %v4931_v22 }
 0x4a0   : > { %v4945_v40 = vmul.f32 1.442695, %v4932_v25 }
 0x4a1   : > { %12854 = vpow2.f32 %v4943_v57 }
 0x4a2   : > { %12856 = vpow2.f32 %v4945_v40 }
 0x4a5   : > { %4958 = vadd.xlane.f32.xlu0 %v4957_v50 }
 0x4a6   : > { %4961 = vadd.xlane.f32.xlu1 %v4960_v43 }
 0x4a9   : > { %4922 = vmax.xlane.f32.xlu0 %v4921_v11 }
 0x4ab   : > { %v14476_v12 = vpop.eup %12854 }
 0x4ac   : > { %v4963_v16 = vsel %vm4902_vm1, %v14476_v12, 0.0  ;;  %v14482_v35 = vpop.eup %12856 }
 0x4ad   : > { %4925 = vmax.xlane.f32.xlu0 %v4924_v60  ;;  %4964 = vadd.xlane.f32.xlu1 %v4963_v16  ;;  %v4966_v3 = vsel %vm4902_vm1, %v14482_v35, 0.0 }
 0x4b1   : > { %4967 = vadd.xlane.f32.xlu0 %v4966_v3 }
 0x4fd   : > { %v4956_v51 = vpop.xlane.xlu0 %4955 }
 0x4fe   : > { %12858 = vrcp.f32 %v4956_v51  ;;  %v4953_v39 = vpop.xlane.xlu1 %4952 }
 0x4ff   : > { %12860 = vrcp.f32 %v4953_v39 }
 0x501   : > { %v2024_v6 = vpop.permute.xlu0 %2023 }
 0x502   : > { %v2181_v38 = vcombine.low %v2012_v46, %v2024_v6  ;;  %v2182_v54 = vcombine.high %v2012_v46, %v2024_v6  ;;  %v2026_v4 = vpop.permute.xlu1 %2025 }
 0x503   : > { %v2385_v29 = vcombine.low %v2014_v8, %v2026_v4  ;;  %v2386_v5 = vcombine.high %v2014_v8, %v2026_v4 }
 0x504   : > { %v2189_v13 = vrot.slane %v2181_v38, %v14069_v30  ;;  %v2196_v2 = vrot.slane %v2182_v54, %v14069_v30 }
 0x505   : > { %v2393_v31 = vrot.slane %v2385_v29, %v14069_v30  ;;  %v2400_v9 = vrot.slane %v2386_v5, %v14069_v30 }
 0x506   : > { %v2197_v23 = vcombine.low %v2173_v59, %v2189_v13  ;;  %v2198_v33 = vcombine.high %v2173_v59, %v2189_v13  ;;  %v2213_v44 = vcombine.low %v2180_v52, %v2196_v2  ;;  %v2214_v61 = vcombine.high %v2180_v52, %v2196_v2 }
 0x507   : > { %v2401_v21 = vcombine.low %v2377_v17, %v2393_v31  ;;  %v2402_v55 = vcombine.high %v2377_v17, %v2393_v31  ;;  %v2417_v7 = vcombine.low %v2384_v34, %v2400_v9  ;;  %v2418_v1 = vcombine.high %v2384_v34, %v2400_v9 }
 0x508   : > { %v12859_v28 = vpop.eup %12858  ;;  %v2205_v37 = vrot.slane %v2197_v23, %v14072_v58  ;;  %v2212_v19 = vrot.slane %v2198_v33, %v14072_v58  ;;  %v2221_v15 = vrot.slane %v2213_v44, %v14072_v58  ;;  %v2228_v62 = vrot.slane %v2214_v61, %v14072_v58 }
 0x509   : > { %v12861_v46 = vpop.eup %12860  ;;  %v4984_v36 = vmul.f32 %v12859_v28, %v14454_v63  ;;  %v2409_v56 = vrot.slane %v2401_v21, %v14072_v58  ;;  %v2416_v42 = vrot.slane %v2402_v55, %v14072_v58  ;;  %v2425_v41 = vrot.slane %v2417_v7, %v14072_v58 }
 0x50a   : > { %v4983_v53 = vmul.f32 %v12861_v46, %v14456_v0  ;;  %v2709_v24 = vcombine.low %v2205_v37, %v2212_v19  ;;  %v10041_v10 = vcombine.high %v2205_v37, %v2212_v19  ;;  %v2725_v8 = vcombine.low %v2221_v15, %v2228_v62 }
 0x50b   : > { %v10042_v20 = vcombine.high %v2221_v15, %v2228_v62  ;;  %v2432_v22 = vrot.slane %v2418_v1, %v14072_v58  ;;  %v2777_v18 = vcombine.low %v2409_v56, %v2416_v42  ;;  %v10043_v25 = vcombine.high %v2409_v56, %v2416_v42 }
 0x50c   : > { %v2716_v57 = vrot.slane %v2709_v24, %v14069_v30  ;;  %v2724_v63 = vrot.slane %v10041_v10, %v14069_v30  ;;  %v2732_v40 = vrot.slane %v2725_v8, %v14069_v30  ;;  %v4992_v50 = vsel %vm4902_vm1, %v4983_v53, 0 }
 0x50d   : > { %v2740_v43 = vrot.slane %v10042_v20, %v14069_v30  ;;  %v2784_v0 = vrot.slane %v2777_v18, %v14069_v30  ;;  %v2792_v11 = vrot.slane %v10043_v25, %v14069_v30  ;;  %v2793_v60 = vcombine.low %v2425_v41, %v2432_v22 }
 0x50e   : > { %v2741_v16 = vcombine.low %v2716_v57, %v2724_v63  ;;  %v2742_v3 = vcombine.high %v2716_v57, %v2724_v63  ;;  %v10044_v51 = vcombine.high %v2425_v41, %v2432_v22  ;;  %v14515_v39 = vand.u32 4294901760, %v4992_v50 }
 0x50f   : > { %v2757_v49 = vcombine.low %v2732_v40, %v2740_v43  ;;  %v2758_v47 = vcombine.high %v2732_v40, %v2740_v43  ;;  %v2800_v27 = vrot.slane %v2793_v60, %v14069_v30  ;;  %v2809_v45 = vcombine.low %v2784_v0, %v2792_v11 }
 0x510   : > { %v2749_v6 = vrot.slane %v2741_v16, %v14072_v58  ;;  %v2756_v38 = vrot.slane %v2742_v3, %v14072_v58  ;;  %v2808_v54 = vrot.slane %v10044_v51, %v14069_v30  ;;  %v2810_v4 = vcombine.high %v2784_v0, %v2792_v11 }
 0x511   : > { %v2765_v29 = vrot.slane %v2757_v49, %v14072_v58  ;;  %v2772_v5 = vrot.slane %v2758_v47, %v14072_v58  ;;  %v2817_v59 = vrot.slane %v2809_v45, %v14072_v58  ;;  %v14525_v52 = vsub.f32 %v4992_v50, %v14515_v39 }
 0x512   : > { %v2824_v13 = vrot.slane %v2810_v4, %v14072_v58  ;;  %v2825_v2 = vcombine.low %v2800_v27, %v2808_v54  ;;  %v2826_v17 = vcombine.high %v2800_v27, %v2808_v54  ;;  %v4995_v34 = vsel %vm4902_vm1, %v4984_v36, 0 }
 0x513   : > { %v2773_v31 = vcombine.low %v2749_v6, %v2765_v29  ;;  %v2774_v9 = vcombine.high %v2749_v6, %v2765_v29  ;;  %v2775_v23 = vcombine.low %v2756_v38, %v2772_v5  ;;  %v14529_v30 = vcombine.high %v2756_v38, %v2772_v5 }
 0x514   : > { %v2833_v33 = vrot.slane %v2825_v2, %v14072_v58  ;;  %v2840_v44 = vrot.slane %v2826_v17, %v14072_v58  ;;  %v5066_v61 = vand.u32 4294901760, %v14525_v52  ;;  %v14534_v21 = vand.u32 4294901760, %v4995_v34 }
 0x515   : > { %v4998_v55 = vand.u32 4294901760, %v2773_v31  ;;  %v5506_v7 = vand.u32 4294901760, %v2774_v9  ;;  %v6014_v1 = vand.u32 4294901760, %v2775_v23  ;;  %v6522_v28 = vand.u32 4294901760, %v14529_v30 }
 0x516   : > { %v2841_v37 = vcombine.low %v2817_v59, %v2833_v33  ;;  %v2842_v19 = vcombine.high %v2817_v59, %v2833_v33  ;;  %v2843_v15 = vcombine.low %v2824_v13, %v2840_v44  ;;  %v2844_v62 = vcombine.high %v2824_v13, %v2840_v44 }
 0x517   : > { %v5067_v46 = vsub.f32 %v14525_v52, %v5066_v61  ;;  %v14541_v36 = vsub.f32 %v4995_v34, %v14534_v21  ;;  %v5086_v58 = vsub.f32 %v2773_v31, %v4998_v55  ;;  %v5594_v56 = vsub.f32 %v2774_v9, %v5506_v7 }
 0x518   : > { %v5001_v42 = vand.u32 4294901760, %v2841_v37  ;;  %v5509_v41 = vand.u32 4294901760, %v2842_v19  ;;  %v6017_v53 = vand.u32 4294901760, %v2843_v15  ;;  %v6102_v24 = vsub.f32 %v2775_v23, %v6014_v1 }
 0x519   : > { %v5068_v10 = vand.u32 4294901760, %v5067_v46  ;;  %v5076_v8 = vand.u32 4294901760, %v14541_v36  ;;  %v5087_v20 = vand.u32 4294901760, %v5086_v58  ;;  %v5595_v22 = vand.u32 4294901760, %v5594_v56 }
 0x51a   : > { %v14544_v18 = vpack.c.bf16 %v5001_v42, %v4998_v55  ;;  %v14546_v25 = vpack.c.bf16 %v5509_v41, %v5506_v7  ;;  %v5093_v57 = vsub.f32 %v2841_v37, %v5001_v42  ;;  %v5601_v63 = vsub.f32 %v2842_v19, %v5509_v41 }
 0x51b   : > { %10987 = vmatprep.mubr.f32.mxu0 %v5068_v10  ;;  %v5077_v40 = vsub.f32 %v14541_v36, %v5076_v8  ;;  %v5088_v50 = vsub.f32 %v5086_v58, %v5087_v20  ;;  %v5596_v43 = vsub.f32 %v5594_v56, %v5595_v22  ;;  %v14551_v0 = vpack.c.bf16 %v6017_v53, %v6014_v1 }
 0x51c   : > { %12106 = vmatprep.subr.bf16.mxu0 %v14544_v18  ;;  %12130 = vmatprep.subr.bf16.mxu1 %v14546_v25  ;;  %v5094_v11 = vand.u32 4294901760, %v5093_v57  ;;  %v5602_v60 = vand.u32 4294901760, %v5601_v63  ;;  %v12113_v16 = vpack.c.bf16 %v5093_v57, %v5086_v58  ;;  %v6103_v3 = vand.u32 4294901760, %v6102_v24 }
 0x51d   : > { %12108 = vmatpush3.bf16.msra.mxu0 %v14544_v18  ;;  %12132 = vmatpush3.bf16.msra.mxu1 %v14546_v25  ;;  %v5078_v51 = vand.u32 4294901760, %v5077_v40  ;;  %v5089_v49 = vand.u32 4294901760, %v5088_v50  ;;  %v5597_v47 = vand.u32 4294901760, %v5596_v43  ;;  %v6109_v27 = vsub.f32 %v2843_v15, %v6017_v53 }
 0x51e   : > { %v5095_v45 = vsub.f32 %v5093_v57, %v5094_v11  ;;  %v5603_v6 = vsub.f32 %v5601_v63, %v5602_v60  ;;  %v12121_v38 = vpack.c.bf16 %v5094_v11, %v5087_v20  ;;  %v6104_v54 = vsub.f32 %v6102_v24, %v6103_v3 }
 0x51f   : > { %v6110_v4 = vand.u32 4294901760, %v6109_v27  ;;  %v14557_v29 = vpack.c.bf16 %v5601_v63, %v5594_v56  ;;  %v14559_v5 = vpack.c.bf16 %v6109_v27, %v6102_v24  ;;  %v14561_v59 = vpack.c.bf16 %v5602_v60, %v5595_v22 }
 0x520   : > { %10988 = vmatmul.mubr.f32.vlgmr.msra.gmra.mrb[8].mxu0 %v5078_v51  ;;  %v5096_v13 = vand.u32 4294901760, %v5095_v45  ;;  %v5604_v2 = vand.u32 4294901760, %v5603_v6  ;;  %v6525_v17 = vand.u32 4294901760, %v2844_v62  ;;  %v6105_v34 = vand.u32 4294901760, %v6104_v54 }
 0x521   : > { %10994 = vmatprep.mubr.f32.mxu0 %v14515_v39  ;;  %v6111_v31 = vsub.f32 %v6109_v27, %v6110_v4  ;;  %v14564_v9 = vpack.c.bf16 %v6110_v4, %v6103_v3  ;;  %v6610_v23 = vsub.f32 %v14529_v30, %v6522_v28 }
 0x522   : > { %v12109_v33 = vpack.c.bf16 %v5096_v13, %v5089_v49  ;;  %v14567_v44 = vpack.c.bf16 %v5604_v2, %v5597_v47  ;;  %v14569_v55 = vpack.c.bf16 %v6525_v17, %v6522_v28  ;;  %v6617_v7 = vsub.f32 %v2844_v62, %v6525_v17 }
 0x523   : > { %v6112_v1 = vand.u32 4294901760, %v6111_v31  ;;  %v6611_v37 = vand.u32 4294901760, %v6610_v23 }
 0x524   : > { %12110 = vmatprep.subr.bf16.mxu0 %v12109_v33  ;;  %12134 = vmatprep.subr.bf16.mxu1 %v14567_v44  ;;  %v6618_v19 = vand.u32 4294901760, %v6617_v7  ;;  %v14572_v15 = vpack.c.bf16 %v6617_v7, %v6610_v23 }
 0x525   : > { %12112 = vmatpush3.bf16.msra.mxu0 %v12109_v33  ;;  %v14574_v46 = vpack.c.bf16 %v6112_v1, %v6105_v34  ;;  %v6612_v58 = vsub.f32 %v6610_v23, %v6611_v37 }
 0x526   : > { %12114 = vmatprep.subr.bf16.mxu0 %v12113_v16  ;;  %v6619_v30 = vsub.f32 %v6617_v7, %v6618_v19  ;;  %v14576_v56 = vpack.c.bf16 %v6618_v19, %v6611_v37 }
 0x527   : > { %v6613_v42 = vand.u32 4294901760, %v6612_v58 }
 0x528   : > { %10995 = vmatmul.mubr.f32.vlgmr.msra.gmra.mrb[8].mxu0 %v14534_v21  ;;  %v6620_v28 = vand.u32 4294901760, %v6619_v30 }
 0x529   : > { %12116 = vmatpush3.bf16.msra.mxu0 %v12113_v16  ;;  %11001 = vmatprep.mubr.f32.mxu0 %v14525_v52 }
 0x52a   : > { %12118 = vmatprep.subr.bf16.mxu0 %v14544_v18  ;;  %v14581_v62 = vpack.c.bf16 %v6620_v28, %v6613_v42 }
 0x530   : > { %11002 = vmatmul.mubr.f32.vlgmr.msra.gmra.mrb[8].mxu0 %v14541_v36 }
 0x531   : > { %12120 = vmatpush3.bf16.msra.mxu0 %v14544_v18  ;;  %11008 = vmatprep.mubr.f32.mxu0 %v5066_v61 }
 0x532   : > { %12122 = vmatprep.subr.bf16.mxu0 %v12121_v38  ;;  %v4959_v41 = vpop.xlane.xlu0 %4958 }
 0x533   : > { %12862 = vrcp.f32 %v4959_v41  ;;  %v4962_v53 = vpop.xlane.xlu1 %4961 }
 0x534   : > { %12864 = vrcp.f32 %v4962_v53 }
 0x536   : > { %v4923_v24 = vpop.xlane.xlu0 %4922 }
 0x537   : > { %v4933_v10 = vsub.f32 %v14450_v14, %v4923_v24 }
 0x538   : > { %11009 = vmatmul.mubr.f32.vlgmr.msra.gmra.mrb[8].mxu0 %v5076_v8 }
 0x539   : > { %12124 = vmatpush3.bf16.msra.mxu0 %v12121_v38  ;;  %v4947_v20 = vmul.f32 1.442695, %v4933_v10  ;;  %11015 = vmatprep.mubr.f32.mxu0 %v14515_v39 }
 0x53a   : > { %12126 = vmatprep.subr.bf16.mxu0 %v14544_v18  ;;  %v4926_v22 = vpop.xlane.xlu0 %4925  ;;  %v4965_v52 = vpop.xlane.xlu1 %4964 }
 0x53b   : > { %12866 = vpow2.f32 %v4947_v20  ;;  %v4934_v61 = vsub.f32 %v14448_v26, %v4926_v22 }
 0x53c   : > { %12868 = vrcp.f32 %v4965_v52 }
 0x53d   : > { %v12863_v57 = vpop.eup %12862  ;;  %v4949_v63 = vmul.f32 1.442695, %v4934_v61 }
 0x53e   : > { %v12865_v40 = vpop.eup %12864  ;;  %v4985_v14 = vmul.f32 %v12863_v57, %v14466_v32  ;;  %v4968_v50 = vpop.xlane.xlu0 %4967 }
 0x53f   : > { %v4986_v36 = vmul.f32 %v12865_v40, %v14468_v48  ;;  %12870 = vpow2.f32 %v4949_v63 }
 0x540   : > { %11016 = vmatmul.mubr.f32.vlgmr.msra.gmra.mrb[8].mxu0 %v14534_v21  ;;  %12872 = vrcp.f32 %v4968_v50  ;;  %v5500_v8 = vsel %vm4902_vm1, %v4985_v14, 0 }
 0x541   : > { %12128 = vmatpush3.bf16.msra.mxu0 %v14544_v18  ;;  %11022 = vmatprep.mubr.f32.mxu0 %v14515_v39  ;;  %v14599_v26 = vand.u32 4294901760, %v5500_v8  ;;  %v5503_v43 = vsel %vm4902_vm1, %v4986_v36, 0 }
 0x542   : > { %12154 = vmatprep.subr.bf16.mxu0 %v14551_v0  ;;  %v14603_v32 = vand.u32 4294901760, %v5503_v43 }
 0x543   : > { %v5573_v48 = vsub.f32 %v5500_v8, %v14599_v26 }
 0x544   : > { %v5583_v11 = vsub.f32 %v5503_v43, %v14603_v32 }
 0x545   : > { %v14607_v60 = vpop.eup %12866  ;;  %v5574_v16 = vand.u32 4294901760, %v5573_v48 }
 0x546   : > { %v12869_v3 = vpop.eup %12868  ;;  %v4969_v18 = vsel %vm4902_vm1, %v14607_v60, 0.0  ;;  %v5584_v39 = vand.u32 4294901760, %v5583_v11 }
 0x547   : > { %v4987_v51 = vmul.f32 %v12869_v3, %v14476_v12  ;;  %4970 = vadd.xlane.f32.xlu1 %v4969_v18  ;;  %v5575_v49 = vsub.f32 %v5573_v48, %v5574_v16 }
 0x548   : > { %11023 = vmatmul.mubr.f32.vlgmr.msra.gmra.mrb[8].mxu0 %v14534_v21  ;;  %v5585_v47 = vsub.f32 %v5583_v11, %v5584_v39 }
 0x549   : > { %v14613_v27 = vpop.eup %12870  ;;  %12156 = vmatpush3.bf16.msra.mxu0 %v14551_v0  ;;  %v5576_v45 = vand.u32 4294901760, %v5575_v49  ;;  %v6008_v6 = vsel %vm4902_vm1, %v4987_v51, 0 }
 0x54a   : > { %v12873_v38 = vpop.eup %12872  ;;  %12158 = vmatprep.subr.bf16.mxu0 %v14574_v46  ;;  %v4972_v54 = vsel %vm4902_vm1, %v14613_v27, 0.0  ;;  %v5586_v4 = vand.u32 4294901760, %v5585_v47  ;;  %v6080_v12 = vand.u32 4294901760, %v6008_v6 }
 0x54b   : > { %v4988_v13 = vmul.f32 %v12873_v38, %v14482_v35  ;;  %11029 = vmatprep.mubr.f32.mxu1 %v5576_v45  ;;  %4973 = vadd.xlane.f32.xlu0 %v4972_v54 }
 0x54c   : > { %11030 = vmatmul.mubr.f32.vlgmr.msra.gmra.mrb[6].mxu1 %v5586_v4  ;;  %v6081_v21 = vsub.f32 %v6008_v6, %v6080_v12 }
 0x54d   : > { %12136 = vmatpush3.bf16.msra.mxu1 %v14567_v44  ;;  %11036 = vmatprep.mubr.f32.mxu1 %v14599_v26  ;;  %v6011_v2 = vsel %vm4902_vm1, %v4988_v13, 0 }
 0x54e   : > { %12138 = vmatprep.subr.bf16.mxu1 %v14557_v29  ;;  %v6082_v17 = vand.u32 4294901760, %v6081_v21  ;;  %v6090_v34 = vand.u32 4294901760, %v6011_v2 }
 0x550   : > { %v6083_v31 = vsub.f32 %v6081_v21, %v6082_v17  ;;  %v6091_v23 = vsub.f32 %v6011_v2, %v6090_v34 }
 0x552   : > { %v6084_v33 = vand.u32 4294901760, %v6083_v31  ;;  %v6092_v7 = vand.u32 4294901760, %v6091_v23 }
 0x554   : > { %11071 = vmatprep.mubr.f32.mxu0 %v6084_v33  ;;  %11037 = vmatmul.mubr.f32.vlgmr.msra.gmra.mrb[6].mxu1 %v14603_v32  ;;  %v6093_v35 = vsub.f32 %v6091_v23, %v6092_v7 }
 0x555   : > { %12140 = vmatpush3.bf16.msra.mxu1 %v14557_v29  ;;  %11043 = vmatprep.mubr.f32.mxu1 %v5573_v48  ;;  %v7024_v29 = vld [vmem:[#allocation7 + $0x8] sm:$0xff] }
 0x556   : > { %12142 = vmatprep.subr.bf16.mxu1 %v14546_v25  ;;  %v6094_v44 = vand.u32 4294901760, %v6093_v35  ;;  %v7049_v1 = vand.u32 4294901760, %v7024_v29 }
 0x558   : > { %11072 = vmatmul.mubr.f32.vlgmr.msra.gmra.mrb[10].mxu0 %v6094_v44  ;;  %v7143_v42 = vsub.f32 %v7024_v29, %v7049_v1  ;;  %v7028_v29 = vld [vmem:[#allocation7 + $0x28] sm:$0xff] }
 0x559   : > { %12160 = vmatpush3.bf16.msra.mxu0 %v14574_v46  ;;  %11078 = vmatprep.mubr.f32.mxu0 %v6080_v12 }
 0x55a   : > { %12162 = vmatprep.subr.bf16.mxu0 %v14559_v5  ;;  %v7144_v53 = vand.u32 4294901760, %v7143_v42 }
 0x55c   : > { %11044 = vmatmul.mubr.f32.vlgmr.msra.gmra.mrb[6].mxu1 %v5583_v11  ;;  %v7145_v22 = vsub.f32 %v7143_v42, %v7144_v53 }
 0x55d   : > { %12144 = vmatpush3.bf16.msra.mxu1 %v14546_v25  ;;  %11050 = vmatprep.mubr.f32.mxu1 %v5574_v16 }
 0x55e   : > { %12146 = vmatprep.subr.bf16.mxu1 %v14561_v59  ;;  %v7146_v63 = vand.u32 4294901760, %v7145_v22 }
 0x560   : > { %11079 = vmatmul.mubr.f32.vlgmr.msra.gmra.mrb[10].mxu0 %v6090_v34 }
 0x561   : > { %12164 = vmatpush3.bf16.msra.mxu0 %v14559_v5  ;;  %11085 = vmatprep.mubr.f32.mxu0 %v6081_v21  ;;  %v7025_v5 = vld [vmem:[#allocation7 + $0x10] sm:$0xff] }
 0x562   : > { %12166 = vmatprep.subr.bf16.mxu0 %v14551_v0  ;;  %v7052_v37 = vand.u32 4294901760, %v7025_v5 }
 0x564   : > { %11051 = vmatmul.mubr.f32.vlgmr.msra.gmra.mrb[6].mxu1 %v5584_v39  ;;  %v7150_v28 = vsub.f32 %v7025_v5, %v7052_v37 }
 0x565   : > { %12148 = vmatpush3.bf16.msra.mxu1 %v14561_v59  ;;  %11057 = vmatprep.mubr.f32.mxu1 %v14599_v26 }
 0x566   : > { %12150 = vmatprep.subr.bf16.mxu1 %v14546_v25  ;;  %v7151_v24 = vand.u32 4294901760, %v7150_v28 }
 0x568   : > { %11086 = vmatmul.mubr.f32.vlgmr.msra.gmra.mrb[10].mxu0 %v6091_v23  ;;  %v7152_v52 = vsub.f32 %v7150_v28, %v7151_v24 }
 0x569   : > { %12168 = vmatpush3.bf16.msra.mxu0 %v14551_v0  ;;  %11092 = vmatprep.mubr.f32.mxu0 %v6082_v17 }
 0x56a   : > { %12170 = vmatprep.subr.bf16.mxu0 %v14564_v9  ;;  %v7153_v40 = vand.u32 4294901760, %v7152_v52 }
 0x56c   : > { %11058 = vmatmul.mubr.f32.vlgmr.msra.gmra.mrb[6].mxu1 %v14603_v32 }
 0x56d   : > { %12152 = vmatpush3.bf16.msra.mxu1 %v14546_v25  ;;  %11064 = vmatprep.mubr.f32.mxu1 %v14599_v26  ;;  %v7023_v25 = vld [vmem:[#allocation7] sm:$0xff] }
 0x56e   : > { %12178 = vmatprep.subr.bf16.mxu1 %v14569_v55  ;;  %v7046_v59 = vand.u32 4294901760, %v7023_v25 }
 0x570   : > { %11093 = vmatmul.mubr.f32.vlgmr.msra.gmra.mrb[10].mxu0 %v6092_v7  ;;  %v14649_v46 = vpack.c.bf16 %v7049_v1, %v7046_v59  ;;  %v7136_v30 = vsub.f32 %v7023_v25, %v7046_v59  ;;  %v7027_v25 = vld [vmem:[#allocation7 + $0x20] sm:$0xff]  ;;  %v7583_v59 = vand.u32 4294901760, %v7028_v29  ;;  %v7029_v1 = vld [vmem:[#allocation7 + $0x30] sm:$0xff] }
 0x571   : > { %12172 = vmatpush3.bf16.msra.mxu0 %v14564_v9  ;;  %11099 = vmatprep.mubr.f32.mxu0 %v6080_v12  ;;  %v7026_v9 = vld [vmem:[#allocation7 + $0x18] sm:$0xff]  ;;  %v7580_v5 = vand.u32 4294901760, %v7027_v25 }
 0x572   : > { %12174 = vmatprep.subr.bf16.mxu0 %v14551_v0  ;;  %v7055_v19 = vand.u32 4294901760, %v7026_v9  ;;  %v7137_v41 = vand.u32 4294901760, %v7136_v30  ;;  %v14659_v36 = vpack.c.bf16 %v7143_v42, %v7136_v30  ;;  %v14705_v42 = vsub.f32 %v7028_v29, %v7583_v59  ;;  %v14773_v29 = vld [vmem:[#allocation7 + $0x70] sm:$0xff] }
 0x574   : > { %11065 = vmatmul.mubr.f32.vlgmr.msra.gmra.mrb[6].mxu1 %v14603_v32  ;;  %v14651_v58 = vpack.c.bf16 %v7055_v19, %v7052_v37  ;;  %v7138_v20 = vsub.f32 %v7136_v30, %v7137_v41  ;;  %v14666_v43 = vpack.c.bf16 %v7144_v53, %v7137_v41  ;;  %v14702_v37 = vsub.f32 %v7027_v25, %v7580_v5 }
 0x575   : > { %12180 = vmatpush3.bf16.msra.mxu1 %v14569_v55  ;;  %v7678_v41 = vand.u32 4294901760, %v14705_v42 }
 0x576   : > { %12182 = vmatprep.subr.bf16.mxu1 %v14581_v62  ;;  %v7139_v57 = vand.u32 4294901760, %v7138_v20 }
 0x578   : > { %11100 = vmatmul.mubr.f32.vlgmr.msra.gmra.mrb[10].mxu0 %v6090_v34  ;;  %v14657_v50 = vpack.c.bf16 %v7146_v63, %v7139_v57  ;;  %v14723_v57 = vpack.c.bf16 %v7583_v59, %v7580_v5 }
 0x579   : > { %12176 = vmatpush3.bf16.msra.mxu0 %v14551_v0  ;;  %11106 = vmatprep.mubr.f32.mxu0 %v6080_v12  ;;  %v7157_v0 = vsub.f32 %v7026_v9, %v7055_v19  ;;  %v7030_v9 = vld [vmem:[#allocation7 + $0x38] sm:$0xff]  ;;  %v7586_v19 = vand.u32 4294901760, %v7029_v1 }
 0x57a   : > { %12202 = vmatprep.subr.bf16.mxu0 %v14649_v46  ;;  %v7589_v30 = vand.u32 4294901760, %v7030_v9 }
 0x57b   : > { %v7158_v10 = vand.u32 4294901760, %v7157_v0  ;;  %v14663_v26 = vpack.c.bf16 %v7157_v0, %v7150_v28  ;;  %v7671_v28 = vand.u32 4294901760, %v14702_v37  ;;  %v14711_v53 = vsub.f32 %v7029_v1, %v7586_v19  ;;  %v14779_v1 = vld [vmem:[#allocation7 + $0x60] sm:$0xff] }
 0x57d   : > { %v7159_v61 = vsub.f32 %v7157_v0, %v7158_v10  ;;  %v14668_v32 = vpack.c.bf16 %v7158_v10, %v7151_v24  ;;  %v14713_v24 = vsub.f32 %v7030_v9, %v7589_v30  ;;  %v7672_v63 = vsub.f32 %v14702_v37, %v7671_v28  ;;  %v14781_v9 = vld [vmem:[#allocation7 + $0x68] sm:$0xff] }
 0x57f   : > { %v7160_v14 = vand.u32 4294901760, %v7159_v61 }
 0x580   : > { %11107 = vmatmul.mubr.f32.vlgmr.msra.gmra.mrb[10].mxu0 %v6090_v34 }
 0x581   : > { %12204 = vmatpush3.bf16.msra.mxu0 %v14649_v46  ;;  %v14661_v8 = vpack.c.bf16 %v7160_v14, %v7153_v40  ;;  %v7679_v14 = vsub.f32 %v14705_v42, %v7678_v41 }
 0x582   : > { %12206 = vmatprep.subr.bf16.mxu0 %v14651_v58 }
 0x585   : > { %12208 = vmatpush3.bf16.msra.mxu0 %v14651_v58 }
 0x586   : > { %12210 = vmatprep.subr.bf16.mxu0 %v14657_v50 }
 0x5d4   : > { %v4971_v48 = vpop.xlane.xlu1 %4970 }
 0x5d5   : > { %12874 = vrcp.f32 %v4971_v48  ;;  %v7680_v48 = vand.u32 4294901760, %v7679_v14 }
 0x5d8   : > { %v4974_v11 = vpop.xlane.xlu0 %4973 }
 0x5d9   : > { %12876 = vrcp.f32 %v4974_v11 }
 0x5df   : > { %v12875_v16 = vpop.eup %12874 }
 0x5e0   : > { %v4989_v3 = vmul.f32 %v12875_v16, %v14607_v60 }
 0x5e2   : > { %v6516_v18 = vsel %vm4902_vm1, %v4989_v3, 0 }
 0x5e3   : > { %v12877_v39 = vpop.eup %12876  ;;  %v6588_v51 = vand.u32 4294901760, %v6516_v18 }
 0x5e4   : > { %v4990_v49 = vmul.f32 %v12877_v39, %v14613_v27 }
 0x5e5   : > { %v6589_v47 = vsub.f32 %v6516_v18, %v6588_v51 }
 0x5e6   : > { %v6519_v45 = vsel %vm4902_vm1, %v4990_v49, 0 }
 0x5e7   : > { %v6598_v6 = vand.u32 4294901760, %v6519_v45  ;;  %v6590_v38 = vand.u32 4294901760, %v6589_v47 }
 0x5e9   : > { %v6591_v54 = vsub.f32 %v6589_v47, %v6590_v38  ;;  %v6599_v4 = vsub.f32 %v6519_v45, %v6598_v6 }
 0x5eb   : > { %v6592_v12 = vand.u32 4294901760, %v6591_v54  ;;  %v6600_v13 = vand.u32 4294901760, %v6599_v4  ;;  %v12265_v54 = vpack.c.bf16 %v14705_v42, %v14702_v37  ;;  %v14783_v37 = vld [vmem:[#allocation7 + $0x78] sm:$0xff] }
 0x5ec   : > { %v8657_v42 = vand.u32 4294901760, %v14783_v37 }
 0x5ed   : > { %11113 = vmatprep.mubr.f32.mxu1 %v6592_v12  ;;  %v6601_v21 = vsub.f32 %v6599_v4, %v6600_v13  ;;  %v12281_v12 = vpack.c.bf16 %v7678_v41, %v7671_v28 }
 0x5ef   : > { %v6602_v2 = vand.u32 4294901760, %v6601_v21  ;;  %v7032_v21 = vld [vmem:[#allocation7 + $0x48] sm:$0xff] }
 0x5f1   : > { %11114 = vmatmul.mubr.f32.vlgmr.msra.gmra.mrb[8].mxu1 %v6602_v2 }
 0x5f2   : > { %12184 = vmatpush3.bf16.msra.mxu1 %v14581_v62  ;;  %11120 = vmatprep.mubr.f32.mxu1 %v6588_v51 }
 0x5f3   : > { %12186 = vmatprep.subr.bf16.mxu1 %v14572_v15 }
 0x5f9   : > { %11121 = vmatmul.mubr.f32.vlgmr.msra.gmra.mrb[8].mxu1 %v6598_v6 }
 0x5fa   : > { %12188 = vmatpush3.bf16.msra.mxu1 %v14572_v15  ;;  %11127 = vmatprep.mubr.f32.mxu1 %v6589_v47 }
 0x5fb   : > { %12190 = vmatprep.subr.bf16.mxu1 %v14569_v55 }
 0x601   : > { %11128 = vmatmul.mubr.f32.vlgmr.msra.gmra.mrb[8].mxu1 %v6599_v4  ;;  %v12269_v4 = vpack.c.bf16 %v14713_v24, %v14711_v53 }
 0x602   : > { %12192 = vmatpush3.bf16.msra.mxu1 %v14569_v55  ;;  %11134 = vmatprep.mubr.f32.mxu1 %v6590_v38 }
 0x603   : > { %12194 = vmatprep.subr.bf16.mxu1 %v14576_v56 }
 0x609   : > { %11135 = vmatmul.mubr.f32.vlgmr.msra.gmra.mrb[8].mxu1 %v6600_v13  ;;  %v7031_v13 = vld [vmem:[#allocation7 + $0x40] sm:$0xff] }
 0x60a   : > { %12196 = vmatpush3.bf16.msra.mxu1 %v14576_v56  ;;  %11141 = vmatprep.mubr.f32.mxu1 %v6588_v51 }
 0x60b   : > { %12198 = vmatprep.subr.bf16.mxu1 %v14569_v55 }
 0x611   : > { %11142 = vmatmul.mubr.f32.vlgmr.msra.gmra.mrb[8].mxu1 %v6598_v6 }
 0x612   : > { %12200 = vmatpush3.bf16.msra.mxu1 %v14569_v55  ;;  %11148 = vmatprep.mubr.f32.mxu1 %v6588_v51 }
 0x619   : > { %11149 = vmatmul.mubr.f32.vlgmr.msra.gmra.mrb[8].mxu1 %v6598_v6 }
 0x61b   : > { %v11024_v15 = vpop.f32.mrb[8].mxu0 }
 0x61c   : > { %v7043_v62 = vsel %vm2845_vm0, %v11024_v15, 0  ;;  %v5489_v60 = vpop.f32.mrb[9].mxu0  ;;  %v8114_v15 = vand.u32 4294901760, %v7031_v13 }
 0x61d   : > { %v14684_v27 = vand.u32 4294901760, %v7043_v62  ;;  %v7040_v17 = vsel %vm2845_vm0, %v5489_v60, 0 }
 0x61e   : > { %v7114_v34 = vand.u32 4294901760, %v7040_v17 }
 0x61f   : > { %v7125_v31 = vsub.f32 %v7043_v62, %v14684_v27  ;;  %v7033_v62 = vld [vmem:[#allocation7 + $0x50] sm:$0xff] }
 0x620   : > { %v7115_v56 = vsub.f32 %v7040_v17, %v7114_v34  ;;  %v7034_v17 = vld [vmem:[#allocation7 + $0x58] sm:$0xff] }
 0x621   : > { %v7126_v23 = vand.u32 4294901760, %v7125_v31 }
 0x622   : > { %v7116_v33 = vand.u32 4294901760, %v7115_v56 }
 0x623   : > { %v7127_v7 = vsub.f32 %v7125_v31, %v7126_v23 }
 0x624   : > { %v7117_v35 = vsub.f32 %v7115_v56, %v7116_v33 }
 0x625   : > { %v7128_v55 = vand.u32 4294901760, %v7127_v7 }
 0x626   : > { %v7118_v44 = vand.u32 4294901760, %v7117_v35 }
 0x628   : > { %11159 = vmatprep.mubr.f32.mxu0 %v7118_v44 }
 0x629   : > { %11160 = vmatmul.mubr.f32.vlgmr.msra.gmra.mrb[12].mxu0 %v7128_v55 }
 0x62a   : > { %12212 = vmatpush3.bf16.msra.mxu0 %v14657_v50  ;;  %11170 = vmatprep.mubr.f32.mxu0 %v7114_v34  ;;  %v7685_v50 = vand.u32 4294901760, %v14711_v53 }
 0x62b   : > { %12214 = vmatprep.subr.bf16.mxu0 %v14661_v8 }
 0x62c   : > { %v7686_v11 = vsub.f32 %v14711_v53, %v7685_v50 }
 0x62e   : > { %12216 = vmatpush3.bf16.msra.mxu0 %v14661_v8  ;;  %v7687_v49 = vand.u32 4294901760, %v7686_v11 }
 0x62f   : > { %12218 = vmatprep.subr.bf16.mxu0 %v14659_v36 }
 0x631   : > { %11171 = vmatmul.mubr.f32.vlgmr.msra.gmra.mrb[12].mxu0 %v14684_v27 }
 0x632   : > { %12220 = vmatpush3.bf16.msra.mxu0 %v14659_v36  ;;  %11181 = vmatprep.mubr.f32.mxu0 %v7115_v56  ;;  %v7692_v36 = vand.u32 4294901760, %v14713_v24  ;;  %v8123_v56 = vand.u32 4294901760, %v7034_v17 }
 0x633   : > { %12222 = vmatprep.subr.bf16.mxu0 %v14663_v26 }
 0x634   : > { %v7693_v16 = vsub.f32 %v14713_v24, %v7692_v36  ;;  %v12285_v60 = vpack.c.bf16 %v7692_v36, %v7685_v50  ;;  %v14771_v25 = vsub.f32 %v7034_v17, %v8123_v56  ;;  %v8648_v24 = vand.u32 4294901760, %v14779_v1  ;;  %v14881_v17 = vld [vmem:[#allocation8 + $0x8] sm:$0xff] }
 0x636   : > { %12224 = vmatpush3.bf16.msra.mxu0 %v14663_v26  ;;  %v14735_v26 = vpack.c.bf16 %v7589_v30, %v7586_v19  ;;  %v7694_v47 = vand.u32 4294901760, %v7693_v16  ;;  %v8654_v19 = vand.u32 4294901760, %v14773_v29  ;;  %v8226_v53 = vand.u32 4294901760, %v14771_v25 }
 0x637   : > { %12226 = vmatprep.subr.bf16.mxu0 %v14649_v46 }
 0x638   : > { %v12261_v38 = vpack.c.bf16 %v7694_v47, %v7687_v49 }
 0x639   : > { %11182 = vmatmul.mubr.f32.vlgmr.msra.gmra.mrb[12].mxu0 %v7125_v31  ;;  %v8120_v31 = vand.u32 4294901760, %v7033_v62 }
 0x63a   : > { %12228 = vmatpush3.bf16.msra.mxu0 %v14649_v46  ;;  %11192 = vmatprep.mubr.f32.mxu0 %v7116_v33 }
 0x63b   : > { %12230 = vmatprep.subr.bf16.mxu0 %v14651_v58  ;;  %v14768_v44 = vsub.f32 %v7033_v62, %v8120_v31 }
 0x63e   : > { %12232 = vmatpush3.bf16.msra.mxu0 %v14651_v58 }
 0x63f   : > { %12234 = vmatprep.subr.bf16.mxu0 %v14666_v43 }
 0x641   : > { %11193 = vmatmul.mubr.f32.vlgmr.msra.gmra.mrb[12].mxu0 %v7126_v23  ;;  %v14760_v23 = vsub.f32 %v7031_v13, %v8114_v15 }
 0x642   : > { %12236 = vmatpush3.bf16.msra.mxu0 %v14666_v43  ;;  %11203 = vmatprep.mubr.f32.mxu0 %v7114_v34  ;;  %v7673_v43 = vand.u32 4294901760, %v7672_v63 }
 0x643   : > { %12238 = vmatprep.subr.bf16.mxu0 %v14668_v32  ;;  %v8205_v55 = vand.u32 4294901760, %v14760_v23 }
 0x645   : > { %v8206_v41 = vsub.f32 %v14760_v23, %v8205_v55 }
 0x646   : > { %12240 = vmatpush3.bf16.msra.mxu0 %v14668_v32 }
 0x647   : > { %12242 = vmatprep.subr.bf16.mxu0 %v14649_v46  ;;  %v11066_v0 = vpop.f32.mrb[6].mxu1 }
 0x648   : > { %v7577_v10 = vsel %vm2845_vm0, %v11066_v0, 0  ;;  %v5997_v20 = vpop.f32.mrb[7].mxu1  ;;  %v8219_v0 = vand.u32 4294901760, %v14768_v44 }
 0x649   : > { %11204 = vmatmul.mubr.f32.vlgmr.msra.gmra.mrb[12].mxu0 %v14684_v27  ;;  %v14717_v22 = vand.u32 4294901760, %v7577_v10  ;;  %v7574_v52 = vsel %vm2845_vm0, %v5997_v20, 0 }
 0x64a   : > { %12244 = vmatpush3.bf16.msra.mxu0 %v14649_v46  ;;  %11214 = vmatprep.mubr.f32.mxu0 %v7114_v34  ;;  %v14721_v61 = vand.u32 4294901760, %v7574_v52  ;;  %v8220_v14 = vsub.f32 %v14768_v44, %v8219_v0 }
 0x64b   : > { %v7659_v40 = vsub.f32 %v7577_v10, %v14717_v22  ;;  %12246 = vmatprep.subr.bf16.mxu0 %v14651_v58  ;;  %v8651_v10 = vand.u32 4294901760, %v14781_v9 }
 0x64c   : > { %v7649_v46 = vsub.f32 %v7574_v52, %v14721_v61 }
 0x64d   : > { %v7660_v32 = vand.u32 4294901760, %v7659_v40 }
 0x64e   : > { %v7650_v8 = vand.u32 4294901760, %v7649_v46  ;;  %12248 = vmatpush3.bf16.msra.mxu0 %v14651_v58  ;;  %v12257_v58 = vpack.c.bf16 %v7680_v48, %v7673_v43  ;;  %v14828_v43 = vsub.f32 %v14779_v1, %v8648_v24  ;;  %v12349_v1 = vpack.c.bf16 %v8657_v42, %v8654_v19 }
 0x64f   : > { %12250 = vmatprep.subr.bf16.mxu0 %v14723_v57  ;;  %v7661_v39 = vsub.f32 %v7659_v40, %v7660_v32 }
 0x650   : > { %v7651_v3 = vsub.f32 %v7649_v46, %v7650_v8 }
 0x651   : > { %11215 = vmatmul.mubr.f32.vlgmr.msra.gmra.mrb[12].mxu0 %v14684_v27  ;;  %v7662_v6 = vand.u32 4294901760, %v7661_v39  ;;  %v8117_v27 = vand.u32 4294901760, %v7032_v21 }
 0x652   : > { %12252 = vmatpush3.bf16.msra.mxu0 %v14723_v57  ;;  %v7652_v18 = vand.u32 4294901760, %v7651_v3 }
 0x653   : > { %v11108_v51 = vpop.f32.mrb[10].mxu0  ;;  %12254 = vmatprep.subr.bf16.mxu0 %v14735_v26  ;;  %v14762_v33 = vsub.f32 %v7032_v21, %v8117_v27  ;;  %v14789_v28 = vpack.c.bf16 %v8117_v27, %v8114_v15  ;;  %v12317_v21 = vpack.c.bf16 %v14771_v25, %v14768_v44  ;;  %v14879_v27 = vld [vmem:[#allocation8] sm:$0xff]  ;;  %v14892_v44 = vld [vmem:[#allocation8 + $0x28] sm:$0xff] }
 0x654   : > { %v6505_v45 = vpop.f32.mrb[11].mxu0  ;;  %11225 = vmatprep.mubr.f32.mxu0 %v7652_v18  ;;  %v8111_v7 = vsel %vm2845_vm0, %v11108_v51, 0 }
 0x655   : > { %v8108_v2 = vsel %vm2845_vm0, %v6505_v45, 0  ;;  %v14775_v5 = vand.u32 4294901760, %v8111_v7  ;;  %v8212_v59 = vand.u32 4294901760, %v14762_v33 }
 0x656   : > { %12256 = vmatpush3.bf16.msra.mxu0 %v14735_v26  ;;  %v14757_v34 = vand.u32 4294901760, %v8108_v2 }
 0x657   : > { %12258 = vmatprep.subr.bf16.mxu0 %v12257_v58  ;;  %v14801_v20 = vsub.f32 %v8111_v7, %v14775_v5  ;;  %v8213_v52 = vsub.f32 %v14762_v33, %v8212_v59  ;;  %v12329_v62 = vpack.c.bf16 %v8212_v59, %v8205_v55 }
 0x658   : > { %v14766_v35 = vsub.f32 %v8108_v2, %v14757_v34 }
 0x659   : > { %11226 = vmatmul.mubr.f32.vlgmr.msra.gmra.mrb[12].mxu0 %v7662_v6  ;;  %v8194_v48 = vand.u32 4294901760, %v14801_v20 }
 0x65a   : > { %12260 = vmatpush3.bf16.msra.mxu0 %v12257_v58  ;;  %11236 = vmatprep.mubr.f32.mxu0 %v14721_v61  ;;  %v8184_v30 = vand.u32 4294901760, %v14766_v35  ;;  %v8221_v58 = vand.u32 4294901760, %v8220_v14 }
 0x65b   : > { %12262 = vmatprep.subr.bf16.mxu0 %v12261_v38  ;;  %v8195_v47 = vsub.f32 %v14801_v20, %v8194_v48 }
 0x65c   : > { %v8185_v63 = vsub.f32 %v14766_v35, %v8184_v30 }
 0x65e   : > { %12264 = vmatpush3.bf16.msra.mxu0 %v12261_v38  ;;  %v8186_v3 = vand.u32 4294901760, %v8185_v63 }
 0x65f   : > { %12266 = vmatprep.subr.bf16.mxu0 %v12265_v54 }
 0x661   : > { %11237 = vmatmul.mubr.f32.vlgmr.msra.gmra.mrb[12].mxu0 %v14717_v22 }
 0x662   : > { %12268 = vmatpush3.bf16.msra.mxu0 %v12265_v54  ;;  %11247 = vmatprep.mubr.f32.mxu0 %v7649_v46  ;;  %v8207_v46 = vand.u32 4294901760, %v8206_v41  ;;  %v8196_v54 = vand.u32 4294901760, %v8195_v47  ;;  %v14909_v41 = vld [vmem:[#allocation8 + $0x30] sm:$0xff] }
 0x663   : > { %12270 = vmatprep.subr.bf16.mxu0 %v12269_v4 }
 0x666   : > { %12272 = vmatpush3.bf16.msra.mxu0 %v12269_v4  ;;  %v12313_v4 = vpack.c.bf16 %v14762_v33, %v14760_v23  ;;  %v9212_v23 = vand.u32 4294901760, %v14881_v17  ;;  %v14887_v33 = vld [vmem:[#allocation8 + $0x18] sm:$0xff] }
 0x667   : > { %12274 = vmatprep.subr.bf16.mxu0 %v14723_v57  ;;  %v9218_v55 = vand.u32 4294901760, %v14887_v33 }
 0x669   : > { %11248 = vmatmul.mubr.f32.vlgmr.msra.gmra.mrb[12].mxu0 %v7659_v40  ;;  %v14816_v40 = vpack.c.bf16 %v8123_v56, %v8120_v31  ;;  %v14883_v31 = vld [vmem:[#allocation8 + $0x10] sm:$0xff]  ;;  %v9209_v56 = vand.u32 4294901760, %v14879_v27 }
 0x66a   : > { %12276 = vmatpush3.bf16.msra.mxu0 %v14723_v57  ;;  %11258 = vmatprep.mubr.f32.mxu0 %v7650_v8  ;;  %v8227_v8 = vsub.f32 %v14771_v25, %v8226_v53  ;;  %v9215_v7 = vand.u32 4294901760, %v14883_v31 }
 0x66b   : > { %12278 = vmatprep.subr.bf16.mxu0 %v14735_v26  ;;  %v14899_v25 = vpack.c.bf16 %v9212_v23, %v9209_v56 }
 0x66c   : > { %v8228_v49 = vand.u32 4294901760, %v8227_v8 }
 0x66d   : > { %12394 = vmatprep.subr.bf16.mxu1 %v14899_v25 }
 0x66e   : > { %12280 = vmatpush3.bf16.msra.mxu0 %v14735_v26  ;;  %12396 = vmatpush3.bf16.msra.mxu1 %v14899_v25 }
 0x66f   : > { %12282 = vmatprep.subr.bf16.mxu0 %v12281_v12 }
 0x671   : > { %11259 = vmatmul.mubr.f32.vlgmr.msra.gmra.mrb[12].mxu0 %v7660_v32  ;;  %v14833_v32 = vsub.f32 %v14781_v9, %v8651_v10 }
 0x672   : > { %12284 = vmatpush3.bf16.msra.mxu0 %v12281_v12  ;;  %11269 = vmatprep.mubr.f32.mxu0 %v14721_v61  ;;  %v8739_v12 = vand.u32 4294901760, %v14828_v43 }
 0x673   : > { %12286 = vmatprep.subr.bf16.mxu0 %v12285_v60  ;;  %v14839_v18 = vpack.c.bf16 %v14833_v32, %v14828_v43  ;;  %v8746_v13 = vand.u32 4294901760, %v14833_v32 }
 0x674   : > { %v8740_v63 = vsub.f32 %v14828_v43, %v8739_v12 }
 0x675   : > { %v14857_v2 = vpack.c.bf16 %v8746_v13, %v8739_v12  ;;  %v8747_v14 = vsub.f32 %v14833_v32, %v8746_v13 }
 0x676   : > { %12288 = vmatpush3.bf16.msra.mxu0 %v12285_v60  ;;  %v12333_v60 = vpack.c.bf16 %v8226_v53, %v8219_v0  ;;  %v14907_v0 = vpack.c.bf16 %v9218_v55, %v9215_v7  ;;  %v14911_v53 = vld [vmem:[#allocation8 + $0x38] sm:$0xff]  ;;  %v8741_v9 = vand.u32 4294901760, %v8740_v63 }
 0x677   : > { %12290 = vmatprep.subr.bf16.mxu0 %v14723_v57 }
 0x678   : > { %12398 = vmatprep.subr.bf16.mxu1 %v14907_v0 }
 0x679   : > { %11270 = vmatmul.mubr.f32.vlgmr.msra.gmra.mrb[12].mxu0 %v14717_v22  ;;  %12400 = vmatpush3.bf16.msra.mxu1 %v14907_v0 }
 0x67a   : > { %12292 = vmatpush3.bf16.msra.mxu0 %v14723_v57  ;;  %11280 = vmatprep.mubr.f32.mxu0 %v14721_v61  ;;  %v8752_v61 = vsub.f32 %v14773_v29, %v8654_v19  ;;  %v8759_v57 = vsub.f32 %v14783_v37, %v8657_v42 }
 0x67b   : > { %12294 = vmatprep.subr.bf16.mxu0 %v14735_v26 }
 0x67c   : > { %v8753_v50 = vand.u32 4294901760, %v8752_v61  ;;  %v8760_v36 = vand.u32 4294901760, %v8759_v57  ;;  %v14847_v38 = vpack.c.bf16 %v8759_v57, %v8752_v61 }
 0x67e   : > { %12296 = vmatpush3.bf16.msra.mxu0 %v14735_v26  ;;  %v8214_v26 = vand.u32 4294901760, %v8213_v52  ;;  %v8754_v11 = vsub.f32 %v8752_v61, %v8753_v50  ;;  %v8761_v16 = vsub.f32 %v8759_v57, %v8760_v36  ;;  %v14861_v15 = vpack.c.bf16 %v8760_v36, %v8753_v50 }
 0x67f   : > { %12298 = vmatprep.subr.bf16.mxu0 %v14789_v28  ;;  %v9227_v52 = vand.u32 4294901760, %v14909_v41  ;;  %v9230_v61 = vand.u32 4294901760, %v14911_v53  ;;  %v12345_v57 = vpack.c.bf16 %v8651_v10, %v8648_v24 }
 0x680   : > { %v8755_v39 = vand.u32 4294901760, %v8754_v11  ;;  %v8762_v51 = vand.u32 4294901760, %v8761_v16  ;;  %v12305_v45 = vpack.c.bf16 %v8214_v26, %v8207_v46  ;;  %v9200_v26 = vld [vmem:[#allocation8 + $0x40] sm:$0xff]  ;;  %v9201_v11 = vld [vmem:[#allocation8 + $0x48] sm:$0xff]  ;;  %v9202_v16 = vld [vmem:[#allocation8 + $0x50] sm:$0xff] }
 0x681   : > { %11281 = vmatmul.mubr.f32.vlgmr.msra.gmra.mrb[12].mxu0 %v14717_v22  ;;  %v12309_v22 = vpack.c.bf16 %v8228_v49, %v8221_v58  ;;  %v9204_v58 = vld [vmem:[#allocation8 + $0x60] sm:$0xff]  ;;  %v9205_v49 = vld [vmem:[#allocation8 + $0x68] sm:$0xff] }
 0x682   : > { %12300 = vmatpush3.bf16.msra.mxu0 %v14789_v28  ;;  %11291 = vmatprep.mubr.f32.mxu0 %v8186_v3  ;;  %v14845_v6 = vpack.c.bf16 %v8762_v51, %v8755_v39  ;;  %v9233_v3 = vand.u32 4294901760, %v9200_v26  ;;  %v9203_v39 = vld [vmem:[#allocation8 + $0x58] sm:$0xff]  ;;  %v9239_v51 = vand.u32 4294901760, %v9202_v16 }
 0x683   : > { %12302 = vmatprep.subr.bf16.mxu0 %v14816_v40  ;;  %v9242_v47 = vand.u32 4294901760, %v9203_v39 }
 0x686   : > { %12304 = vmatpush3.bf16.msra.mxu0 %v14816_v40 }
 0x687   : > { %12306 = vmatprep.subr.bf16.mxu0 %v12305_v45 }
 0x689   : > { %11292 = vmatmul.mubr.f32.vlgmr.msra.gmra.mrb[12].mxu0 %v8196_v54  ;;  %v9206_v54 = vld [vmem:[#allocation8 + $0x70] sm:$0xff] }
 0x68a   : > { %12308 = vmatpush3.bf16.msra.mxu0 %v12305_v45  ;;  %11302 = vmatprep.mubr.f32.mxu0 %v14757_v34  ;;  %v9251_v12 = vand.u32 4294901760, %v9206_v54 }
 0x68b   : > { %12310 = vmatprep.subr.bf16.mxu0 %v12309_v22 }
 0x68e   : > { %12312 = vmatpush3.bf16.msra.mxu0 %v12309_v22  ;;  %v14966_v22 = vpack.c.bf16 %v9242_v47, %v9239_v51 }
 0x68f   : > { %12314 = vmatprep.subr.bf16.mxu0 %v12313_v4 }
 0x691   : > { %11303 = vmatmul.mubr.f32.vlgmr.msra.gmra.mrb[12].mxu0 %v14775_v5 }
 0x692   : > { %12316 = vmatpush3.bf16.msra.mxu0 %v12313_v4  ;;  %11313 = vmatprep.mubr.f32.mxu0 %v14766_v35  ;;  %v14890_v35 = vld [vmem:[#allocation8 + $0x20] sm:$0xff]  ;;  %v9207_v4 = vld [vmem:[#allocation8 + $0x78] sm:$0xff] }
 0x693   : > { %12318 = vmatprep.subr.bf16.mxu0 %v12317_v21  ;;  %v9221_v59 = vand.u32 4294901760, %v14890_v35 }
 0x696   : > { %12320 = vmatpush3.bf16.msra.mxu0 %v12317_v21  ;;  %v9254_v21 = vand.u32 4294901760, %v9207_v4 }
 0x697   : > { %12322 = vmatprep.subr.bf16.mxu0 %v14789_v28 }
 0x699   : > { %11314 = vmatmul.mubr.f32.vlgmr.msra.gmra.mrb[12].mxu0 %v14801_v20 }
 0x69a   : > { %12324 = vmatpush3.bf16.msra.mxu0 %v14789_v28  ;;  %11324 = vmatprep.mubr.f32.mxu0 %v8184_v30  ;;  %v9224_v30 = vand.u32 4294901760, %v14892_v44 }
 0x69b   : > { %12326 = vmatprep.subr.bf16.mxu0 %v14816_v40 }
 0x69c   : > { %v14922_v20 = vpack.c.bf16 %v9224_v30, %v9221_v59 }
 0x69e   : > { %12328 = vmatpush3.bf16.msra.mxu0 %v14816_v40  ;;  %12402 = vmatprep.subr.bf16.mxu1 %v14922_v20 }
 0x69f   : > { %12330 = vmatprep.subr.bf16.mxu0 %v12329_v62  ;;  %12404 = vmatpush3.bf16.msra.mxu1 %v14922_v20 }
 0x6a1   : > { %11325 = vmatmul.mubr.f32.vlgmr.msra.gmra.mrb[12].mxu0 %v8194_v48 }
 0x6a2   : > { %12332 = vmatpush3.bf16.msra.mxu0 %v12329_v62  ;;  %11335 = vmatprep.mubr.f32.mxu0 %v14757_v34 }
 0x6a3   : > { %12334 = vmatprep.subr.bf16.mxu0 %v12333_v60 }
 0x6a6   : > { %12336 = vmatpush3.bf16.msra.mxu0 %v12333_v60 }
 0x6a7   : > { %12338 = vmatprep.subr.bf16.mxu0 %v14789_v28 }
 0x6a9   : > { %11336 = vmatmul.mubr.f32.vlgmr.msra.gmra.mrb[12].mxu0 %v14775_v5 }
 0x6aa   : > { %12340 = vmatpush3.bf16.msra.mxu0 %v14789_v28  ;;  %11346 = vmatprep.mubr.f32.mxu0 %v14757_v34  ;;  %v14941_v34 = vpack.c.bf16 %v9230_v61, %v9227_v52  ;;  %v8748_v28 = vand.u32 4294901760, %v8747_v14  ;;  %v15001_v14 = vsub.f32 %v9200_v26, %v9233_v3 }
 0x6ab   : > { %12342 = vmatprep.subr.bf16.mxu0 %v14816_v40 }
 0x6ac   : > { %12406 = vmatprep.subr.bf16.mxu1 %v14941_v34  ;;  %v12353_v24 = vpack.c.bf16 %v8748_v28, %v8741_v9  ;;  %v9368_v9 = vand.u32 4294901760, %v15001_v14 }
 0x6ad   : > { %12408 = vmatpush3.bf16.msra.mxu1 %v14941_v34 }
 0x6ae   : > { %12344 = vmatpush3.bf16.msra.mxu0 %v14816_v40 }
 0x6af   : > { %12346 = vmatprep.subr.bf16.mxu0 %v12345_v57 }
 0x6b1   : > { %11347 = vmatmul.mubr.f32.vlgmr.msra.gmra.mrb[12].mxu0 %v14775_v5 }
 0x6b2   : > { %12348 = vmatpush3.bf16.msra.mxu0 %v12345_v57 }
 0x6b3   : > { %12350 = vmatprep.subr.bf16.mxu0 %v12349_v1 }
 0x6b6   : > { %12352 = vmatpush3.bf16.msra.mxu0 %v12349_v1 }
 0x6b7   : > { %12354 = vmatprep.subr.bf16.mxu0 %v12353_v24 }
 0x6ec   : > { %v11150_v10 = vpop.f32.mrb[8].mxu1 }
 0x6ed   : > { %v8645_v29 = vsel %vm2845_vm0, %v11150_v10, 0  ;;  %v7013_v37 = vpop.f32.mrb[9].mxu1 }
 0x6ee   : > { %v8726_v19 = vand.u32 4294901760, %v8645_v29  ;;  %v8642_v42 = vsel %vm2845_vm0, %v7013_v37, 0  ;;  %v15015_v37 = vsub.f32 %v9203_v39, %v9242_v47  ;;  %v15041_v39 = vsub.f32 %v9207_v4, %v9254_v21 }
 0x6ef   : > { %v8716_v40 = vand.u32 4294901760, %v8642_v42 }
 0x6f0   : > { %v8727_v50 = vsub.f32 %v8645_v29, %v8726_v19  ;;  %v15013_v29 = vsub.f32 %v9202_v16, %v9239_v51 }
 0x6f1   : > { %v8717_v36 = vsub.f32 %v8642_v42, %v8716_v40 }
 0x6f2   : > { %v8728_v5 = vand.u32 4294901760, %v8727_v50 }
 0x6f3   : > { %v8718_v46 = vand.u32 4294901760, %v8717_v36 }
 0x6f4   : > { %v8729_v8 = vsub.f32 %v8727_v50, %v8728_v5 }
 0x6f5   : > { %v8719_v43 = vsub.f32 %v8717_v36, %v8718_v46 }
 0x6f6   : > { %v8730_v48 = vand.u32 4294901760, %v8729_v8 }
 0x6f7   : > { %v8720_v32 = vand.u32 4294901760, %v8719_v43 }
 0x6f9   : > { %11357 = vmatprep.mubr.f32.mxu0 %v8720_v32 }
 0x6fa   : > { %11358 = vmatmul.mubr.f32.vlgmr.msra.gmra.mrb[12].mxu0 %v8730_v48 }
 0x6fb   : > { %12356 = vmatpush3.bf16.msra.mxu0 %v12353_v24  ;;  %11368 = vmatprep.mubr.f32.mxu0 %v8716_v40  ;;  %v9369_v24 = vsub.f32 %v15001_v14, %v9368_v9 }
 0x6fc   : > { %12358 = vmatprep.subr.bf16.mxu0 %v14845_v6 }
 0x6ff   : > { %12360 = vmatpush3.bf16.msra.mxu0 %v14845_v6  ;;  %v9245_v6 = vand.u32 4294901760, %v9204_v58 }
 0x700   : > { %12362 = vmatprep.subr.bf16.mxu0 %v14839_v18 }
 0x702   : > { %11369 = vmatmul.mubr.f32.vlgmr.msra.gmra.mrb[12].mxu0 %v8726_v19 }
 0x703   : > { %12364 = vmatpush3.bf16.msra.mxu0 %v14839_v18  ;;  %11379 = vmatprep.mubr.f32.mxu0 %v8717_v36  ;;  %v9236_v18 = vand.u32 4294901760, %v9201_v11 }
 0x704   : > { %12366 = vmatprep.subr.bf16.mxu0 %v14847_v38 }
 0x705   : > { %v14964_v45 = vpack.c.bf16 %v9236_v18, %v9233_v3 }
 0x707   : > { %12368 = vmatpush3.bf16.msra.mxu0 %v14847_v38  ;;  %v9248_v38 = vand.u32 4294901760, %v9205_v49  ;;  %12410 = vmatprep.subr.bf16.mxu1 %v14964_v45 }
 0x708   : > { %12370 = vmatprep.subr.bf16.mxu0 %v12345_v57  ;;  %12412 = vmatpush3.bf16.msra.mxu1 %v14964_v45 }
 0x709   : > { %12414 = vmatprep.subr.bf16.mxu1 %v14966_v22  ;;  %v14971_v13 = vpack.c.bf16 %v9248_v38, %v9245_v6  ;;  %v15026_v8 = vsub.f32 %v9205_v49, %v9248_v38 }
 0x70a   : > { %11380 = vmatmul.mubr.f32.vlgmr.msra.gmra.mrb[12].mxu0 %v8727_v50  ;;  %v15409_v50 = vand.u32 4294901760, %v15015_v37 }
 0x70b   : > { %12372 = vmatpush3.bf16.msra.mxu0 %v12345_v57  ;;  %11390 = vmatprep.mubr.f32.mxu0 %v8718_v46  ;;  %v15024_v46 = vsub.f32 %v9204_v58, %v9245_v6  ;;  %v15407_v26 = vand.u32 4294901760, %v15026_v8  ;;  %v15405_v6 = vand.u32 4294901760, %v15041_v39 }
 0x70c   : > { %12374 = vmatprep.subr.bf16.mxu0 %v12349_v1  ;;  %12416 = vmatpush3.bf16.msra.mxu1 %v14966_v22  ;;  %v9390_v43 = vsub.f32 %v15015_v37, %v15409_v50 }
 0x70d   : > { %12418 = vmatprep.subr.bf16.mxu1 %v14971_v13  ;;  %v15408_v48 = vand.u32 4294901760, %v15024_v46  ;;  %v9404_v3 = vsub.f32 %v15026_v8, %v15407_v26 }
 0x70f   : > { %12376 = vmatpush3.bf16.msra.mxu0 %v12349_v1  ;;  %v9397_v16 = vsub.f32 %v15024_v46, %v15408_v48  ;;  %v9405_v49 = vand.u32 4294901760, %v9404_v3 }
 0x710   : > { %12378 = vmatprep.subr.bf16.mxu0 %v14857_v2  ;;  %12420 = vmatpush3.bf16.msra.mxu1 %v14971_v13 }
 0x711   : > { %v9398_v58 = vand.u32 4294901760, %v9397_v16 }
 0x712   : > { %11391 = vmatmul.mubr.f32.vlgmr.msra.gmra.mrb[12].mxu0 %v8728_v5 }
 0x713   : > { %12380 = vmatpush3.bf16.msra.mxu0 %v14857_v2  ;;  %11401 = vmatprep.mubr.f32.mxu0 %v8716_v40  ;;  %v14976_v2 = vsub.f32 %v14879_v27, %v9209_v56  ;;  %v15047_v38 = vpack.c.bf16 %v9405_v49, %v9398_v58  ;;  %v15095_v49 = vsub.f32 %v14890_v35, %v9221_v59 }
 0x714   : > { %12382 = vmatprep.subr.bf16.mxu0 %v14861_v15 }
 0x715   : > { %v9312_v62 = vand.u32 4294901760, %v14976_v2  ;;  %v9340_v59 = vand.u32 4294901760, %v15095_v49 }
 0x717   : > { %12384 = vmatpush3.bf16.msra.mxu0 %v14861_v15  ;;  %v14981_v15 = vsub.f32 %v14881_v17, %v9212_v23  ;;  %v9313_v27 = vsub.f32 %v14976_v2, %v9312_v62 }
 0x718   : > { %12386 = vmatprep.subr.bf16.mxu0 %v12345_v57 }
 0x719   : > { %v9319_v60 = vand.u32 4294901760, %v14981_v15  ;;  %v9314_v17 = vand.u32 4294901760, %v9313_v27 }
 0x71a   : > { %11402 = vmatmul.mubr.f32.vlgmr.msra.gmra.mrb[12].mxu0 %v8726_v19 }
 0x71b   : > { %12388 = vmatpush3.bf16.msra.mxu0 %v12345_v57  ;;  %11412 = vmatprep.mubr.f32.mxu0 %v8716_v40  ;;  %v14987_v57 = vpack.c.bf16 %v9254_v21, %v9251_v12  ;;  %v9320_v56 = vsub.f32 %v14981_v15, %v9319_v60  ;;  %v9382_v40 = vand.u32 4294901760, %v15013_v29  ;;  %v15057_v21 = vpack.c.bf16 %v14981_v15, %v14976_v2 }
 0x71c   : > { %12390 = vmatprep.subr.bf16.mxu0 %v12349_v1 }
 0x71d   : > { %v9321_v23 = vand.u32 4294901760, %v9320_v56  ;;  %12422 = vmatprep.subr.bf16.mxu1 %v14987_v57  ;;  %v9383_v5 = vsub.f32 %v15013_v29, %v9382_v40 }
 0x71e   : > { %12424 = vmatpush3.bf16.msra.mxu1 %v14987_v57 }
 0x71f   : > { %12392 = vmatpush3.bf16.msra.mxu0 %v12349_v1  ;;  %v14997_v63 = vpack.c.bf16 %v9321_v23, %v9314_v17  ;;  %v15003_v1 = vsub.f32 %v9201_v11, %v9236_v18  ;;  %v9384_v32 = vand.u32 4294901760, %v9383_v5  ;;  %v9391_v11 = vand.u32 4294901760, %v9390_v43 }
 0x720   : > { %v15039_v18 = vsub.f32 %v9206_v54, %v9251_v12  ;;  %v9418_v54 = vsub.f32 %v15041_v39, %v15405_v6  ;;  %v15067_v23 = vpack.c.bf16 %v15015_v37, %v15013_v29  ;;  %v15088_v5 = vsub.f32 %v14887_v33, %v9218_v55  ;;  %v12879_v55 = vld [vmem:[%s13327_s1] sm:$0xff] }
 0x721   : > { %12426 = vmatprep.subr.bf16.mxu1 %v14997_v63  ;;  %v9375_v28 = vand.u32 4294901760, %v15003_v1  ;;  %v15043_v51 = vpack.c.bf16 %v9391_v11, %v9384_v32  ;;  %v15063_v17 = vpack.c.bf16 %v15003_v1, %v15001_v14  ;;  %v15101_v33 = vsub.f32 %v14892_v44, %v9224_v30 }
 0x722   : > { %11413 = vmatmul.mubr.f32.vlgmr.msra.gmra.mrb[12].mxu0 %v8726_v19  ;;  %v9370_v19 = vand.u32 4294901760, %v9369_v24  ;;  %v15406_v47 = vand.u32 4294901760, %v15039_v18  ;;  %v9419_v12 = vand.u32 4294901760, %v9418_v54  ;;  %v15071_v24 = vpack.c.bf16 %v15026_v8, %v15024_v46 }
 0x723   : > { %v9376_v10 = vsub.f32 %v15003_v1, %v9375_v28  ;;  %v9333_v58 = vand.u32 4294901760, %v15088_v5  ;;  %v9347_v44 = vand.u32 4294901760, %v15101_v33  ;;  %v15122_v30 = vsub.f32 %v14909_v41, %v9227_v52 }
 0x724   : > { %v9411_v27 = vsub.f32 %v15039_v18, %v15406_v47  ;;  %v15548_v14 = vand.u32 4294901760, %v15039_v18  ;;  %v15549_v1 = vand.u32 4294901760, %v15041_v39 }
 0x725   : > { %v9377_v42 = vand.u32 4294901760, %v9376_v10  ;;  %v15075_v10 = vpack.c.bf16 %v15041_v39, %v15039_v18  ;;  %v9334_v35 = vsub.f32 %v15088_v5, %v9333_v58  ;;  %v9354_v52 = vand.u32 4294901760, %v15122_v30 }
 0x726   : > { %v9412_v4 = vand.u32 4294901760, %v9411_v27  ;;  %v12529_v2 = vpack.c.bf16 %v9347_v44, %v9340_v59 }
 0x727   : > { %v15019_v36 = vpack.c.bf16 %v9377_v42, %v9370_v19  ;;  %v10045_v19 = vld [vmem:[%s15307_s4] ss:$0 sm:$0xff]  ;;  %v15083_v42 = vsub.f32 %v14883_v31, %v9215_v7  ;;  %v12878_v31 = vld [vmem:[%s13327_s1 + $0x8] sm:$0xff]  ;;  %v9355_v48 = vsub.f32 %v15122_v30, %v9354_v52  ;;  %s9895_s1 = scalar_lea.sflag [#allocation4], %s13321_s16 }
 0x728   : > { %v15059_v56 = vpack.c.bf16 %v9419_v12, %v9412_v4 }
 0x729   : > { %v9326_v3 = vand.u32 4294901760, %v15083_v42 }
 0x72b   : > { %v9327_v12 = vsub.f32 %v15083_v42, %v9326_v3 }
 0x7f5   : > { %v11414_v43 = vpop.f32.mrb[12].mxu0 }
 0x7f6   : > { %v9189_v32 = vadd.f32 %v11414_v43, %v10045_v19  ;;  %v9165_v11 = vpop.f32.mrb[13].mxu0  ;;  %v15127_v43 = vsub.f32 %v14911_v53, %v9230_v61  ;;  %v9348_v53 = vsub.f32 %v15101_v33, %v9347_v44 }
 0x7f7   : > { %v9188_v16 = vadd.f32 %v10045_v19, %v9165_v11 }
 0x7f8   : > { %v9191_v7 = vadd.f32 %v12878_v31, %v9189_v32  ;;  %v9328_v31 = vand.u32 4294901760, %v9327_v12  ;;  %v9361_v61 = vand.u32 4294901760, %v15127_v43  ;;  %v9349_v26 = vand.u32 4294901760, %v9348_v53 }
 0x7f9   : > { %v9190_v27 = vadd.f32 %v12879_v55, %v9188_v16  ;;  %v9341_v55 = vsub.f32 %v15095_v49, %v9340_v59 }
 0x7fa   : > { %v15104_v54 = vand.u32 4294901760, %v9191_v7  ;;  %v9362_v50 = vsub.f32 %v15127_v43, %v9361_v61  ;;  %v12533_v15 = vpack.c.bf16 %v9361_v61, %v9354_v52 }
 0x7fb   : > { %v15106_v4 = vand.u32 4294901760, %v9190_v27  ;;  %v9342_v6 = vand.u32 4294901760, %v9341_v55 }
 0x7fc   : > { %v15116_v19 = vsub.f32 %v9191_v7, %v15104_v54  ;;  %v9335_v7 = vand.u32 4294901760, %v9334_v35 }
 0x7fd   : > { %v15130_v32 = vsub.f32 %v9190_v27, %v15106_v4 }
 0x7fe   : > { %v9301_v11 = vand.u32 4294901760, %v15116_v19  ;;  %v12429_v35 = vpack.c.bf16 %v9335_v7, %v9328_v31  ;;  %v9356_v31 = vand.u32 4294901760, %v9355_v48  ;;  %v9363_v7 = vand.u32 4294901760, %v9362_v50 }
 0x7ff   : > { %v9291_v16 = vand.u32 4294901760, %v15130_v32  ;;  %v12465_v50 = vpack.c.bf16 %v15101_v33, %v15095_v49  ;;  %v12521_v48 = vpack.c.bf16 %v9319_v60, %v9312_v62  ;;  %v12537_v62 = vpack.c.bf16 %v9375_v28, %v9368_v9 }
 0x800   : > { %v9302_v41 = vsub.f32 %v15116_v19, %v9301_v11  ;;  %v12437_v55 = vpack.c.bf16 %v9363_v7, %v9356_v31  ;;  %v15545_v60 = vand.u32 4294901760, %v15015_v37  ;;  %v12549_v9 = vpack.c.bf16 %v15549_v1, %v15548_v14 }
 0x801   : > { %v9292_v27 = vsub.f32 %v15130_v32, %v9291_v16 }
 0x802   : > { %v9303_v47 = vand.u32 4294901760, %v9302_v41 }
 0x803   : > { %v9293_v12 = vand.u32 4294901760, %v9292_v27  ;;  %v12433_v27 = vpack.c.bf16 %v9349_v26, %v9342_v6  ;;  %v12525_v26 = vpack.c.bf16 %v9333_v58, %v9326_v3  ;;  %v15547_v6 = vand.u32 4294901760, %v15026_v8 }
 0x805   : > { %11447 = vmatprep.mubr.f32.mxu1 %v9293_v12 }
 0x806   : > { %11448 = vmatmul.mubr.f32.vlgmr.msra.gmra.mrb[10].mxu1 %v9303_v47  ;;  %v15546_v47 = vand.u32 4294901760, %v15024_v46 }
 0x807   : > { %12428 = vmatpush3.bf16.msra.mxu1 %v14997_v63  ;;  %11482 = vmatprep.mubr.f32.mxu1 %v15106_v4  ;;  %v12461_v63 = vpack.c.bf16 %v15088_v5, %v15083_v42 }
 0x808   : > { %12430 = vmatprep.subr.bf16.mxu1 %v12429_v35 }
 0x80b   : > { %12432 = vmatpush3.bf16.msra.mxu1 %v12429_v35 }
 0x80c   : > { %12434 = vmatprep.subr.bf16.mxu1 %v12433_v27 }
 0x80f   : > { %12436 = vmatpush3.bf16.msra.mxu1 %v12433_v27 }
 0x810   : > { %12438 = vmatprep.subr.bf16.mxu1 %v12437_v55 }
 0x813   : > { %12440 = vmatpush3.bf16.msra.mxu1 %v12437_v55 }
 0x814   : > { %12442 = vmatprep.subr.bf16.mxu1 %v15019_v36 }
 0x817   : > { %12444 = vmatpush3.bf16.msra.mxu1 %v15019_v36  ;;  %v12469_v36 = vpack.c.bf16 %v15127_v43, %v15122_v30 }
 0x818   : > { %12446 = vmatprep.subr.bf16.mxu1 %v15043_v51 }
 0x81b   : > { %12448 = vmatpush3.bf16.msra.mxu1 %v15043_v51  ;;  %v12541_v51 = vpack.c.bf16 %v15545_v60, %v9382_v40 }
 0x81c   : > { %12450 = vmatprep.subr.bf16.mxu1 %v15047_v38 }
 0x81f   : > { %12452 = vmatpush3.bf16.msra.mxu1 %v15047_v38  ;;  %v12545_v38 = vpack.c.bf16 %v15547_v6, %v15546_v47 }
 0x820   : > { %12454 = vmatprep.subr.bf16.mxu1 %v15059_v56 }
 0x823   : > { %12456 = vmatpush3.bf16.msra.mxu1 %v15059_v56 }
 0x824   : > { %12458 = vmatprep.subr.bf16.mxu1 %v15057_v21 }
 0x826   : > { %11483 = vmatmul.mubr.f32.vlgmr.msra.gmra.mrb[10].mxu1 %v15104_v54 }
 0x827   : > { %12460 = vmatpush3.bf16.msra.mxu1 %v15057_v21  ;;  %11517 = vmatprep.mubr.f32.mxu1 %v15130_v32 }
 0x828   : > { %12462 = vmatprep.subr.bf16.mxu1 %v12461_v63 }
 0x82b   : > { %12464 = vmatpush3.bf16.msra.mxu1 %v12461_v63 }
 0x82c   : > { %12466 = vmatprep.subr.bf16.mxu1 %v12465_v50 }
 0x82f   : > { %12468 = vmatpush3.bf16.msra.mxu1 %v12465_v50 }
 0x830   : > { %12470 = vmatprep.subr.bf16.mxu1 %v12469_v36 }
 0x833   : > { %12472 = vmatpush3.bf16.msra.mxu1 %v12469_v36 }
 0x834   : > { %12474 = vmatprep.subr.bf16.mxu1 %v15063_v17 }
 0x837   : > { %12476 = vmatpush3.bf16.msra.mxu1 %v15063_v17 }
 0x838   : > { %12478 = vmatprep.subr.bf16.mxu1 %v15067_v23 }
 0x83b   : > { %12480 = vmatpush3.bf16.msra.mxu1 %v15067_v23 }
 0x83c   : > { %12482 = vmatprep.subr.bf16.mxu1 %v15071_v24 }
 0x83f   : > { %12484 = vmatpush3.bf16.msra.mxu1 %v15071_v24 }
 0x840   : > { %12486 = vmatprep.subr.bf16.mxu1 %v15075_v10 }
 0x843   : > { %12488 = vmatpush3.bf16.msra.mxu1 %v15075_v10 }
 0x844   : > { %12490 = vmatprep.subr.bf16.mxu1 %v14899_v25 }
 0x846   : > { %11518 = vmatmul.mubr.f32.vlgmr.msra.gmra.mrb[10].mxu1 %v15116_v19 }
 0x847   : > { %12492 = vmatpush3.bf16.msra.mxu1 %v14899_v25  ;;  %11552 = vmatprep.mubr.f32.mxu1 %v9291_v16 }
 0x848   : > { %12494 = vmatprep.subr.bf16.mxu1 %v14907_v0 }
 0x84b   : > { %12496 = vmatpush3.bf16.msra.mxu1 %v14907_v0 }
 0x84c   : > { %12498 = vmatprep.subr.bf16.mxu1 %v14922_v20 }
 0x84f   : > { %12500 = vmatpush3.bf16.msra.mxu1 %v14922_v20 }
 0x850   : > { %12502 = vmatprep.subr.bf16.mxu1 %v14941_v34 }
 0x853   : > { %12504 = vmatpush3.bf16.msra.mxu1 %v14941_v34 }
 0x854   : > { %12506 = vmatprep.subr.bf16.mxu1 %v14964_v45 }
 0x857   : > { %12508 = vmatpush3.bf16.msra.mxu1 %v14964_v45 }
 0x858   : > { %12510 = vmatprep.subr.bf16.mxu1 %v14966_v22 }
 0x85b   : > { %12512 = vmatpush3.bf16.msra.mxu1 %v14966_v22 }
 0x85c   : > { %12514 = vmatprep.subr.bf16.mxu1 %v14971_v13 }
 0x85f   : > { %12516 = vmatpush3.bf16.msra.mxu1 %v14971_v13 }
 0x860   : > { %12518 = vmatprep.subr.bf16.mxu1 %v14987_v57 }
 0x863   : > { %12520 = vmatpush3.bf16.msra.mxu1 %v14987_v57 }
 0x864   : > { %12522 = vmatprep.subr.bf16.mxu1 %v12521_v48 }
 0x866   : > { %11553 = vmatmul.mubr.f32.vlgmr.msra.gmra.mrb[10].mxu1 %v9301_v11 }
 0x867   : > { %12524 = vmatpush3.bf16.msra.mxu1 %v12521_v48  ;;  %11587 = vmatprep.mubr.f32.mxu1 %v15106_v4 }
 0x868   : > { %12526 = vmatprep.subr.bf16.mxu1 %v12525_v26 }
 0x86b   : > { %12528 = vmatpush3.bf16.msra.mxu1 %v12525_v26 }
 0x86c   : > { %12530 = vmatprep.subr.bf16.mxu1 %v12529_v2 }
 0x86f   : > { %12532 = vmatpush3.bf16.msra.mxu1 %v12529_v2 }
 0x870   : > { %12534 = vmatprep.subr.bf16.mxu1 %v12533_v15 }
 0x873   : > { %12536 = vmatpush3.bf16.msra.mxu1 %v12533_v15 }
 0x874   : > { %12538 = vmatprep.subr.bf16.mxu1 %v12537_v62 }
 0x877   : > { %12540 = vmatpush3.bf16.msra.mxu1 %v12537_v62 }
 0x878   : > { %12542 = vmatprep.subr.bf16.mxu1 %v12541_v51 }
 0x87b   : > { %12544 = vmatpush3.bf16.msra.mxu1 %v12541_v51 }
 0x87c   : > { %12546 = vmatprep.subr.bf16.mxu1 %v12545_v38 }
 0x87f   : > { %12548 = vmatpush3.bf16.msra.mxu1 %v12545_v38 }
 0x880   : > { %12550 = vmatprep.subr.bf16.mxu1 %v12549_v9 }
 0x883   : > { %12552 = vmatpush3.bf16.msra.mxu1 %v12549_v9 }
 0x884   : > { %12554 = vmatprep.subr.bf16.mxu1 %v14899_v25 }
 0x886   : > { %11588 = vmatmul.mubr.f32.vlgmr.msra.gmra.mrb[10].mxu1 %v15104_v54 }
 0x887   : > { %12556 = vmatpush3.bf16.msra.mxu1 %v14899_v25  ;;  %11622 = vmatprep.mubr.f32.mxu1 %v15106_v4 }
 0x888   : > { %12558 = vmatprep.subr.bf16.mxu1 %v14907_v0 }
 0x88b   : > { %12560 = vmatpush3.bf16.msra.mxu1 %v14907_v0 }
 0x88c   : > { %12562 = vmatprep.subr.bf16.mxu1 %v14922_v20 }
 0x88f   : > { %12564 = vmatpush3.bf16.msra.mxu1 %v14922_v20 }
 0x890   : > { %12566 = vmatprep.subr.bf16.mxu1 %v14941_v34 }
 0x893   : > { %12568 = vmatpush3.bf16.msra.mxu1 %v14941_v34 }
 0x894   : > { %12570 = vmatprep.subr.bf16.mxu1 %v14964_v45 }
 0x897   : > { %12572 = vmatpush3.bf16.msra.mxu1 %v14964_v45 }
 0x898   : > { %12574 = vmatprep.subr.bf16.mxu1 %v14966_v22 }
 0x89b   : > { %12576 = vmatpush3.bf16.msra.mxu1 %v14966_v22 }
 0x89c   : > { %12578 = vmatprep.subr.bf16.mxu1 %v14971_v13 }
 0x89f   : > { %12580 = vmatpush3.bf16.msra.mxu1 %v14971_v13 }
 0x8a0   : > { %12582 = vmatprep.subr.bf16.mxu1 %v14987_v57 }
 0x8a3   : > { %12584 = vmatpush3.bf16.msra.mxu1 %v14987_v57 }
 0x8a6   : > { %11623 = vmatmul.mubr.f32.vlgmr.msra.gmra.mrb[10].mxu1 %v15104_v54 }
 0x979   : > { %v11624_v25 = vpop.f32.mrb[10].mxu1 }
 0x97a   : > { %9893 = vst [vmem:[%s313_s18 + $0x8] sm:$0xff] %v11624_v25  ;;  %v9882_v0 = vpop.f32.mrb[11].mxu1 }
 0x97b   : > { %9892 = vst [vmem:[%s313_s18] sm:$0xff] %v9882_v0 }
 0x97c   : > { %13007 = shalt.err (!%p13004_p4)
}
 0x97d   : > { %s13008_s19 = scalar_lea.hbm %s15259_s17, 256  ;;  %s13012_s10 = scalar_lea.hbm %s15309_s6, 512 }
 0x97e   : > { %p13009_p9 = scmp.ne.s32.totalorder %s15259_s17, %s13008_s19  ;;  %p13013_p8 = scmp.lt.u32.totalorder %s15259_s17, %s15309_s6 }
 0x97f   : > { %p13014_p13 = scmp.lt.u32.totalorder %s13012_s10, %s13008_s19  ;;  %p13016_p10 = scmp.lt.u32.totalorder %s13008_s19, %s15259_s17 }
 0x980   : > { %p13010_p0 = pnand %p13009_p9, %p13270_p5 }
 0x981   : > { %p13015_p6 = por %p13014_p13, %p13013_p8 }
 0x982   : > { %p13011_p11 = pneg %p13010_p0 }
 0x983   : > { %p13017_p3 = por %p13016_p10, %p13015_p6 }
 0x985   : > { %p13018_p7 = pnand %p13017_p3, %p13011_p11 }
 0x987   : > { %13021 = shalt.err (!%p13018_p7)
}
 0x988   : > { %s13085_s7 = smov 128   ;;  %s13086_s8 = smov 8  }
 0x989   : > { %12771 = dma.vmem_to_hbm [thread:$0]  (%p13270_p5), %s15254_s13, 256, %s15259_s17, %s9895_s1, %s13085_s7, %s13085_s7, %s13086_s8  }
 0x98a PF: > { %s9923_s14 = sand.u32 1, %s13056_s21   ;;  %p15550_p12 = scmp.ne.s32.totalorder %s15412_s28, 0 }
 0x98b   : > { %p15551_p2 = scmp.ge.s32.totalorder %s13068_s24, 2  ;;  %s9924_s27 = scalar_lea.sflag [#allocation4], %s9923_s14 }
 0x98d   : > { %p12788_p1 = pnand %p15551_p2, %p15550_p12 }
 0x98f   : > { %13051 = dma.done.wait (!%p12788_p1), %s9924_s27, 256  }
 0x990   : > { %13053 = vsyncadd (!%p12788_p1), %s9924_s27, 4294967040  ;;  %p21_p4 = scmp.ge.s32.totalorder %s13235_s12, 4   ;;  %s15552_s21 = smov %s13060_s22 }
 0x991   : > { %s15553_s22 = smov %s13064_s23  ;;  %s15554_s23 = smov %s13266_s30 }
 0x992   : > { %s15555_s24 = smov %s13235_s12  ;;  %23 = sbr.rel (!%p21_p4) target bundleno = 9 (0x9), region = 101 }
 0x999   :  { %9929 = vsyncpa [#allocation3], 1 }
 0x99a   :  { %9931 = vsyncpa [#allocation3 + $0x1], 1 }
 0x99b   :  { %9932 = vsyncpa [#allocation6], 1 }
 0x99c   :  { %9933 = vsyncpa [#allocation9], 1 }
 0x99d   :  { %9934 = vsyncpa [#allocation4], 1 }
 0x99e   :  { %9936 = vsyncpa [#allocation4 + $0x1], 1 }

</bundles_post_ra>
